<compile_context>
chip_gen: v7x
topology: tpu7x:2x2x1
jax: 0.10.0
libtpu: 0.0.40
codegen_flags: <defaults>
</compile_context>

<pallas_src>
import functools

import jax
import jax.numpy as jnp
from jax.experimental import pallas as pl
from jax.experimental.pallas import tpu as pltpu

nc = 3
ndf = 32
LRELU_SLOPE = 0.2
BN_EPS = 1e-5


def _round_up(x, m):
    return (x + m - 1) // m * m


# ----------------------------------------------------------------------------
# Pallas kernels
# ----------------------------------------------------------------------------
def _matmul_act_kernel(a_ref, b_ref, o_ref, *, act):
    # Full K contraction in one step -> no accumulator scratch / phase gating.
    # bf16 MXU inputs, f32 accumulation; activation fused in the epilogue.
    a = a_ref[...].astype(jnp.bfloat16)
    b = b_ref[...].astype(jnp.bfloat16)
    y = jnp.dot(a, b, preferred_element_type=jnp.float32)
    if act == "lrelu":
        y = jnp.where(y > 0, y, LRELU_SLOPE * y)
    elif act == "sigmoid":
        y = jax.nn.sigmoid(y)
    o_ref[...] = y.astype(o_ref.dtype)


def pallas_matmul(a, b, act="none"):
    """act(A @ B); full K/N per grid step, M tiled only when it is large."""
    M, K = a.shape
    K2, N = b.shape
    assert K == K2
    a = a.astype(jnp.float32)
    b = b.astype(jnp.float32)

    # Keep one tile's A+out blocks under ~2 MiB of f32.  At DCGAN / batch-2
    # sizes every layer is a single grid step whose block shapes equal the true
    # (unpadded) dims, so no padded-operand copies are created.
    max_rows = max(8, (2 * 1024 * 1024) // (4 * (K + N)))
    if M <= max_rows:
        tm, Mp = M, M
    else:
        tm = max(8, (max_rows // 8) * 8)
        Mp = _round_up(M, tm)
        if Mp != M:  # cheap row-only pad; padded rows are sliced off below
            a = jnp.zeros((Mp, K), jnp.float32).at[:M].set(a)

    out = pl.pallas_call(
        functools.partial(_matmul_act_kernel, act=act),
        out_shape=jax.ShapeDtypeStruct((Mp, N), jnp.float32),
        grid=(Mp // tm,),
        in_specs=[pl.BlockSpec((tm, K), lambda i: (i, 0)),
                  pl.BlockSpec((K, N), lambda i: (0, 0))],
        out_specs=pl.BlockSpec((tm, N), lambda i: (i, 0)),
        compiler_params=pltpu.CompilerParams(
            dimension_semantics=("parallel",)),
    )(a, b)
    return out[:M] if Mp != M else out


def _matmul_bn_lrelu_kernel(a_ref, b_ref, g_ref, bt_ref, o_ref):
    a = a_ref[...].astype(jnp.bfloat16)
    b = b_ref[...].astype(jnp.bfloat16)
    y = jnp.dot(a, b, preferred_element_type=jnp.float32)
    # nn.BatchNorm2d default (training-mode) forward: biased per-channel batch
    # statistics over all (N*H*W) rows, which live entirely in this block.
    mean = jnp.mean(y, axis=0, keepdims=True)
    var = jnp.mean(jnp.square(y - mean), axis=0, keepdims=True)
    scale = g_ref[...] * jax.lax.rsqrt(var + BN_EPS)
    z = (y - mean) * scale + bt_ref[...]
    o_ref[...] = jnp.where(z > 0, z, LRELU_SLOPE * z).astype(o_ref.dtype)


def pallas_matmul_bn_lrelu(a, b, gamma, beta):
    """leaky_relu(batchnorm(A @ B)); conv + BN + activation in one kernel."""
    M, K = a.shape
    K2, N = b.shape
    assert K == K2
    g = gamma.astype(jnp.float32).reshape(1, N)
    bt = beta.astype(jnp.float32).reshape(1, N)
    return pl.pallas_call(
        _matmul_bn_lrelu_kernel,
        out_shape=jax.ShapeDtypeStruct((M, N), jnp.float32),
        grid=(1,),
        in_specs=[pl.BlockSpec((M, K), lambda i: (0, 0)),
                  pl.BlockSpec((K, N), lambda i: (0, 0)),
                  pl.BlockSpec((1, N), lambda i: (0, 0)),
                  pl.BlockSpec((1, N), lambda i: (0, 0))],
        out_specs=pl.BlockSpec((M, N), lambda i: (0, 0)),
        compiler_params=pltpu.CompilerParams(
            dimension_semantics=("arbitrary",)),
    )(a.astype(jnp.float32), b.astype(jnp.float32), g, bt)


def _head_sigmoid_kernel(a_ref, w_ref, o_ref):
    # (M, K) @ (K, 1) with M=2: VPU multiply + lane reduction (avoids driving
    # the MXU with an N=1 matmul / padded 128-cube tiles); sigmoid fused.
    y = jnp.sum(a_ref[...] * w_ref[...], axis=1, keepdims=True)
    o_ref[...] = jax.nn.sigmoid(y).astype(o_ref.dtype)


def pallas_head_sigmoid(a, w_row):
    M, K = a.shape
    return pl.pallas_call(
        _head_sigmoid_kernel,
        out_shape=jax.ShapeDtypeStruct((M, 1), jnp.float32),
        grid=(1,),
        in_specs=[pl.BlockSpec((M, K), lambda i: (0, 0)),
                  pl.BlockSpec((1, K), lambda i: (0, 0))],
        out_specs=pl.BlockSpec((M, 1), lambda i: (0, 0)),
        compiler_params=pltpu.CompilerParams(
            dimension_semantics=("arbitrary",)),
    )(a.astype(jnp.float32), w_row.astype(jnp.float32))


# ----------------------------------------------------------------------------
# Conv glue built on the Pallas kernels
# ----------------------------------------------------------------------------
def _im2col(x, k, stride, pad):
    # TODO(synk): stride-2 window extraction stays in XLA glue; BlockSpec
    # cannot express strided (kh,kw) taps, and an in-kernel DMA gather is not
    # worth it at these sizes.
    N, H, W, C = x.shape
    xp = jnp.pad(x, ((0, 0), (pad, pad), (pad, pad), (0, 0)))
    Ho = (H + 2 * pad - k) // stride + 1
    Wo = (W + 2 * pad - k) // stride + 1
    cols = []
    for kh in range(k):
        for kw in range(k):
            cols.append(xp[:, kh:kh + stride * Ho:stride,
                           kw:kw + stride * Wo:stride, :])
    patches = jnp.concatenate(cols, axis=-1)          # (N, Ho, Wo, k*k*C)
    return patches.reshape(N * Ho * Wo, k * k * C), (N, Ho, Wo)


def _w_to_mat(w):
    # (Cout, Cin, k, k) -> (k*k*Cin, Cout) with (kh, kw, cin) row ordering,
    # matching the im2col patch ordering.
    cout, cin, k, _ = w.shape
    return jnp.transpose(w, (2, 3, 1, 0)).reshape(k * k * cin, cout)


def conv2d_act(x, w, stride, pad, act="none"):
    cout, cin, k, _ = w.shape
    cols, (N, Ho, Wo) = _im2col(x, k, stride, pad)
    y = pallas_matmul(cols, _w_to_mat(w), act=act)
    return y.reshape(N, Ho, Wo, cout)


def conv2d_bn_lrelu(x, w, gamma, beta, stride, pad):
    cout, cin, k, _ = w.shape
    cols, (N, Ho, Wo) = _im2col(x, k, stride, pad)
    y = pallas_matmul_bn_lrelu(cols, _w_to_mat(w), gamma, beta)
    return y.reshape(N, Ho, Wo, cout)


def conv2d_head_sigmoid(x, w, stride, pad):
    cout, cin, k, _ = w.shape
    assert cout == 1
    cols, (N, Ho, Wo) = _im2col(x, k, stride, pad)
    w_row = jnp.transpose(w, (2, 3, 1, 0)).reshape(1, k * k * cin)
    y = pallas_head_sigmoid(cols, w_row)
    return y.reshape(N, Ho, Wo, 1)


# ----------------------------------------------------------------------------
# Model
# ----------------------------------------------------------------------------
def init_params(key):
    ks = jax.random.split(key, 9)
    std = 0.02  # DCGAN-style deterministic synthetic init
    return {
        "w1": std * jax.random.normal(ks[0], (ndf, nc, 4, 4), jnp.float32),
        "w2": std * jax.random.normal(ks[1], (ndf * 2, ndf, 4, 4), jnp.float32),
        "w3": std * jax.random.normal(ks[2], (ndf * 4, ndf * 2, 4, 4), jnp.float32),
        "w4": std * jax.random.normal(ks[3], (ndf * 8, ndf * 4, 4, 4), jnp.float32),
        "w5": std * jax.random.normal(ks[4], (1, ndf * 8, 4, 4), jnp.float32),
        "g2": 1.0 + std * jax.random.normal(ks[5], (ndf * 2,), jnp.float32),
        "b2": jnp.zeros((ndf * 2,), jnp.float32),
        "g3": 1.0 + std * jax.random.normal(ks[6], (ndf * 4,), jnp.float32),
        "b3": jnp.zeros((ndf * 4,), jnp.float32),
        "g4": 1.0 + std * jax.random.normal(ks[7], (ndf * 8,), jnp.float32),
        "b4": jnp.zeros((ndf * 8,), jnp.float32),
    }


def discriminator_forward(params, x_nchw):
    x = jnp.transpose(x_nchw, (0, 2, 3, 1))                      # NCHW -> NHWC

    # Conv(3->32, 4, 2, 1) + LeakyReLU(0.2) fused into the matmul epilogue.
    y = conv2d_act(x, params["w1"], 2, 1, act="lrelu")
    # Conv + BatchNorm(train-mode batch stats) + LeakyReLU, fully fused.
    y = conv2d_bn_lrelu(y, params["w2"], params["g2"], params["b2"], 2, 1)
    y = conv2d_bn_lrelu(y, params["w3"], params["g3"], params["b3"], 2, 1)
    y = conv2d_bn_lrelu(y, params["w4"], params["g4"], params["b4"], 2, 1)
    # Head: Conv(256->1, 4, 1, 0) + Sigmoid -> (N, 1, 1, 1).
    y = conv2d_head_sigmoid(y, params["w5"], 1, 0)

    return jnp.transpose(y, (0, 3, 1, 2))                        # NHWC -> NCHW


if __name__ == "__main__":
    key = jax.random.PRNGKey(0)
    pkey, xkey = jax.random.split(key)
    params = init_params(pkey)
    # DCGAN discriminator expects 64x64 inputs so the 4x4/s1/p0 head yields 1x1.
    x = jax.random.normal(xkey, (2, nc, 64, 64), jnp.float32)

    out = jax.jit(discriminator_forward)(params, x)
    out = jax.block_until_ready(out)

    assert out.shape == (2, 1, 1, 1), out.shape
    assert bool(jnp.all(jnp.isfinite(out)))
    assert bool(jnp.all((out >= 0.0) & (out <= 1.0)))
    print("KERNEL_OK")
</pallas_src>

<mosaic_0001>
module attributes {stable_mosaic.version = 11 : i64} {
  func.func @_matmul_act_kernel(%arg0: i32, %arg1: memref<2048x48xf32, #tpu.memory_space<vmem>>, %arg2: memref<48x32xf32, #tpu.memory_space<vmem>>, %arg3: memref<2048x32xf32, #tpu.memory_space<vmem>>) attributes {dimension_semantics = [#tpu.dimension_semantics<parallel>], iteration_bounds = array<i64: 1>, scalar_prefetch = 0 : i64, scratch_operands = 0 : i64, tpu.core_type = #tpu.core_type<tc>, window_params = [{transform_indices = @transform_0, window_bounds = array<i64: 2048, 48>}, {pipeline_mode = #tpu.pipeline_mode<synchronous>, transform_indices = @transform_1, window_bounds = array<i64: 48, 32>}, {transform_indices = @transform_2, window_bounds = array<i64: 2048, 32>}]} {
    %c0 = arith.constant 0 : index
    %c0_0 = arith.constant 0 : index
    %0 = vector.load %arg1[%c0, %c0_0] : memref<2048x48xf32, #tpu.memory_space<vmem>>, vector<2048x48xf32>
    %1 = arith.truncf %0 : vector<2048x48xf32> to vector<2048x48xbf16>
    %c0_1 = arith.constant 0 : index
    %c0_2 = arith.constant 0 : index
    %2 = vector.load %arg2[%c0_1, %c0_2] : memref<48x32xf32, #tpu.memory_space<vmem>>, vector<48x32xf32>
    %3 = arith.truncf %2 : vector<48x32xf32> to vector<48x32xbf16>
    %cst = arith.constant dense<0.000000e+00> : vector<2048x32xf32>
    %4 = tpu.matmul %1, %3, %cst {dimension_numbers = #tpu.dot_dimension_numbers<[1], [0], [0], [1], [0, 0, 1, 1], [], []>} : vector<2048x48xbf16>, vector<48x32xbf16>, vector<2048x32xf32> -> vector<2048x32xf32>
    %cst_3 = arith.constant 0.000000e+00 : f32
    %5 = vector.broadcast %cst_3 : f32 to vector<2048x32xf32>
    %6 = arith.cmpf ogt, %4, %5 : vector<2048x32xf32>
    %cst_4 = arith.constant 2.000000e-01 : f32
    %7 = vector.broadcast %cst_4 : f32 to vector<2048x32xf32>
    %8 = arith.mulf %7, %4 : vector<2048x32xf32>
    %9 = arith.select %6, %4, %8 : vector<2048x32xi1>, vector<2048x32xf32>
    %c0_5 = arith.constant 0 : index
    %c0_6 = arith.constant 0 : index
    %10 = vector.load %arg3[%c0_5, %c0_6] : memref<2048x32xf32, #tpu.memory_space<vmem>>, vector<2048x32xf32>
    tpu.vector_store %arg3[%c0_5, %c0_6], %9 {strides = array<i32>} : memref<2048x32xf32, #tpu.memory_space<vmem>>, vector<2048x32xf32>,
    return
  }
  func.func @transform_0(%arg0: i32) -> (i32, i32) {
    %c0_i32 = arith.constant 0 : i32
    %c0_i32_0 = arith.constant 0 : i32
    return %arg0, %c0_i32 : i32, i32
  }
  func.func @transform_1(%arg0: i32) -> (i32, i32) {
    %c0_i32 = arith.constant 0 : i32
    %c0_i32_0 = arith.constant 0 : i32
    %c0_i32_1 = arith.constant 0 : i32
    return %c0_i32, %c0_i32_0 : i32, i32
  }
  func.func @transform_2(%arg0: i32) -> (i32, i32) {
    %c0_i32 = arith.constant 0 : i32
    %c0_i32_0 = arith.constant 0 : i32
    return %arg0, %c0_i32 : i32, i32
  }
}

module attributes {stable_mosaic.version = 11 : i64} {
  func.func @_matmul_bn_lrelu_kernel(%arg0: i32, %arg1: memref<512x512xf32, #tpu.memory_space<vmem>>, %arg2: memref<512x64xf32, #tpu.memory_space<vmem>>, %arg3: memref<1x64xf32, #tpu.memory_space<vmem>>, %arg4: memref<1x64xf32, #tpu.memory_space<vmem>>, %arg5: memref<512x64xf32, #tpu.memory_space<vmem>>) attributes {dimension_semantics = [#tpu.dimension_semantics<arbitrary>], iteration_bounds = array<i64: 1>, scalar_prefetch = 0 : i64, scratch_operands = 0 : i64, tpu.core_type = #tpu.core_type<tc>, window_params = [{pipeline_mode = #tpu.pipeline_mode<synchronous>, transform_indices = @transform_0, window_bounds = array<i64: 512, 512>}, {pipeline_mode = #tpu.pipeline_mode<synchronous>, transform_indices = @transform_1, window_bounds = array<i64: 512, 64>}, {pipeline_mode = #tpu.pipeline_mode<synchronous>, transform_indices = @transform_2, window_bounds = array<i64: 1, 64>}, {pipeline_mode = #tpu.pipeline_mode<synchronous>, transform_indices = @transform_3, window_bounds = array<i64: 1, 64>}, {pipeline_mode = #tpu.pipeline_mode<synchronous>, transform_indices = @transform_4, window_bounds = array<i64: 512, 64>}]} {
    %c0 = arith.constant 0 : index
    %c0_0 = arith.constant 0 : index
    %0 = vector.load %arg1[%c0, %c0_0] : memref<512x512xf32, #tpu.memory_space<vmem>>, vector<512x512xf32>
    %1 = arith.truncf %0 : vector<512x512xf32> to vector<512x512xbf16>
    %c0_1 = arith.constant 0 : index
    %c0_2 = arith.constant 0 : index
    %2 = vector.load %arg2[%c0_1, %c0_2] : memref<512x64xf32, #tpu.memory_space<vmem>>, vector<512x64xf32>
    %3 = arith.truncf %2 : vector<512x64xf32> to vector<512x64xbf16>
    %cst = arith.constant dense<0.000000e+00> : vector<512x64xf32>
    %4 = tpu.matmul %1, %3, %cst {dimension_numbers = #tpu.dot_dimension_numbers<[1], [0], [0], [1], [0, 0, 1, 1], [], []>} : vector<512x512xbf16>, vector<512x64xbf16>, vector<512x64xf32> -> vector<512x64xf32>
    %cst_3 = arith.constant dense<0.000000e+00> : vector<64xf32>
    %5 = vector.multi_reduction <add>, %4, %cst_3 [0] : vector<512x64xf32> to vector<64xf32>
    %6 = vector.shape_cast %5 : vector<64xf32> to vector<1x64xf32>
    %cst_4 = arith.constant 5.120000e+02 : f32
    %7 = vector.broadcast %cst_4 : f32 to vector<1x64xf32>
    %8 = arith.divf %6, %7 : vector<1x64xf32>
    %9 = vector.broadcast %8 : vector<1x64xf32> to vector<512x64xf32>
    %10 = arith.subf %4, %9 : vector<512x64xf32>
    %11 = arith.mulf %10, %10 : vector<512x64xf32>
    %cst_5 = arith.constant dense<0.000000e+00> : vector<64xf32>
    %12 = vector.multi_reduction <add>, %11, %cst_5 [0] : vector<512x64xf32> to vector<64xf32>
    %13 = vector.shape_cast %12 : vector<64xf32> to vector<1x64xf32>
    %cst_6 = arith.constant 5.120000e+02 : f32
    %14 = vector.broadcast %cst_6 : f32 to vector<1x64xf32>
    %15 = arith.divf %13, %14 : vector<1x64xf32>
    %c0_7 = arith.constant 0 : index
    %c0_8 = arith.constant 0 : index
    %16 = vector.load %arg3[%c0_7, %c0_8] : memref<1x64xf32, #tpu.memory_space<vmem>>, vector<1x64xf32>
    %cst_9 = arith.constant 9.99999974E-6 : f32
    %17 = vector.broadcast %cst_9 : f32 to vector<1x64xf32>
    %18 = arith.addf %15, %17 : vector<1x64xf32>
    %19 = math.rsqrt %18 : vector<1x64xf32>
    %20 = arith.mulf %16, %19 : vector<1x64xf32>
    %21 = vector.broadcast %8 : vector<1x64xf32> to vector<512x64xf32>
    %22 = arith.subf %4, %21 : vector<512x64xf32>
    %23 = vector.broadcast %20 : vector<1x64xf32> to vector<512x64xf32>
    %24 = arith.mulf %22, %23 : vector<512x64xf32>
    %c0_10 = arith.constant 0 : index
    %c0_11 = arith.constant 0 : index
    %25 = vector.load %arg4[%c0_10, %c0_11] : memref<1x64xf32, #tpu.memory_space<vmem>>, vector<1x64xf32>
    %26 = vector.broadcast %25 : vector<1x64xf32> to vector<512x64xf32>
    %27 = arith.addf %24, %26 : vector<512x64xf32>
    %cst_12 = arith.constant 0.000000e+00 : f32
    %28 = vector.broadcast %cst_12 : f32 to vector<512x64xf32>
    %29 = arith.cmpf ogt, %27, %28 : vector<512x64xf32>
    %cst_13 = arith.constant 2.000000e-01 : f32
    %30 = vector.broadcast %cst_13 : f32 to vector<512x64xf32>
    %31 = arith.mulf %30, %27 : vector<512x64xf32>
    %32 = arith.select %29, %27, %31 : vector<512x64xi1>, vector<512x64xf32>
    %c0_14 = arith.constant 0 : index
    %c0_15 = arith.constant 0 : index
    %33 = vector.load %arg5[%c0_14, %c0_15] : memref<512x64xf32, #tpu.memory_space<vmem>>, vector<512x64xf32>
    tpu.vector_store %arg5[%c0_14, %c0_15], %32 {strides = array<i32>} : memref<512x64xf32, #tpu.memory_space<vmem>>, vector<512x64xf32>,
    return
  }
  func.func @transform_0(%arg0: i32) -> (i32, i32) {
    %c0_i32 = arith.constant 0 : i32
    %c0_i32_0 = arith.constant 0 : i32
    %c0_i32_1 = arith.constant 0 : i32
    return %c0_i32, %c0_i32_0 : i32, i32
  }
  func.func @transform_1(%arg0: i32) -> (i32, i32) {
    %c0_i32 = arith.constant 0 : i32
    %c0_i32_0 = arith.constant 0 : i32
    %c0_i32_1 = arith.constant 0 : i32
    return %c0_i32, %c0_i32_0 : i32, i32
  }
  func.func @transform_2(%arg0: i32) -> (i32, i32) {
    %c0_i32 = arith.constant 0 : i32
    %c0_i32_0 = arith.constant 0 : i32
    %c0_i32_1 = arith.constant 0 : i32
    return %c0_i32, %c0_i32_0 : i32, i32
  }
  func.func @transform_3(%arg0: i32) -> (i32, i32) {
    %c0_i32 = arith.constant 0 : i32
    %c0_i32_0 = arith.constant 0 : i32
    %c0_i32_1 = arith.constant 0 : i32
    return %c0_i32, %c0_i32_0 : i32, i32
  }
  func.func @transform_4(%arg0: i32) -> (i32, i32) {
    %c0_i32 = arith.constant 0 : i32
    %c0_i32_0 = arith.constant 0 : i32
    %c0_i32_1 = arith.constant 0 : i32
    return %c0_i32, %c0_i32_0 : i32, i32
  }
}

module attributes {stable_mosaic.version = 11 : i64} {
  func.func @_matmul_bn_lrelu_kernel(%arg0: i32, %arg1: memref<128x1024xf32, #tpu.memory_space<vmem>>, %arg2: memref<1024x128xf32, #tpu.memory_space<vmem>>, %arg3: memref<1x128xf32, #tpu.memory_space<vmem>>, %arg4: memref<1x128xf32, #tpu.memory_space<vmem>>, %arg5: memref<128x128xf32, #tpu.memory_space<vmem>>) attributes {dimension_semantics = [#tpu.dimension_semantics<arbitrary>], iteration_bounds = array<i64: 1>, scalar_prefetch = 0 : i64, scratch_operands = 0 : i64, tpu.core_type = #tpu.core_type<tc>, window_params = [{pipeline_mode = #tpu.pipeline_mode<synchronous>, transform_indices = @transform_0, window_bounds = array<i64: 128, 1024>}, {pipeline_mode = #tpu.pipeline_mode<synchronous>, transform_indices = @transform_1, window_bounds = array<i64: 1024, 128>}, {pipeline_mode = #tpu.pipeline_mode<synchronous>, transform_indices = @transform_2, window_bounds = array<i64: 1, 128>}, {pipeline_mode = #tpu.pipeline_mode<synchronous>, transform_indices = @transform_3, window_bounds = array<i64: 1, 128>}, {pipeline_mode = #tpu.pipeline_mode<synchronous>, transform_indices = @transform_4, window_bounds = array<i64: 128, 128>}]} {
    %c0 = arith.constant 0 : index
    %c0_0 = arith.constant 0 : index
    %0 = vector.load %arg1[%c0, %c0_0] : memref<128x1024xf32, #tpu.memory_space<vmem>>, vector<128x1024xf32>
    %1 = arith.truncf %0 : vector<128x1024xf32> to vector<128x1024xbf16>
    %c0_1 = arith.constant 0 : index
    %c0_2 = arith.constant 0 : index
    %2 = vector.load %arg2[%c0_1, %c0_2] : memref<1024x128xf32, #tpu.memory_space<vmem>>, vector<1024x128xf32>
    %3 = arith.truncf %2 : vector<1024x128xf32> to vector<1024x128xbf16>
    %cst = arith.constant dense<0.000000e+00> : vector<128x128xf32>
    %4 = tpu.matmul %1, %3, %cst {dimension_numbers = #tpu.dot_dimension_numbers<[1], [0], [0], [1], [0, 0, 1, 1], [], []>} : vector<128x1024xbf16>, vector<1024x128xbf16>, vector<128x128xf32> -> vector<128x128xf32>
    %cst_3 = arith.constant dense<0.000000e+00> : vector<128xf32>
    %5 = vector.multi_reduction <add>, %4, %cst_3 [0] : vector<128x128xf32> to vector<128xf32>
    %6 = vector.shape_cast %5 : vector<128xf32> to vector<1x128xf32>
    %cst_4 = arith.constant 1.280000e+02 : f32
    %7 = vector.broadcast %cst_4 : f32 to vector<1x128xf32>
    %8 = arith.divf %6, %7 : vector<1x128xf32>
    %9 = vector.broadcast %8 : vector<1x128xf32> to vector<128x128xf32>
    %10 = arith.subf %4, %9 : vector<128x128xf32>
    %11 = arith.mulf %10, %10 : vector<128x128xf32>
    %cst_5 = arith.constant dense<0.000000e+00> : vector<128xf32>
    %12 = vector.multi_reduction <add>, %11, %cst_5 [0] : vector<128x128xf32> to vector<128xf32>
    %13 = vector.shape_cast %12 : vector<128xf32> to vector<1x128xf32>
    %cst_6 = arith.constant 1.280000e+02 : f32
    %14 = vector.broadcast %cst_6 : f32 to vector<1x128xf32>
    %15 = arith.divf %13, %14 : vector<1x128xf32>
    %c0_7 = arith.constant 0 : index
    %c0_8 = arith.constant 0 : index
    %16 = vector.load %arg3[%c0_7, %c0_8] : memref<1x128xf32, #tpu.memory_space<vmem>>, vector<1x128xf32>
    %cst_9 = arith.constant 9.99999974E-6 : f32
    %17 = vector.broadcast %cst_9 : f32 to vector<1x128xf32>
    %18 = arith.addf %15, %17 : vector<1x128xf32>
    %19 = math.rsqrt %18 : vector<1x128xf32>
    %20 = arith.mulf %16, %19 : vector<1x128xf32>
    %21 = vector.broadcast %8 : vector<1x128xf32> to vector<128x128xf32>
    %22 = arith.subf %4, %21 : vector<128x128xf32>
    %23 = vector.broadcast %20 : vector<1x128xf32> to vector<128x128xf32>
    %24 = arith.mulf %22, %23 : vector<128x128xf32>
    %c0_10 = arith.constant 0 : index
    %c0_11 = arith.constant 0 : index
    %25 = vector.load %arg4[%c0_10, %c0_11] : memref<1x128xf32, #tpu.memory_space<vmem>>, vector<1x128xf32>
    %26 = vector.broadcast %25 : vector<1x128xf32> to vector<128x128xf32>
    %27 = arith.addf %24, %26 : vector<128x128xf32>
    %cst_12 = arith.constant 0.000000e+00 : f32
    %28 = vector.broadcast %cst_12 : f32 to vector<128x128xf32>
    %29 = arith.cmpf ogt, %27, %28 : vector<128x128xf32>
    %cst_13 = arith.constant 2.000000e-01 : f32
    %30 = vector.broadcast %cst_13 : f32 to vector<128x128xf32>
    %31 = arith.mulf %30, %27 : vector<128x128xf32>
    %32 = arith.select %29, %27, %31 : vector<128x128xi1>, vector<128x128xf32>
    %c0_14 = arith.constant 0 : index
    %c0_15 = arith.constant 0 : index
    %33 = vector.load %arg5[%c0_14, %c0_15] : memref<128x128xf32, #tpu.memory_space<vmem>>, vector<128x128xf32>
    tpu.vector_store %arg5[%c0_14, %c0_15], %32 {strides = array<i32>} : memref<128x128xf32, #tpu.memory_space<vmem>>, vector<128x128xf32>,
    return
  }
  func.func @transform_0(%arg0: i32) -> (i32, i32) {
    %c0_i32 = arith.constant 0 : i32
    %c0_i32_0 = arith.constant 0 : i32
    %c0_i32_1 = arith.constant 0 : i32
    return %c0_i32, %c0_i32_0 : i32, i32
  }
  func.func @transform_1(%arg0: i32) -> (i32, i32) {
    %c0_i32 = arith.constant 0 : i32
    %c0_i32_0 = arith.constant 0 : i32
    %c0_i32_1 = arith.constant 0 : i32
    return %c0_i32, %c0_i32_0 : i32, i32
  }
  func.func @transform_2(%arg0: i32) -> (i32, i32) {
    %c0_i32 = arith.constant 0 : i32
    %c0_i32_0 = arith.constant 0 : i32
    %c0_i32_1 = arith.constant 0 : i32
    return %c0_i32, %c0_i32_0 : i32, i32
  }
  func.func @transform_3(%arg0: i32) -> (i32, i32) {
    %c0_i32 = arith.constant 0 : i32
    %c0_i32_0 = arith.constant 0 : i32
    %c0_i32_1 = arith.constant 0 : i32
    return %c0_i32, %c0_i32_0 : i32, i32
  }
  func.func @transform_4(%arg0: i32) -> (i32, i32) {
    %c0_i32 = arith.constant 0 : i32
    %c0_i32_0 = arith.constant 0 : i32
    %c0_i32_1 = arith.constant 0 : i32
    return %c0_i32, %c0_i32_0 : i32, i32
  }
}

module attributes {stable_mosaic.version = 11 : i64} {
  func.func @_matmul_bn_lrelu_kernel(%arg0: i32, %arg1: memref<32x2048xf32, #tpu.memory_space<vmem>>, %arg2: memref<2048x256xf32, #tpu.memory_space<vmem>>, %arg3: memref<1x256xf32, #tpu.memory_space<vmem>>, %arg4: memref<1x256xf32, #tpu.memory_space<vmem>>, %arg5: memref<32x256xf32, #tpu.memory_space<vmem>>) attributes {dimension_semantics = [#tpu.dimension_semantics<arbitrary>], iteration_bounds = array<i64: 1>, scalar_prefetch = 0 : i64, scratch_operands = 0 : i64, tpu.core_type = #tpu.core_type<tc>, window_params = [{pipeline_mode = #tpu.pipeline_mode<synchronous>, transform_indices = @transform_0, window_bounds = array<i64: 32, 2048>}, {pipeline_mode = #tpu.pipeline_mode<synchronous>, transform_indices = @transform_1, window_bounds = array<i64: 2048, 256>}, {pipeline_mode = #tpu.pipeline_mode<synchronous>, transform_indices = @transform_2, window_bounds = array<i64: 1, 256>}, {pipeline_mode = #tpu.pipeline_mode<synchronous>, transform_indices = @transform_3, window_bounds = array<i64: 1, 256>}, {pipeline_mode = #tpu.pipeline_mode<synchronous>, transform_indices = @transform_4, window_bounds = array<i64: 32, 256>}]} {
    %c0 = arith.constant 0 : index
    %c0_0 = arith.constant 0 : index
    %0 = vector.load %arg1[%c0, %c0_0] : memref<32x2048xf32, #tpu.memory_space<vmem>>, vector<32x2048xf32>
    %1 = arith.truncf %0 : vector<32x2048xf32> to vector<32x2048xbf16>
    %c0_1 = arith.constant 0 : index
    %c0_2 = arith.constant 0 : index
    %2 = vector.load %arg2[%c0_1, %c0_2] : memref<2048x256xf32, #tpu.memory_space<vmem>>, vector<2048x256xf32>
    %3 = arith.truncf %2 : vector<2048x256xf32> to vector<2048x256xbf16>
    %cst = arith.constant dense<0.000000e+00> : vector<32x256xf32>
    %4 = tpu.matmul %1, %3, %cst {dimension_numbers = #tpu.dot_dimension_numbers<[1], [0], [0], [1], [0, 0, 1, 1], [], []>} : vector<32x2048xbf16>, vector<2048x256xbf16>, vector<32x256xf32> -> vector<32x256xf32>
    %cst_3 = arith.constant dense<0.000000e+00> : vector<256xf32>
    %5 = vector.multi_reduction <add>, %4, %cst_3 [0] : vector<32x256xf32> to vector<256xf32>
    %6 = vector.shape_cast %5 : vector<256xf32> to vector<1x256xf32>
    %cst_4 = arith.constant 3.200000e+01 : f32
    %7 = vector.broadcast %cst_4 : f32 to vector<1x256xf32>
    %8 = arith.divf %6, %7 : vector<1x256xf32>
    %9 = vector.broadcast %8 : vector<1x256xf32> to vector<32x256xf32>
    %10 = arith.subf %4, %9 : vector<32x256xf32>
    %11 = arith.mulf %10, %10 : vector<32x256xf32>
    %cst_5 = arith.constant dense<0.000000e+00> : vector<256xf32>
    %12 = vector.multi_reduction <add>, %11, %cst_5 [0] : vector<32x256xf32> to vector<256xf32>
    %13 = vector.shape_cast %12 : vector<256xf32> to vector<1x256xf32>
    %cst_6 = arith.constant 3.200000e+01 : f32
    %14 = vector.broadcast %cst_6 : f32 to vector<1x256xf32>
    %15 = arith.divf %13, %14 : vector<1x256xf32>
    %c0_7 = arith.constant 0 : index
    %c0_8 = arith.constant 0 : index
    %16 = vector.load %arg3[%c0_7, %c0_8] : memref<1x256xf32, #tpu.memory_space<vmem>>, vector<1x256xf32>
    %cst_9 = arith.constant 9.99999974E-6 : f32
    %17 = vector.broadcast %cst_9 : f32 to vector<1x256xf32>
    %18 = arith.addf %15, %17 : vector<1x256xf32>
    %19 = math.rsqrt %18 : vector<1x256xf32>
    %20 = arith.mulf %16, %19 : vector<1x256xf32>
    %21 = vector.broadcast %8 : vector<1x256xf32> to vector<32x256xf32>
    %22 = arith.subf %4, %21 : vector<32x256xf32>
    %23 = vector.broadcast %20 : vector<1x256xf32> to vector<32x256xf32>
    %24 = arith.mulf %22, %23 : vector<32x256xf32>
    %c0_10 = arith.constant 0 : index
    %c0_11 = arith.constant 0 : index
    %25 = vector.load %arg4[%c0_10, %c0_11] : memref<1x256xf32, #tpu.memory_space<vmem>>, vector<1x256xf32>
    %26 = vector.broadcast %25 : vector<1x256xf32> to vector<32x256xf32>
    %27 = arith.addf %24, %26 : vector<32x256xf32>
    %cst_12 = arith.constant 0.000000e+00 : f32
    %28 = vector.broadcast %cst_12 : f32 to vector<32x256xf32>
    %29 = arith.cmpf ogt, %27, %28 : vector<32x256xf32>
    %cst_13 = arith.constant 2.000000e-01 : f32
    %30 = vector.broadcast %cst_13 : f32 to vector<32x256xf32>
    %31 = arith.mulf %30, %27 : vector<32x256xf32>
    %32 = arith.select %29, %27, %31 : vector<32x256xi1>, vector<32x256xf32>
    %c0_14 = arith.constant 0 : index
    %c0_15 = arith.constant 0 : index
    %33 = vector.load %arg5[%c0_14, %c0_15] : memref<32x256xf32, #tpu.memory_space<vmem>>, vector<32x256xf32>
    tpu.vector_store %arg5[%c0_14, %c0_15], %32 {strides = array<i32>} : memref<32x256xf32, #tpu.memory_space<vmem>>, vector<32x256xf32>,
    return
  }
  func.func @transform_0(%arg0: i32) -> (i32, i32) {
    %c0_i32 = arith.constant 0 : i32
    %c0_i32_0 = arith.constant 0 : i32
    %c0_i32_1 = arith.constant 0 : i32
    return %c0_i32, %c0_i32_0 : i32, i32
  }
  func.func @transform_1(%arg0: i32) -> (i32, i32) {
    %c0_i32 = arith.constant 0 : i32
    %c0_i32_0 = arith.constant 0 : i32
    %c0_i32_1 = arith.constant 0 : i32
    return %c0_i32, %c0_i32_0 : i32, i32
  }
  func.func @transform_2(%arg0: i32) -> (i32, i32) {
    %c0_i32 = arith.constant 0 : i32
    %c0_i32_0 = arith.constant 0 : i32
    %c0_i32_1 = arith.constant 0 : i32
    return %c0_i32, %c0_i32_0 : i32, i32
  }
  func.func @transform_3(%arg0: i32) -> (i32, i32) {
    %c0_i32 = arith.constant 0 : i32
    %c0_i32_0 = arith.constant 0 : i32
    %c0_i32_1 = arith.constant 0 : i32
    return %c0_i32, %c0_i32_0 : i32, i32
  }
  func.func @transform_4(%arg0: i32) -> (i32, i32) {
    %c0_i32 = arith.constant 0 : i32
    %c0_i32_0 = arith.constant 0 : i32
    %c0_i32_1 = arith.constant 0 : i32
    return %c0_i32, %c0_i32_0 : i32, i32
  }
}

module attributes {stable_mosaic.version = 11 : i64} {
  func.func @_head_sigmoid_kernel(%arg0: i32, %arg1: memref<2x4096xf32, #tpu.memory_space<vmem>>, %arg2: memref<1x4096xf32, #tpu.memory_space<vmem>>, %arg3: memref<2x1xf32, #tpu.memory_space<vmem>>) attributes {dimension_semantics = [#tpu.dimension_semantics<arbitrary>], iteration_bounds = array<i64: 1>, scalar_prefetch = 0 : i64, scratch_operands = 0 : i64, tpu.core_type = #tpu.core_type<tc>, window_params = [{pipeline_mode = #tpu.pipeline_mode<synchronous>, transform_indices = @transform_0, window_bounds = array<i64: 2, 4096>}, {pipeline_mode = #tpu.pipeline_mode<synchronous>, transform_indices = @transform_1, window_bounds = array<i64: 1, 4096>}, {pipeline_mode = #tpu.pipeline_mode<synchronous>, transform_indices = @transform_2, window_bounds = array<i64: 2, 1>}]} {
    %c0 = arith.constant 0 : index
    %c0_0 = arith.constant 0 : index
    %0 = vector.load %arg1[%c0, %c0_0] : memref<2x4096xf32, #tpu.memory_space<vmem>>, vector<2x4096xf32>
    %c0_1 = arith.constant 0 : index
    %c0_2 = arith.constant 0 : index
    %1 = vector.load %arg2[%c0_1, %c0_2] : memref<1x4096xf32, #tpu.memory_space<vmem>>, vector<1x4096xf32>
    %2 = vector.broadcast %1 : vector<1x4096xf32> to vector<2x4096xf32>
    %3 = arith.mulf %0, %2 : vector<2x4096xf32>
    %cst = arith.constant dense<0.000000e+00> : vector<2xf32>
    %4 = vector.multi_reduction <add>, %3, %cst [1] : vector<2x4096xf32> to vector<2xf32>
    %5 = vector.shape_cast %4 : vector<2xf32> to vector<2x1xf32>
    %6 = arith.negf %5 : vector<2x1xf32>
    %7 = math.exp %6 : vector<2x1xf32>
    %cst_3 = arith.constant 1.000000e+00 : f32
    %8 = vector.broadcast %cst_3 : f32 to vector<2x1xf32>
    %9 = arith.addf %8, %7 : vector<2x1xf32>
    %10 = arith.divf %8, %9 : vector<2x1xf32>
    %c0_4 = arith.constant 0 : index
    %c0_5 = arith.constant 0 : index
    %11 = vector.load %arg3[%c0_4, %c0_5] : memref<2x1xf32, #tpu.memory_space<vmem>>, vector<2x1xf32>
    tpu.vector_store %arg3[%c0_4, %c0_5], %10 {strides = array<i32>} : memref<2x1xf32, #tpu.memory_space<vmem>>, vector<2x1xf32>,
    return
  }
  func.func @transform_0(%arg0: i32) -> (i32, i32) {
    %c0_i32 = arith.constant 0 : i32
    %c0_i32_0 = arith.constant 0 : i32
    %c0_i32_1 = arith.constant 0 : i32
    return %c0_i32, %c0_i32_0 : i32, i32
  }
  func.func @transform_1(%arg0: i32) -> (i32, i32) {
    %c0_i32 = arith.constant 0 : i32
    %c0_i32_0 = arith.constant 0 : i32
    %c0_i32_1 = arith.constant 0 : i32
    return %c0_i32, %c0_i32_0 : i32, i32
  }
  func.func @transform_2(%arg0: i32) -> (i32, i32) {
    %c0_i32 = arith.constant 0 : i32
    %c0_i32_0 = arith.constant 0 : i32
    %c0_i32_1 = arith.constant 0 : i32
    return %c0_i32, %c0_i32_0 : i32, i32
  }
}

</mosaic_0001>

<bundles_post_ra>
// kernel: discriminator_forward.5
= control target key start
LH: loop header
LB: loop body
LE: loop exit
PB: predicated region body
PF: predicated region fallthrough
CT: control target
= control target key end

     0   :  { %vm405_vm0 = vcmask 392192   ;;  %vm2615_vm1 = vcmask 261120   ;;  %s5418_s1 = inlined_call_operand.vmem [shape: f32[48,32], index: 1, kind: input, shape index: {}]   ;;  %s5419_s0 = inlined_call_operand.vmem [shape: f32[2048,48], index: 0, kind: input, shape index: {}]   ;;  %s5420_s2 = inlined_call_operand.vmem [shape: f32[2048,32], index: 2, kind: output, shape index: {}]  }
   0x1   :  { %v396_v0 = vld [vmem:[%s5418_s1] sm:$0xff]  ;;  %v397_v1 = vld [vmem:[%s5418_s1 + $0x8] sm:$0xff]  ;;  %v398_v2 = vld [vmem:[%s5418_s1 + $0x10] sm:$0xff] }
   0x2   :  { %v402_v3 = vpack.c.bf16 %v397_v1, %v396_v0  ;;  %v399_v4 = vld [vmem:[%s5418_s1 + $0x18] sm:$0xff]  ;;  %v400_v5 = vld [vmem:[%s5418_s1 + $0x20] sm:$0xff]  ;;  %v401_v6 = vld [vmem:[%s5418_s1 + $0x28] sm:$0xff] }
   0x3   :  { %v403_v7 = vpack.c.bf16 %v399_v4, %v398_v2  ;;  %v12_v8 = vld [vmem:[%s5419_s0] sm:$0xff]  ;;  %v13_v9 = vld [vmem:[%s5419_s0 + $0x8] sm:$0xff]  ;;  %v404_v14 = vpack.c.bf16 %v401_v6, %v400_v5  ;;  %v14_v15 = vld [vmem:[%s5419_s0 + $0x10] sm:$0xff] }
   0x4   :  { %v140_v10 = vld [vmem:[%s5419_s0 + $0x400] sm:$0xff]  ;;  %3135 = vmatprep.subr.bf16.mxu0 %v402_v3  ;;  %3397 = vmatprep.subr.bf16.mxu1 %v402_v3  ;;  %v268_v11 = vpack.c.bf16 %v13_v9, %v12_v8  ;;  %v141_v12 = vld [vmem:[%s5419_s0 + $0x408] sm:$0xff]  ;;  %v15_v16 = vld [vmem:[%s5419_s0 + $0x18] sm:$0xff] }
   0x5   :  { %3136 = vmatpush3.bf16.msra.mxu0 %v402_v3  ;;  %3400 = vmatpush3.bf16.msra.mxu1 %v402_v3  ;;  %v332_v13 = vpack.c.bf16 %v141_v12, %v140_v10  ;;  %v142_v17 = vld [vmem:[%s5419_s0 + $0x410] sm:$0xff]  ;;  %v143_v18 = vld [vmem:[%s5419_s0 + $0x418] sm:$0xff]  ;;  %v16_v19 = vld [vmem:[%s5419_s0 + $0x20] sm:$0xff]  ;;  %v269_v23 = vpack.c.bf16 %v15_v16, %v14_v15 }
   0x6   :  { %3137 = vmatprep.subr.bf16.mxu0 %v403_v7  ;;  %3398 = vmatprep.subr.bf16.mxu1 %v403_v7  ;;  %v17_v20 = vld [vmem:[%s5419_s0 + $0x28] sm:$0xff]  ;;  %v144_v21 = vld [vmem:[%s5419_s0 + $0x420] sm:$0xff]  ;;  %v333_v24 = vpack.c.bf16 %v143_v18, %v142_v17  ;;  %v18_v27 = vld [vmem:[%s5419_s0 + $0x30] sm:$0xff] }
   0x7   :  { %3141 = vmatprep.mubr.msk.bf16.mxu0 %vm405_vm0, %v268_v11  ;;  %3269 = vmatprep.mubr.msk.bf16.mxu1 %vm405_vm0, %v332_v13  ;;  %v145_v22 = vld [vmem:[%s5419_s0 + $0x428] sm:$0xff]  ;;  %v270_v25 = vpack.c.bf16 %v17_v20, %v16_v19  ;;  %v19_v28 = vld [vmem:[%s5419_s0 + $0x38] sm:$0xff]  ;;  %v146_v29 = vld [vmem:[%s5419_s0 + $0x430] sm:$0xff] }
   0x8   :  { %v334_v26 = vpack.c.bf16 %v145_v22, %v144_v21  ;;  %v147_v30 = vld [vmem:[%s5419_s0 + $0x438] sm:$0xff]  ;;  %v20_v31 = vld [vmem:[%s5419_s0 + $0x40] sm:$0xff]  ;;  %v21_v32 = vld [vmem:[%s5419_s0 + $0x48] sm:$0xff]  ;;  %v271_v35 = vpack.c.bf16 %v19_v28, %v18_v27 }
   0x9   :  { %3138 = vmatpush3.bf16.msra.mxu0 %v403_v7  ;;  %3401 = vmatpush3.bf16.msra.mxu1 %v403_v7  ;;  %v148_v33 = vld [vmem:[%s5419_s0 + $0x440] sm:$0xff]  ;;  %v149_v34 = vld [vmem:[%s5419_s0 + $0x448] sm:$0xff]  ;;  %v335_v36 = vpack.c.bf16 %v147_v30, %v146_v29  ;;  %v272_v37 = vpack.c.bf16 %v21_v32, %v20_v31  ;;  %v22_v39 = vld [vmem:[%s5419_s0 + $0x50] sm:$0xff] }
   0xa   :  { %3139 = vmatprep.subr.bf16.mxu0 %v404_v14  ;;  %3399 = vmatprep.subr.bf16.mxu1 %v404_v14  ;;  %v336_v38 = vpack.c.bf16 %v149_v34, %v148_v33  ;;  %v23_v40 = vld [vmem:[%s5419_s0 + $0x58] sm:$0xff]  ;;  %v150_v41 = vld [vmem:[%s5419_s0 + $0x450] sm:$0xff]  ;;  %v24_v43 = vld [vmem:[%s5419_s0 + $0x60] sm:$0xff] }
   0xb   :  { %v151_v42 = vld [vmem:[%s5419_s0 + $0x458] sm:$0xff]  ;;  %v25_v44 = vld [vmem:[%s5419_s0 + $0x68] sm:$0xff]  ;;  %v152_v45 = vld [vmem:[%s5419_s0 + $0x460] sm:$0xff]  ;;  %v273_v47 = vpack.c.bf16 %v23_v40, %v22_v39 }
   0xc   :  { %v153_v46 = vld [vmem:[%s5419_s0 + $0x468] sm:$0xff]  ;;  %v337_v48 = vpack.c.bf16 %v151_v42, %v150_v41  ;;  %v274_v49 = vpack.c.bf16 %v25_v44, %v24_v43  ;;  %v26_v51 = vld [vmem:[%s5419_s0 + $0x70] sm:$0xff]  ;;  %v27_v52 = vld [vmem:[%s5419_s0 + $0x78] sm:$0xff] }
   0xd   :  { %3140 = vmatpush3.bf16.msra.mxu0 %v404_v14  ;;  %3402 = vmatpush3.bf16.msra.mxu1 %v404_v14  ;;  %v338_v50 = vpack.c.bf16 %v153_v46, %v152_v45  ;;  %v154_v53 = vld [vmem:[%s5419_s0 + $0x470] sm:$0xff]  ;;  %v155_v54 = vld [vmem:[%s5419_s0 + $0x478] sm:$0xff]  ;;  %v28_v55 = vld [vmem:[%s5419_s0 + $0x80] sm:$0xff]  ;;  %v275_v59 = vpack.c.bf16 %v27_v52, %v26_v51 }
   0xe   :  { %v29_v56 = vld [vmem:[%s5419_s0 + $0x88] sm:$0xff]  ;;  %v156_v57 = vld [vmem:[%s5419_s0 + $0x480] sm:$0xff]  ;;  %v339_v60 = vpack.c.bf16 %v155_v54, %v154_v53  ;;  %v30_v63 = vld [vmem:[%s5419_s0 + $0x90] sm:$0xff] }
   0xf   :  { %v157_v58 = vld [vmem:[%s5419_s0 + $0x488] sm:$0xff]  ;;  %v276_v61 = vpack.c.bf16 %v29_v56, %v28_v55  ;;  %v31_v0 = vld [vmem:[%s5419_s0 + $0x98] sm:$0xff]  ;;  %v158_v1 = vld [vmem:[%s5419_s0 + $0x490] sm:$0xff] }
  0x10   :  { %3142 = vmatmul.mubr.msk.bf16.vlgmr.msra.gmra.mrb[0].mxu0 %vm405_vm0, %v269_v23  ;;  %3270 = vmatmul.mubr.msk.bf16.vlgmr.msra.gmra.mrb[0].mxu1 %vm405_vm0, %v333_v24  ;;  %v340_v62 = vpack.c.bf16 %v157_v58, %v156_v57  ;;  %v159_v2 = vld [vmem:[%s5419_s0 + $0x498] sm:$0xff]  ;;  %v32_v3 = vld [vmem:[%s5419_s0 + $0xa0] sm:$0xff]  ;;  %v33_v4 = vld [vmem:[%s5419_s0 + $0xa8] sm:$0xff]  ;;  %v277_v7 = vpack.c.bf16 %v31_v0, %v30_v63 }
  0x11   :  { %3145 = vmatprep.mubr.msk.bf16.mxu0 %vm405_vm0, %v270_v25  ;;  %3273 = vmatprep.mubr.msk.bf16.mxu1 %vm405_vm0, %v334_v26  ;;  %v160_v5 = vld [vmem:[%s5419_s0 + $0x4a0] sm:$0xff]  ;;  %v161_v6 = vld [vmem:[%s5419_s0 + $0x4a8] sm:$0xff]  ;;  %v341_v8 = vpack.c.bf16 %v159_v2, %v158_v1  ;;  %v278_v9 = vpack.c.bf16 %v33_v4, %v32_v3  ;;  %v34_v11 = vld [vmem:[%s5419_s0 + $0xb0] sm:$0xff] }
  0x12   :  { %v342_v10 = vpack.c.bf16 %v161_v6, %v160_v5  ;;  %v35_v12 = vld [vmem:[%s5419_s0 + $0xb8] sm:$0xff]  ;;  %v162_v13 = vld [vmem:[%s5419_s0 + $0x4b0] sm:$0xff]  ;;  %v36_v15 = vld [vmem:[%s5419_s0 + $0xc0] sm:$0xff] }
  0x13   :  { %v163_v14 = vld [vmem:[%s5419_s0 + $0x4b8] sm:$0xff]  ;;  %v37_v16 = vld [vmem:[%s5419_s0 + $0xc8] sm:$0xff]  ;;  %v164_v17 = vld [vmem:[%s5419_s0 + $0x4c0] sm:$0xff]  ;;  %v279_v19 = vpack.c.bf16 %v35_v12, %v34_v11 }
  0x14   :  { %v165_v18 = vld [vmem:[%s5419_s0 + $0x4c8] sm:$0xff]  ;;  %v343_v20 = vpack.c.bf16 %v163_v14, %v162_v13  ;;  %v280_v21 = vpack.c.bf16 %v37_v16, %v36_v15  ;;  %v38_v23 = vld [vmem:[%s5419_s0 + $0xd0] sm:$0xff]  ;;  %v39_v24 = vld [vmem:[%s5419_s0 + $0xd8] sm:$0xff] }
  0x15   :  { %v344_v22 = vpack.c.bf16 %v165_v18, %v164_v17  ;;  %v166_v25 = vld [vmem:[%s5419_s0 + $0x4d0] sm:$0xff]  ;;  %v167_v26 = vld [vmem:[%s5419_s0 + $0x4d8] sm:$0xff]  ;;  %v40_v27 = vld [vmem:[%s5419_s0 + $0xe0] sm:$0xff]  ;;  %v281_v31 = vpack.c.bf16 %v39_v24, %v38_v23 }
  0x16   :  { %v41_v28 = vld [vmem:[%s5419_s0 + $0xe8] sm:$0xff]  ;;  %v168_v29 = vld [vmem:[%s5419_s0 + $0x4e0] sm:$0xff]  ;;  %v345_v32 = vpack.c.bf16 %v167_v26, %v166_v25 }
  0x17   :  { %v169_v30 = vld [vmem:[%s5419_s0 + $0x4e8] sm:$0xff]  ;;  %v282_v33 = vpack.c.bf16 %v41_v28, %v40_v27  ;;  %v44_v39 = vld [vmem:[%s5419_s0 + $0x100] sm:$0xff] }
  0x18   :  { %3146 = vmatmul.mubr.msk.bf16.gmra.mrb[4].mxu0 %vm405_vm0, %v271_v35  ;;  %3274 = vmatmul.mubr.msk.bf16.gmra.mrb[4].mxu1 %vm405_vm0, %v335_v36  ;;  %v346_v34 = vpack.c.bf16 %v169_v30, %v168_v29  ;;  %v42_v35 = vld [vmem:[%s5419_s0 + $0xf0] sm:$0xff]  ;;  %v43_v36 = vld [vmem:[%s5419_s0 + $0xf8] sm:$0xff]  ;;  %v45_v40 = vld [vmem:[%s5419_s0 + $0x108] sm:$0xff] }
  0x19   :  { %3149 = vmatprep.mubr.msk.bf16.mxu0 %vm405_vm0, %v272_v37  ;;  %3277 = vmatprep.mubr.msk.bf16.mxu1 %vm405_vm0, %v336_v38  ;;  %v170_v37 = vld [vmem:[%s5419_s0 + $0x4f0] sm:$0xff]  ;;  %v171_v38 = vld [vmem:[%s5419_s0 + $0x4f8] sm:$0xff]  ;;  %v172_v41 = vld [vmem:[%s5419_s0 + $0x500] sm:$0xff]  ;;  %v283_v43 = vpack.c.bf16 %v43_v36, %v42_v35  ;;  %v284_v45 = vpack.c.bf16 %v45_v40, %v44_v39 }
  0x1a   :  { %v173_v42 = vld [vmem:[%s5419_s0 + $0x508] sm:$0xff]  ;;  %v347_v44 = vpack.c.bf16 %v171_v38, %v170_v37  ;;  %v48_v51 = vld [vmem:[%s5419_s0 + $0x120] sm:$0xff] }
  0x1b   :  { %v348_v46 = vpack.c.bf16 %v173_v42, %v172_v41  ;;  %v49_v52 = vld [vmem:[%s5419_s0 + $0x128] sm:$0xff]  ;;  %v176_v53 = vld [vmem:[%s5419_s0 + $0x520] sm:$0xff] }
  0x1c   :  { %v177_v54 = vld [vmem:[%s5419_s0 + $0x528] sm:$0xff]  ;;  %v286_v57 = vpack.c.bf16 %v49_v52, %v48_v51  ;;  %v52_v63 = vld [vmem:[%s5419_s0 + $0x140] sm:$0xff] }
  0x1d   :  { %v350_v58 = vpack.c.bf16 %v177_v54, %v176_v53  ;;  %v53_v0 = vld [vmem:[%s5419_s0 + $0x148] sm:$0xff]  ;;  %v180_v1 = vld [vmem:[%s5419_s0 + $0x540] sm:$0xff] }
  0x1e   :  { %v181_v2 = vld [vmem:[%s5419_s0 + $0x548] sm:$0xff]  ;;  %v288_v5 = vpack.c.bf16 %v53_v0, %v52_v63  ;;  %v56_v11 = vld [vmem:[%s5419_s0 + $0x160] sm:$0xff] }
  0x1f   :  { %v352_v6 = vpack.c.bf16 %v181_v2, %v180_v1  ;;  %v57_v12 = vld [vmem:[%s5419_s0 + $0x168] sm:$0xff]  ;;  %v184_v13 = vld [vmem:[%s5419_s0 + $0x560] sm:$0xff] }
  0x20   :  { %3150 = vmatmul.mubr.msk.bf16.gmra.mrb[8].mxu0 %vm405_vm0, %v273_v47  ;;  %3278 = vmatmul.mubr.msk.bf16.gmra.mrb[8].mxu1 %vm405_vm0, %v337_v48  ;;  %v46_v47 = vld [vmem:[%s5419_s0 + $0x110] sm:$0xff]  ;;  %v47_v48 = vld [vmem:[%s5419_s0 + $0x118] sm:$0xff]  ;;  %v185_v14 = vld [vmem:[%s5419_s0 + $0x568] sm:$0xff]  ;;  %v290_v17 = vpack.c.bf16 %v57_v12, %v56_v11 }
  0x21   :  { %3153 = vmatprep.mubr.msk.bf16.mxu0 %vm405_vm0, %v274_v49  ;;  %3281 = vmatprep.mubr.msk.bf16.mxu1 %vm405_vm0, %v338_v50  ;;  %v174_v49 = vld [vmem:[%s5419_s0 + $0x510] sm:$0xff]  ;;  %v175_v50 = vld [vmem:[%s5419_s0 + $0x518] sm:$0xff]  ;;  %v285_v55 = vpack.c.bf16 %v47_v48, %v46_v47  ;;  %v354_v18 = vpack.c.bf16 %v185_v14, %v184_v13  ;;  %v60_v23 = vld [vmem:[%s5419_s0 + $0x180] sm:$0xff] }
  0x22   :  { %v349_v56 = vpack.c.bf16 %v175_v50, %v174_v49  ;;  %v61_v24 = vld [vmem:[%s5419_s0 + $0x188] sm:$0xff]  ;;  %v188_v25 = vld [vmem:[%s5419_s0 + $0x580] sm:$0xff] }
  0x23   :  { %v189_v26 = vld [vmem:[%s5419_s0 + $0x588] sm:$0xff]  ;;  %v292_v29 = vpack.c.bf16 %v61_v24, %v60_v23  ;;  %v64_v35 = vld [vmem:[%s5419_s0 + $0x1a0] sm:$0xff] }
  0x24   :  { %v356_v30 = vpack.c.bf16 %v189_v26, %v188_v25  ;;  %v65_v36 = vld [vmem:[%s5419_s0 + $0x1a8] sm:$0xff]  ;;  %v192_v37 = vld [vmem:[%s5419_s0 + $0x5a0] sm:$0xff] }
  0x25   :  { %v193_v38 = vld [vmem:[%s5419_s0 + $0x5a8] sm:$0xff]  ;;  %v294_v41 = vpack.c.bf16 %v65_v36, %v64_v35  ;;  %v68_v47 = vld [vmem:[%s5419_s0 + $0x1c0] sm:$0xff] }
  0x26   :  { %v358_v42 = vpack.c.bf16 %v193_v38, %v192_v37  ;;  %v69_v48 = vld [vmem:[%s5419_s0 + $0x1c8] sm:$0xff]  ;;  %v196_v49 = vld [vmem:[%s5419_s0 + $0x5c0] sm:$0xff] }
  0x27   :  { %v197_v50 = vld [vmem:[%s5419_s0 + $0x5c8] sm:$0xff]  ;;  %v296_v53 = vpack.c.bf16 %v69_v48, %v68_v47 }
  0x28   :  { %3154 = vmatmul.mubr.msk.bf16.gmra.mrb[12].mxu0 %vm405_vm0, %v275_v59  ;;  %3282 = vmatmul.mubr.msk.bf16.gmra.mrb[12].mxu1 %vm405_vm0, %v339_v60  ;;  %v50_v59 = vld [vmem:[%s5419_s0 + $0x130] sm:$0xff]  ;;  %v51_v60 = vld [vmem:[%s5419_s0 + $0x138] sm:$0xff]  ;;  %v360_v54 = vpack.c.bf16 %v197_v50, %v196_v49 }
  0x29   :  { %3157 = vmatprep.mubr.msk.bf16.mxu0 %vm405_vm0, %v276_v61  ;;  %3285 = vmatprep.mubr.msk.bf16.mxu1 %vm405_vm0, %v340_v62  ;;  %v178_v61 = vld [vmem:[%s5419_s0 + $0x530] sm:$0xff]  ;;  %v179_v62 = vld [vmem:[%s5419_s0 + $0x538] sm:$0xff]  ;;  %v287_v3 = vpack.c.bf16 %v51_v60, %v50_v59  ;;  %v72_v59 = vld [vmem:[%s5419_s0 + $0x1e0] sm:$0xff] }
  0x2a   :  { %v351_v4 = vpack.c.bf16 %v179_v62, %v178_v61  ;;  %v73_v60 = vld [vmem:[%s5419_s0 + $0x1e8] sm:$0xff]  ;;  %v200_v61 = vld [vmem:[%s5419_s0 + $0x5e0] sm:$0xff] }
  0x2b   :  { %v201_v62 = vld [vmem:[%s5419_s0 + $0x5e8] sm:$0xff]  ;;  %v298_v1 = vpack.c.bf16 %v73_v60, %v72_v59 }
  0x2c   :  { %v362_v2 = vpack.c.bf16 %v201_v62, %v200_v61 }
  0x30   :  { %3158 = vmatmul.mubr.msk.bf16.gmra.mrb[16].mxu0 %vm405_vm0, %v277_v7  ;;  %3286 = vmatmul.mubr.msk.bf16.gmra.mrb[16].mxu1 %vm405_vm0, %v341_v8  ;;  %v54_v7 = vld [vmem:[%s5419_s0 + $0x150] sm:$0xff]  ;;  %v55_v8 = vld [vmem:[%s5419_s0 + $0x158] sm:$0xff] }
  0x31   :  { %3161 = vmatprep.mubr.msk.bf16.mxu0 %vm405_vm0, %v278_v9  ;;  %3289 = vmatprep.mubr.msk.bf16.mxu1 %vm405_vm0, %v342_v10  ;;  %v182_v9 = vld [vmem:[%s5419_s0 + $0x550] sm:$0xff]  ;;  %v183_v10 = vld [vmem:[%s5419_s0 + $0x558] sm:$0xff]  ;;  %v289_v15 = vpack.c.bf16 %v55_v8, %v54_v7  ;;  %v76_v7 = vld [vmem:[%s5419_s0 + $0x200] sm:$0xff] }
  0x32   :  { %v353_v16 = vpack.c.bf16 %v183_v10, %v182_v9  ;;  %v77_v8 = vld [vmem:[%s5419_s0 + $0x208] sm:$0xff]  ;;  %v204_v9 = vld [vmem:[%s5419_s0 + $0x600] sm:$0xff] }
  0x33   :  { %v205_v10 = vld [vmem:[%s5419_s0 + $0x608] sm:$0xff]  ;;  %v300_v13 = vpack.c.bf16 %v77_v8, %v76_v7 }
  0x34   :  { %v364_v14 = vpack.c.bf16 %v205_v10, %v204_v9 }
  0x38   :  { %3162 = vmatmul.mubr.msk.bf16.gmra.mrb[20].mxu0 %vm405_vm0, %v279_v19  ;;  %3290 = vmatmul.mubr.msk.bf16.gmra.mrb[20].mxu1 %vm405_vm0, %v343_v20  ;;  %v58_v19 = vld [vmem:[%s5419_s0 + $0x170] sm:$0xff]  ;;  %v59_v20 = vld [vmem:[%s5419_s0 + $0x178] sm:$0xff] }
  0x39   :  { %3165 = vmatprep.mubr.msk.bf16.mxu0 %vm405_vm0, %v280_v21  ;;  %3293 = vmatprep.mubr.msk.bf16.mxu1 %vm405_vm0, %v344_v22  ;;  %v186_v21 = vld [vmem:[%s5419_s0 + $0x570] sm:$0xff]  ;;  %v187_v22 = vld [vmem:[%s5419_s0 + $0x578] sm:$0xff]  ;;  %v291_v27 = vpack.c.bf16 %v59_v20, %v58_v19  ;;  %v80_v19 = vld [vmem:[%s5419_s0 + $0x220] sm:$0xff] }
  0x3a   :  { %v355_v28 = vpack.c.bf16 %v187_v22, %v186_v21  ;;  %v81_v20 = vld [vmem:[%s5419_s0 + $0x228] sm:$0xff]  ;;  %v208_v21 = vld [vmem:[%s5419_s0 + $0x620] sm:$0xff] }
  0x3b   :  { %v209_v22 = vld [vmem:[%s5419_s0 + $0x628] sm:$0xff]  ;;  %v302_v25 = vpack.c.bf16 %v81_v20, %v80_v19 }
  0x3c   :  { %v366_v26 = vpack.c.bf16 %v209_v22, %v208_v21 }
  0x40   :  { %3166 = vmatmul.mubr.msk.bf16.gmra.mrb[24].mxu0 %vm405_vm0, %v281_v31  ;;  %3294 = vmatmul.mubr.msk.bf16.gmra.mrb[24].mxu1 %vm405_vm0, %v345_v32  ;;  %v62_v31 = vld [vmem:[%s5419_s0 + $0x190] sm:$0xff]  ;;  %v63_v32 = vld [vmem:[%s5419_s0 + $0x198] sm:$0xff] }
  0x41   :  { %3169 = vmatprep.mubr.msk.bf16.mxu0 %vm405_vm0, %v282_v33  ;;  %3297 = vmatprep.mubr.msk.bf16.mxu1 %vm405_vm0, %v346_v34  ;;  %v190_v33 = vld [vmem:[%s5419_s0 + $0x590] sm:$0xff]  ;;  %v191_v34 = vld [vmem:[%s5419_s0 + $0x598] sm:$0xff]  ;;  %v293_v39 = vpack.c.bf16 %v63_v32, %v62_v31  ;;  %v84_v31 = vld [vmem:[%s5419_s0 + $0x240] sm:$0xff] }
  0x42   :  { %v357_v40 = vpack.c.bf16 %v191_v34, %v190_v33  ;;  %v85_v32 = vld [vmem:[%s5419_s0 + $0x248] sm:$0xff]  ;;  %v212_v33 = vld [vmem:[%s5419_s0 + $0x640] sm:$0xff] }
  0x43   :  { %v213_v34 = vld [vmem:[%s5419_s0 + $0x648] sm:$0xff]  ;;  %v304_v37 = vpack.c.bf16 %v85_v32, %v84_v31 }
  0x44   :  { %v368_v38 = vpack.c.bf16 %v213_v34, %v212_v33 }
  0x48   :  { %3170 = vmatmul.mubr.msk.bf16.gmra.mrb[28].mxu0 %vm405_vm0, %v283_v43  ;;  %3298 = vmatmul.mubr.msk.bf16.gmra.mrb[28].mxu1 %vm405_vm0, %v347_v44  ;;  %v66_v43 = vld [vmem:[%s5419_s0 + $0x1b0] sm:$0xff]  ;;  %v67_v44 = vld [vmem:[%s5419_s0 + $0x1b8] sm:$0xff] }
  0x49   :  { %3173 = vmatprep.mubr.msk.bf16.mxu0 %vm405_vm0, %v284_v45  ;;  %3301 = vmatprep.mubr.msk.bf16.mxu1 %vm405_vm0, %v348_v46  ;;  %v194_v45 = vld [vmem:[%s5419_s0 + $0x5b0] sm:$0xff]  ;;  %v195_v46 = vld [vmem:[%s5419_s0 + $0x5b8] sm:$0xff]  ;;  %v295_v51 = vpack.c.bf16 %v67_v44, %v66_v43  ;;  %v88_v43 = vld [vmem:[%s5419_s0 + $0x260] sm:$0xff] }
  0x4a   :  { %v359_v52 = vpack.c.bf16 %v195_v46, %v194_v45  ;;  %v89_v44 = vld [vmem:[%s5419_s0 + $0x268] sm:$0xff]  ;;  %v216_v45 = vld [vmem:[%s5419_s0 + $0x660] sm:$0xff] }
  0x4b   :  { %v217_v46 = vld [vmem:[%s5419_s0 + $0x668] sm:$0xff]  ;;  %v306_v49 = vpack.c.bf16 %v89_v44, %v88_v43 }
  0x4c   :  { %v370_v50 = vpack.c.bf16 %v217_v46, %v216_v45 }
  0x50   :  { %3174 = vmatmul.mubr.msk.bf16.gmra.mrb[32].mxu0 %vm405_vm0, %v285_v55  ;;  %3302 = vmatmul.mubr.msk.bf16.gmra.mrb[32].mxu1 %vm405_vm0, %v349_v56  ;;  %v70_v55 = vld [vmem:[%s5419_s0 + $0x1d0] sm:$0xff]  ;;  %v71_v56 = vld [vmem:[%s5419_s0 + $0x1d8] sm:$0xff] }
  0x51   :  { %3177 = vmatprep.mubr.msk.bf16.mxu0 %vm405_vm0, %v286_v57  ;;  %3305 = vmatprep.mubr.msk.bf16.mxu1 %vm405_vm0, %v350_v58  ;;  %v198_v57 = vld [vmem:[%s5419_s0 + $0x5d0] sm:$0xff]  ;;  %v199_v58 = vld [vmem:[%s5419_s0 + $0x5d8] sm:$0xff]  ;;  %v297_v63 = vpack.c.bf16 %v71_v56, %v70_v55  ;;  %v92_v55 = vld [vmem:[%s5419_s0 + $0x280] sm:$0xff] }
  0x52   :  { %v361_v0 = vpack.c.bf16 %v199_v58, %v198_v57  ;;  %v93_v56 = vld [vmem:[%s5419_s0 + $0x288] sm:$0xff]  ;;  %v220_v57 = vld [vmem:[%s5419_s0 + $0x680] sm:$0xff] }
  0x53   :  { %v221_v58 = vld [vmem:[%s5419_s0 + $0x688] sm:$0xff]  ;;  %v308_v61 = vpack.c.bf16 %v93_v56, %v92_v55 }
  0x54   :  { %v372_v62 = vpack.c.bf16 %v221_v58, %v220_v57 }
  0x58   :  { %3178 = vmatmul.mubr.msk.bf16.gmra.mrb[36].mxu0 %vm405_vm0, %v287_v3  ;;  %3306 = vmatmul.mubr.msk.bf16.gmra.mrb[36].mxu1 %vm405_vm0, %v351_v4  ;;  %v74_v3 = vld [vmem:[%s5419_s0 + $0x1f0] sm:$0xff]  ;;  %v75_v4 = vld [vmem:[%s5419_s0 + $0x1f8] sm:$0xff] }
  0x59   :  { %3181 = vmatprep.mubr.msk.bf16.mxu0 %vm405_vm0, %v288_v5  ;;  %3309 = vmatprep.mubr.msk.bf16.mxu1 %vm405_vm0, %v352_v6  ;;  %v202_v5 = vld [vmem:[%s5419_s0 + $0x5f0] sm:$0xff]  ;;  %v203_v6 = vld [vmem:[%s5419_s0 + $0x5f8] sm:$0xff]  ;;  %v299_v11 = vpack.c.bf16 %v75_v4, %v74_v3  ;;  %v96_v3 = vld [vmem:[%s5419_s0 + $0x2a0] sm:$0xff] }
  0x5a   :  { %v363_v12 = vpack.c.bf16 %v203_v6, %v202_v5  ;;  %v97_v4 = vld [vmem:[%s5419_s0 + $0x2a8] sm:$0xff]  ;;  %v224_v5 = vld [vmem:[%s5419_s0 + $0x6a0] sm:$0xff] }
  0x5b   :  { %v225_v6 = vld [vmem:[%s5419_s0 + $0x6a8] sm:$0xff]  ;;  %v310_v9 = vpack.c.bf16 %v97_v4, %v96_v3 }
  0x5c   :  { %v374_v10 = vpack.c.bf16 %v225_v6, %v224_v5 }
  0x60   :  { %3182 = vmatmul.mubr.msk.bf16.gmra.mrb[40].mxu0 %vm405_vm0, %v289_v15  ;;  %3310 = vmatmul.mubr.msk.bf16.gmra.mrb[40].mxu1 %vm405_vm0, %v353_v16  ;;  %v78_v15 = vld [vmem:[%s5419_s0 + $0x210] sm:$0xff]  ;;  %v79_v16 = vld [vmem:[%s5419_s0 + $0x218] sm:$0xff] }
  0x61   :  { %3185 = vmatprep.mubr.msk.bf16.mxu0 %vm405_vm0, %v290_v17  ;;  %3313 = vmatprep.mubr.msk.bf16.mxu1 %vm405_vm0, %v354_v18  ;;  %v206_v17 = vld [vmem:[%s5419_s0 + $0x610] sm:$0xff]  ;;  %v207_v18 = vld [vmem:[%s5419_s0 + $0x618] sm:$0xff]  ;;  %v301_v23 = vpack.c.bf16 %v79_v16, %v78_v15  ;;  %v100_v15 = vld [vmem:[%s5419_s0 + $0x2c0] sm:$0xff] }
  0x62   :  { %v365_v24 = vpack.c.bf16 %v207_v18, %v206_v17  ;;  %v101_v16 = vld [vmem:[%s5419_s0 + $0x2c8] sm:$0xff]  ;;  %v228_v17 = vld [vmem:[%s5419_s0 + $0x6c0] sm:$0xff] }
  0x63   :  { %v229_v18 = vld [vmem:[%s5419_s0 + $0x6c8] sm:$0xff]  ;;  %v312_v21 = vpack.c.bf16 %v101_v16, %v100_v15 }
  0x64   :  { %v376_v22 = vpack.c.bf16 %v229_v18, %v228_v17 }
  0x68   :  { %3186 = vmatmul.mubr.msk.bf16.gmra.mrb[44].mxu0 %vm405_vm0, %v291_v27  ;;  %3314 = vmatmul.mubr.msk.bf16.gmra.mrb[44].mxu1 %vm405_vm0, %v355_v28  ;;  %v82_v27 = vld [vmem:[%s5419_s0 + $0x230] sm:$0xff]  ;;  %v83_v28 = vld [vmem:[%s5419_s0 + $0x238] sm:$0xff] }
  0x69   :  { %3189 = vmatprep.mubr.msk.bf16.mxu0 %vm405_vm0, %v292_v29  ;;  %3317 = vmatprep.mubr.msk.bf16.mxu1 %vm405_vm0, %v356_v30  ;;  %v210_v29 = vld [vmem:[%s5419_s0 + $0x630] sm:$0xff]  ;;  %v211_v30 = vld [vmem:[%s5419_s0 + $0x638] sm:$0xff]  ;;  %v303_v35 = vpack.c.bf16 %v83_v28, %v82_v27  ;;  %v104_v27 = vld [vmem:[%s5419_s0 + $0x2e0] sm:$0xff] }
  0x6a   :  { %v367_v36 = vpack.c.bf16 %v211_v30, %v210_v29  ;;  %v105_v28 = vld [vmem:[%s5419_s0 + $0x2e8] sm:$0xff]  ;;  %v232_v29 = vld [vmem:[%s5419_s0 + $0x6e0] sm:$0xff] }
  0x6b   :  { %v233_v30 = vld [vmem:[%s5419_s0 + $0x6e8] sm:$0xff]  ;;  %v314_v33 = vpack.c.bf16 %v105_v28, %v104_v27 }
  0x6c   :  { %v378_v34 = vpack.c.bf16 %v233_v30, %v232_v29 }
  0x70   :  { %3190 = vmatmul.mubr.msk.bf16.gmra.mrb[48].mxu0 %vm405_vm0, %v293_v39  ;;  %3318 = vmatmul.mubr.msk.bf16.gmra.mrb[48].mxu1 %vm405_vm0, %v357_v40  ;;  %v86_v39 = vld [vmem:[%s5419_s0 + $0x250] sm:$0xff]  ;;  %v87_v40 = vld [vmem:[%s5419_s0 + $0x258] sm:$0xff] }
  0x71   :  { %3193 = vmatprep.mubr.msk.bf16.mxu0 %vm405_vm0, %v294_v41  ;;  %3321 = vmatprep.mubr.msk.bf16.mxu1 %vm405_vm0, %v358_v42  ;;  %v214_v41 = vld [vmem:[%s5419_s0 + $0x650] sm:$0xff]  ;;  %v215_v42 = vld [vmem:[%s5419_s0 + $0x658] sm:$0xff]  ;;  %v305_v47 = vpack.c.bf16 %v87_v40, %v86_v39  ;;  %v108_v39 = vld [vmem:[%s5419_s0 + $0x300] sm:$0xff] }
  0x72   :  { %v369_v48 = vpack.c.bf16 %v215_v42, %v214_v41  ;;  %v109_v40 = vld [vmem:[%s5419_s0 + $0x308] sm:$0xff]  ;;  %v236_v41 = vld [vmem:[%s5419_s0 + $0x700] sm:$0xff] }
  0x73   :  { %v237_v42 = vld [vmem:[%s5419_s0 + $0x708] sm:$0xff]  ;;  %v316_v45 = vpack.c.bf16 %v109_v40, %v108_v39 }
  0x74   :  { %v380_v46 = vpack.c.bf16 %v237_v42, %v236_v41 }
  0x78   :  { %3194 = vmatmul.mubr.msk.bf16.gmra.mrb[52].mxu0 %vm405_vm0, %v295_v51  ;;  %3322 = vmatmul.mubr.msk.bf16.gmra.mrb[52].mxu1 %vm405_vm0, %v359_v52  ;;  %v90_v51 = vld [vmem:[%s5419_s0 + $0x270] sm:$0xff]  ;;  %v91_v52 = vld [vmem:[%s5419_s0 + $0x278] sm:$0xff] }
  0x79   :  { %3197 = vmatprep.mubr.msk.bf16.mxu0 %vm405_vm0, %v296_v53  ;;  %3325 = vmatprep.mubr.msk.bf16.mxu1 %vm405_vm0, %v360_v54  ;;  %v218_v53 = vld [vmem:[%s5419_s0 + $0x670] sm:$0xff]  ;;  %v219_v54 = vld [vmem:[%s5419_s0 + $0x678] sm:$0xff]  ;;  %v307_v59 = vpack.c.bf16 %v91_v52, %v90_v51  ;;  %v112_v51 = vld [vmem:[%s5419_s0 + $0x320] sm:$0xff] }
  0x7a   :  { %v371_v60 = vpack.c.bf16 %v219_v54, %v218_v53  ;;  %v113_v52 = vld [vmem:[%s5419_s0 + $0x328] sm:$0xff]  ;;  %v240_v53 = vld [vmem:[%s5419_s0 + $0x720] sm:$0xff] }
  0x7b   :  { %v241_v54 = vld [vmem:[%s5419_s0 + $0x728] sm:$0xff]  ;;  %v318_v57 = vpack.c.bf16 %v113_v52, %v112_v51 }
  0x7c   :  { %v382_v58 = vpack.c.bf16 %v241_v54, %v240_v53 }
  0x80   :  { %3198 = vmatmul.mubr.msk.bf16.gmra.mrb[56].mxu0 %vm405_vm0, %v297_v63  ;;  %3326 = vmatmul.mubr.msk.bf16.gmra.mrb[56].mxu1 %vm405_vm0, %v361_v0  ;;  %v94_v63 = vld [vmem:[%s5419_s0 + $0x290] sm:$0xff]  ;;  %v95_v0 = vld [vmem:[%s5419_s0 + $0x298] sm:$0xff] }
  0x81   :  { %3201 = vmatprep.mubr.msk.bf16.mxu0 %vm405_vm0, %v298_v1  ;;  %3329 = vmatprep.mubr.msk.bf16.mxu1 %vm405_vm0, %v362_v2  ;;  %v222_v1 = vld [vmem:[%s5419_s0 + $0x690] sm:$0xff]  ;;  %v223_v2 = vld [vmem:[%s5419_s0 + $0x698] sm:$0xff]  ;;  %v309_v7 = vpack.c.bf16 %v95_v0, %v94_v63  ;;  %v116_v63 = vld [vmem:[%s5419_s0 + $0x340] sm:$0xff] }
  0x82   :  { %v373_v8 = vpack.c.bf16 %v223_v2, %v222_v1  ;;  %v117_v0 = vld [vmem:[%s5419_s0 + $0x348] sm:$0xff]  ;;  %v244_v1 = vld [vmem:[%s5419_s0 + $0x740] sm:$0xff] }
  0x83   :  { %v245_v2 = vld [vmem:[%s5419_s0 + $0x748] sm:$0xff]  ;;  %v320_v5 = vpack.c.bf16 %v117_v0, %v116_v63 }
  0x84   :  { %v384_v6 = vpack.c.bf16 %v245_v2, %v244_v1 }
  0x88   :  { %3202 = vmatmul.mubr.msk.bf16.gmra.mrb[60].mxu0 %vm405_vm0, %v299_v11  ;;  %3330 = vmatmul.mubr.msk.bf16.gmra.mrb[60].mxu1 %vm405_vm0, %v363_v12  ;;  %v98_v11 = vld [vmem:[%s5419_s0 + $0x2b0] sm:$0xff]  ;;  %v99_v12 = vld [vmem:[%s5419_s0 + $0x2b8] sm:$0xff] }
  0x89   :  { %3205 = vmatprep.mubr.msk.bf16.mxu0 %vm405_vm0, %v300_v13  ;;  %3333 = vmatprep.mubr.msk.bf16.mxu1 %vm405_vm0, %v364_v14  ;;  %v226_v13 = vld [vmem:[%s5419_s0 + $0x6b0] sm:$0xff]  ;;  %v227_v14 = vld [vmem:[%s5419_s0 + $0x6b8] sm:$0xff]  ;;  %v311_v19 = vpack.c.bf16 %v99_v12, %v98_v11  ;;  %v120_v11 = vld [vmem:[%s5419_s0 + $0x360] sm:$0xff] }
  0x8a   :  { %v375_v20 = vpack.c.bf16 %v227_v14, %v226_v13  ;;  %v121_v12 = vld [vmem:[%s5419_s0 + $0x368] sm:$0xff]  ;;  %v248_v13 = vld [vmem:[%s5419_s0 + $0x760] sm:$0xff] }
  0x8b   :  { %v249_v14 = vld [vmem:[%s5419_s0 + $0x768] sm:$0xff]  ;;  %v322_v17 = vpack.c.bf16 %v121_v12, %v120_v11 }
  0x8c   :  { %v386_v18 = vpack.c.bf16 %v249_v14, %v248_v13  ;;  %v4318_v14 = vld [vmem:[%s5419_s0 + $0x3b0] sm:$0xff] }
  0x90   :  { %3206 = vmatmul.mubr.msk.bf16.gmra.mrb[64].mxu0 %vm405_vm0, %v301_v23  ;;  %3334 = vmatmul.mubr.msk.bf16.gmra.mrb[64].mxu1 %vm405_vm0, %v365_v24  ;;  %v102_v23 = vld [vmem:[%s5419_s0 + $0x2d0] sm:$0xff]  ;;  %v103_v24 = vld [vmem:[%s5419_s0 + $0x2d8] sm:$0xff] }
  0x91   :  { %3209 = vmatprep.mubr.msk.bf16.mxu0 %vm405_vm0, %v302_v25  ;;  %3337 = vmatprep.mubr.msk.bf16.mxu1 %vm405_vm0, %v366_v26  ;;  %v230_v25 = vld [vmem:[%s5419_s0 + $0x6d0] sm:$0xff]  ;;  %v231_v26 = vld [vmem:[%s5419_s0 + $0x6d8] sm:$0xff]  ;;  %v313_v31 = vpack.c.bf16 %v103_v24, %v102_v23  ;;  %v124_v23 = vld [vmem:[%s5419_s0 + $0x380] sm:$0xff] }
  0x92   :  { %v377_v32 = vpack.c.bf16 %v231_v26, %v230_v25  ;;  %v125_v24 = vld [vmem:[%s5419_s0 + $0x388] sm:$0xff]  ;;  %v252_v25 = vld [vmem:[%s5419_s0 + $0x780] sm:$0xff] }
  0x93   :  { %v253_v26 = vld [vmem:[%s5419_s0 + $0x788] sm:$0xff] }
  0x98   :  { %3210 = vmatmul.mubr.msk.bf16.gmra.mrb[68].mxu0 %vm405_vm0, %v303_v35  ;;  %3338 = vmatmul.mubr.msk.bf16.gmra.mrb[68].mxu1 %vm405_vm0, %v367_v36  ;;  %v106_v35 = vld [vmem:[%s5419_s0 + $0x2f0] sm:$0xff]  ;;  %v107_v36 = vld [vmem:[%s5419_s0 + $0x2f8] sm:$0xff] }
  0x99   :  { %3213 = vmatprep.mubr.msk.bf16.mxu0 %vm405_vm0, %v304_v37  ;;  %3341 = vmatprep.mubr.msk.bf16.mxu1 %vm405_vm0, %v368_v38  ;;  %v234_v37 = vld [vmem:[%s5419_s0 + $0x6f0] sm:$0xff]  ;;  %v235_v38 = vld [vmem:[%s5419_s0 + $0x6f8] sm:$0xff]  ;;  %v315_v43 = vpack.c.bf16 %v107_v36, %v106_v35  ;;  %v324_v35 = vpack.c.bf16 %v125_v24, %v124_v23  ;;  %v388_v36 = vpack.c.bf16 %v253_v26, %v252_v25 }
  0x9a   :  { %v379_v44 = vpack.c.bf16 %v235_v38, %v234_v37  ;;  %v4233_v37 = vld [vmem:[%s5419_s0 + $0x390] sm:$0xff]  ;;  %v4238_v38 = vld [vmem:[%s5419_s0 + $0x398] sm:$0xff] }
  0x9b   :  { %v258_v23 = vld [vmem:[%s5419_s0 + $0x7b0] sm:$0xff]  ;;  %v259_v24 = vld [vmem:[%s5419_s0 + $0x7b8] sm:$0xff] }
  0xa0   :  { %3214 = vmatmul.mubr.msk.bf16.gmra.mrb[72].mxu0 %vm405_vm0, %v305_v47  ;;  %3342 = vmatmul.mubr.msk.bf16.gmra.mrb[72].mxu1 %vm405_vm0, %v369_v48  ;;  %v110_v47 = vld [vmem:[%s5419_s0 + $0x310] sm:$0xff]  ;;  %v111_v48 = vld [vmem:[%s5419_s0 + $0x318] sm:$0xff] }
  0xa1   :  { %3217 = vmatprep.mubr.msk.bf16.mxu0 %vm405_vm0, %v306_v49  ;;  %3345 = vmatprep.mubr.msk.bf16.mxu1 %vm405_vm0, %v370_v50  ;;  %v238_v49 = vld [vmem:[%s5419_s0 + $0x710] sm:$0xff]  ;;  %v239_v50 = vld [vmem:[%s5419_s0 + $0x718] sm:$0xff]  ;;  %v317_v55 = vpack.c.bf16 %v111_v48, %v110_v47  ;;  %v4258_v47 = vld [vmem:[%s5419_s0 + $0x3a8] sm:$0xff] }
  0xa2   :  { %v381_v56 = vpack.c.bf16 %v239_v50, %v238_v49  ;;  %v4263_v48 = vld [vmem:[%s5419_s0 + $0x7a0] sm:$0xff] }
  0xa8   :  { %3218 = vmatmul.mubr.msk.bf16.gmra.mrb[76].mxu0 %vm405_vm0, %v307_v59  ;;  %3346 = vmatmul.mubr.msk.bf16.gmra.mrb[76].mxu1 %vm405_vm0, %v371_v60  ;;  %v114_v59 = vld [vmem:[%s5419_s0 + $0x330] sm:$0xff]  ;;  %v115_v60 = vld [vmem:[%s5419_s0 + $0x338] sm:$0xff] }
  0xa9   :  { %3221 = vmatprep.mubr.msk.bf16.mxu0 %vm405_vm0, %v308_v61  ;;  %3349 = vmatprep.mubr.msk.bf16.mxu1 %vm405_vm0, %v372_v62  ;;  %v242_v61 = vld [vmem:[%s5419_s0 + $0x730] sm:$0xff]  ;;  %v243_v62 = vld [vmem:[%s5419_s0 + $0x738] sm:$0xff]  ;;  %v319_v3 = vpack.c.bf16 %v115_v60, %v114_v59 }
  0xaa   :  { %v383_v4 = vpack.c.bf16 %v243_v62, %v242_v61  ;;  %v325_v61 = vpack.c.bf16 %v4238_v38, %v4233_v37  ;;  %v391_v38 = vpack.c.bf16 %v259_v24, %v258_v23 }
  0xb0   :  { %3222 = vmatmul.mubr.msk.bf16.gmra.mrb[80].mxu0 %vm405_vm0, %v309_v7  ;;  %3350 = vmatmul.mubr.msk.bf16.gmra.mrb[80].mxu1 %vm405_vm0, %v373_v8  ;;  %v118_v7 = vld [vmem:[%s5419_s0 + $0x350] sm:$0xff]  ;;  %v119_v8 = vld [vmem:[%s5419_s0 + $0x358] sm:$0xff] }
  0xb1   :  { %3225 = vmatprep.mubr.msk.bf16.mxu0 %vm405_vm0, %v310_v9  ;;  %3353 = vmatprep.mubr.msk.bf16.mxu1 %vm405_vm0, %v374_v10  ;;  %v246_v9 = vld [vmem:[%s5419_s0 + $0x750] sm:$0xff]  ;;  %v247_v10 = vld [vmem:[%s5419_s0 + $0x758] sm:$0xff]  ;;  %v321_v15 = vpack.c.bf16 %v119_v8, %v118_v7 }
  0xb2   :  { %v385_v16 = vpack.c.bf16 %v247_v10, %v246_v9 }
  0xb8   :  { %3226 = vmatmul.mubr.msk.bf16.gmra.mrb[84].mxu0 %vm405_vm0, %v311_v19  ;;  %3354 = vmatmul.mubr.msk.bf16.gmra.mrb[84].mxu1 %vm405_vm0, %v375_v20  ;;  %v122_v19 = vld [vmem:[%s5419_s0 + $0x370] sm:$0xff]  ;;  %v123_v20 = vld [vmem:[%s5419_s0 + $0x378] sm:$0xff] }
  0xb9   :  { %3229 = vmatprep.mubr.msk.bf16.mxu0 %vm405_vm0, %v312_v21  ;;  %3357 = vmatprep.mubr.msk.bf16.mxu1 %vm405_vm0, %v376_v22  ;;  %v250_v21 = vld [vmem:[%s5419_s0 + $0x770] sm:$0xff]  ;;  %v251_v22 = vld [vmem:[%s5419_s0 + $0x778] sm:$0xff]  ;;  %v323_v29 = vpack.c.bf16 %v123_v20, %v122_v19 }
  0xba   :  { %v387_v30 = vpack.c.bf16 %v251_v22, %v250_v21  ;;  %v4327_v20 = vld [vmem:[%s5419_s0 + $0x3b8] sm:$0xff] }
  0xbb   :  { %v327_v37 = vpack.c.bf16 %v4327_v20, %v4318_v14 }
  0xc0   :  { %3230 = vmatmul.mubr.msk.bf16.gmra.mrb[88].mxu0 %vm405_vm0, %v313_v31  ;;  %3358 = vmatmul.mubr.msk.bf16.gmra.mrb[88].mxu1 %vm405_vm0, %v377_v32 }
  0xc1   :  { %3233 = vmatprep.mubr.msk.bf16.mxu0 %vm405_vm0, %v314_v33  ;;  %3361 = vmatprep.mubr.msk.bf16.mxu1 %vm405_vm0, %v378_v34 }
  0xc8   :  { %3234 = vmatmul.mubr.msk.bf16.gmra.mrb[92].mxu0 %vm405_vm0, %v315_v43  ;;  %3362 = vmatmul.mubr.msk.bf16.gmra.mrb[92].mxu1 %vm405_vm0, %v379_v44  ;;  %v4243_v44 = vld [vmem:[%s5419_s0 + $0x790] sm:$0xff] }
  0xc9   :  { %3237 = vmatprep.mubr.msk.bf16.mxu0 %vm405_vm0, %v316_v45  ;;  %3365 = vmatprep.mubr.msk.bf16.mxu1 %vm405_vm0, %v380_v46  ;;  %v4248_v45 = vld [vmem:[%s5419_s0 + $0x798] sm:$0xff]  ;;  %v4253_v46 = vld [vmem:[%s5419_s0 + $0x3a0] sm:$0xff] }
  0xca   :  { %v389_v1 = vpack.c.bf16 %v4248_v45, %v4243_v44  ;;  %v326_v2 = vpack.c.bf16 %v4258_v47, %v4253_v46  ;;  %v4388_v45 = vld [vmem:[%s5419_s0 + $0x3d0] sm:$0xff]  ;;  %v4393_v46 = vld [vmem:[%s5419_s0 + $0x3d8] sm:$0xff] }
  0xd0   :  { %3238 = vmatmul.mubr.msk.bf16.gmra.mrb[96].mxu0 %vm405_vm0, %v317_v55  ;;  %3366 = vmatmul.mubr.msk.bf16.gmra.mrb[96].mxu1 %vm405_vm0, %v381_v56  ;;  %v4278_v55 = vld [vmem:[%s5419_s0 + $0x7a8] sm:$0xff] }
  0xd1   :  { %3241 = vmatprep.mubr.msk.bf16.mxu0 %vm405_vm0, %v318_v57  ;;  %3369 = vmatprep.mubr.msk.bf16.mxu1 %vm405_vm0, %v382_v58 }
  0xd8   :  { %3242 = vmatmul.mubr.msk.bf16.gmra.mrb[100].mxu0 %vm405_vm0, %v319_v3  ;;  %3370 = vmatmul.mubr.msk.bf16.gmra.mrb[100].mxu1 %vm405_vm0, %v383_v4  ;;  %v390_v3 = vpack.c.bf16 %v4278_v55, %v4263_v48  ;;  %v4413_v55 = vld [vmem:[%s5419_s0 + $0x3e8] sm:$0xff] }
  0xd9   :  { %3245 = vmatprep.mubr.msk.bf16.mxu0 %vm405_vm0, %v320_v5  ;;  %3373 = vmatprep.mubr.msk.bf16.mxu1 %vm405_vm0, %v384_v6 }
  0xe0   :  { %3246 = vmatmul.mubr.msk.bf16.gmra.mrb[104].mxu0 %vm405_vm0, %v321_v15  ;;  %3374 = vmatmul.mubr.msk.bf16.gmra.mrb[104].mxu1 %vm405_vm0, %v385_v16 }
  0xe1   :  { %3249 = vmatprep.mubr.msk.bf16.mxu0 %vm405_vm0, %v322_v17  ;;  %3377 = vmatprep.mubr.msk.bf16.mxu1 %vm405_vm0, %v386_v18 }
  0xe3   :  { %v3143_v27 = vpop.f32.mrb[0].mxu0  ;;  %v3271_v28 = vpop.f32.mrb[0].mxu1 }
  0xe4   :  { %vm1849_vm2 = vcmp.gt.f32.partialorder %v3143_v27, 0.0  ;;  %v2105_v31 = vmul.f32 0.2, %v3143_v27  ;;  %vm1977_vm3 = vcmp.gt.f32.partialorder %v3271_v28, 0.0  ;;  %v2233_v32 = vmul.f32 0.2, %v3271_v28 }
  0xe5   :  { %v824_v33 = vpop.f32.mrb[1].mxu0  ;;  %v1336_v34 = vpop.f32.mrb[1].mxu1 }
  0xe6   :  { %v2361_v39 = vsel %vm1849_vm2, %v3143_v27, %v2105_v31  ;;  %v2489_v40 = vsel %vm1977_vm3, %v3271_v28, %v2233_v32  ;;  %vm1847_vm4 = vcmp.gt.f32.partialorder %v824_v33, 0.0  ;;  %v2103_v41 = vmul.f32 0.2, %v824_v33  ;;  %v3144_v42 = vpop.f32.mrb[2].mxu0  ;;  %v3272_v43 = vpop.f32.mrb[2].mxu1  ;;  %v132_v28 = vld [vmem:[%s5419_s0 + $0x3c0] sm:$0xff] }
  0xe7   :  { %2618 = vst.msk [vmem:[%s5420_s2 + $0x10] sm:$0xff] %vm2615_vm1, %v2361_v39  ;;  %2746 = vst.msk [vmem:[%s5420_s2 + $0x410] sm:$0xff] %vm2615_vm1, %v2489_v40  ;;  %vm1975_vm5 = vcmp.gt.f32.partialorder %v1336_v34, 0.0  ;;  %v2231_v49 = vmul.f32 0.2, %v1336_v34  ;;  %vm1850_vm6 = vcmp.gt.f32.partialorder %v3144_v42, 0.0 }
  0xe8   :  { %v2106_v50 = vmul.f32 0.2, %v3144_v42  ;;  %v2359_v51 = vsel %vm1847_vm4, %v824_v33, %v2103_v41  ;;  %vm1978_vm7 = vcmp.gt.f32.partialorder %v3272_v43, 0.0  ;;  %v2234_v52 = vmul.f32 0.2, %v3272_v43  ;;  %v827_v53 = vpop.f32.mrb[3].mxu0  ;;  %3250 = vmatmul.mubr.msk.bf16.gmra.mrb[108].mxu0 %vm405_vm0, %v323_v29  ;;  %3378 = vmatmul.mubr.msk.bf16.gmra.mrb[108].mxu1 %vm405_vm0, %v387_v30 }
  0xe9   :  { %v1339_v54 = vpop.f32.mrb[3].mxu1  ;;  %2616 = vst.msk [vmem:[%s5420_s2] sm:$0xff] %vm2615_vm1, %v2359_v51  ;;  %v2487_v56 = vsel %vm1975_vm5, %v1336_v34, %v2231_v49  ;;  %vm1848_vm8 = vcmp.gt.f32.partialorder %v827_v53, 0.0  ;;  %v2104_v58 = vmul.f32 0.2, %v827_v53  ;;  %3253 = vmatprep.mubr.msk.bf16.mxu0 %vm405_vm0, %v324_v35  ;;  %3381 = vmatprep.mubr.msk.bf16.mxu1 %vm405_vm0, %v388_v36  ;;  %v133_v30 = vld [vmem:[%s5419_s0 + $0x3c8] sm:$0xff] }
  0xea   :  { %v2362_v57 = vsel %vm1850_vm6, %v3144_v42, %v2106_v50  ;;  %2744 = vst.msk [vmem:[%s5420_s2 + $0x400] sm:$0xff] %vm2615_vm1, %v2487_v56  ;;  %v2490_v59 = vsel %vm1978_vm7, %v3272_v43, %v2234_v52  ;;  %vm1976_vm9 = vcmp.gt.f32.partialorder %v1339_v54, 0.0  ;;  %v2232_v60 = vmul.f32 0.2, %v1339_v54  ;;  %v260_v31 = vld [vmem:[%s5419_s0 + $0x7c0] sm:$0xff]  ;;  %v261_v32 = vld [vmem:[%s5419_s0 + $0x7c8] sm:$0xff] }
  0xeb   :  { %2619 = vst.msk [vmem:[%s5420_s2 + $0x18] sm:$0xff] %vm2615_vm1, %v2362_v57  ;;  %2747 = vst.msk [vmem:[%s5420_s2 + $0x418] sm:$0xff] %vm2615_vm1, %v2490_v59  ;;  %v2360_v62 = vsel %vm1848_vm8, %v827_v53, %v2104_v58  ;;  %v3147_v63 = vpop.f32.mrb[4].mxu0  ;;  %v3275_v0 = vpop.f32.mrb[4].mxu1  ;;  %v328_v43 = vpack.c.bf16 %v133_v30, %v132_v28  ;;  %v392_v44 = vpack.c.bf16 %v261_v32, %v260_v31  ;;  %v4398_v52 = vld [vmem:[%s5419_s0 + $0x7d0] sm:$0xff]  ;;  %v4403_v53 = vld [vmem:[%s5419_s0 + $0x7d8] sm:$0xff] }
  0xec   :  { %2617 = vst.msk [vmem:[%s5420_s2 + $0x8] sm:$0xff] %vm2615_vm1, %v2360_v62  ;;  %v2488_v4 = vsel %vm1976_vm9, %v1339_v54, %v2232_v60  ;;  %vm1853_vm10 = vcmp.gt.f32.partialorder %v3147_v63, 0.0  ;;  %v2109_v5 = vmul.f32 0.2, %v3147_v63  ;;  %vm1981_vm11 = vcmp.gt.f32.partialorder %v3275_v0, 0.0  ;;  %v840_v6 = vpop.f32.mrb[5].mxu0 }
  0xed   :  { %v1352_v7 = vpop.f32.mrb[5].mxu1  ;;  %2745 = vst.msk [vmem:[%s5420_s2 + $0x408] sm:$0xff] %vm2615_vm1, %v2488_v4  ;;  %v2237_v8 = vmul.f32 0.2, %v3275_v0  ;;  %vm1851_vm12 = vcmp.gt.f32.partialorder %v840_v6, 0.0  ;;  %v3148_v12 = vpop.f32.mrb[6].mxu0 }
  0xee   :  { %v2107_v9 = vmul.f32 0.2, %v840_v6  ;;  %vm1979_vm13 = vcmp.gt.f32.partialorder %v1352_v7, 0.0  ;;  %v2365_v10 = vsel %vm1853_vm10, %v3147_v63, %v2109_v5  ;;  %v2235_v11 = vmul.f32 0.2, %v1352_v7  ;;  %v3276_v13 = vpop.f32.mrb[6].mxu1 }
  0xef   :  { %2622 = vst.msk [vmem:[%s5420_s2 + $0x30] sm:$0xff] %vm2615_vm1, %v2365_v10  ;;  %v2493_v15 = vsel %vm1981_vm11, %v3275_v0, %v2237_v8  ;;  %vm1854_vm14 = vcmp.gt.f32.partialorder %v3148_v12, 0.0  ;;  %v2110_v17 = vmul.f32 0.2, %v3148_v12  ;;  %v843_v18 = vpop.f32.mrb[7].mxu0  ;;  %v1355_v19 = vpop.f32.mrb[7].mxu1  ;;  %v329_v5 = vpack.c.bf16 %v4393_v46, %v4388_v45 }
  0xf0   :  { %v2363_v16 = vsel %vm1851_vm12, %v840_v6, %v2107_v9  ;;  %2750 = vst.msk [vmem:[%s5420_s2 + $0x430] sm:$0xff] %vm2615_vm1, %v2493_v15  ;;  %v2491_v21 = vsel %vm1979_vm13, %v1352_v7, %v2235_v11  ;;  %vm1982_vm15 = vcmp.gt.f32.partialorder %v3276_v13, 0.0  ;;  %v2238_v22 = vmul.f32 0.2, %v3276_v13  ;;  %3254 = vmatmul.mubr.msk.bf16.gmra.mrb[112].mxu0 %vm405_vm0, %v325_v61  ;;  %3382 = vmatmul.mubr.msk.bf16.gmra.mrb[112].mxu1 %vm405_vm0, %v389_v1  ;;  %v4408_v54 = vld [vmem:[%s5419_s0 + $0x3e0] sm:$0xff]  ;;  %v4433_v63 = vld [vmem:[%s5419_s0 + $0x7e8] sm:$0xff] }
  0xf1   :  { %2620 = vst.msk [vmem:[%s5420_s2 + $0x20] sm:$0xff] %vm2615_vm1, %v2363_v16  ;;  %vm1852_vm2 = vcmp.gt.f32.partialorder %v843_v18, 0.0  ;;  %2748 = vst.msk [vmem:[%s5420_s2 + $0x420] sm:$0xff] %vm2615_vm1, %v2491_v21  ;;  %v2366_v25 = vsel %vm1854_vm14, %v3148_v12, %v2110_v17  ;;  %v2108_v26 = vmul.f32 0.2, %v843_v18  ;;  %vm1980_vm3 = vcmp.gt.f32.partialorder %v1355_v19, 0.0  ;;  %3257 = vmatprep.mubr.msk.bf16.mxu0 %vm405_vm0, %v326_v2  ;;  %3385 = vmatprep.mubr.msk.bf16.mxu1 %vm405_vm0, %v390_v3 }
  0xf2   :  { %v2236_v27 = vmul.f32 0.2, %v1355_v19  ;;  %2623 = vst.msk [vmem:[%s5420_s2 + $0x38] sm:$0xff] %vm2615_vm1, %v2366_v25  ;;  %v2494_v29 = vsel %vm1982_vm15, %v3276_v13, %v2238_v22  ;;  %v4418_v56 = vld [vmem:[%s5419_s0 + $0x7e0] sm:$0xff]  ;;  %v393_v9 = vpack.c.bf16 %v4403_v53, %v4398_v52  ;;  %v330_v10 = vpack.c.bf16 %v4413_v55, %v4408_v54  ;;  %v138_v22 = vld [vmem:[%s5419_s0 + $0x3f0] sm:$0xff]  ;;  %v139_v28 = vld [vmem:[%s5419_s0 + $0x3f8] sm:$0xff] }
  0xf3   :  { %2751 = vst.msk [vmem:[%s5420_s2 + $0x438] sm:$0xff] %vm2615_vm1, %v2494_v29  ;;  %v2364_v33 = vsel %vm1852_vm2, %v843_v18, %v2108_v26  ;;  %v3151_v35 = vpop.f32.mrb[8].mxu0  ;;  %v3279_v36 = vpop.f32.mrb[8].mxu1  ;;  %v394_v11 = vpack.c.bf16 %v4433_v63, %v4418_v56  ;;  %v266_v31 = vld [vmem:[%s5419_s0 + $0x7f0] sm:$0xff]  ;;  %v267_v32 = vld [vmem:[%s5419_s0 + $0x7f8] sm:$0xff] }
  0xf4   :  { %v2492_v34 = vsel %vm1980_vm3, %v1355_v19, %v2236_v27  ;;  %2621 = vst.msk [vmem:[%s5420_s2 + $0x28] sm:$0xff] %vm2615_vm1, %v2364_v33  ;;  %vm1857_vm4 = vcmp.gt.f32.partialorder %v3151_v35, 0.0  ;;  %v2113_v39 = vmul.f32 0.2, %v3151_v35  ;;  %vm1985_vm5 = vcmp.gt.f32.partialorder %v3279_v36, 0.0  ;;  %v856_v41 = vpop.f32.mrb[9].mxu0 }
  0xf5   :  { %2749 = vst.msk [vmem:[%s5420_s2 + $0x428] sm:$0xff] %vm2615_vm1, %v2492_v34  ;;  %v2241_v40 = vmul.f32 0.2, %v3279_v36  ;;  %v1368_v42 = vpop.f32.mrb[9].mxu1  ;;  %vm1855_vm6 = vcmp.gt.f32.partialorder %v856_v41, 0.0  ;;  %v3152_v50 = vpop.f32.mrb[10].mxu0 }
  0xf6   :  { %v2369_v47 = vsel %vm1857_vm4, %v3151_v35, %v2113_v39  ;;  %v2111_v49 = vmul.f32 0.2, %v856_v41  ;;  %v3280_v51 = vpop.f32.mrb[10].mxu1  ;;  %vm1983_vm7 = vcmp.gt.f32.partialorder %v1368_v42, 0.0  ;;  %v2239_v57 = vmul.f32 0.2, %v1368_v42 }
  0xf7   :  { %v2497_v48 = vsel %vm1985_vm5, %v3279_v36, %v2241_v40  ;;  %2626 = vst.msk [vmem:[%s5420_s2 + $0x50] sm:$0xff] %vm2615_vm1, %v2369_v47  ;;  %vm1858_vm8 = vcmp.gt.f32.partialorder %v3152_v50, 0.0  ;;  %v2114_v58 = vmul.f32 0.2, %v3152_v50  ;;  %vm1986_vm9 = vcmp.gt.f32.partialorder %v3280_v51, 0.0  ;;  %v859_v61 = vpop.f32.mrb[11].mxu0 }
  0xf8   :  { %2754 = vst.msk [vmem:[%s5420_s2 + $0x450] sm:$0xff] %vm2615_vm1, %v2497_v48  ;;  %v2367_v59 = vsel %vm1855_vm6, %v856_v41, %v2111_v49  ;;  %v2242_v60 = vmul.f32 0.2, %v3280_v51  ;;  %v1371_v62 = vpop.f32.mrb[11].mxu1  ;;  %3258 = vmatmul.mubr.msk.bf16.gmra.mrb[116].mxu0 %vm405_vm0, %v327_v37  ;;  %3386 = vmatmul.mubr.msk.bf16.gmra.mrb[116].mxu1 %vm405_vm0, %v391_v38  ;;  %v2495_v0 = vsel %vm1983_vm7, %v1368_v42, %v2239_v57  ;;  %vm1856_vm10 = vcmp.gt.f32.partialorder %v859_v61, 0.0 }
  0xf9   :  { %2624 = vst.msk [vmem:[%s5420_s2 + $0x40] sm:$0xff] %vm2615_vm1, %v2367_v59  ;;  %v2370_v1 = vsel %vm1858_vm8, %v3152_v50, %v2114_v58  ;;  %v2112_v2 = vmul.f32 0.2, %v859_v61  ;;  %3261 = vmatprep.mubr.msk.bf16.mxu0 %vm405_vm0, %v328_v43  ;;  %3389 = vmatprep.mubr.msk.bf16.mxu1 %vm405_vm0, %v392_v44  ;;  %2752 = vst.msk [vmem:[%s5420_s2 + $0x440] sm:$0xff] %vm2615_vm1, %v2495_v0  ;;  %vm1984_vm11 = vcmp.gt.f32.partialorder %v1371_v62, 0.0 }
  0xfa   :  { %2627 = vst.msk [vmem:[%s5420_s2 + $0x58] sm:$0xff] %vm2615_vm1, %v2370_v1  ;;  %v2498_v3 = vsel %vm1986_vm9, %v3280_v51, %v2242_v60  ;;  %v2240_v4 = vmul.f32 0.2, %v1371_v62  ;;  %v331_v41 = vpack.c.bf16 %v139_v28, %v138_v22  ;;  %v395_v42 = vpack.c.bf16 %v267_v32, %v266_v31 }
  0xfb   :  { %2755 = vst.msk [vmem:[%s5420_s2 + $0x458] sm:$0xff] %vm2615_vm1, %v2498_v3  ;;  %v2368_v6 = vsel %vm1856_vm10, %v859_v61, %v2112_v2  ;;  %v3155_v7 = vpop.f32.mrb[12].mxu0  ;;  %v3283_v8 = vpop.f32.mrb[12].mxu1 }
  0xfc   :  { %2625 = vst.msk [vmem:[%s5420_s2 + $0x48] sm:$0xff] %vm2615_vm1, %v2368_v6  ;;  %v2496_v12 = vsel %vm1984_vm11, %v1371_v62, %v2240_v4  ;;  %vm1861_vm12 = vcmp.gt.f32.partialorder %v3155_v7, 0.0  ;;  %v2117_v13 = vmul.f32 0.2, %v3155_v7  ;;  %vm1989_vm13 = vcmp.gt.f32.partialorder %v3283_v8, 0.0  ;;  %v872_v14 = vpop.f32.mrb[13].mxu0 }
  0xfd   :  { %v1384_v15 = vpop.f32.mrb[13].mxu1  ;;  %2753 = vst.msk [vmem:[%s5420_s2 + $0x448] sm:$0xff] %vm2615_vm1, %v2496_v12  ;;  %v2245_v16 = vmul.f32 0.2, %v3283_v8  ;;  %vm1859_vm14 = vcmp.gt.f32.partialorder %v872_v14, 0.0  ;;  %v3156_v20 = vpop.f32.mrb[14].mxu0 }
  0xfe   :  { %v2115_v17 = vmul.f32 0.2, %v872_v14  ;;  %vm1987_vm15 = vcmp.gt.f32.partialorder %v1384_v15, 0.0  ;;  %v2373_v18 = vsel %vm1861_vm12, %v3155_v7, %v2117_v13  ;;  %v2243_v19 = vmul.f32 0.2, %v1384_v15  ;;  %v3284_v21 = vpop.f32.mrb[14].mxu1 }
  0xff   :  { %2630 = vst.msk [vmem:[%s5420_s2 + $0x70] sm:$0xff] %vm2615_vm1, %v2373_v18  ;;  %v2501_v23 = vsel %vm1989_vm13, %v3283_v8, %v2245_v16  ;;  %vm1862_vm2 = vcmp.gt.f32.partialorder %v3156_v20, 0.0  ;;  %v2118_v25 = vmul.f32 0.2, %v3156_v20  ;;  %v875_v26 = vpop.f32.mrb[15].mxu0  ;;  %v1387_v27 = vpop.f32.mrb[15].mxu1 }
 0x100   :  { %v2371_v24 = vsel %vm1859_vm14, %v872_v14, %v2115_v17  ;;  %2758 = vst.msk [vmem:[%s5420_s2 + $0x470] sm:$0xff] %vm2615_vm1, %v2501_v23  ;;  %v2499_v29 = vsel %vm1987_vm15, %v1384_v15, %v2243_v19  ;;  %vm1990_vm3 = vcmp.gt.f32.partialorder %v3284_v21, 0.0  ;;  %v2246_v30 = vmul.f32 0.2, %v3284_v21  ;;  %3262 = vmatmul.mubr.msk.bf16.gmra.mrb[120].mxu0 %vm405_vm0, %v329_v5  ;;  %3390 = vmatmul.mubr.msk.bf16.gmra.mrb[120].mxu1 %vm405_vm0, %v393_v9 }
 0x101   :  { %2628 = vst.msk [vmem:[%s5420_s2 + $0x60] sm:$0xff] %vm2615_vm1, %v2371_v24  ;;  %vm1860_vm4 = vcmp.gt.f32.partialorder %v875_v26, 0.0  ;;  %2756 = vst.msk [vmem:[%s5420_s2 + $0x460] sm:$0xff] %vm2615_vm1, %v2499_v29  ;;  %v2374_v33 = vsel %vm1862_vm2, %v3156_v20, %v2118_v25  ;;  %v2116_v34 = vmul.f32 0.2, %v875_v26  ;;  %vm1988_vm5 = vcmp.gt.f32.partialorder %v1387_v27, 0.0  ;;  %3265 = vmatprep.mubr.msk.bf16.mxu0 %vm405_vm0, %v330_v10  ;;  %3393 = vmatprep.mubr.msk.bf16.mxu1 %vm405_vm0, %v394_v11 }
 0x102   :  { %v2244_v35 = vmul.f32 0.2, %v1387_v27  ;;  %2631 = vst.msk [vmem:[%s5420_s2 + $0x78] sm:$0xff] %vm2615_vm1, %v2374_v33  ;;  %v2502_v36 = vsel %vm1990_vm3, %v3284_v21, %v2246_v30 }
 0x103   :  { %2759 = vst.msk [vmem:[%s5420_s2 + $0x478] sm:$0xff] %vm2615_vm1, %v2502_v36  ;;  %v2372_v37 = vsel %vm1860_vm4, %v875_v26, %v2116_v34  ;;  %v3159_v39 = vpop.f32.mrb[16].mxu0  ;;  %v3287_v40 = vpop.f32.mrb[16].mxu1 }
 0x104   :  { %v2500_v38 = vsel %vm1988_vm5, %v1387_v27, %v2244_v35  ;;  %2629 = vst.msk [vmem:[%s5420_s2 + $0x68] sm:$0xff] %vm2615_vm1, %v2372_v37  ;;  %vm1865_vm6 = vcmp.gt.f32.partialorder %v3159_v39, 0.0  ;;  %v2121_v43 = vmul.f32 0.2, %v3159_v39  ;;  %vm1993_vm7 = vcmp.gt.f32.partialorder %v3287_v40, 0.0  ;;  %v888_v45 = vpop.f32.mrb[17].mxu0 }
 0x105   :  { %2757 = vst.msk [vmem:[%s5420_s2 + $0x468] sm:$0xff] %vm2615_vm1, %v2500_v38  ;;  %v2249_v44 = vmul.f32 0.2, %v3287_v40  ;;  %v1400_v46 = vpop.f32.mrb[17].mxu1  ;;  %vm1863_vm8 = vcmp.gt.f32.partialorder %v888_v45, 0.0  ;;  %v3160_v50 = vpop.f32.mrb[18].mxu0 }
 0x106   :  { %v2377_v47 = vsel %vm1865_vm6, %v3159_v39, %v2121_v43  ;;  %v2119_v49 = vmul.f32 0.2, %v888_v45  ;;  %v3288_v51 = vpop.f32.mrb[18].mxu1  ;;  %vm1991_vm9 = vcmp.gt.f32.partialorder %v1400_v46, 0.0  ;;  %v2247_v52 = vmul.f32 0.2, %v1400_v46 }
 0x107   :  { %v2505_v48 = vsel %vm1993_vm7, %v3287_v40, %v2249_v44  ;;  %2634 = vst.msk [vmem:[%s5420_s2 + $0x90] sm:$0xff] %vm2615_vm1, %v2377_v47  ;;  %vm1866_vm10 = vcmp.gt.f32.partialorder %v3160_v50, 0.0  ;;  %v2122_v53 = vmul.f32 0.2, %v3160_v50  ;;  %vm1994_vm11 = vcmp.gt.f32.partialorder %v3288_v51, 0.0  ;;  %v891_v56 = vpop.f32.mrb[19].mxu0 }
 0x108   :  { %2762 = vst.msk [vmem:[%s5420_s2 + $0x490] sm:$0xff] %vm2615_vm1, %v2505_v48  ;;  %v2375_v54 = vsel %vm1863_vm8, %v888_v45, %v2119_v49  ;;  %v2250_v55 = vmul.f32 0.2, %v3288_v51  ;;  %v1403_v57 = vpop.f32.mrb[19].mxu1  ;;  %3266 = vmatmul.mubr.msk.bf16.gmra.mrb[124].mxu0 %vm405_vm0, %v331_v41  ;;  %3394 = vmatmul.mubr.msk.bf16.gmra.mrb[124].mxu1 %vm405_vm0, %v395_v42  ;;  %v2503_v58 = vsel %vm1991_vm9, %v1400_v46, %v2247_v52  ;;  %vm1864_vm12 = vcmp.gt.f32.partialorder %v891_v56, 0.0 }
 0x109   :  { %2632 = vst.msk [vmem:[%s5420_s2 + $0x80] sm:$0xff] %vm2615_vm1, %v2375_v54  ;;  %v2378_v59 = vsel %vm1866_vm10, %v3160_v50, %v2122_v53  ;;  %v2120_v60 = vmul.f32 0.2, %v891_v56  ;;  %2760 = vst.msk [vmem:[%s5420_s2 + $0x480] sm:$0xff] %vm2615_vm1, %v2503_v58  ;;  %vm1992_vm0 = vcmp.gt.f32.partialorder %v1403_v57, 0.0 }
 0x10a   :  { %2635 = vst.msk [vmem:[%s5420_s2 + $0x98] sm:$0xff] %vm2615_vm1, %v2378_v59  ;;  %v2506_v61 = vsel %vm1994_vm11, %v3288_v51, %v2250_v55  ;;  %v2248_v62 = vmul.f32 0.2, %v1403_v57 }
 0x10b   :  { %2763 = vst.msk [vmem:[%s5420_s2 + $0x498] sm:$0xff] %vm2615_vm1, %v2506_v61  ;;  %v2376_v63 = vsel %vm1864_vm12, %v891_v56, %v2120_v60  ;;  %v3163_v0 = vpop.f32.mrb[20].mxu0  ;;  %v3291_v1 = vpop.f32.mrb[20].mxu1 }
 0x10c   :  { %2633 = vst.msk [vmem:[%s5420_s2 + $0x88] sm:$0xff] %vm2615_vm1, %v2376_v63  ;;  %v2504_v2 = vsel %vm1992_vm0, %v1403_v57, %v2248_v62  ;;  %vm1869_vm13 = vcmp.gt.f32.partialorder %v3163_v0, 0.0  ;;  %v2125_v3 = vmul.f32 0.2, %v3163_v0  ;;  %vm1997_vm14 = vcmp.gt.f32.partialorder %v3291_v1, 0.0  ;;  %v904_v4 = vpop.f32.mrb[21].mxu0 }
 0x10d   :  { %v1416_v5 = vpop.f32.mrb[21].mxu1  ;;  %2761 = vst.msk [vmem:[%s5420_s2 + $0x488] sm:$0xff] %vm2615_vm1, %v2504_v2  ;;  %v2253_v6 = vmul.f32 0.2, %v3291_v1  ;;  %vm1867_vm15 = vcmp.gt.f32.partialorder %v904_v4, 0.0  ;;  %v3164_v10 = vpop.f32.mrb[22].mxu0 }
 0x10e   :  { %v2123_v7 = vmul.f32 0.2, %v904_v4  ;;  %vm1995_vm2 = vcmp.gt.f32.partialorder %v1416_v5, 0.0  ;;  %v2381_v8 = vsel %vm1869_vm13, %v3163_v0, %v2125_v3  ;;  %v2251_v9 = vmul.f32 0.2, %v1416_v5  ;;  %v3292_v11 = vpop.f32.mrb[22].mxu1 }
 0x10f   :  { %2638 = vst.msk [vmem:[%s5420_s2 + $0xb0] sm:$0xff] %vm2615_vm1, %v2381_v8  ;;  %v2509_v12 = vsel %vm1997_vm14, %v3291_v1, %v2253_v6  ;;  %vm1870_vm3 = vcmp.gt.f32.partialorder %v3164_v10, 0.0  ;;  %v2126_v14 = vmul.f32 0.2, %v3164_v10  ;;  %v907_v15 = vpop.f32.mrb[23].mxu0  ;;  %v1419_v16 = vpop.f32.mrb[23].mxu1 }
 0x110   :  { %v2379_v13 = vsel %vm1867_vm15, %v904_v4, %v2123_v7  ;;  %2766 = vst.msk [vmem:[%s5420_s2 + $0x4b0] sm:$0xff] %vm2615_vm1, %v2509_v12  ;;  %v2507_v17 = vsel %vm1995_vm2, %v1416_v5, %v2251_v9  ;;  %vm1998_vm4 = vcmp.gt.f32.partialorder %v3292_v11, 0.0  ;;  %v2254_v18 = vmul.f32 0.2, %v3292_v11 }
 0x111   :  { %2636 = vst.msk [vmem:[%s5420_s2 + $0xa0] sm:$0xff] %vm2615_vm1, %v2379_v13  ;;  %vm1868_vm5 = vcmp.gt.f32.partialorder %v907_v15, 0.0  ;;  %2764 = vst.msk [vmem:[%s5420_s2 + $0x4a0] sm:$0xff] %vm2615_vm1, %v2507_v17  ;;  %v2382_v19 = vsel %vm1870_vm3, %v3164_v10, %v2126_v14  ;;  %v2124_v20 = vmul.f32 0.2, %v907_v15  ;;  %vm1996_vm6 = vcmp.gt.f32.partialorder %v1419_v16, 0.0 }
 0x112   :  { %v2252_v21 = vmul.f32 0.2, %v1419_v16  ;;  %2639 = vst.msk [vmem:[%s5420_s2 + $0xb8] sm:$0xff] %vm2615_vm1, %v2382_v19  ;;  %v2510_v22 = vsel %vm1998_vm4, %v3292_v11, %v2254_v18 }
 0x113   :  { %2767 = vst.msk [vmem:[%s5420_s2 + $0x4b8] sm:$0xff] %vm2615_vm1, %v2510_v22  ;;  %v2380_v23 = vsel %vm1868_vm5, %v907_v15, %v2124_v20  ;;  %v3167_v25 = vpop.f32.mrb[24].mxu0  ;;  %v3295_v26 = vpop.f32.mrb[24].mxu1 }
 0x114   :  { %v2508_v24 = vsel %vm1996_vm6, %v1419_v16, %v2252_v21  ;;  %2637 = vst.msk [vmem:[%s5420_s2 + $0xa8] sm:$0xff] %vm2615_vm1, %v2380_v23  ;;  %vm1873_vm7 = vcmp.gt.f32.partialorder %v3167_v25, 0.0  ;;  %v2129_v27 = vmul.f32 0.2, %v3167_v25  ;;  %vm2001_vm8 = vcmp.gt.f32.partialorder %v3295_v26, 0.0  ;;  %v920_v29 = vpop.f32.mrb[25].mxu0 }
 0x115   :  { %2765 = vst.msk [vmem:[%s5420_s2 + $0x4a8] sm:$0xff] %vm2615_vm1, %v2508_v24  ;;  %v2257_v28 = vmul.f32 0.2, %v3295_v26  ;;  %v1432_v30 = vpop.f32.mrb[25].mxu1  ;;  %vm1871_vm9 = vcmp.gt.f32.partialorder %v920_v29, 0.0  ;;  %v3168_v34 = vpop.f32.mrb[26].mxu0 }
 0x116   :  { %v2385_v31 = vsel %vm1873_vm7, %v3167_v25, %v2129_v27  ;;  %v2127_v33 = vmul.f32 0.2, %v920_v29  ;;  %v3296_v35 = vpop.f32.mrb[26].mxu1  ;;  %vm1999_vm10 = vcmp.gt.f32.partialorder %v1432_v30, 0.0  ;;  %v2255_v36 = vmul.f32 0.2, %v1432_v30 }
 0x117   :  { %v2513_v32 = vsel %vm2001_vm8, %v3295_v26, %v2257_v28  ;;  %2642 = vst.msk [vmem:[%s5420_s2 + $0xd0] sm:$0xff] %vm2615_vm1, %v2385_v31  ;;  %vm1874_vm11 = vcmp.gt.f32.partialorder %v3168_v34, 0.0  ;;  %v2130_v37 = vmul.f32 0.2, %v3168_v34  ;;  %vm2002_vm12 = vcmp.gt.f32.partialorder %v3296_v35, 0.0  ;;  %v923_v40 = vpop.f32.mrb[27].mxu0 }
 0x118   :  { %2770 = vst.msk [vmem:[%s5420_s2 + $0x4d0] sm:$0xff] %vm2615_vm1, %v2513_v32  ;;  %v2383_v38 = vsel %vm1871_vm9, %v920_v29, %v2127_v33  ;;  %v2258_v39 = vmul.f32 0.2, %v3296_v35  ;;  %v1435_v41 = vpop.f32.mrb[27].mxu1  ;;  %v2511_v42 = vsel %vm1999_vm10, %v1432_v30, %v2255_v36  ;;  %vm1872_vm0 = vcmp.gt.f32.partialorder %v923_v40, 0.0 }
 0x119   :  { %2640 = vst.msk [vmem:[%s5420_s2 + $0xc0] sm:$0xff] %vm2615_vm1, %v2383_v38  ;;  %v2386_v43 = vsel %vm1874_vm11, %v3168_v34, %v2130_v37  ;;  %v2128_v44 = vmul.f32 0.2, %v923_v40  ;;  %2768 = vst.msk [vmem:[%s5420_s2 + $0x4c0] sm:$0xff] %vm2615_vm1, %v2511_v42  ;;  %vm2000_vm13 = vcmp.gt.f32.partialorder %v1435_v41, 0.0 }
 0x11a   :  { %2643 = vst.msk [vmem:[%s5420_s2 + $0xd8] sm:$0xff] %vm2615_vm1, %v2386_v43  ;;  %v2514_v45 = vsel %vm2002_vm12, %v3296_v35, %v2258_v39  ;;  %v2256_v46 = vmul.f32 0.2, %v1435_v41 }
 0x11b   :  { %2771 = vst.msk [vmem:[%s5420_s2 + $0x4d8] sm:$0xff] %vm2615_vm1, %v2514_v45  ;;  %v2384_v47 = vsel %vm1872_vm0, %v923_v40, %v2128_v44  ;;  %v3171_v48 = vpop.f32.mrb[28].mxu0  ;;  %v3299_v49 = vpop.f32.mrb[28].mxu1 }
 0x11c   :  { %2641 = vst.msk [vmem:[%s5420_s2 + $0xc8] sm:$0xff] %vm2615_vm1, %v2384_v47  ;;  %v2512_v50 = vsel %vm2000_vm13, %v1435_v41, %v2256_v46  ;;  %vm1877_vm14 = vcmp.gt.f32.partialorder %v3171_v48, 0.0  ;;  %v2133_v51 = vmul.f32 0.2, %v3171_v48  ;;  %vm2005_vm15 = vcmp.gt.f32.partialorder %v3299_v49, 0.0  ;;  %v936_v52 = vpop.f32.mrb[29].mxu0 }
 0x11d   :  { %v1448_v53 = vpop.f32.mrb[29].mxu1  ;;  %2769 = vst.msk [vmem:[%s5420_s2 + $0x4c8] sm:$0xff] %vm2615_vm1, %v2512_v50  ;;  %v2261_v54 = vmul.f32 0.2, %v3299_v49  ;;  %vm1875_vm2 = vcmp.gt.f32.partialorder %v936_v52, 0.0  ;;  %v3172_v58 = vpop.f32.mrb[30].mxu0 }
 0x11e   :  { %v2131_v55 = vmul.f32 0.2, %v936_v52  ;;  %vm2003_vm3 = vcmp.gt.f32.partialorder %v1448_v53, 0.0  ;;  %v2389_v56 = vsel %vm1877_vm14, %v3171_v48, %v2133_v51  ;;  %v2259_v57 = vmul.f32 0.2, %v1448_v53  ;;  %v3300_v59 = vpop.f32.mrb[30].mxu1 }
 0x11f   :  { %2646 = vst.msk [vmem:[%s5420_s2 + $0xf0] sm:$0xff] %vm2615_vm1, %v2389_v56  ;;  %v2517_v60 = vsel %vm2005_vm15, %v3299_v49, %v2261_v54  ;;  %vm1878_vm4 = vcmp.gt.f32.partialorder %v3172_v58, 0.0  ;;  %v2134_v62 = vmul.f32 0.2, %v3172_v58  ;;  %v939_v63 = vpop.f32.mrb[31].mxu0  ;;  %v1451_v0 = vpop.f32.mrb[31].mxu1 }
 0x120   :  { %v2387_v61 = vsel %vm1875_vm2, %v936_v52, %v2131_v55  ;;  %2774 = vst.msk [vmem:[%s5420_s2 + $0x4f0] sm:$0xff] %vm2615_vm1, %v2517_v60  ;;  %v2515_v1 = vsel %vm2003_vm3, %v1448_v53, %v2259_v57  ;;  %vm2006_vm5 = vcmp.gt.f32.partialorder %v3300_v59, 0.0  ;;  %v2262_v2 = vmul.f32 0.2, %v3300_v59 }
 0x121   :  { %2644 = vst.msk [vmem:[%s5420_s2 + $0xe0] sm:$0xff] %vm2615_vm1, %v2387_v61  ;;  %vm1876_vm6 = vcmp.gt.f32.partialorder %v939_v63, 0.0  ;;  %2772 = vst.msk [vmem:[%s5420_s2 + $0x4e0] sm:$0xff] %vm2615_vm1, %v2515_v1  ;;  %v2390_v3 = vsel %vm1878_vm4, %v3172_v58, %v2134_v62  ;;  %v2132_v4 = vmul.f32 0.2, %v939_v63  ;;  %vm2004_vm7 = vcmp.gt.f32.partialorder %v1451_v0, 0.0 }
 0x122   :  { %v2260_v5 = vmul.f32 0.2, %v1451_v0  ;;  %2647 = vst.msk [vmem:[%s5420_s2 + $0xf8] sm:$0xff] %vm2615_vm1, %v2390_v3  ;;  %v2518_v6 = vsel %vm2006_vm5, %v3300_v59, %v2262_v2 }
 0x123   :  { %2775 = vst.msk [vmem:[%s5420_s2 + $0x4f8] sm:$0xff] %vm2615_vm1, %v2518_v6  ;;  %v2388_v7 = vsel %vm1876_vm6, %v939_v63, %v2132_v4  ;;  %v3175_v9 = vpop.f32.mrb[32].mxu0  ;;  %v3303_v10 = vpop.f32.mrb[32].mxu1 }
 0x124   :  { %v2516_v8 = vsel %vm2004_vm7, %v1451_v0, %v2260_v5  ;;  %2645 = vst.msk [vmem:[%s5420_s2 + $0xe8] sm:$0xff] %vm2615_vm1, %v2388_v7  ;;  %vm1881_vm8 = vcmp.gt.f32.partialorder %v3175_v9, 0.0  ;;  %v2137_v11 = vmul.f32 0.2, %v3175_v9  ;;  %vm2009_vm9 = vcmp.gt.f32.partialorder %v3303_v10, 0.0  ;;  %v952_v13 = vpop.f32.mrb[33].mxu0 }
 0x125   :  { %2773 = vst.msk [vmem:[%s5420_s2 + $0x4e8] sm:$0xff] %vm2615_vm1, %v2516_v8  ;;  %v2265_v12 = vmul.f32 0.2, %v3303_v10  ;;  %v1464_v14 = vpop.f32.mrb[33].mxu1  ;;  %vm1879_vm10 = vcmp.gt.f32.partialorder %v952_v13, 0.0  ;;  %v3176_v18 = vpop.f32.mrb[34].mxu0 }
 0x126   :  { %v2393_v15 = vsel %vm1881_vm8, %v3175_v9, %v2137_v11  ;;  %v2135_v17 = vmul.f32 0.2, %v952_v13  ;;  %v3304_v19 = vpop.f32.mrb[34].mxu1  ;;  %vm2007_vm11 = vcmp.gt.f32.partialorder %v1464_v14, 0.0  ;;  %v2263_v20 = vmul.f32 0.2, %v1464_v14 }
 0x127   :  { %v2521_v16 = vsel %vm2009_vm9, %v3303_v10, %v2265_v12  ;;  %2650 = vst.msk [vmem:[%s5420_s2 + $0x110] sm:$0xff] %vm2615_vm1, %v2393_v15  ;;  %vm1882_vm12 = vcmp.gt.f32.partialorder %v3176_v18, 0.0  ;;  %v2138_v21 = vmul.f32 0.2, %v3176_v18  ;;  %vm2010_vm0 = vcmp.gt.f32.partialorder %v3304_v19, 0.0  ;;  %v955_v24 = vpop.f32.mrb[35].mxu0 }
 0x128   :  { %2778 = vst.msk [vmem:[%s5420_s2 + $0x510] sm:$0xff] %vm2615_vm1, %v2521_v16  ;;  %v2391_v22 = vsel %vm1879_vm10, %v952_v13, %v2135_v17  ;;  %v2266_v23 = vmul.f32 0.2, %v3304_v19  ;;  %v1467_v25 = vpop.f32.mrb[35].mxu1  ;;  %v2519_v26 = vsel %vm2007_vm11, %v1464_v14, %v2263_v20  ;;  %vm1880_vm13 = vcmp.gt.f32.partialorder %v955_v24, 0.0 }
 0x129   :  { %2648 = vst.msk [vmem:[%s5420_s2 + $0x100] sm:$0xff] %vm2615_vm1, %v2391_v22  ;;  %v2394_v27 = vsel %vm1882_vm12, %v3176_v18, %v2138_v21  ;;  %v2136_v28 = vmul.f32 0.2, %v955_v24  ;;  %2776 = vst.msk [vmem:[%s5420_s2 + $0x500] sm:$0xff] %vm2615_vm1, %v2519_v26  ;;  %vm2008_vm14 = vcmp.gt.f32.partialorder %v1467_v25, 0.0 }
 0x12a   :  { %2651 = vst.msk [vmem:[%s5420_s2 + $0x118] sm:$0xff] %vm2615_vm1, %v2394_v27  ;;  %v2522_v29 = vsel %vm2010_vm0, %v3304_v19, %v2266_v23  ;;  %v2264_v30 = vmul.f32 0.2, %v1467_v25 }
 0x12b   :  { %2779 = vst.msk [vmem:[%s5420_s2 + $0x518] sm:$0xff] %vm2615_vm1, %v2522_v29  ;;  %v2392_v31 = vsel %vm1880_vm13, %v955_v24, %v2136_v28  ;;  %v3179_v32 = vpop.f32.mrb[36].mxu0  ;;  %v3307_v33 = vpop.f32.mrb[36].mxu1 }
 0x12c   :  { %2649 = vst.msk [vmem:[%s5420_s2 + $0x108] sm:$0xff] %vm2615_vm1, %v2392_v31  ;;  %v2520_v34 = vsel %vm2008_vm14, %v1467_v25, %v2264_v30  ;;  %vm1885_vm15 = vcmp.gt.f32.partialorder %v3179_v32, 0.0  ;;  %v2141_v35 = vmul.f32 0.2, %v3179_v32  ;;  %vm2013_vm2 = vcmp.gt.f32.partialorder %v3307_v33, 0.0  ;;  %v968_v36 = vpop.f32.mrb[37].mxu0 }
 0x12d   :  { %v1480_v37 = vpop.f32.mrb[37].mxu1  ;;  %2777 = vst.msk [vmem:[%s5420_s2 + $0x508] sm:$0xff] %vm2615_vm1, %v2520_v34  ;;  %v2269_v38 = vmul.f32 0.2, %v3307_v33  ;;  %vm1883_vm3 = vcmp.gt.f32.partialorder %v968_v36, 0.0  ;;  %v3180_v42 = vpop.f32.mrb[38].mxu0 }
 0x12e   :  { %v2139_v39 = vmul.f32 0.2, %v968_v36  ;;  %vm2011_vm4 = vcmp.gt.f32.partialorder %v1480_v37, 0.0  ;;  %v2397_v40 = vsel %vm1885_vm15, %v3179_v32, %v2141_v35  ;;  %v2267_v41 = vmul.f32 0.2, %v1480_v37  ;;  %v3308_v43 = vpop.f32.mrb[38].mxu1 }
 0x12f   :  { %2654 = vst.msk [vmem:[%s5420_s2 + $0x130] sm:$0xff] %vm2615_vm1, %v2397_v40  ;;  %v2525_v44 = vsel %vm2013_vm2, %v3307_v33, %v2269_v38  ;;  %vm1886_vm5 = vcmp.gt.f32.partialorder %v3180_v42, 0.0  ;;  %v2142_v46 = vmul.f32 0.2, %v3180_v42  ;;  %v971_v47 = vpop.f32.mrb[39].mxu0  ;;  %v1483_v48 = vpop.f32.mrb[39].mxu1 }
 0x130   :  { %v2395_v45 = vsel %vm1883_vm3, %v968_v36, %v2139_v39  ;;  %2782 = vst.msk [vmem:[%s5420_s2 + $0x530] sm:$0xff] %vm2615_vm1, %v2525_v44  ;;  %v2523_v49 = vsel %vm2011_vm4, %v1480_v37, %v2267_v41  ;;  %vm2014_vm6 = vcmp.gt.f32.partialorder %v3308_v43, 0.0  ;;  %v2270_v50 = vmul.f32 0.2, %v3308_v43 }
 0x131   :  { %2652 = vst.msk [vmem:[%s5420_s2 + $0x120] sm:$0xff] %vm2615_vm1, %v2395_v45  ;;  %vm1884_vm7 = vcmp.gt.f32.partialorder %v971_v47, 0.0  ;;  %2780 = vst.msk [vmem:[%s5420_s2 + $0x520] sm:$0xff] %vm2615_vm1, %v2523_v49  ;;  %v2398_v51 = vsel %vm1886_vm5, %v3180_v42, %v2142_v46  ;;  %v2140_v52 = vmul.f32 0.2, %v971_v47  ;;  %vm2012_vm8 = vcmp.gt.f32.partialorder %v1483_v48, 0.0 }
 0x132   :  { %v2268_v53 = vmul.f32 0.2, %v1483_v48  ;;  %2655 = vst.msk [vmem:[%s5420_s2 + $0x138] sm:$0xff] %vm2615_vm1, %v2398_v51  ;;  %v2526_v54 = vsel %vm2014_vm6, %v3308_v43, %v2270_v50 }
 0x133   :  { %2783 = vst.msk [vmem:[%s5420_s2 + $0x538] sm:$0xff] %vm2615_vm1, %v2526_v54  ;;  %v2396_v55 = vsel %vm1884_vm7, %v971_v47, %v2140_v52  ;;  %v3183_v57 = vpop.f32.mrb[40].mxu0  ;;  %v3311_v58 = vpop.f32.mrb[40].mxu1 }
 0x134   :  { %v2524_v56 = vsel %vm2012_vm8, %v1483_v48, %v2268_v53  ;;  %2653 = vst.msk [vmem:[%s5420_s2 + $0x128] sm:$0xff] %vm2615_vm1, %v2396_v55  ;;  %vm1889_vm9 = vcmp.gt.f32.partialorder %v3183_v57, 0.0  ;;  %v2145_v59 = vmul.f32 0.2, %v3183_v57  ;;  %vm2017_vm10 = vcmp.gt.f32.partialorder %v3311_v58, 0.0  ;;  %v984_v61 = vpop.f32.mrb[41].mxu0 }
 0x135   :  { %2781 = vst.msk [vmem:[%s5420_s2 + $0x528] sm:$0xff] %vm2615_vm1, %v2524_v56  ;;  %v2273_v60 = vmul.f32 0.2, %v3311_v58  ;;  %v1496_v62 = vpop.f32.mrb[41].mxu1  ;;  %vm1887_vm11 = vcmp.gt.f32.partialorder %v984_v61, 0.0  ;;  %v3184_v2 = vpop.f32.mrb[42].mxu0 }
 0x136   :  { %v2401_v63 = vsel %vm1889_vm9, %v3183_v57, %v2145_v59  ;;  %v2143_v1 = vmul.f32 0.2, %v984_v61  ;;  %v3312_v3 = vpop.f32.mrb[42].mxu1  ;;  %vm2015_vm12 = vcmp.gt.f32.partialorder %v1496_v62, 0.0  ;;  %v2271_v4 = vmul.f32 0.2, %v1496_v62 }
 0x137   :  { %v2529_v0 = vsel %vm2017_vm10, %v3311_v58, %v2273_v60  ;;  %2658 = vst.msk [vmem:[%s5420_s2 + $0x150] sm:$0xff] %vm2615_vm1, %v2401_v63  ;;  %vm1890_vm0 = vcmp.gt.f32.partialorder %v3184_v2, 0.0  ;;  %v2146_v5 = vmul.f32 0.2, %v3184_v2  ;;  %vm2018_vm13 = vcmp.gt.f32.partialorder %v3312_v3, 0.0  ;;  %v987_v8 = vpop.f32.mrb[43].mxu0 }
 0x138   :  { %2786 = vst.msk [vmem:[%s5420_s2 + $0x550] sm:$0xff] %vm2615_vm1, %v2529_v0  ;;  %v2399_v6 = vsel %vm1887_vm11, %v984_v61, %v2143_v1  ;;  %v2274_v7 = vmul.f32 0.2, %v3312_v3  ;;  %v1499_v9 = vpop.f32.mrb[43].mxu1  ;;  %v2527_v10 = vsel %vm2015_vm12, %v1496_v62, %v2271_v4  ;;  %vm1888_vm14 = vcmp.gt.f32.partialorder %v987_v8, 0.0 }
 0x139   :  { %2656 = vst.msk [vmem:[%s5420_s2 + $0x140] sm:$0xff] %vm2615_vm1, %v2399_v6  ;;  %v2402_v11 = vsel %vm1890_vm0, %v3184_v2, %v2146_v5  ;;  %v2144_v12 = vmul.f32 0.2, %v987_v8  ;;  %2784 = vst.msk [vmem:[%s5420_s2 + $0x540] sm:$0xff] %vm2615_vm1, %v2527_v10  ;;  %vm2016_vm15 = vcmp.gt.f32.partialorder %v1499_v9, 0.0 }
 0x13a   :  { %2659 = vst.msk [vmem:[%s5420_s2 + $0x158] sm:$0xff] %vm2615_vm1, %v2402_v11  ;;  %v2530_v13 = vsel %vm2018_vm13, %v3312_v3, %v2274_v7  ;;  %v2272_v14 = vmul.f32 0.2, %v1499_v9 }
 0x13b   :  { %2787 = vst.msk [vmem:[%s5420_s2 + $0x558] sm:$0xff] %vm2615_vm1, %v2530_v13  ;;  %v2400_v15 = vsel %vm1888_vm14, %v987_v8, %v2144_v12  ;;  %v3187_v16 = vpop.f32.mrb[44].mxu0  ;;  %v3315_v17 = vpop.f32.mrb[44].mxu1 }
 0x13c   :  { %2657 = vst.msk [vmem:[%s5420_s2 + $0x148] sm:$0xff] %vm2615_vm1, %v2400_v15  ;;  %v2528_v18 = vsel %vm2016_vm15, %v1499_v9, %v2272_v14  ;;  %vm1893_vm2 = vcmp.gt.f32.partialorder %v3187_v16, 0.0  ;;  %v2149_v19 = vmul.f32 0.2, %v3187_v16  ;;  %vm2021_vm3 = vcmp.gt.f32.partialorder %v3315_v17, 0.0  ;;  %v1000_v20 = vpop.f32.mrb[45].mxu0 }
 0x13d   :  { %v1512_v21 = vpop.f32.mrb[45].mxu1  ;;  %2785 = vst.msk [vmem:[%s5420_s2 + $0x548] sm:$0xff] %vm2615_vm1, %v2528_v18  ;;  %v2277_v22 = vmul.f32 0.2, %v3315_v17  ;;  %vm1891_vm4 = vcmp.gt.f32.partialorder %v1000_v20, 0.0  ;;  %v3188_v26 = vpop.f32.mrb[46].mxu0 }
 0x13e   :  { %v2147_v23 = vmul.f32 0.2, %v1000_v20  ;;  %vm2019_vm5 = vcmp.gt.f32.partialorder %v1512_v21, 0.0  ;;  %v2405_v24 = vsel %vm1893_vm2, %v3187_v16, %v2149_v19  ;;  %v2275_v25 = vmul.f32 0.2, %v1512_v21  ;;  %v3316_v27 = vpop.f32.mrb[46].mxu1 }
 0x13f   :  { %2662 = vst.msk [vmem:[%s5420_s2 + $0x170] sm:$0xff] %vm2615_vm1, %v2405_v24  ;;  %v2533_v28 = vsel %vm2021_vm3, %v3315_v17, %v2277_v22  ;;  %vm1894_vm6 = vcmp.gt.f32.partialorder %v3188_v26, 0.0  ;;  %v2150_v30 = vmul.f32 0.2, %v3188_v26  ;;  %v1003_v31 = vpop.f32.mrb[47].mxu0  ;;  %v1515_v32 = vpop.f32.mrb[47].mxu1 }
 0x140   :  { %v2403_v29 = vsel %vm1891_vm4, %v1000_v20, %v2147_v23  ;;  %2790 = vst.msk [vmem:[%s5420_s2 + $0x570] sm:$0xff] %vm2615_vm1, %v2533_v28  ;;  %v2531_v33 = vsel %vm2019_vm5, %v1512_v21, %v2275_v25  ;;  %vm2022_vm7 = vcmp.gt.f32.partialorder %v3316_v27, 0.0  ;;  %v2278_v34 = vmul.f32 0.2, %v3316_v27 }
 0x141   :  { %2660 = vst.msk [vmem:[%s5420_s2 + $0x160] sm:$0xff] %vm2615_vm1, %v2403_v29  ;;  %vm1892_vm8 = vcmp.gt.f32.partialorder %v1003_v31, 0.0  ;;  %2788 = vst.msk [vmem:[%s5420_s2 + $0x560] sm:$0xff] %vm2615_vm1, %v2531_v33  ;;  %v2406_v35 = vsel %vm1894_vm6, %v3188_v26, %v2150_v30  ;;  %v2148_v36 = vmul.f32 0.2, %v1003_v31  ;;  %vm2020_vm9 = vcmp.gt.f32.partialorder %v1515_v32, 0.0 }
 0x142   :  { %v2276_v37 = vmul.f32 0.2, %v1515_v32  ;;  %2663 = vst.msk [vmem:[%s5420_s2 + $0x178] sm:$0xff] %vm2615_vm1, %v2406_v35  ;;  %v2534_v38 = vsel %vm2022_vm7, %v3316_v27, %v2278_v34 }
 0x143   :  { %2791 = vst.msk [vmem:[%s5420_s2 + $0x578] sm:$0xff] %vm2615_vm1, %v2534_v38  ;;  %v2404_v39 = vsel %vm1892_vm8, %v1003_v31, %v2148_v36  ;;  %v3191_v41 = vpop.f32.mrb[48].mxu0  ;;  %v3319_v42 = vpop.f32.mrb[48].mxu1 }
 0x144   :  { %v2532_v40 = vsel %vm2020_vm9, %v1515_v32, %v2276_v37  ;;  %2661 = vst.msk [vmem:[%s5420_s2 + $0x168] sm:$0xff] %vm2615_vm1, %v2404_v39  ;;  %vm1897_vm10 = vcmp.gt.f32.partialorder %v3191_v41, 0.0  ;;  %v2153_v43 = vmul.f32 0.2, %v3191_v41  ;;  %vm2025_vm11 = vcmp.gt.f32.partialorder %v3319_v42, 0.0  ;;  %v1016_v45 = vpop.f32.mrb[49].mxu0 }
 0x145   :  { %2789 = vst.msk [vmem:[%s5420_s2 + $0x568] sm:$0xff] %vm2615_vm1, %v2532_v40  ;;  %v2281_v44 = vmul.f32 0.2, %v3319_v42  ;;  %v1528_v46 = vpop.f32.mrb[49].mxu1  ;;  %vm1895_vm12 = vcmp.gt.f32.partialorder %v1016_v45, 0.0  ;;  %v3192_v50 = vpop.f32.mrb[50].mxu0 }
 0x146   :  { %v2409_v47 = vsel %vm1897_vm10, %v3191_v41, %v2153_v43  ;;  %v2151_v49 = vmul.f32 0.2, %v1016_v45  ;;  %v3320_v51 = vpop.f32.mrb[50].mxu1  ;;  %vm2023_vm0 = vcmp.gt.f32.partialorder %v1528_v46, 0.0  ;;  %v2279_v52 = vmul.f32 0.2, %v1528_v46 }
 0x147   :  { %v2537_v48 = vsel %vm2025_vm11, %v3319_v42, %v2281_v44  ;;  %2666 = vst.msk [vmem:[%s5420_s2 + $0x190] sm:$0xff] %vm2615_vm1, %v2409_v47  ;;  %vm1898_vm13 = vcmp.gt.f32.partialorder %v3192_v50, 0.0  ;;  %v2154_v53 = vmul.f32 0.2, %v3192_v50  ;;  %vm2026_vm14 = vcmp.gt.f32.partialorder %v3320_v51, 0.0  ;;  %v1019_v56 = vpop.f32.mrb[51].mxu0 }
 0x148   :  { %2794 = vst.msk [vmem:[%s5420_s2 + $0x590] sm:$0xff] %vm2615_vm1, %v2537_v48  ;;  %v2407_v54 = vsel %vm1895_vm12, %v1016_v45, %v2151_v49  ;;  %v2282_v55 = vmul.f32 0.2, %v3320_v51  ;;  %v1531_v57 = vpop.f32.mrb[51].mxu1  ;;  %v2535_v58 = vsel %vm2023_vm0, %v1528_v46, %v2279_v52  ;;  %vm1896_vm15 = vcmp.gt.f32.partialorder %v1019_v56, 0.0 }
 0x149   :  { %2664 = vst.msk [vmem:[%s5420_s2 + $0x180] sm:$0xff] %vm2615_vm1, %v2407_v54  ;;  %v2410_v59 = vsel %vm1898_vm13, %v3192_v50, %v2154_v53  ;;  %v2152_v60 = vmul.f32 0.2, %v1019_v56  ;;  %2792 = vst.msk [vmem:[%s5420_s2 + $0x580] sm:$0xff] %vm2615_vm1, %v2535_v58  ;;  %vm2024_vm2 = vcmp.gt.f32.partialorder %v1531_v57, 0.0 }
 0x14a   :  { %2667 = vst.msk [vmem:[%s5420_s2 + $0x198] sm:$0xff] %vm2615_vm1, %v2410_v59  ;;  %v2538_v61 = vsel %vm2026_vm14, %v3320_v51, %v2282_v55  ;;  %v2280_v62 = vmul.f32 0.2, %v1531_v57 }
 0x14b   :  { %2795 = vst.msk [vmem:[%s5420_s2 + $0x598] sm:$0xff] %vm2615_vm1, %v2538_v61  ;;  %v2408_v63 = vsel %vm1896_vm15, %v1019_v56, %v2152_v60  ;;  %v3195_v0 = vpop.f32.mrb[52].mxu0  ;;  %v3323_v1 = vpop.f32.mrb[52].mxu1 }
 0x14c   :  { %2665 = vst.msk [vmem:[%s5420_s2 + $0x188] sm:$0xff] %vm2615_vm1, %v2408_v63  ;;  %v2536_v2 = vsel %vm2024_vm2, %v1531_v57, %v2280_v62  ;;  %vm1901_vm3 = vcmp.gt.f32.partialorder %v3195_v0, 0.0  ;;  %v2157_v3 = vmul.f32 0.2, %v3195_v0  ;;  %vm2029_vm4 = vcmp.gt.f32.partialorder %v3323_v1, 0.0  ;;  %v1032_v4 = vpop.f32.mrb[53].mxu0 }
 0x14d   :  { %v1544_v5 = vpop.f32.mrb[53].mxu1  ;;  %2793 = vst.msk [vmem:[%s5420_s2 + $0x588] sm:$0xff] %vm2615_vm1, %v2536_v2  ;;  %v2285_v6 = vmul.f32 0.2, %v3323_v1  ;;  %vm1899_vm5 = vcmp.gt.f32.partialorder %v1032_v4, 0.0  ;;  %v3196_v10 = vpop.f32.mrb[54].mxu0 }
 0x14e   :  { %v2155_v7 = vmul.f32 0.2, %v1032_v4  ;;  %vm2027_vm6 = vcmp.gt.f32.partialorder %v1544_v5, 0.0  ;;  %v2413_v8 = vsel %vm1901_vm3, %v3195_v0, %v2157_v3  ;;  %v2283_v9 = vmul.f32 0.2, %v1544_v5  ;;  %v3324_v11 = vpop.f32.mrb[54].mxu1 }
 0x14f   :  { %2670 = vst.msk [vmem:[%s5420_s2 + $0x1b0] sm:$0xff] %vm2615_vm1, %v2413_v8  ;;  %v2541_v12 = vsel %vm2029_vm4, %v3323_v1, %v2285_v6  ;;  %vm1902_vm7 = vcmp.gt.f32.partialorder %v3196_v10, 0.0  ;;  %v2158_v14 = vmul.f32 0.2, %v3196_v10  ;;  %v1035_v15 = vpop.f32.mrb[55].mxu0  ;;  %v1547_v16 = vpop.f32.mrb[55].mxu1 }
 0x150   :  { %v2411_v13 = vsel %vm1899_vm5, %v1032_v4, %v2155_v7  ;;  %2798 = vst.msk [vmem:[%s5420_s2 + $0x5b0] sm:$0xff] %vm2615_vm1, %v2541_v12  ;;  %v2539_v17 = vsel %vm2027_vm6, %v1544_v5, %v2283_v9  ;;  %vm2030_vm8 = vcmp.gt.f32.partialorder %v3324_v11, 0.0  ;;  %v2286_v18 = vmul.f32 0.2, %v3324_v11 }
 0x151   :  { %2668 = vst.msk [vmem:[%s5420_s2 + $0x1a0] sm:$0xff] %vm2615_vm1, %v2411_v13  ;;  %vm1900_vm9 = vcmp.gt.f32.partialorder %v1035_v15, 0.0  ;;  %2796 = vst.msk [vmem:[%s5420_s2 + $0x5a0] sm:$0xff] %vm2615_vm1, %v2539_v17  ;;  %v2414_v19 = vsel %vm1902_vm7, %v3196_v10, %v2158_v14  ;;  %v2156_v20 = vmul.f32 0.2, %v1035_v15  ;;  %vm2028_vm10 = vcmp.gt.f32.partialorder %v1547_v16, 0.0 }
 0x152   :  { %v2284_v21 = vmul.f32 0.2, %v1547_v16  ;;  %2671 = vst.msk [vmem:[%s5420_s2 + $0x1b8] sm:$0xff] %vm2615_vm1, %v2414_v19  ;;  %v2542_v22 = vsel %vm2030_vm8, %v3324_v11, %v2286_v18 }
 0x153   :  { %2799 = vst.msk [vmem:[%s5420_s2 + $0x5b8] sm:$0xff] %vm2615_vm1, %v2542_v22  ;;  %v2412_v23 = vsel %vm1900_vm9, %v1035_v15, %v2156_v20  ;;  %v3199_v25 = vpop.f32.mrb[56].mxu0  ;;  %v3327_v26 = vpop.f32.mrb[56].mxu1 }
 0x154   :  { %v2540_v24 = vsel %vm2028_vm10, %v1547_v16, %v2284_v21  ;;  %2669 = vst.msk [vmem:[%s5420_s2 + $0x1a8] sm:$0xff] %vm2615_vm1, %v2412_v23  ;;  %vm1905_vm11 = vcmp.gt.f32.partialorder %v3199_v25, 0.0  ;;  %v2161_v27 = vmul.f32 0.2, %v3199_v25  ;;  %vm2033_vm12 = vcmp.gt.f32.partialorder %v3327_v26, 0.0  ;;  %v1048_v29 = vpop.f32.mrb[57].mxu0 }
 0x155   :  { %2797 = vst.msk [vmem:[%s5420_s2 + $0x5a8] sm:$0xff] %vm2615_vm1, %v2540_v24  ;;  %v2289_v28 = vmul.f32 0.2, %v3327_v26  ;;  %v1560_v30 = vpop.f32.mrb[57].mxu1  ;;  %vm1903_vm0 = vcmp.gt.f32.partialorder %v1048_v29, 0.0  ;;  %v3200_v34 = vpop.f32.mrb[58].mxu0 }
 0x156   :  { %v2417_v31 = vsel %vm1905_vm11, %v3199_v25, %v2161_v27  ;;  %v2159_v33 = vmul.f32 0.2, %v1048_v29  ;;  %v3328_v35 = vpop.f32.mrb[58].mxu1  ;;  %vm2031_vm13 = vcmp.gt.f32.partialorder %v1560_v30, 0.0  ;;  %v2287_v36 = vmul.f32 0.2, %v1560_v30 }
 0x157   :  { %v2545_v32 = vsel %vm2033_vm12, %v3327_v26, %v2289_v28  ;;  %2674 = vst.msk [vmem:[%s5420_s2 + $0x1d0] sm:$0xff] %vm2615_vm1, %v2417_v31  ;;  %vm1906_vm14 = vcmp.gt.f32.partialorder %v3200_v34, 0.0  ;;  %v2162_v37 = vmul.f32 0.2, %v3200_v34  ;;  %vm2034_vm15 = vcmp.gt.f32.partialorder %v3328_v35, 0.0  ;;  %v1051_v40 = vpop.f32.mrb[59].mxu0 }
 0x158   :  { %2802 = vst.msk [vmem:[%s5420_s2 + $0x5d0] sm:$0xff] %vm2615_vm1, %v2545_v32  ;;  %v2415_v38 = vsel %vm1903_vm0, %v1048_v29, %v2159_v33  ;;  %v2290_v39 = vmul.f32 0.2, %v3328_v35  ;;  %v1563_v41 = vpop.f32.mrb[59].mxu1  ;;  %v2543_v42 = vsel %vm2031_vm13, %v1560_v30, %v2287_v36  ;;  %vm1904_vm2 = vcmp.gt.f32.partialorder %v1051_v40, 0.0 }
 0x159   :  { %2672 = vst.msk [vmem:[%s5420_s2 + $0x1c0] sm:$0xff] %vm2615_vm1, %v2415_v38  ;;  %v2418_v43 = vsel %vm1906_vm14, %v3200_v34, %v2162_v37  ;;  %v2160_v44 = vmul.f32 0.2, %v1051_v40  ;;  %2800 = vst.msk [vmem:[%s5420_s2 + $0x5c0] sm:$0xff] %vm2615_vm1, %v2543_v42  ;;  %vm2032_vm3 = vcmp.gt.f32.partialorder %v1563_v41, 0.0 }
 0x15a   :  { %2675 = vst.msk [vmem:[%s5420_s2 + $0x1d8] sm:$0xff] %vm2615_vm1, %v2418_v43  ;;  %v2546_v45 = vsel %vm2034_vm15, %v3328_v35, %v2290_v39  ;;  %v2288_v46 = vmul.f32 0.2, %v1563_v41 }
 0x15b   :  { %2803 = vst.msk [vmem:[%s5420_s2 + $0x5d8] sm:$0xff] %vm2615_vm1, %v2546_v45  ;;  %v2416_v47 = vsel %vm1904_vm2, %v1051_v40, %v2160_v44  ;;  %v3203_v48 = vpop.f32.mrb[60].mxu0  ;;  %v3331_v49 = vpop.f32.mrb[60].mxu1 }
 0x15c   :  { %2673 = vst.msk [vmem:[%s5420_s2 + $0x1c8] sm:$0xff] %vm2615_vm1, %v2416_v47  ;;  %v2544_v50 = vsel %vm2032_vm3, %v1563_v41, %v2288_v46  ;;  %vm1909_vm4 = vcmp.gt.f32.partialorder %v3203_v48, 0.0  ;;  %v2165_v51 = vmul.f32 0.2, %v3203_v48  ;;  %vm2037_vm5 = vcmp.gt.f32.partialorder %v3331_v49, 0.0  ;;  %v1064_v52 = vpop.f32.mrb[61].mxu0 }
 0x15d   :  { %v1576_v53 = vpop.f32.mrb[61].mxu1  ;;  %2801 = vst.msk [vmem:[%s5420_s2 + $0x5c8] sm:$0xff] %vm2615_vm1, %v2544_v50  ;;  %v2293_v54 = vmul.f32 0.2, %v3331_v49  ;;  %vm1907_vm6 = vcmp.gt.f32.partialorder %v1064_v52, 0.0  ;;  %v3204_v58 = vpop.f32.mrb[62].mxu0 }
 0x15e   :  { %v2163_v55 = vmul.f32 0.2, %v1064_v52  ;;  %vm2035_vm7 = vcmp.gt.f32.partialorder %v1576_v53, 0.0  ;;  %v2421_v56 = vsel %vm1909_vm4, %v3203_v48, %v2165_v51  ;;  %v2291_v57 = vmul.f32 0.2, %v1576_v53  ;;  %v3332_v59 = vpop.f32.mrb[62].mxu1 }
 0x15f   :  { %2678 = vst.msk [vmem:[%s5420_s2 + $0x1f0] sm:$0xff] %vm2615_vm1, %v2421_v56  ;;  %v2549_v60 = vsel %vm2037_vm5, %v3331_v49, %v2293_v54  ;;  %vm1910_vm8 = vcmp.gt.f32.partialorder %v3204_v58, 0.0  ;;  %v2166_v62 = vmul.f32 0.2, %v3204_v58  ;;  %v1067_v63 = vpop.f32.mrb[63].mxu0  ;;  %v1579_v0 = vpop.f32.mrb[63].mxu1 }
 0x160   :  { %v2419_v61 = vsel %vm1907_vm6, %v1064_v52, %v2163_v55  ;;  %2806 = vst.msk [vmem:[%s5420_s2 + $0x5f0] sm:$0xff] %vm2615_vm1, %v2549_v60  ;;  %v2547_v1 = vsel %vm2035_vm7, %v1576_v53, %v2291_v57  ;;  %vm2038_vm9 = vcmp.gt.f32.partialorder %v3332_v59, 0.0  ;;  %v2294_v2 = vmul.f32 0.2, %v3332_v59 }
 0x161   :  { %2676 = vst.msk [vmem:[%s5420_s2 + $0x1e0] sm:$0xff] %vm2615_vm1, %v2419_v61  ;;  %vm1908_vm10 = vcmp.gt.f32.partialorder %v1067_v63, 0.0  ;;  %2804 = vst.msk [vmem:[%s5420_s2 + $0x5e0] sm:$0xff] %vm2615_vm1, %v2547_v1  ;;  %v2422_v3 = vsel %vm1910_vm8, %v3204_v58, %v2166_v62  ;;  %v2164_v4 = vmul.f32 0.2, %v1067_v63  ;;  %vm2036_vm11 = vcmp.gt.f32.partialorder %v1579_v0, 0.0 }
 0x162   :  { %v2292_v5 = vmul.f32 0.2, %v1579_v0  ;;  %2679 = vst.msk [vmem:[%s5420_s2 + $0x1f8] sm:$0xff] %vm2615_vm1, %v2422_v3  ;;  %v2550_v6 = vsel %vm2038_vm9, %v3332_v59, %v2294_v2 }
 0x163   :  { %2807 = vst.msk [vmem:[%s5420_s2 + $0x5f8] sm:$0xff] %vm2615_vm1, %v2550_v6  ;;  %v2420_v7 = vsel %vm1908_vm10, %v1067_v63, %v2164_v4  ;;  %v3207_v9 = vpop.f32.mrb[64].mxu0  ;;  %v3335_v10 = vpop.f32.mrb[64].mxu1 }
 0x164   :  { %v2548_v8 = vsel %vm2036_vm11, %v1579_v0, %v2292_v5  ;;  %2677 = vst.msk [vmem:[%s5420_s2 + $0x1e8] sm:$0xff] %vm2615_vm1, %v2420_v7  ;;  %vm1913_vm12 = vcmp.gt.f32.partialorder %v3207_v9, 0.0  ;;  %v2169_v11 = vmul.f32 0.2, %v3207_v9  ;;  %vm2041_vm0 = vcmp.gt.f32.partialorder %v3335_v10, 0.0  ;;  %v1080_v13 = vpop.f32.mrb[65].mxu0 }
 0x165   :  { %2805 = vst.msk [vmem:[%s5420_s2 + $0x5e8] sm:$0xff] %vm2615_vm1, %v2548_v8  ;;  %v2297_v12 = vmul.f32 0.2, %v3335_v10  ;;  %v1592_v14 = vpop.f32.mrb[65].mxu1  ;;  %vm1911_vm13 = vcmp.gt.f32.partialorder %v1080_v13, 0.0  ;;  %v3208_v18 = vpop.f32.mrb[66].mxu0 }
 0x166   :  { %v2425_v15 = vsel %vm1913_vm12, %v3207_v9, %v2169_v11  ;;  %v2167_v17 = vmul.f32 0.2, %v1080_v13  ;;  %v3336_v19 = vpop.f32.mrb[66].mxu1  ;;  %vm2039_vm14 = vcmp.gt.f32.partialorder %v1592_v14, 0.0  ;;  %v2295_v20 = vmul.f32 0.2, %v1592_v14 }
 0x167   :  { %v2553_v16 = vsel %vm2041_vm0, %v3335_v10, %v2297_v12  ;;  %2682 = vst.msk [vmem:[%s5420_s2 + $0x210] sm:$0xff] %vm2615_vm1, %v2425_v15  ;;  %vm1914_vm15 = vcmp.gt.f32.partialorder %v3208_v18, 0.0  ;;  %v2170_v21 = vmul.f32 0.2, %v3208_v18  ;;  %vm2042_vm2 = vcmp.gt.f32.partialorder %v3336_v19, 0.0  ;;  %v1083_v24 = vpop.f32.mrb[67].mxu0 }
 0x168   :  { %2810 = vst.msk [vmem:[%s5420_s2 + $0x610] sm:$0xff] %vm2615_vm1, %v2553_v16  ;;  %v2423_v22 = vsel %vm1911_vm13, %v1080_v13, %v2167_v17  ;;  %v2298_v23 = vmul.f32 0.2, %v3336_v19  ;;  %v1595_v25 = vpop.f32.mrb[67].mxu1  ;;  %v2551_v26 = vsel %vm2039_vm14, %v1592_v14, %v2295_v20  ;;  %vm1912_vm3 = vcmp.gt.f32.partialorder %v1083_v24, 0.0 }
 0x169   :  { %2680 = vst.msk [vmem:[%s5420_s2 + $0x200] sm:$0xff] %vm2615_vm1, %v2423_v22  ;;  %v2426_v27 = vsel %vm1914_vm15, %v3208_v18, %v2170_v21  ;;  %v2168_v28 = vmul.f32 0.2, %v1083_v24  ;;  %2808 = vst.msk [vmem:[%s5420_s2 + $0x600] sm:$0xff] %vm2615_vm1, %v2551_v26  ;;  %vm2040_vm4 = vcmp.gt.f32.partialorder %v1595_v25, 0.0 }
 0x16a   :  { %2683 = vst.msk [vmem:[%s5420_s2 + $0x218] sm:$0xff] %vm2615_vm1, %v2426_v27  ;;  %v2554_v29 = vsel %vm2042_vm2, %v3336_v19, %v2298_v23  ;;  %v2296_v30 = vmul.f32 0.2, %v1595_v25 }
 0x16b   :  { %2811 = vst.msk [vmem:[%s5420_s2 + $0x618] sm:$0xff] %vm2615_vm1, %v2554_v29  ;;  %v2424_v31 = vsel %vm1912_vm3, %v1083_v24, %v2168_v28  ;;  %v3211_v32 = vpop.f32.mrb[68].mxu0  ;;  %v3339_v33 = vpop.f32.mrb[68].mxu1 }
 0x16c   :  { %2681 = vst.msk [vmem:[%s5420_s2 + $0x208] sm:$0xff] %vm2615_vm1, %v2424_v31  ;;  %v2552_v34 = vsel %vm2040_vm4, %v1595_v25, %v2296_v30  ;;  %vm1917_vm5 = vcmp.gt.f32.partialorder %v3211_v32, 0.0  ;;  %v2173_v35 = vmul.f32 0.2, %v3211_v32  ;;  %vm2045_vm6 = vcmp.gt.f32.partialorder %v3339_v33, 0.0  ;;  %v1096_v36 = vpop.f32.mrb[69].mxu0 }
 0x16d   :  { %v1608_v37 = vpop.f32.mrb[69].mxu1  ;;  %2809 = vst.msk [vmem:[%s5420_s2 + $0x608] sm:$0xff] %vm2615_vm1, %v2552_v34  ;;  %v2301_v38 = vmul.f32 0.2, %v3339_v33  ;;  %vm1915_vm7 = vcmp.gt.f32.partialorder %v1096_v36, 0.0  ;;  %v3212_v42 = vpop.f32.mrb[70].mxu0 }
 0x16e   :  { %v2171_v39 = vmul.f32 0.2, %v1096_v36  ;;  %vm2043_vm8 = vcmp.gt.f32.partialorder %v1608_v37, 0.0  ;;  %v2429_v40 = vsel %vm1917_vm5, %v3211_v32, %v2173_v35  ;;  %v2299_v41 = vmul.f32 0.2, %v1608_v37  ;;  %v3340_v43 = vpop.f32.mrb[70].mxu1 }
 0x16f   :  { %2686 = vst.msk [vmem:[%s5420_s2 + $0x230] sm:$0xff] %vm2615_vm1, %v2429_v40  ;;  %v2557_v44 = vsel %vm2045_vm6, %v3339_v33, %v2301_v38  ;;  %vm1918_vm9 = vcmp.gt.f32.partialorder %v3212_v42, 0.0  ;;  %v2174_v46 = vmul.f32 0.2, %v3212_v42  ;;  %v1099_v47 = vpop.f32.mrb[71].mxu0  ;;  %v1611_v48 = vpop.f32.mrb[71].mxu1 }
 0x170   :  { %v2427_v45 = vsel %vm1915_vm7, %v1096_v36, %v2171_v39  ;;  %2814 = vst.msk [vmem:[%s5420_s2 + $0x630] sm:$0xff] %vm2615_vm1, %v2557_v44  ;;  %v2555_v49 = vsel %vm2043_vm8, %v1608_v37, %v2299_v41  ;;  %vm2046_vm10 = vcmp.gt.f32.partialorder %v3340_v43, 0.0  ;;  %v2302_v50 = vmul.f32 0.2, %v3340_v43 }
 0x171   :  { %2684 = vst.msk [vmem:[%s5420_s2 + $0x220] sm:$0xff] %vm2615_vm1, %v2427_v45  ;;  %vm1916_vm11 = vcmp.gt.f32.partialorder %v1099_v47, 0.0  ;;  %2812 = vst.msk [vmem:[%s5420_s2 + $0x620] sm:$0xff] %vm2615_vm1, %v2555_v49  ;;  %v2430_v51 = vsel %vm1918_vm9, %v3212_v42, %v2174_v46  ;;  %v2172_v52 = vmul.f32 0.2, %v1099_v47  ;;  %vm2044_vm12 = vcmp.gt.f32.partialorder %v1611_v48, 0.0 }
 0x172   :  { %v2300_v53 = vmul.f32 0.2, %v1611_v48  ;;  %2687 = vst.msk [vmem:[%s5420_s2 + $0x238] sm:$0xff] %vm2615_vm1, %v2430_v51  ;;  %v2558_v54 = vsel %vm2046_vm10, %v3340_v43, %v2302_v50 }
 0x173   :  { %2815 = vst.msk [vmem:[%s5420_s2 + $0x638] sm:$0xff] %vm2615_vm1, %v2558_v54  ;;  %v2428_v55 = vsel %vm1916_vm11, %v1099_v47, %v2172_v52  ;;  %v3215_v57 = vpop.f32.mrb[72].mxu0  ;;  %v3343_v58 = vpop.f32.mrb[72].mxu1 }
 0x174   :  { %v2556_v56 = vsel %vm2044_vm12, %v1611_v48, %v2300_v53  ;;  %2685 = vst.msk [vmem:[%s5420_s2 + $0x228] sm:$0xff] %vm2615_vm1, %v2428_v55  ;;  %vm1921_vm0 = vcmp.gt.f32.partialorder %v3215_v57, 0.0  ;;  %v2177_v59 = vmul.f32 0.2, %v3215_v57  ;;  %vm2049_vm13 = vcmp.gt.f32.partialorder %v3343_v58, 0.0  ;;  %v1112_v61 = vpop.f32.mrb[73].mxu0 }
 0x175   :  { %2813 = vst.msk [vmem:[%s5420_s2 + $0x628] sm:$0xff] %vm2615_vm1, %v2556_v56  ;;  %v2305_v60 = vmul.f32 0.2, %v3343_v58  ;;  %v1624_v62 = vpop.f32.mrb[73].mxu1  ;;  %vm1919_vm14 = vcmp.gt.f32.partialorder %v1112_v61, 0.0  ;;  %v3216_v2 = vpop.f32.mrb[74].mxu0 }
 0x176   :  { %v2433_v63 = vsel %vm1921_vm0, %v3215_v57, %v2177_v59  ;;  %v2175_v1 = vmul.f32 0.2, %v1112_v61  ;;  %v3344_v3 = vpop.f32.mrb[74].mxu1  ;;  %vm2047_vm15 = vcmp.gt.f32.partialorder %v1624_v62, 0.0  ;;  %v2303_v4 = vmul.f32 0.2, %v1624_v62 }
 0x177   :  { %v2561_v0 = vsel %vm2049_vm13, %v3343_v58, %v2305_v60  ;;  %2690 = vst.msk [vmem:[%s5420_s2 + $0x250] sm:$0xff] %vm2615_vm1, %v2433_v63  ;;  %vm1922_vm2 = vcmp.gt.f32.partialorder %v3216_v2, 0.0  ;;  %v2178_v5 = vmul.f32 0.2, %v3216_v2  ;;  %vm2050_vm3 = vcmp.gt.f32.partialorder %v3344_v3, 0.0  ;;  %v1115_v8 = vpop.f32.mrb[75].mxu0 }
 0x178   :  { %2818 = vst.msk [vmem:[%s5420_s2 + $0x650] sm:$0xff] %vm2615_vm1, %v2561_v0  ;;  %v2431_v6 = vsel %vm1919_vm14, %v1112_v61, %v2175_v1  ;;  %v2306_v7 = vmul.f32 0.2, %v3344_v3  ;;  %v1627_v9 = vpop.f32.mrb[75].mxu1  ;;  %v2559_v10 = vsel %vm2047_vm15, %v1624_v62, %v2303_v4  ;;  %vm1920_vm4 = vcmp.gt.f32.partialorder %v1115_v8, 0.0 }
 0x179   :  { %2688 = vst.msk [vmem:[%s5420_s2 + $0x240] sm:$0xff] %vm2615_vm1, %v2431_v6  ;;  %v2434_v11 = vsel %vm1922_vm2, %v3216_v2, %v2178_v5  ;;  %v2176_v12 = vmul.f32 0.2, %v1115_v8  ;;  %2816 = vst.msk [vmem:[%s5420_s2 + $0x640] sm:$0xff] %vm2615_vm1, %v2559_v10  ;;  %vm2048_vm5 = vcmp.gt.f32.partialorder %v1627_v9, 0.0 }
 0x17a   :  { %2691 = vst.msk [vmem:[%s5420_s2 + $0x258] sm:$0xff] %vm2615_vm1, %v2434_v11  ;;  %v2562_v13 = vsel %vm2050_vm3, %v3344_v3, %v2306_v7  ;;  %v2304_v14 = vmul.f32 0.2, %v1627_v9 }
 0x17b   :  { %2819 = vst.msk [vmem:[%s5420_s2 + $0x658] sm:$0xff] %vm2615_vm1, %v2562_v13  ;;  %v2432_v15 = vsel %vm1920_vm4, %v1115_v8, %v2176_v12  ;;  %v3219_v16 = vpop.f32.mrb[76].mxu0  ;;  %v3347_v17 = vpop.f32.mrb[76].mxu1 }
 0x17c   :  { %2689 = vst.msk [vmem:[%s5420_s2 + $0x248] sm:$0xff] %vm2615_vm1, %v2432_v15  ;;  %v2560_v18 = vsel %vm2048_vm5, %v1627_v9, %v2304_v14  ;;  %vm1925_vm6 = vcmp.gt.f32.partialorder %v3219_v16, 0.0  ;;  %v2181_v19 = vmul.f32 0.2, %v3219_v16  ;;  %vm2053_vm7 = vcmp.gt.f32.partialorder %v3347_v17, 0.0  ;;  %v1128_v20 = vpop.f32.mrb[77].mxu0 }
 0x17d   :  { %v1640_v21 = vpop.f32.mrb[77].mxu1  ;;  %2817 = vst.msk [vmem:[%s5420_s2 + $0x648] sm:$0xff] %vm2615_vm1, %v2560_v18  ;;  %v2309_v22 = vmul.f32 0.2, %v3347_v17  ;;  %vm1923_vm8 = vcmp.gt.f32.partialorder %v1128_v20, 0.0  ;;  %v3220_v26 = vpop.f32.mrb[78].mxu0 }
 0x17e   :  { %v2179_v23 = vmul.f32 0.2, %v1128_v20  ;;  %vm2051_vm9 = vcmp.gt.f32.partialorder %v1640_v21, 0.0  ;;  %v2437_v24 = vsel %vm1925_vm6, %v3219_v16, %v2181_v19  ;;  %v2307_v25 = vmul.f32 0.2, %v1640_v21  ;;  %v3348_v27 = vpop.f32.mrb[78].mxu1 }
 0x17f   :  { %2694 = vst.msk [vmem:[%s5420_s2 + $0x270] sm:$0xff] %vm2615_vm1, %v2437_v24  ;;  %v2565_v28 = vsel %vm2053_vm7, %v3347_v17, %v2309_v22  ;;  %vm1926_vm10 = vcmp.gt.f32.partialorder %v3220_v26, 0.0  ;;  %v2182_v30 = vmul.f32 0.2, %v3220_v26  ;;  %v1131_v31 = vpop.f32.mrb[79].mxu0  ;;  %v1643_v32 = vpop.f32.mrb[79].mxu1 }
 0x180   :  { %v2435_v29 = vsel %vm1923_vm8, %v1128_v20, %v2179_v23  ;;  %2822 = vst.msk [vmem:[%s5420_s2 + $0x670] sm:$0xff] %vm2615_vm1, %v2565_v28  ;;  %v2563_v33 = vsel %vm2051_vm9, %v1640_v21, %v2307_v25  ;;  %vm2054_vm11 = vcmp.gt.f32.partialorder %v3348_v27, 0.0  ;;  %v2310_v34 = vmul.f32 0.2, %v3348_v27 }
 0x181   :  { %2692 = vst.msk [vmem:[%s5420_s2 + $0x260] sm:$0xff] %vm2615_vm1, %v2435_v29  ;;  %vm1924_vm12 = vcmp.gt.f32.partialorder %v1131_v31, 0.0  ;;  %2820 = vst.msk [vmem:[%s5420_s2 + $0x660] sm:$0xff] %vm2615_vm1, %v2563_v33  ;;  %v2438_v35 = vsel %vm1926_vm10, %v3220_v26, %v2182_v30  ;;  %v2180_v36 = vmul.f32 0.2, %v1131_v31  ;;  %vm2052_vm0 = vcmp.gt.f32.partialorder %v1643_v32, 0.0 }
 0x182   :  { %v2308_v37 = vmul.f32 0.2, %v1643_v32  ;;  %2695 = vst.msk [vmem:[%s5420_s2 + $0x278] sm:$0xff] %vm2615_vm1, %v2438_v35  ;;  %v2566_v38 = vsel %vm2054_vm11, %v3348_v27, %v2310_v34 }
 0x183   :  { %2823 = vst.msk [vmem:[%s5420_s2 + $0x678] sm:$0xff] %vm2615_vm1, %v2566_v38  ;;  %v2436_v39 = vsel %vm1924_vm12, %v1131_v31, %v2180_v36  ;;  %v3223_v41 = vpop.f32.mrb[80].mxu0  ;;  %v3351_v42 = vpop.f32.mrb[80].mxu1 }
 0x184   :  { %v2564_v40 = vsel %vm2052_vm0, %v1643_v32, %v2308_v37  ;;  %2693 = vst.msk [vmem:[%s5420_s2 + $0x268] sm:$0xff] %vm2615_vm1, %v2436_v39  ;;  %vm1929_vm13 = vcmp.gt.f32.partialorder %v3223_v41, 0.0  ;;  %v2185_v43 = vmul.f32 0.2, %v3223_v41  ;;  %vm2057_vm14 = vcmp.gt.f32.partialorder %v3351_v42, 0.0  ;;  %v1144_v45 = vpop.f32.mrb[81].mxu0 }
 0x185   :  { %2821 = vst.msk [vmem:[%s5420_s2 + $0x668] sm:$0xff] %vm2615_vm1, %v2564_v40  ;;  %v2313_v44 = vmul.f32 0.2, %v3351_v42  ;;  %v1656_v46 = vpop.f32.mrb[81].mxu1  ;;  %vm1927_vm15 = vcmp.gt.f32.partialorder %v1144_v45, 0.0  ;;  %v3224_v50 = vpop.f32.mrb[82].mxu0 }
 0x186   :  { %v2441_v47 = vsel %vm1929_vm13, %v3223_v41, %v2185_v43  ;;  %v2183_v49 = vmul.f32 0.2, %v1144_v45  ;;  %v3352_v51 = vpop.f32.mrb[82].mxu1  ;;  %vm2055_vm2 = vcmp.gt.f32.partialorder %v1656_v46, 0.0  ;;  %v2311_v52 = vmul.f32 0.2, %v1656_v46 }
 0x187   :  { %v2569_v48 = vsel %vm2057_vm14, %v3351_v42, %v2313_v44  ;;  %2698 = vst.msk [vmem:[%s5420_s2 + $0x290] sm:$0xff] %vm2615_vm1, %v2441_v47  ;;  %vm1930_vm3 = vcmp.gt.f32.partialorder %v3224_v50, 0.0  ;;  %v2186_v53 = vmul.f32 0.2, %v3224_v50  ;;  %vm2058_vm4 = vcmp.gt.f32.partialorder %v3352_v51, 0.0  ;;  %v1147_v56 = vpop.f32.mrb[83].mxu0 }
 0x188   :  { %2826 = vst.msk [vmem:[%s5420_s2 + $0x690] sm:$0xff] %vm2615_vm1, %v2569_v48  ;;  %v2439_v54 = vsel %vm1927_vm15, %v1144_v45, %v2183_v49  ;;  %v2314_v55 = vmul.f32 0.2, %v3352_v51  ;;  %v1659_v57 = vpop.f32.mrb[83].mxu1  ;;  %v2567_v58 = vsel %vm2055_vm2, %v1656_v46, %v2311_v52  ;;  %vm1928_vm5 = vcmp.gt.f32.partialorder %v1147_v56, 0.0 }
 0x189   :  { %2696 = vst.msk [vmem:[%s5420_s2 + $0x280] sm:$0xff] %vm2615_vm1, %v2439_v54  ;;  %v2442_v59 = vsel %vm1930_vm3, %v3224_v50, %v2186_v53  ;;  %v2184_v60 = vmul.f32 0.2, %v1147_v56  ;;  %2824 = vst.msk [vmem:[%s5420_s2 + $0x680] sm:$0xff] %vm2615_vm1, %v2567_v58  ;;  %vm2056_vm6 = vcmp.gt.f32.partialorder %v1659_v57, 0.0 }
 0x18a   :  { %2699 = vst.msk [vmem:[%s5420_s2 + $0x298] sm:$0xff] %vm2615_vm1, %v2442_v59  ;;  %v2570_v61 = vsel %vm2058_vm4, %v3352_v51, %v2314_v55  ;;  %v2312_v62 = vmul.f32 0.2, %v1659_v57 }
 0x18b   :  { %2827 = vst.msk [vmem:[%s5420_s2 + $0x698] sm:$0xff] %vm2615_vm1, %v2570_v61  ;;  %v2440_v63 = vsel %vm1928_vm5, %v1147_v56, %v2184_v60  ;;  %v3227_v0 = vpop.f32.mrb[84].mxu0  ;;  %v3355_v1 = vpop.f32.mrb[84].mxu1 }
 0x18c   :  { %2697 = vst.msk [vmem:[%s5420_s2 + $0x288] sm:$0xff] %vm2615_vm1, %v2440_v63  ;;  %v2568_v2 = vsel %vm2056_vm6, %v1659_v57, %v2312_v62  ;;  %vm1933_vm7 = vcmp.gt.f32.partialorder %v3227_v0, 0.0  ;;  %v2189_v3 = vmul.f32 0.2, %v3227_v0  ;;  %vm2061_vm8 = vcmp.gt.f32.partialorder %v3355_v1, 0.0  ;;  %v1160_v4 = vpop.f32.mrb[85].mxu0 }
 0x18d   :  { %v1672_v5 = vpop.f32.mrb[85].mxu1  ;;  %2825 = vst.msk [vmem:[%s5420_s2 + $0x688] sm:$0xff] %vm2615_vm1, %v2568_v2  ;;  %v2317_v6 = vmul.f32 0.2, %v3355_v1  ;;  %vm1931_vm9 = vcmp.gt.f32.partialorder %v1160_v4, 0.0  ;;  %v3228_v10 = vpop.f32.mrb[86].mxu0 }
 0x18e   :  { %v2187_v7 = vmul.f32 0.2, %v1160_v4  ;;  %vm2059_vm10 = vcmp.gt.f32.partialorder %v1672_v5, 0.0  ;;  %v2445_v8 = vsel %vm1933_vm7, %v3227_v0, %v2189_v3  ;;  %v2315_v9 = vmul.f32 0.2, %v1672_v5  ;;  %v3356_v11 = vpop.f32.mrb[86].mxu1 }
 0x18f   :  { %2702 = vst.msk [vmem:[%s5420_s2 + $0x2b0] sm:$0xff] %vm2615_vm1, %v2445_v8  ;;  %v2573_v12 = vsel %vm2061_vm8, %v3355_v1, %v2317_v6  ;;  %vm1934_vm11 = vcmp.gt.f32.partialorder %v3228_v10, 0.0  ;;  %v2190_v14 = vmul.f32 0.2, %v3228_v10  ;;  %v1163_v15 = vpop.f32.mrb[87].mxu0  ;;  %v1675_v16 = vpop.f32.mrb[87].mxu1 }
 0x190   :  { %v2443_v13 = vsel %vm1931_vm9, %v1160_v4, %v2187_v7  ;;  %2830 = vst.msk [vmem:[%s5420_s2 + $0x6b0] sm:$0xff] %vm2615_vm1, %v2573_v12  ;;  %v2571_v17 = vsel %vm2059_vm10, %v1672_v5, %v2315_v9  ;;  %vm2062_vm12 = vcmp.gt.f32.partialorder %v3356_v11, 0.0  ;;  %v2318_v18 = vmul.f32 0.2, %v3356_v11 }
 0x191   :  { %2700 = vst.msk [vmem:[%s5420_s2 + $0x2a0] sm:$0xff] %vm2615_vm1, %v2443_v13  ;;  %vm1932_vm0 = vcmp.gt.f32.partialorder %v1163_v15, 0.0  ;;  %2828 = vst.msk [vmem:[%s5420_s2 + $0x6a0] sm:$0xff] %vm2615_vm1, %v2571_v17  ;;  %v2446_v19 = vsel %vm1934_vm11, %v3228_v10, %v2190_v14  ;;  %v2188_v20 = vmul.f32 0.2, %v1163_v15  ;;  %vm2060_vm13 = vcmp.gt.f32.partialorder %v1675_v16, 0.0 }
 0x192   :  { %v2316_v21 = vmul.f32 0.2, %v1675_v16  ;;  %2703 = vst.msk [vmem:[%s5420_s2 + $0x2b8] sm:$0xff] %vm2615_vm1, %v2446_v19  ;;  %v2574_v22 = vsel %vm2062_vm12, %v3356_v11, %v2318_v18 }
 0x193   :  { %2831 = vst.msk [vmem:[%s5420_s2 + $0x6b8] sm:$0xff] %vm2615_vm1, %v2574_v22  ;;  %v2444_v23 = vsel %vm1932_vm0, %v1163_v15, %v2188_v20  ;;  %v3231_v25 = vpop.f32.mrb[88].mxu0  ;;  %v3359_v26 = vpop.f32.mrb[88].mxu1 }
 0x194   :  { %v2572_v24 = vsel %vm2060_vm13, %v1675_v16, %v2316_v21  ;;  %2701 = vst.msk [vmem:[%s5420_s2 + $0x2a8] sm:$0xff] %vm2615_vm1, %v2444_v23  ;;  %vm1937_vm14 = vcmp.gt.f32.partialorder %v3231_v25, 0.0  ;;  %v2193_v27 = vmul.f32 0.2, %v3231_v25  ;;  %vm2065_vm15 = vcmp.gt.f32.partialorder %v3359_v26, 0.0  ;;  %v1176_v29 = vpop.f32.mrb[89].mxu0 }
 0x195   :  { %2829 = vst.msk [vmem:[%s5420_s2 + $0x6a8] sm:$0xff] %vm2615_vm1, %v2572_v24  ;;  %v2321_v28 = vmul.f32 0.2, %v3359_v26  ;;  %v1688_v30 = vpop.f32.mrb[89].mxu1  ;;  %vm1935_vm2 = vcmp.gt.f32.partialorder %v1176_v29, 0.0  ;;  %v3232_v34 = vpop.f32.mrb[90].mxu0 }
 0x196   :  { %v2449_v31 = vsel %vm1937_vm14, %v3231_v25, %v2193_v27  ;;  %v2191_v33 = vmul.f32 0.2, %v1176_v29  ;;  %v3360_v35 = vpop.f32.mrb[90].mxu1  ;;  %vm2063_vm3 = vcmp.gt.f32.partialorder %v1688_v30, 0.0  ;;  %v2319_v36 = vmul.f32 0.2, %v1688_v30 }
 0x197   :  { %v2577_v32 = vsel %vm2065_vm15, %v3359_v26, %v2321_v28  ;;  %2706 = vst.msk [vmem:[%s5420_s2 + $0x2d0] sm:$0xff] %vm2615_vm1, %v2449_v31  ;;  %vm1938_vm4 = vcmp.gt.f32.partialorder %v3232_v34, 0.0  ;;  %v2194_v37 = vmul.f32 0.2, %v3232_v34  ;;  %vm2066_vm5 = vcmp.gt.f32.partialorder %v3360_v35, 0.0  ;;  %v1179_v40 = vpop.f32.mrb[91].mxu0 }
 0x198   :  { %2834 = vst.msk [vmem:[%s5420_s2 + $0x6d0] sm:$0xff] %vm2615_vm1, %v2577_v32  ;;  %v2447_v38 = vsel %vm1935_vm2, %v1176_v29, %v2191_v33  ;;  %v2322_v39 = vmul.f32 0.2, %v3360_v35  ;;  %v1691_v41 = vpop.f32.mrb[91].mxu1  ;;  %v2575_v42 = vsel %vm2063_vm3, %v1688_v30, %v2319_v36  ;;  %vm1936_vm6 = vcmp.gt.f32.partialorder %v1179_v40, 0.0 }
 0x199   :  { %2704 = vst.msk [vmem:[%s5420_s2 + $0x2c0] sm:$0xff] %vm2615_vm1, %v2447_v38  ;;  %v2450_v43 = vsel %vm1938_vm4, %v3232_v34, %v2194_v37  ;;  %v2192_v44 = vmul.f32 0.2, %v1179_v40  ;;  %2832 = vst.msk [vmem:[%s5420_s2 + $0x6c0] sm:$0xff] %vm2615_vm1, %v2575_v42  ;;  %vm2064_vm7 = vcmp.gt.f32.partialorder %v1691_v41, 0.0 }
 0x19a   :  { %2707 = vst.msk [vmem:[%s5420_s2 + $0x2d8] sm:$0xff] %vm2615_vm1, %v2450_v43  ;;  %v2578_v45 = vsel %vm2066_vm5, %v3360_v35, %v2322_v39  ;;  %v2320_v46 = vmul.f32 0.2, %v1691_v41 }
 0x19b   :  { %2835 = vst.msk [vmem:[%s5420_s2 + $0x6d8] sm:$0xff] %vm2615_vm1, %v2578_v45  ;;  %v2448_v47 = vsel %vm1936_vm6, %v1179_v40, %v2192_v44  ;;  %v3235_v48 = vpop.f32.mrb[92].mxu0  ;;  %v3363_v49 = vpop.f32.mrb[92].mxu1 }
 0x19c   :  { %2705 = vst.msk [vmem:[%s5420_s2 + $0x2c8] sm:$0xff] %vm2615_vm1, %v2448_v47  ;;  %v2576_v50 = vsel %vm2064_vm7, %v1691_v41, %v2320_v46  ;;  %vm1941_vm8 = vcmp.gt.f32.partialorder %v3235_v48, 0.0  ;;  %v2197_v51 = vmul.f32 0.2, %v3235_v48  ;;  %vm2069_vm9 = vcmp.gt.f32.partialorder %v3363_v49, 0.0  ;;  %v1192_v52 = vpop.f32.mrb[93].mxu0 }
 0x19d   :  { %v1704_v53 = vpop.f32.mrb[93].mxu1  ;;  %2833 = vst.msk [vmem:[%s5420_s2 + $0x6c8] sm:$0xff] %vm2615_vm1, %v2576_v50  ;;  %v2325_v54 = vmul.f32 0.2, %v3363_v49  ;;  %vm1939_vm10 = vcmp.gt.f32.partialorder %v1192_v52, 0.0  ;;  %v3236_v58 = vpop.f32.mrb[94].mxu0 }
 0x19e   :  { %v2195_v55 = vmul.f32 0.2, %v1192_v52  ;;  %vm2067_vm11 = vcmp.gt.f32.partialorder %v1704_v53, 0.0  ;;  %v2453_v56 = vsel %vm1941_vm8, %v3235_v48, %v2197_v51  ;;  %v2323_v57 = vmul.f32 0.2, %v1704_v53  ;;  %v3364_v59 = vpop.f32.mrb[94].mxu1 }
 0x19f   :  { %2710 = vst.msk [vmem:[%s5420_s2 + $0x2f0] sm:$0xff] %vm2615_vm1, %v2453_v56  ;;  %v2581_v60 = vsel %vm2069_vm9, %v3363_v49, %v2325_v54  ;;  %vm1942_vm12 = vcmp.gt.f32.partialorder %v3236_v58, 0.0  ;;  %v2198_v62 = vmul.f32 0.2, %v3236_v58  ;;  %v1195_v63 = vpop.f32.mrb[95].mxu0  ;;  %v1707_v0 = vpop.f32.mrb[95].mxu1 }
 0x1a0   :  { %v2451_v61 = vsel %vm1939_vm10, %v1192_v52, %v2195_v55  ;;  %2838 = vst.msk [vmem:[%s5420_s2 + $0x6f0] sm:$0xff] %vm2615_vm1, %v2581_v60  ;;  %v2579_v1 = vsel %vm2067_vm11, %v1704_v53, %v2323_v57  ;;  %vm2070_vm0 = vcmp.gt.f32.partialorder %v3364_v59, 0.0  ;;  %v2326_v2 = vmul.f32 0.2, %v3364_v59 }
 0x1a1   :  { %2708 = vst.msk [vmem:[%s5420_s2 + $0x2e0] sm:$0xff] %vm2615_vm1, %v2451_v61  ;;  %vm1940_vm13 = vcmp.gt.f32.partialorder %v1195_v63, 0.0  ;;  %2836 = vst.msk [vmem:[%s5420_s2 + $0x6e0] sm:$0xff] %vm2615_vm1, %v2579_v1  ;;  %v2454_v3 = vsel %vm1942_vm12, %v3236_v58, %v2198_v62  ;;  %v2196_v4 = vmul.f32 0.2, %v1195_v63  ;;  %vm2068_vm14 = vcmp.gt.f32.partialorder %v1707_v0, 0.0 }
 0x1a2   :  { %v2324_v5 = vmul.f32 0.2, %v1707_v0  ;;  %2711 = vst.msk [vmem:[%s5420_s2 + $0x2f8] sm:$0xff] %vm2615_vm1, %v2454_v3  ;;  %v2582_v6 = vsel %vm2070_vm0, %v3364_v59, %v2326_v2 }
 0x1a3   :  { %2839 = vst.msk [vmem:[%s5420_s2 + $0x6f8] sm:$0xff] %vm2615_vm1, %v2582_v6  ;;  %v2452_v7 = vsel %vm1940_vm13, %v1195_v63, %v2196_v4  ;;  %v3239_v9 = vpop.f32.mrb[96].mxu0  ;;  %v3367_v10 = vpop.f32.mrb[96].mxu1 }
 0x1a4   :  { %v2580_v8 = vsel %vm2068_vm14, %v1707_v0, %v2324_v5  ;;  %2709 = vst.msk [vmem:[%s5420_s2 + $0x2e8] sm:$0xff] %vm2615_vm1, %v2452_v7  ;;  %vm1945_vm15 = vcmp.gt.f32.partialorder %v3239_v9, 0.0  ;;  %v2201_v11 = vmul.f32 0.2, %v3239_v9  ;;  %vm2073_vm2 = vcmp.gt.f32.partialorder %v3367_v10, 0.0  ;;  %v1208_v13 = vpop.f32.mrb[97].mxu0 }
 0x1a5   :  { %2837 = vst.msk [vmem:[%s5420_s2 + $0x6e8] sm:$0xff] %vm2615_vm1, %v2580_v8  ;;  %v2329_v12 = vmul.f32 0.2, %v3367_v10  ;;  %v1720_v14 = vpop.f32.mrb[97].mxu1  ;;  %vm1943_vm3 = vcmp.gt.f32.partialorder %v1208_v13, 0.0  ;;  %v3240_v18 = vpop.f32.mrb[98].mxu0 }
 0x1a6   :  { %v2457_v15 = vsel %vm1945_vm15, %v3239_v9, %v2201_v11  ;;  %v2199_v17 = vmul.f32 0.2, %v1208_v13  ;;  %v3368_v19 = vpop.f32.mrb[98].mxu1  ;;  %vm2071_vm4 = vcmp.gt.f32.partialorder %v1720_v14, 0.0  ;;  %v2327_v20 = vmul.f32 0.2, %v1720_v14 }
 0x1a7   :  { %v2585_v16 = vsel %vm2073_vm2, %v3367_v10, %v2329_v12  ;;  %2714 = vst.msk [vmem:[%s5420_s2 + $0x310] sm:$0xff] %vm2615_vm1, %v2457_v15  ;;  %vm1946_vm5 = vcmp.gt.f32.partialorder %v3240_v18, 0.0  ;;  %v2202_v21 = vmul.f32 0.2, %v3240_v18  ;;  %vm2074_vm6 = vcmp.gt.f32.partialorder %v3368_v19, 0.0  ;;  %v1211_v24 = vpop.f32.mrb[99].mxu0 }
 0x1a8   :  { %2842 = vst.msk [vmem:[%s5420_s2 + $0x710] sm:$0xff] %vm2615_vm1, %v2585_v16  ;;  %v2455_v22 = vsel %vm1943_vm3, %v1208_v13, %v2199_v17  ;;  %v2330_v23 = vmul.f32 0.2, %v3368_v19  ;;  %v1723_v25 = vpop.f32.mrb[99].mxu1  ;;  %v2583_v26 = vsel %vm2071_vm4, %v1720_v14, %v2327_v20  ;;  %vm1944_vm7 = vcmp.gt.f32.partialorder %v1211_v24, 0.0 }
 0x1a9   :  { %2712 = vst.msk [vmem:[%s5420_s2 + $0x300] sm:$0xff] %vm2615_vm1, %v2455_v22  ;;  %v2458_v27 = vsel %vm1946_vm5, %v3240_v18, %v2202_v21  ;;  %v2200_v28 = vmul.f32 0.2, %v1211_v24  ;;  %2840 = vst.msk [vmem:[%s5420_s2 + $0x700] sm:$0xff] %vm2615_vm1, %v2583_v26  ;;  %vm2072_vm8 = vcmp.gt.f32.partialorder %v1723_v25, 0.0 }
 0x1aa   :  { %2715 = vst.msk [vmem:[%s5420_s2 + $0x318] sm:$0xff] %vm2615_vm1, %v2458_v27  ;;  %v2586_v29 = vsel %vm2074_vm6, %v3368_v19, %v2330_v23  ;;  %v2328_v30 = vmul.f32 0.2, %v1723_v25 }
 0x1ab   :  { %2843 = vst.msk [vmem:[%s5420_s2 + $0x718] sm:$0xff] %vm2615_vm1, %v2586_v29  ;;  %v2456_v31 = vsel %vm1944_vm7, %v1211_v24, %v2200_v28  ;;  %v3243_v32 = vpop.f32.mrb[100].mxu0  ;;  %v3371_v33 = vpop.f32.mrb[100].mxu1 }
 0x1ac   :  { %2713 = vst.msk [vmem:[%s5420_s2 + $0x308] sm:$0xff] %vm2615_vm1, %v2456_v31  ;;  %v2584_v34 = vsel %vm2072_vm8, %v1723_v25, %v2328_v30  ;;  %vm1949_vm9 = vcmp.gt.f32.partialorder %v3243_v32, 0.0  ;;  %v2205_v35 = vmul.f32 0.2, %v3243_v32  ;;  %vm2077_vm10 = vcmp.gt.f32.partialorder %v3371_v33, 0.0  ;;  %v1224_v36 = vpop.f32.mrb[101].mxu0 }
 0x1ad   :  { %v1736_v37 = vpop.f32.mrb[101].mxu1  ;;  %2841 = vst.msk [vmem:[%s5420_s2 + $0x708] sm:$0xff] %vm2615_vm1, %v2584_v34  ;;  %v2333_v38 = vmul.f32 0.2, %v3371_v33  ;;  %vm1947_vm11 = vcmp.gt.f32.partialorder %v1224_v36, 0.0  ;;  %v3244_v42 = vpop.f32.mrb[102].mxu0 }
 0x1ae   :  { %v2203_v39 = vmul.f32 0.2, %v1224_v36  ;;  %vm2075_vm12 = vcmp.gt.f32.partialorder %v1736_v37, 0.0  ;;  %v2461_v40 = vsel %vm1949_vm9, %v3243_v32, %v2205_v35  ;;  %v2331_v41 = vmul.f32 0.2, %v1736_v37  ;;  %v3372_v43 = vpop.f32.mrb[102].mxu1 }
 0x1af   :  { %2718 = vst.msk [vmem:[%s5420_s2 + $0x330] sm:$0xff] %vm2615_vm1, %v2461_v40  ;;  %v2589_v44 = vsel %vm2077_vm10, %v3371_v33, %v2333_v38  ;;  %vm1950_vm0 = vcmp.gt.f32.partialorder %v3244_v42, 0.0  ;;  %v2206_v46 = vmul.f32 0.2, %v3244_v42  ;;  %v1227_v47 = vpop.f32.mrb[103].mxu0  ;;  %v1739_v48 = vpop.f32.mrb[103].mxu1 }
 0x1b0   :  { %v2459_v45 = vsel %vm1947_vm11, %v1224_v36, %v2203_v39  ;;  %2846 = vst.msk [vmem:[%s5420_s2 + $0x730] sm:$0xff] %vm2615_vm1, %v2589_v44  ;;  %v2587_v49 = vsel %vm2075_vm12, %v1736_v37, %v2331_v41  ;;  %vm2078_vm13 = vcmp.gt.f32.partialorder %v3372_v43, 0.0  ;;  %v2334_v50 = vmul.f32 0.2, %v3372_v43 }
 0x1b1   :  { %2716 = vst.msk [vmem:[%s5420_s2 + $0x320] sm:$0xff] %vm2615_vm1, %v2459_v45  ;;  %vm1948_vm14 = vcmp.gt.f32.partialorder %v1227_v47, 0.0  ;;  %2844 = vst.msk [vmem:[%s5420_s2 + $0x720] sm:$0xff] %vm2615_vm1, %v2587_v49  ;;  %v2462_v51 = vsel %vm1950_vm0, %v3244_v42, %v2206_v46  ;;  %v2204_v52 = vmul.f32 0.2, %v1227_v47  ;;  %vm2076_vm15 = vcmp.gt.f32.partialorder %v1739_v48, 0.0 }
 0x1b2   :  { %v2332_v53 = vmul.f32 0.2, %v1739_v48  ;;  %2719 = vst.msk [vmem:[%s5420_s2 + $0x338] sm:$0xff] %vm2615_vm1, %v2462_v51  ;;  %v2590_v54 = vsel %vm2078_vm13, %v3372_v43, %v2334_v50 }
 0x1b3   :  { %2847 = vst.msk [vmem:[%s5420_s2 + $0x738] sm:$0xff] %vm2615_vm1, %v2590_v54  ;;  %v2460_v55 = vsel %vm1948_vm14, %v1227_v47, %v2204_v52  ;;  %v3247_v57 = vpop.f32.mrb[104].mxu0  ;;  %v3375_v58 = vpop.f32.mrb[104].mxu1 }
 0x1b4   :  { %v2588_v56 = vsel %vm2076_vm15, %v1739_v48, %v2332_v53  ;;  %2717 = vst.msk [vmem:[%s5420_s2 + $0x328] sm:$0xff] %vm2615_vm1, %v2460_v55  ;;  %vm1953_vm2 = vcmp.gt.f32.partialorder %v3247_v57, 0.0  ;;  %v2209_v59 = vmul.f32 0.2, %v3247_v57  ;;  %vm2081_vm3 = vcmp.gt.f32.partialorder %v3375_v58, 0.0  ;;  %v1240_v61 = vpop.f32.mrb[105].mxu0 }
 0x1b5   :  { %2845 = vst.msk [vmem:[%s5420_s2 + $0x728] sm:$0xff] %vm2615_vm1, %v2588_v56  ;;  %v2337_v60 = vmul.f32 0.2, %v3375_v58  ;;  %v1752_v62 = vpop.f32.mrb[105].mxu1  ;;  %vm1951_vm4 = vcmp.gt.f32.partialorder %v1240_v61, 0.0  ;;  %v3248_v2 = vpop.f32.mrb[106].mxu0 }
 0x1b6   :  { %v2465_v63 = vsel %vm1953_vm2, %v3247_v57, %v2209_v59  ;;  %v2207_v1 = vmul.f32 0.2, %v1240_v61  ;;  %v3376_v3 = vpop.f32.mrb[106].mxu1  ;;  %vm2079_vm5 = vcmp.gt.f32.partialorder %v1752_v62, 0.0  ;;  %v2335_v4 = vmul.f32 0.2, %v1752_v62 }
 0x1b7   :  { %v2593_v0 = vsel %vm2081_vm3, %v3375_v58, %v2337_v60  ;;  %2722 = vst.msk [vmem:[%s5420_s2 + $0x350] sm:$0xff] %vm2615_vm1, %v2465_v63  ;;  %vm1954_vm6 = vcmp.gt.f32.partialorder %v3248_v2, 0.0  ;;  %v2210_v5 = vmul.f32 0.2, %v3248_v2  ;;  %vm2082_vm7 = vcmp.gt.f32.partialorder %v3376_v3, 0.0  ;;  %v1243_v8 = vpop.f32.mrb[107].mxu0 }
 0x1b8   :  { %2850 = vst.msk [vmem:[%s5420_s2 + $0x750] sm:$0xff] %vm2615_vm1, %v2593_v0  ;;  %v2463_v6 = vsel %vm1951_vm4, %v1240_v61, %v2207_v1  ;;  %v2338_v7 = vmul.f32 0.2, %v3376_v3  ;;  %v1755_v9 = vpop.f32.mrb[107].mxu1  ;;  %v2591_v10 = vsel %vm2079_vm5, %v1752_v62, %v2335_v4  ;;  %vm1952_vm8 = vcmp.gt.f32.partialorder %v1243_v8, 0.0 }
 0x1b9   :  { %2720 = vst.msk [vmem:[%s5420_s2 + $0x340] sm:$0xff] %vm2615_vm1, %v2463_v6  ;;  %v2466_v11 = vsel %vm1954_vm6, %v3248_v2, %v2210_v5  ;;  %v2208_v12 = vmul.f32 0.2, %v1243_v8  ;;  %2848 = vst.msk [vmem:[%s5420_s2 + $0x740] sm:$0xff] %vm2615_vm1, %v2591_v10  ;;  %vm2080_vm9 = vcmp.gt.f32.partialorder %v1755_v9, 0.0 }
 0x1ba   :  { %2723 = vst.msk [vmem:[%s5420_s2 + $0x358] sm:$0xff] %vm2615_vm1, %v2466_v11  ;;  %v2594_v13 = vsel %vm2082_vm7, %v3376_v3, %v2338_v7  ;;  %v2336_v14 = vmul.f32 0.2, %v1755_v9 }
 0x1bb   :  { %2851 = vst.msk [vmem:[%s5420_s2 + $0x758] sm:$0xff] %vm2615_vm1, %v2594_v13  ;;  %v2464_v15 = vsel %vm1952_vm8, %v1243_v8, %v2208_v12  ;;  %v3251_v16 = vpop.f32.mrb[108].mxu0  ;;  %v3379_v17 = vpop.f32.mrb[108].mxu1 }
 0x1bc   :  { %2721 = vst.msk [vmem:[%s5420_s2 + $0x348] sm:$0xff] %vm2615_vm1, %v2464_v15  ;;  %v2592_v18 = vsel %vm2080_vm9, %v1755_v9, %v2336_v14  ;;  %vm1957_vm10 = vcmp.gt.f32.partialorder %v3251_v16, 0.0  ;;  %v2213_v19 = vmul.f32 0.2, %v3251_v16  ;;  %vm2085_vm11 = vcmp.gt.f32.partialorder %v3379_v17, 0.0  ;;  %v1256_v20 = vpop.f32.mrb[109].mxu0 }
 0x1bd   :  { %v1768_v21 = vpop.f32.mrb[109].mxu1  ;;  %2849 = vst.msk [vmem:[%s5420_s2 + $0x748] sm:$0xff] %vm2615_vm1, %v2592_v18  ;;  %v2341_v22 = vmul.f32 0.2, %v3379_v17  ;;  %vm1955_vm12 = vcmp.gt.f32.partialorder %v1256_v20, 0.0  ;;  %v3252_v26 = vpop.f32.mrb[110].mxu0 }
 0x1be   :  { %v2211_v23 = vmul.f32 0.2, %v1256_v20  ;;  %vm2083_vm0 = vcmp.gt.f32.partialorder %v1768_v21, 0.0  ;;  %v2469_v24 = vsel %vm1957_vm10, %v3251_v16, %v2213_v19  ;;  %v2339_v25 = vmul.f32 0.2, %v1768_v21  ;;  %v3380_v27 = vpop.f32.mrb[110].mxu1 }
 0x1bf   :  { %2726 = vst.msk [vmem:[%s5420_s2 + $0x370] sm:$0xff] %vm2615_vm1, %v2469_v24  ;;  %v2597_v28 = vsel %vm2085_vm11, %v3379_v17, %v2341_v22  ;;  %vm1958_vm13 = vcmp.gt.f32.partialorder %v3252_v26, 0.0  ;;  %v2214_v30 = vmul.f32 0.2, %v3252_v26  ;;  %v1259_v31 = vpop.f32.mrb[111].mxu0  ;;  %v1771_v32 = vpop.f32.mrb[111].mxu1 }
 0x1c0   :  { %v2467_v29 = vsel %vm1955_vm12, %v1256_v20, %v2211_v23  ;;  %2854 = vst.msk [vmem:[%s5420_s2 + $0x770] sm:$0xff] %vm2615_vm1, %v2597_v28  ;;  %v2595_v33 = vsel %vm2083_vm0, %v1768_v21, %v2339_v25  ;;  %vm2086_vm14 = vcmp.gt.f32.partialorder %v3380_v27, 0.0  ;;  %v2342_v34 = vmul.f32 0.2, %v3380_v27 }
 0x1c1   :  { %2724 = vst.msk [vmem:[%s5420_s2 + $0x360] sm:$0xff] %vm2615_vm1, %v2467_v29  ;;  %vm1956_vm15 = vcmp.gt.f32.partialorder %v1259_v31, 0.0  ;;  %2852 = vst.msk [vmem:[%s5420_s2 + $0x760] sm:$0xff] %vm2615_vm1, %v2595_v33  ;;  %v2470_v35 = vsel %vm1958_vm13, %v3252_v26, %v2214_v30  ;;  %v2212_v36 = vmul.f32 0.2, %v1259_v31  ;;  %vm2084_vm2 = vcmp.gt.f32.partialorder %v1771_v32, 0.0 }
 0x1c2   :  { %v2340_v37 = vmul.f32 0.2, %v1771_v32  ;;  %2727 = vst.msk [vmem:[%s5420_s2 + $0x378] sm:$0xff] %vm2615_vm1, %v2470_v35  ;;  %v2598_v38 = vsel %vm2086_vm14, %v3380_v27, %v2342_v34 }
 0x1c3   :  { %2855 = vst.msk [vmem:[%s5420_s2 + $0x778] sm:$0xff] %vm2615_vm1, %v2598_v38  ;;  %v2468_v39 = vsel %vm1956_vm15, %v1259_v31, %v2212_v36  ;;  %v3255_v41 = vpop.f32.mrb[112].mxu0  ;;  %v3383_v42 = vpop.f32.mrb[112].mxu1 }
 0x1c4   :  { %v2596_v40 = vsel %vm2084_vm2, %v1771_v32, %v2340_v37  ;;  %2725 = vst.msk [vmem:[%s5420_s2 + $0x368] sm:$0xff] %vm2615_vm1, %v2468_v39  ;;  %vm1961_vm3 = vcmp.gt.f32.partialorder %v3255_v41, 0.0  ;;  %v2217_v43 = vmul.f32 0.2, %v3255_v41  ;;  %vm2089_vm4 = vcmp.gt.f32.partialorder %v3383_v42, 0.0  ;;  %v1272_v45 = vpop.f32.mrb[113].mxu0 }
 0x1c5   :  { %2853 = vst.msk [vmem:[%s5420_s2 + $0x768] sm:$0xff] %vm2615_vm1, %v2596_v40  ;;  %v2345_v44 = vmul.f32 0.2, %v3383_v42  ;;  %v1784_v46 = vpop.f32.mrb[113].mxu1  ;;  %vm1959_vm5 = vcmp.gt.f32.partialorder %v1272_v45, 0.0  ;;  %v3256_v50 = vpop.f32.mrb[114].mxu0 }
 0x1c6   :  { %v2473_v47 = vsel %vm1961_vm3, %v3255_v41, %v2217_v43  ;;  %v2215_v49 = vmul.f32 0.2, %v1272_v45  ;;  %v3384_v51 = vpop.f32.mrb[114].mxu1  ;;  %vm2087_vm6 = vcmp.gt.f32.partialorder %v1784_v46, 0.0  ;;  %v2343_v52 = vmul.f32 0.2, %v1784_v46 }
 0x1c7   :  { %v2601_v48 = vsel %vm2089_vm4, %v3383_v42, %v2345_v44  ;;  %2730 = vst.msk [vmem:[%s5420_s2 + $0x390] sm:$0xff] %vm2615_vm1, %v2473_v47  ;;  %vm1962_vm7 = vcmp.gt.f32.partialorder %v3256_v50, 0.0  ;;  %v2218_v53 = vmul.f32 0.2, %v3256_v50  ;;  %vm2090_vm8 = vcmp.gt.f32.partialorder %v3384_v51, 0.0  ;;  %v1275_v56 = vpop.f32.mrb[115].mxu0 }
 0x1c8   :  { %2858 = vst.msk [vmem:[%s5420_s2 + $0x790] sm:$0xff] %vm2615_vm1, %v2601_v48  ;;  %v2471_v54 = vsel %vm1959_vm5, %v1272_v45, %v2215_v49  ;;  %v2346_v55 = vmul.f32 0.2, %v3384_v51  ;;  %v1787_v57 = vpop.f32.mrb[115].mxu1  ;;  %v2599_v58 = vsel %vm2087_vm6, %v1784_v46, %v2343_v52  ;;  %vm1960_vm9 = vcmp.gt.f32.partialorder %v1275_v56, 0.0 }
 0x1c9   :  { %2728 = vst.msk [vmem:[%s5420_s2 + $0x380] sm:$0xff] %vm2615_vm1, %v2471_v54  ;;  %v2474_v59 = vsel %vm1962_vm7, %v3256_v50, %v2218_v53  ;;  %v2216_v60 = vmul.f32 0.2, %v1275_v56  ;;  %2856 = vst.msk [vmem:[%s5420_s2 + $0x780] sm:$0xff] %vm2615_vm1, %v2599_v58  ;;  %vm2088_vm10 = vcmp.gt.f32.partialorder %v1787_v57, 0.0 }
 0x1ca   :  { %2731 = vst.msk [vmem:[%s5420_s2 + $0x398] sm:$0xff] %vm2615_vm1, %v2474_v59  ;;  %v2602_v61 = vsel %vm2090_vm8, %v3384_v51, %v2346_v55  ;;  %v2344_v62 = vmul.f32 0.2, %v1787_v57 }
 0x1cb   :  { %2859 = vst.msk [vmem:[%s5420_s2 + $0x798] sm:$0xff] %vm2615_vm1, %v2602_v61  ;;  %v2472_v63 = vsel %vm1960_vm9, %v1275_v56, %v2216_v60  ;;  %v3259_v0 = vpop.f32.mrb[116].mxu0  ;;  %v3387_v1 = vpop.f32.mrb[116].mxu1 }
 0x1cc   :  { %2729 = vst.msk [vmem:[%s5420_s2 + $0x388] sm:$0xff] %vm2615_vm1, %v2472_v63  ;;  %v2600_v2 = vsel %vm2088_vm10, %v1787_v57, %v2344_v62  ;;  %vm1965_vm11 = vcmp.gt.f32.partialorder %v3259_v0, 0.0  ;;  %v2221_v3 = vmul.f32 0.2, %v3259_v0  ;;  %vm2093_vm12 = vcmp.gt.f32.partialorder %v3387_v1, 0.0  ;;  %v1288_v4 = vpop.f32.mrb[117].mxu0 }
 0x1cd   :  { %v1800_v5 = vpop.f32.mrb[117].mxu1  ;;  %2857 = vst.msk [vmem:[%s5420_s2 + $0x788] sm:$0xff] %vm2615_vm1, %v2600_v2  ;;  %v2349_v6 = vmul.f32 0.2, %v3387_v1  ;;  %vm1963_vm0 = vcmp.gt.f32.partialorder %v1288_v4, 0.0  ;;  %v3260_v10 = vpop.f32.mrb[118].mxu0 }
 0x1ce   :  { %v2219_v7 = vmul.f32 0.2, %v1288_v4  ;;  %vm2091_vm13 = vcmp.gt.f32.partialorder %v1800_v5, 0.0  ;;  %v2477_v8 = vsel %vm1965_vm11, %v3259_v0, %v2221_v3  ;;  %v2347_v9 = vmul.f32 0.2, %v1800_v5  ;;  %v3388_v11 = vpop.f32.mrb[118].mxu1 }
 0x1cf   :  { %2734 = vst.msk [vmem:[%s5420_s2 + $0x3b0] sm:$0xff] %vm2615_vm1, %v2477_v8  ;;  %v2605_v12 = vsel %vm2093_vm12, %v3387_v1, %v2349_v6  ;;  %vm1966_vm14 = vcmp.gt.f32.partialorder %v3260_v10, 0.0  ;;  %v2222_v14 = vmul.f32 0.2, %v3260_v10  ;;  %v1291_v15 = vpop.f32.mrb[119].mxu0  ;;  %v1803_v16 = vpop.f32.mrb[119].mxu1 }
 0x1d0   :  { %v2475_v13 = vsel %vm1963_vm0, %v1288_v4, %v2219_v7  ;;  %2862 = vst.msk [vmem:[%s5420_s2 + $0x7b0] sm:$0xff] %vm2615_vm1, %v2605_v12  ;;  %v2603_v17 = vsel %vm2091_vm13, %v1800_v5, %v2347_v9  ;;  %vm2094_vm15 = vcmp.gt.f32.partialorder %v3388_v11, 0.0  ;;  %v2350_v18 = vmul.f32 0.2, %v3388_v11 }
 0x1d1   :  { %2732 = vst.msk [vmem:[%s5420_s2 + $0x3a0] sm:$0xff] %vm2615_vm1, %v2475_v13  ;;  %vm1964_vm2 = vcmp.gt.f32.partialorder %v1291_v15, 0.0  ;;  %2860 = vst.msk [vmem:[%s5420_s2 + $0x7a0] sm:$0xff] %vm2615_vm1, %v2603_v17  ;;  %v2478_v19 = vsel %vm1966_vm14, %v3260_v10, %v2222_v14  ;;  %v2220_v20 = vmul.f32 0.2, %v1291_v15  ;;  %vm2092_vm3 = vcmp.gt.f32.partialorder %v1803_v16, 0.0 }
 0x1d2   :  { %v2348_v21 = vmul.f32 0.2, %v1803_v16  ;;  %2735 = vst.msk [vmem:[%s5420_s2 + $0x3b8] sm:$0xff] %vm2615_vm1, %v2478_v19  ;;  %v2606_v22 = vsel %vm2094_vm15, %v3388_v11, %v2350_v18 }
 0x1d3   :  { %2863 = vst.msk [vmem:[%s5420_s2 + $0x7b8] sm:$0xff] %vm2615_vm1, %v2606_v22  ;;  %v2476_v23 = vsel %vm1964_vm2, %v1291_v15, %v2220_v20  ;;  %v3263_v25 = vpop.f32.mrb[120].mxu0  ;;  %v3391_v26 = vpop.f32.mrb[120].mxu1 }
 0x1d4   :  { %v2604_v24 = vsel %vm2092_vm3, %v1803_v16, %v2348_v21  ;;  %2733 = vst.msk [vmem:[%s5420_s2 + $0x3a8] sm:$0xff] %vm2615_vm1, %v2476_v23  ;;  %vm1969_vm4 = vcmp.gt.f32.partialorder %v3263_v25, 0.0  ;;  %v2225_v27 = vmul.f32 0.2, %v3263_v25  ;;  %vm2097_vm5 = vcmp.gt.f32.partialorder %v3391_v26, 0.0  ;;  %v1304_v29 = vpop.f32.mrb[121].mxu0 }
 0x1d5   :  { %2861 = vst.msk [vmem:[%s5420_s2 + $0x7a8] sm:$0xff] %vm2615_vm1, %v2604_v24  ;;  %v2353_v28 = vmul.f32 0.2, %v3391_v26  ;;  %v1816_v30 = vpop.f32.mrb[121].mxu1  ;;  %vm1967_vm6 = vcmp.gt.f32.partialorder %v1304_v29, 0.0  ;;  %v3264_v34 = vpop.f32.mrb[122].mxu0 }
 0x1d6   :  { %v2481_v31 = vsel %vm1969_vm4, %v3263_v25, %v2225_v27  ;;  %v2223_v33 = vmul.f32 0.2, %v1304_v29  ;;  %v3392_v35 = vpop.f32.mrb[122].mxu1  ;;  %vm2095_vm7 = vcmp.gt.f32.partialorder %v1816_v30, 0.0  ;;  %v2351_v36 = vmul.f32 0.2, %v1816_v30 }
 0x1d7   :  { %v2609_v32 = vsel %vm2097_vm5, %v3391_v26, %v2353_v28  ;;  %2738 = vst.msk [vmem:[%s5420_s2 + $0x3d0] sm:$0xff] %vm2615_vm1, %v2481_v31  ;;  %vm1970_vm8 = vcmp.gt.f32.partialorder %v3264_v34, 0.0  ;;  %v2226_v37 = vmul.f32 0.2, %v3264_v34  ;;  %vm2098_vm9 = vcmp.gt.f32.partialorder %v3392_v35, 0.0  ;;  %v1307_v40 = vpop.f32.mrb[123].mxu0 }
 0x1d8   :  { %2866 = vst.msk [vmem:[%s5420_s2 + $0x7d0] sm:$0xff] %vm2615_vm1, %v2609_v32  ;;  %v2479_v38 = vsel %vm1967_vm6, %v1304_v29, %v2223_v33  ;;  %v2354_v39 = vmul.f32 0.2, %v3392_v35  ;;  %v1819_v41 = vpop.f32.mrb[123].mxu1  ;;  %v2607_v42 = vsel %vm2095_vm7, %v1816_v30, %v2351_v36  ;;  %vm1968_vm10 = vcmp.gt.f32.partialorder %v1307_v40, 0.0 }
 0x1d9   :  { %2736 = vst.msk [vmem:[%s5420_s2 + $0x3c0] sm:$0xff] %vm2615_vm1, %v2479_v38  ;;  %v2482_v43 = vsel %vm1970_vm8, %v3264_v34, %v2226_v37  ;;  %v2224_v44 = vmul.f32 0.2, %v1307_v40  ;;  %2864 = vst.msk [vmem:[%s5420_s2 + $0x7c0] sm:$0xff] %vm2615_vm1, %v2607_v42  ;;  %vm2096_vm11 = vcmp.gt.f32.partialorder %v1819_v41, 0.0 }
 0x1da   :  { %2739 = vst.msk [vmem:[%s5420_s2 + $0x3d8] sm:$0xff] %vm2615_vm1, %v2482_v43  ;;  %v2610_v45 = vsel %vm2098_vm9, %v3392_v35, %v2354_v39  ;;  %v2352_v46 = vmul.f32 0.2, %v1819_v41 }
 0x1db   :  { %2867 = vst.msk [vmem:[%s5420_s2 + $0x7d8] sm:$0xff] %vm2615_vm1, %v2610_v45  ;;  %v2480_v47 = vsel %vm1968_vm10, %v1307_v40, %v2224_v44  ;;  %v3267_v48 = vpop.f32.mrb[124].mxu0  ;;  %v3395_v49 = vpop.f32.mrb[124].mxu1 }
 0x1dc   :  { %2737 = vst.msk [vmem:[%s5420_s2 + $0x3c8] sm:$0xff] %vm2615_vm1, %v2480_v47  ;;  %v2608_v50 = vsel %vm2096_vm11, %v1819_v41, %v2352_v46  ;;  %vm1973_vm12 = vcmp.gt.f32.partialorder %v3267_v48, 0.0  ;;  %v2229_v51 = vmul.f32 0.2, %v3267_v48  ;;  %vm2101_vm0 = vcmp.gt.f32.partialorder %v3395_v49, 0.0  ;;  %v1320_v52 = vpop.f32.mrb[125].mxu0 }
 0x1dd   :  { %v1832_v53 = vpop.f32.mrb[125].mxu1  ;;  %2865 = vst.msk [vmem:[%s5420_s2 + $0x7c8] sm:$0xff] %vm2615_vm1, %v2608_v50  ;;  %v2357_v54 = vmul.f32 0.2, %v3395_v49  ;;  %vm1971_vm13 = vcmp.gt.f32.partialorder %v1320_v52, 0.0  ;;  %v3268_v58 = vpop.f32.mrb[126].mxu0 }
 0x1de   :  { %v2227_v55 = vmul.f32 0.2, %v1320_v52  ;;  %vm2099_vm14 = vcmp.gt.f32.partialorder %v1832_v53, 0.0  ;;  %v2485_v56 = vsel %vm1973_vm12, %v3267_v48, %v2229_v51  ;;  %v2355_v57 = vmul.f32 0.2, %v1832_v53  ;;  %v3396_v59 = vpop.f32.mrb[126].mxu1 }
 0x1df   :  { %2742 = vst.msk [vmem:[%s5420_s2 + $0x3f0] sm:$0xff] %vm2615_vm1, %v2485_v56  ;;  %v2613_v60 = vsel %vm2101_vm0, %v3395_v49, %v2357_v54  ;;  %vm1974_vm15 = vcmp.gt.f32.partialorder %v3268_v58, 0.0  ;;  %v2230_v62 = vmul.f32 0.2, %v3268_v58  ;;  %v1323_v63 = vpop.f32.mrb[127].mxu0  ;;  %v1835_v0 = vpop.f32.mrb[127].mxu1 }
 0x1e0   :  { %v2483_v61 = vsel %vm1971_vm13, %v1320_v52, %v2227_v55  ;;  %2870 = vst.msk [vmem:[%s5420_s2 + $0x7f0] sm:$0xff] %vm2615_vm1, %v2613_v60  ;;  %v2611_v1 = vsel %vm2099_vm14, %v1832_v53, %v2355_v57  ;;  %vm2102_vm2 = vcmp.gt.f32.partialorder %v3396_v59, 0.0  ;;  %v2358_v2 = vmul.f32 0.2, %v3396_v59 }
 0x1e1   :  { %2740 = vst.msk [vmem:[%s5420_s2 + $0x3e0] sm:$0xff] %vm2615_vm1, %v2483_v61  ;;  %vm1972_vm3 = vcmp.gt.f32.partialorder %v1323_v63, 0.0  ;;  %2868 = vst.msk [vmem:[%s5420_s2 + $0x7e0] sm:$0xff] %vm2615_vm1, %v2611_v1  ;;  %v2486_v3 = vsel %vm1974_vm15, %v3268_v58, %v2230_v62  ;;  %v2228_v4 = vmul.f32 0.2, %v1323_v63  ;;  %vm2100_vm4 = vcmp.gt.f32.partialorder %v1835_v0, 0.0 }
 0x1e2   :  { %v2356_v5 = vmul.f32 0.2, %v1835_v0  ;;  %2743 = vst.msk [vmem:[%s5420_s2 + $0x3f8] sm:$0xff] %vm2615_vm1, %v2486_v3  ;;  %v2614_v6 = vsel %vm2102_vm2, %v3396_v59, %v2358_v2 }
 0x1e3   :  { %2871 = vst.msk [vmem:[%s5420_s2 + $0x7f8] sm:$0xff] %vm2615_vm1, %v2614_v6  ;;  %v2484_v7 = vsel %vm1972_vm3, %v1323_v63, %v2228_v4 }
 0x1e4   :  { %v2612_v8 = vsel %vm2100_vm4, %v1835_v0, %v2356_v5  ;;  %2741 = vst.msk [vmem:[%s5420_s2 + $0x3e8] sm:$0xff] %vm2615_vm1, %v2484_v7 }
 0x1e5   :  { %2869 = vst.msk [vmem:[%s5420_s2 + $0x7e8] sm:$0xff] %vm2615_vm1, %v2612_v8 }

// kernel: discriminator_forward.6
= control target key start
LH: loop header
LB: loop body
LE: loop exit
PB: predicated region body
PF: predicated region fallthrough
CT: control target
= control target key end

     0   :  { %v1947_v0 = vmov 0   ;;  %vm1076_vm0 = vcmask 523264   ;;  %s4899_s1 = inlined_call_operand.vmem [shape: f32[512,64], index: 1, kind: input, shape index: {}]   ;;  %s4900_s0 = inlined_call_operand.vmem [shape: f32[512,512], index: 0, kind: input, shape index: {}]   ;;  %s4901_s2 = inlined_call_operand.vmem [shape: f32[1,64], index: 2, kind: input, shape index: {}]   ;;  %s4902_s3 = inlined_call_operand.vmem [shape: f32[1,64], index: 3, kind: input, shape index: {}]   ;;  %s4903_s4 = inlined_call_operand.vmem [shape: f32[512,64], index: 4, kind: output, shape index: {}]  }
   0x1   :  { %498 = vmatprep.subr.bf16.mxu1 %v1947_v0  ;;  %787 = vmatprep.subr.bf16.mxu0 %v1947_v0  ;;  %v402_v1 = vld [vmem:[%s4899_s1] sm:$0xff]  ;;  %v403_v2 = vld [vmem:[%s4899_s1 + $0x8] sm:$0xff]  ;;  %v404_v6 = vld [vmem:[%s4899_s1 + $0x10] sm:$0xff] }
   0x2   :  { %v434_v3 = vld [vmem:[%s4899_s1 + $0x100] sm:$0xff]  ;;  %v466_v4 = vpack.c.bf16 %v403_v2, %v402_v1  ;;  %v435_v5 = vld [vmem:[%s4899_s1 + $0x108] sm:$0xff]  ;;  %v405_v7 = vld [vmem:[%s4899_s1 + $0x18] sm:$0xff] }
   0x3   :  { %v482_v8 = vpack.c.bf16 %v435_v5, %v434_v3  ;;  %v436_v9 = vld [vmem:[%s4899_s1 + $0x110] sm:$0xff]  ;;  %v437_v10 = vld [vmem:[%s4899_s1 + $0x118] sm:$0xff]  ;;  %v467_v11 = vpack.c.bf16 %v405_v7, %v404_v6  ;;  %v406_v13 = vld [vmem:[%s4899_s1 + $0x20] sm:$0xff] }
   0x4   :  { %499 = vmatpush1.bf16.msra.mxu1 %v466_v4  ;;  %v483_v12 = vpack.c.bf16 %v437_v10, %v436_v9  ;;  %v407_v14 = vld [vmem:[%s4899_s1 + $0x28] sm:$0xff]  ;;  %v438_v15 = vld [vmem:[%s4899_s1 + $0x120] sm:$0xff]  ;;  %v408_v19 = vld [vmem:[%s4899_s1 + $0x30] sm:$0xff] }
   0x5   :  { %788 = vmatpush1.bf16.msra.mxu0 %v482_v8  ;;  %500 = vmatprep.subr.bf16.mxu1 %v1947_v0  ;;  %v439_v16 = vld [vmem:[%s4899_s1 + $0x128] sm:$0xff]  ;;  %v468_v17 = vpack.c.bf16 %v407_v14, %v406_v13  ;;  %v409_v20 = vld [vmem:[%s4899_s1 + $0x38] sm:$0xff]  ;;  %v440_v21 = vld [vmem:[%s4899_s1 + $0x130] sm:$0xff] }
   0x6   :  { %789 = vmatprep.subr.bf16.mxu0 %v1947_v0  ;;  %v484_v18 = vpack.c.bf16 %v439_v16, %v438_v15  ;;  %v441_v22 = vld [vmem:[%s4899_s1 + $0x138] sm:$0xff]  ;;  %v469_v23 = vpack.c.bf16 %v409_v20, %v408_v19  ;;  %v410_v25 = vld [vmem:[%s4899_s1 + $0x40] sm:$0xff]  ;;  %v411_v26 = vld [vmem:[%s4899_s1 + $0x48] sm:$0xff] }
   0x7   :  { %v485_v24 = vpack.c.bf16 %v441_v22, %v440_v21  ;;  %v442_v27 = vld [vmem:[%s4899_s1 + $0x140] sm:$0xff]  ;;  %v443_v28 = vld [vmem:[%s4899_s1 + $0x148] sm:$0xff]  ;;  %v470_v29 = vpack.c.bf16 %v411_v26, %v410_v25  ;;  %v412_v31 = vld [vmem:[%s4899_s1 + $0x50] sm:$0xff] }
   0x8   :  { %501 = vmatpush1.bf16.msra.mxu1 %v467_v11  ;;  %v486_v30 = vpack.c.bf16 %v443_v28, %v442_v27  ;;  %v413_v32 = vld [vmem:[%s4899_s1 + $0x58] sm:$0xff]  ;;  %v444_v33 = vld [vmem:[%s4899_s1 + $0x150] sm:$0xff]  ;;  %v414_v37 = vld [vmem:[%s4899_s1 + $0x60] sm:$0xff] }
   0x9   :  { %790 = vmatpush1.bf16.msra.mxu0 %v483_v12  ;;  %502 = vmatprep.subr.bf16.mxu1 %v1947_v0  ;;  %v445_v34 = vld [vmem:[%s4899_s1 + $0x158] sm:$0xff]  ;;  %v471_v35 = vpack.c.bf16 %v413_v32, %v412_v31  ;;  %v415_v38 = vld [vmem:[%s4899_s1 + $0x68] sm:$0xff]  ;;  %v446_v39 = vld [vmem:[%s4899_s1 + $0x160] sm:$0xff] }
   0xa   :  { %791 = vmatprep.subr.bf16.mxu0 %v1947_v0  ;;  %v487_v36 = vpack.c.bf16 %v445_v34, %v444_v33  ;;  %v447_v40 = vld [vmem:[%s4899_s1 + $0x168] sm:$0xff]  ;;  %v21_v44 = vld [vmem:[%s4900_s0 + $0x18] sm:$0xff]  ;;  %v472_v46 = vpack.c.bf16 %v415_v38, %v414_v37  ;;  %v416_v49 = vld [vmem:[%s4899_s1 + $0x70] sm:$0xff] }
   0xb   :  { %v19_v41 = vld [vmem:[%s4900_s0 + $0x8] sm:$0xff]  ;;  %v25_v45 = vld [vmem:[%s4900_s0 + $0x38] sm:$0xff]  ;;  %v488_v48 = vpack.c.bf16 %v447_v40, %v446_v39  ;;  %v448_v51 = vld [vmem:[%s4899_s1 + $0x170] sm:$0xff] }
   0xc   :  { %503 = vmatpush1.bf16.msra.mxu1 %v468_v17  ;;  %v23_v42 = vld [vmem:[%s4900_s0 + $0x28] sm:$0xff]  ;;  %v277_v47 = vpack.c.bf16 %v25_v45, %v21_v44  ;;  %v417_v50 = vld [vmem:[%s4899_s1 + $0x78] sm:$0xff]  ;;  %v418_v55 = vld [vmem:[%s4899_s1 + $0x80] sm:$0xff] }
   0xd   :  { %792 = vmatpush1.bf16.msra.mxu0 %v484_v18  ;;  %504 = vmatprep.subr.bf16.mxu1 %v1947_v0  ;;  %v275_v43 = vpack.c.bf16 %v23_v42, %v19_v41  ;;  %v449_v52 = vld [vmem:[%s4899_s1 + $0x178] sm:$0xff]  ;;  %v473_v53 = vpack.c.bf16 %v417_v50, %v416_v49  ;;  %v419_v56 = vld [vmem:[%s4899_s1 + $0x88] sm:$0xff]  ;;  %v450_v57 = vld [vmem:[%s4899_s1 + $0x180] sm:$0xff] }
   0xe   :  { %793 = vmatprep.subr.bf16.mxu0 %v1947_v0  ;;  %819 = vmatprep.mubr.bf16.mxu0 %v277_v47  ;;  %v489_v54 = vpack.c.bf16 %v449_v52, %v448_v51  ;;  %v451_v58 = vld [vmem:[%s4899_s1 + $0x188] sm:$0xff]  ;;  %v474_v59 = vpack.c.bf16 %v419_v56, %v418_v55  ;;  %v420_v61 = vld [vmem:[%s4899_s1 + $0x90] sm:$0xff]  ;;  %v421_v62 = vld [vmem:[%s4899_s1 + $0x98] sm:$0xff] }
   0xf   :  { %530 = vmatprep.mubr.bf16.mxu1 %v275_v43  ;;  %v490_v60 = vpack.c.bf16 %v451_v58, %v450_v57  ;;  %v452_v63 = vld [vmem:[%s4899_s1 + $0x190] sm:$0xff]  ;;  %v453_v1 = vld [vmem:[%s4899_s1 + $0x198] sm:$0xff]  ;;  %v475_v2 = vpack.c.bf16 %v421_v62, %v420_v61  ;;  %v422_v4 = vld [vmem:[%s4899_s1 + $0xa0] sm:$0xff] }
  0x10   :  { %505 = vmatpush1.bf16.msra.mxu1 %v469_v23  ;;  %v491_v3 = vpack.c.bf16 %v453_v1, %v452_v63  ;;  %v423_v5 = vld [vmem:[%s4899_s1 + $0xa8] sm:$0xff]  ;;  %v454_v6 = vld [vmem:[%s4899_s1 + $0x1a0] sm:$0xff]  ;;  %v424_v10 = vld [vmem:[%s4899_s1 + $0xb0] sm:$0xff] }
  0x11   :  { %794 = vmatpush1.bf16.msra.mxu0 %v485_v24  ;;  %506 = vmatprep.subr.bf16.mxu1 %v1947_v0  ;;  %v455_v7 = vld [vmem:[%s4899_s1 + $0x1a8] sm:$0xff]  ;;  %v476_v8 = vpack.c.bf16 %v423_v5, %v422_v4  ;;  %v425_v11 = vld [vmem:[%s4899_s1 + $0xb8] sm:$0xff]  ;;  %v456_v12 = vld [vmem:[%s4899_s1 + $0x1b0] sm:$0xff] }
  0x12   :  { %795 = vmatprep.subr.bf16.mxu0 %v1947_v0  ;;  %v492_v9 = vpack.c.bf16 %v455_v7, %v454_v6  ;;  %v457_v13 = vld [vmem:[%s4899_s1 + $0x1b8] sm:$0xff]  ;;  %v477_v14 = vpack.c.bf16 %v425_v11, %v424_v10  ;;  %v426_v16 = vld [vmem:[%s4899_s1 + $0xc0] sm:$0xff]  ;;  %v427_v17 = vld [vmem:[%s4899_s1 + $0xc8] sm:$0xff] }
  0x13   :  { %v493_v15 = vpack.c.bf16 %v457_v13, %v456_v12  ;;  %v458_v18 = vld [vmem:[%s4899_s1 + $0x1c0] sm:$0xff]  ;;  %v459_v19 = vld [vmem:[%s4899_s1 + $0x1c8] sm:$0xff]  ;;  %v478_v20 = vpack.c.bf16 %v427_v17, %v426_v16  ;;  %v428_v22 = vld [vmem:[%s4899_s1 + $0xd0] sm:$0xff] }
  0x14   :  { %507 = vmatpush1.bf16.msra.mxu1 %v470_v29  ;;  %v494_v21 = vpack.c.bf16 %v459_v19, %v458_v18  ;;  %v429_v23 = vld [vmem:[%s4899_s1 + $0xd8] sm:$0xff]  ;;  %v460_v24 = vld [vmem:[%s4899_s1 + $0x1d0] sm:$0xff]  ;;  %v430_v28 = vld [vmem:[%s4899_s1 + $0xe0] sm:$0xff] }
  0x15   :  { %796 = vmatpush1.bf16.msra.mxu0 %v486_v30  ;;  %508 = vmatprep.subr.bf16.mxu1 %v1947_v0  ;;  %v461_v25 = vld [vmem:[%s4899_s1 + $0x1d8] sm:$0xff]  ;;  %v479_v26 = vpack.c.bf16 %v429_v23, %v428_v22  ;;  %v431_v29 = vld [vmem:[%s4899_s1 + $0xe8] sm:$0xff]  ;;  %v462_v30 = vld [vmem:[%s4899_s1 + $0x1e0] sm:$0xff] }
  0x16   :  { %797 = vmatprep.subr.bf16.mxu0 %v1947_v0  ;;  %v495_v27 = vpack.c.bf16 %v461_v25, %v460_v24  ;;  %v463_v31 = vld [vmem:[%s4899_s1 + $0x1e8] sm:$0xff]  ;;  %v480_v32 = vpack.c.bf16 %v431_v29, %v430_v28  ;;  %v432_v34 = vld [vmem:[%s4899_s1 + $0xf0] sm:$0xff]  ;;  %v465_v37 = vld [vmem:[%s4899_s1 + $0x1f8] sm:$0xff] }
  0x17   :  { %v496_v33 = vpack.c.bf16 %v463_v31, %v462_v30  ;;  %v18_v39 = vld [vmem:[%s4900_s0] sm:$0xff]  ;;  %v20_v41 = vld [vmem:[%s4900_s0 + $0x10] sm:$0xff]  ;;  %v27_v44 = vld [vmem:[%s4900_s0 + $0x48] sm:$0xff] }
  0x18   :  { %509 = vmatpush1.bf16.msra.mxu1 %v471_v35  ;;  %v433_v35 = vld [vmem:[%s4899_s1 + $0xf8] sm:$0xff]  ;;  %v22_v40 = vld [vmem:[%s4900_s0 + $0x20] sm:$0xff]  ;;  %v24_v43 = vld [vmem:[%s4900_s0 + $0x30] sm:$0xff] }
  0x19   :  { %798 = vmatpush1.bf16.msra.mxu0 %v487_v36  ;;  %510 = vmatprep.subr.bf16.mxu1 %v1947_v0  ;;  %v464_v36 = vld [vmem:[%s4899_s1 + $0x1f0] sm:$0xff]  ;;  %v481_v38 = vpack.c.bf16 %v433_v35, %v432_v34  ;;  %v31_v45 = vld [vmem:[%s4900_s0 + $0x68] sm:$0xff]  ;;  %v33_v47 = vld [vmem:[%s4900_s0 + $0x78] sm:$0xff]  ;;  %v276_v49 = vpack.c.bf16 %v24_v43, %v20_v41 }
  0x1a   :  { %799 = vmatprep.subr.bf16.mxu0 %v1947_v0  ;;  %v497_v42 = vpack.c.bf16 %v465_v37, %v464_v36  ;;  %v279_v50 = vpack.c.bf16 %v31_v45, %v27_v44  ;;  %v30_v52 = vld [vmem:[%s4900_s0 + $0x60] sm:$0xff]  ;;  %v35_v55 = vld [vmem:[%s4900_s0 + $0x88] sm:$0xff]  ;;  %v37_v57 = vld [vmem:[%s4900_s0 + $0x98] sm:$0xff] }
  0x1b   :  { %v39_v56 = vld [vmem:[%s4900_s0 + $0xa8] sm:$0xff]  ;;  %v41_v58 = vld [vmem:[%s4900_s0 + $0xb8] sm:$0xff]  ;;  %v34_v63 = vld [vmem:[%s4900_s0 + $0x80] sm:$0xff] }
  0x1c   :  { %511 = vmatpush1.bf16.msra.mxu1 %v472_v46  ;;  %v29_v46 = vld [vmem:[%s4900_s0 + $0x58] sm:$0xff]  ;;  %v283_v61 = vpack.c.bf16 %v39_v56, %v35_v55  ;;  %v285_v62 = vpack.c.bf16 %v41_v58, %v37_v57  ;;  %v38_v1 = vld [vmem:[%s4900_s0 + $0xa0] sm:$0xff]  ;;  %v43_v4 = vld [vmem:[%s4900_s0 + $0xc8] sm:$0xff] }
  0x1d   :  { %800 = vmatpush1.bf16.msra.mxu0 %v488_v48  ;;  %512 = vmatprep.subr.bf16.mxu1 %v1947_v0  ;;  %v274_v48 = vpack.c.bf16 %v22_v40, %v18_v39  ;;  %v281_v51 = vpack.c.bf16 %v33_v47, %v29_v46  ;;  %v47_v5 = vld [vmem:[%s4900_s0 + $0xe8] sm:$0xff]  ;;  %v45_v6 = vld [vmem:[%s4900_s0 + $0xd8] sm:$0xff]  ;;  %v42_v12 = vld [vmem:[%s4900_s0 + $0xc0] sm:$0xff] }
  0x1e   :  { %801 = vmatprep.subr.bf16.mxu0 %v1947_v0  ;;  %v49_v7 = vld [vmem:[%s4900_s0 + $0xf8] sm:$0xff]  ;;  %v287_v10 = vpack.c.bf16 %v47_v5, %v43_v4  ;;  %v46_v13 = vld [vmem:[%s4900_s0 + $0xe0] sm:$0xff]  ;;  %v51_v16 = vld [vmem:[%s4900_s0 + $0x108] sm:$0xff] }
  0x1f   :  { %v289_v11 = vpack.c.bf16 %v49_v7, %v45_v6  ;;  %v55_v17 = vld [vmem:[%s4900_s0 + $0x128] sm:$0xff]  ;;  %v53_v18 = vld [vmem:[%s4900_s0 + $0x118] sm:$0xff]  ;;  %v50_v24 = vld [vmem:[%s4900_s0 + $0x100] sm:$0xff] }
  0x20   :  { %513 = vmatpush1.bf16.msra.mxu1 %v473_v53  ;;  %v28_v53 = vld [vmem:[%s4900_s0 + $0x50] sm:$0xff]  ;;  %v57_v19 = vld [vmem:[%s4900_s0 + $0x138] sm:$0xff]  ;;  %v291_v22 = vpack.c.bf16 %v55_v17, %v51_v16  ;;  %v54_v25 = vld [vmem:[%s4900_s0 + $0x120] sm:$0xff] }
  0x21   :  { %802 = vmatpush1.bf16.msra.mxu0 %v489_v54  ;;  %514 = vmatprep.subr.bf16.mxu1 %v1947_v0  ;;  %v32_v54 = vld [vmem:[%s4900_s0 + $0x70] sm:$0xff]  ;;  %v293_v23 = vpack.c.bf16 %v57_v19, %v53_v18  ;;  %v59_v28 = vld [vmem:[%s4900_s0 + $0x148] sm:$0xff]  ;;  %v61_v30 = vld [vmem:[%s4900_s0 + $0x158] sm:$0xff] }
  0x22   :  { %803 = vmatprep.subr.bf16.mxu0 %v1947_v0  ;;  %v63_v29 = vld [vmem:[%s4900_s0 + $0x168] sm:$0xff]  ;;  %v65_v31 = vld [vmem:[%s4900_s0 + $0x178] sm:$0xff]  ;;  %v58_v36 = vld [vmem:[%s4900_s0 + $0x140] sm:$0xff] }
  0x23   :  { %v295_v34 = vpack.c.bf16 %v63_v29, %v59_v28  ;;  %v297_v35 = vpack.c.bf16 %v65_v31, %v61_v30  ;;  %v62_v37 = vld [vmem:[%s4900_s0 + $0x160] sm:$0xff]  ;;  %v64_v39 = vld [vmem:[%s4900_s0 + $0x170] sm:$0xff]  ;;  %v67_v40 = vld [vmem:[%s4900_s0 + $0x188] sm:$0xff] }
  0x24   :  { %515 = vmatpush1.bf16.msra.mxu1 %v474_v59  ;;  %v71_v41 = vld [vmem:[%s4900_s0 + $0x1a8] sm:$0xff]  ;;  %v73_v43 = vld [vmem:[%s4900_s0 + $0x1b8] sm:$0xff]  ;;  %v294_v44 = vpack.c.bf16 %v62_v37, %v58_v36 }
  0x25   :  { %804 = vmatpush1.bf16.msra.mxu0 %v490_v60  ;;  %516 = vmatprep.subr.bf16.mxu1 %v1947_v0  ;;  %v280_v60 = vpack.c.bf16 %v32_v54, %v28_v53  ;;  %v299_v46 = vpack.c.bf16 %v71_v41, %v67_v40  ;;  %v77_v53 = vld [vmem:[%s4900_s0 + $0x1d8] sm:$0xff]  ;;  %v107_v36 = vld [vmem:[%s4900_s0 + $0x2c8] sm:$0xff] }
  0x26   :  { %805 = vmatprep.subr.bf16.mxu0 %v1947_v0  ;;  %v81_v54 = vld [vmem:[%s4900_s0 + $0x1f8] sm:$0xff]  ;;  %v111_v37 = vld [vmem:[%s4900_s0 + $0x2e8] sm:$0xff] }
  0x27   :  { %v305_v58 = vpack.c.bf16 %v81_v54, %v77_v53 }
  0x28   :  { %517 = vmatpush1.bf16.msra.mxu1 %v475_v2  ;;  %v36_v2 = vld [vmem:[%s4900_s0 + $0x90] sm:$0xff] }
  0x29   :  { %806 = vmatpush1.bf16.msra.mxu0 %v491_v3  ;;  %518 = vmatprep.subr.bf16.mxu1 %v1947_v0  ;;  %v40_v3 = vld [vmem:[%s4900_s0 + $0xb0] sm:$0xff] }
  0x2a   :  { %807 = vmatprep.subr.bf16.mxu0 %v1947_v0 }
  0x2c   :  { %519 = vmatpush1.bf16.msra.mxu1 %v476_v8  ;;  %v282_v8 = vpack.c.bf16 %v38_v1, %v34_v63  ;;  %v83_v63 = vld [vmem:[%s4900_s0 + $0x208] sm:$0xff] }
  0x2d   :  { %808 = vmatpush1.bf16.msra.mxu0 %v492_v9  ;;  %520 = vmatprep.subr.bf16.mxu1 %v1947_v0  ;;  %v284_v9 = vpack.c.bf16 %v40_v3, %v36_v2  ;;  %v87_v1 = vld [vmem:[%s4900_s0 + $0x228] sm:$0xff]  ;;  %v85_v2 = vld [vmem:[%s4900_s0 + $0x218] sm:$0xff] }
  0x2e   :  { %809 = vmatprep.subr.bf16.mxu0 %v1947_v0  ;;  %v89_v3 = vld [vmem:[%s4900_s0 + $0x238] sm:$0xff]  ;;  %v307_v6 = vpack.c.bf16 %v87_v1, %v83_v63 }
  0x2f   :  { %v309_v7 = vpack.c.bf16 %v89_v3, %v85_v2 }
  0x30   :  { %521 = vmatpush1.bf16.msra.mxu1 %v477_v14  ;;  %v44_v14 = vld [vmem:[%s4900_s0 + $0xd0] sm:$0xff] }
  0x31   :  { %810 = vmatpush1.bf16.msra.mxu0 %v493_v15  ;;  %522 = vmatprep.subr.bf16.mxu1 %v1947_v0  ;;  %v48_v15 = vld [vmem:[%s4900_s0 + $0xf0] sm:$0xff] }
  0x32   :  { %811 = vmatprep.subr.bf16.mxu0 %v1947_v0 }
  0x34   :  { %523 = vmatpush1.bf16.msra.mxu1 %v478_v20  ;;  %v286_v20 = vpack.c.bf16 %v46_v13, %v42_v12  ;;  %v91_v12 = vld [vmem:[%s4900_s0 + $0x248] sm:$0xff] }
  0x35   :  { %812 = vmatpush1.bf16.msra.mxu0 %v494_v21  ;;  %524 = vmatprep.subr.bf16.mxu1 %v1947_v0  ;;  %v288_v21 = vpack.c.bf16 %v48_v15, %v44_v14  ;;  %v95_v13 = vld [vmem:[%s4900_s0 + $0x268] sm:$0xff]  ;;  %v93_v14 = vld [vmem:[%s4900_s0 + $0x258] sm:$0xff] }
  0x36   :  { %813 = vmatprep.subr.bf16.mxu0 %v1947_v0  ;;  %v97_v15 = vld [vmem:[%s4900_s0 + $0x278] sm:$0xff]  ;;  %v311_v18 = vpack.c.bf16 %v95_v13, %v91_v12 }
  0x37   :  { %v313_v19 = vpack.c.bf16 %v97_v15, %v93_v14 }
  0x38   :  { %525 = vmatpush1.bf16.msra.mxu1 %v479_v26  ;;  %v52_v26 = vld [vmem:[%s4900_s0 + $0x110] sm:$0xff] }
  0x39   :  { %814 = vmatpush1.bf16.msra.mxu0 %v495_v27  ;;  %526 = vmatprep.subr.bf16.mxu1 %v1947_v0  ;;  %v56_v27 = vld [vmem:[%s4900_s0 + $0x130] sm:$0xff] }
  0x3a   :  { %815 = vmatprep.subr.bf16.mxu0 %v1947_v0 }
  0x3c   :  { %527 = vmatpush1.bf16.msra.mxu1 %v480_v32  ;;  %v290_v32 = vpack.c.bf16 %v54_v25, %v50_v24  ;;  %v99_v24 = vld [vmem:[%s4900_s0 + $0x288] sm:$0xff] }
  0x3d   :  { %816 = vmatpush1.bf16.msra.mxu0 %v496_v33  ;;  %528 = vmatprep.subr.bf16.mxu1 %v1947_v0  ;;  %v292_v33 = vpack.c.bf16 %v56_v27, %v52_v26  ;;  %v103_v25 = vld [vmem:[%s4900_s0 + $0x2a8] sm:$0xff]  ;;  %v101_v26 = vld [vmem:[%s4900_s0 + $0x298] sm:$0xff] }
  0x3e   :  { %817 = vmatprep.subr.bf16.mxu0 %v1947_v0  ;;  %v26_v0 = vld [vmem:[%s4900_s0 + $0x40] sm:$0xff]  ;;  %v105_v27 = vld [vmem:[%s4900_s0 + $0x2b8] sm:$0xff]  ;;  %v315_v30 = vpack.c.bf16 %v103_v25, %v99_v24 }
  0x3f   :  { %v278_v59 = vpack.c.bf16 %v30_v52, %v26_v0  ;;  %v75_v0 = vld [vmem:[%s4900_s0 + $0x1c8] sm:$0xff]  ;;  %v317_v31 = vpack.c.bf16 %v105_v27, %v101_v26 }
  0x40   :  { %529 = vmatpush1.bf16.msra.mxu1 %v481_v38  ;;  %v60_v38 = vld [vmem:[%s4900_s0 + $0x150] sm:$0xff]  ;;  %v79_v52 = vld [vmem:[%s4900_s0 + $0x1e8] sm:$0xff] }
  0x41   :  { %818 = vmatpush1.bf16.msra.mxu0 %v497_v42  ;;  %v69_v42 = vld [vmem:[%s4900_s0 + $0x198] sm:$0xff]  ;;  %v296_v45 = vpack.c.bf16 %v64_v39, %v60_v38  ;;  %v303_v57 = vpack.c.bf16 %v79_v52, %v75_v0 }
  0x42   :  { %v301_v47 = vpack.c.bf16 %v73_v43, %v69_v42  ;;  %v109_v38 = vld [vmem:[%s4900_s0 + $0x2d8] sm:$0xff]  ;;  %v319_v42 = vpack.c.bf16 %v111_v37, %v107_v36 }
  0x43   :  { %531 = vmatmul.mubr.bf16.vlgmr.msra.gmra.mrb[0].mxu1 %v274_v48  ;;  %v66_v48 = vld [vmem:[%s4900_s0 + $0x180] sm:$0xff]  ;;  %v113_v39 = vld [vmem:[%s4900_s0 + $0x2f8] sm:$0xff] }
  0x44   :  { %820 = vmatmul.mubr.bf16.vlgmr.msra.gmra.mrb[0].mxu0 %v276_v49  ;;  %538 = vmatprep.mubr.bf16.mxu1 %v279_v50  ;;  %v70_v49 = vld [vmem:[%s4900_s0 + $0x1a0] sm:$0xff]  ;;  %v68_v50 = vld [vmem:[%s4900_s0 + $0x190] sm:$0xff]  ;;  %v321_v43 = vpack.c.bf16 %v113_v39, %v109_v38 }
  0x45   :  { %827 = vmatprep.mubr.bf16.mxu0 %v281_v51  ;;  %v72_v51 = vld [vmem:[%s4900_s0 + $0x1b0] sm:$0xff]  ;;  %v298_v55 = vpack.c.bf16 %v70_v49, %v66_v48  ;;  %v115_v48 = vld [vmem:[%s4900_s0 + $0x308] sm:$0xff] }
  0x46   :  { %v300_v56 = vpack.c.bf16 %v72_v51, %v68_v50  ;;  %v119_v49 = vld [vmem:[%s4900_s0 + $0x328] sm:$0xff]  ;;  %v117_v50 = vld [vmem:[%s4900_s0 + $0x318] sm:$0xff] }
  0x47   :  { %v121_v51 = vld [vmem:[%s4900_s0 + $0x338] sm:$0xff]  ;;  %v323_v53 = vpack.c.bf16 %v119_v49, %v115_v48 }
  0x48   :  { %v325_v54 = vpack.c.bf16 %v121_v51, %v117_v50 }
  0x4b   :  { %539 = vmatmul.mubr.bf16.gmra.mrb[4].mxu1 %v278_v59  ;;  %v74_v59 = vld [vmem:[%s4900_s0 + $0x1c0] sm:$0xff] }
  0x4c   :  { %828 = vmatmul.mubr.bf16.gmra.mrb[4].mxu0 %v280_v60  ;;  %546 = vmatprep.mubr.bf16.mxu1 %v283_v61  ;;  %v78_v60 = vld [vmem:[%s4900_s0 + $0x1e0] sm:$0xff]  ;;  %v76_v61 = vld [vmem:[%s4900_s0 + $0x1d0] sm:$0xff] }
  0x4d   :  { %835 = vmatprep.mubr.bf16.mxu0 %v285_v62  ;;  %v80_v62 = vld [vmem:[%s4900_s0 + $0x1f0] sm:$0xff]  ;;  %v302_v4 = vpack.c.bf16 %v78_v60, %v74_v59  ;;  %v123_v59 = vld [vmem:[%s4900_s0 + $0x348] sm:$0xff] }
  0x4e   :  { %v304_v5 = vpack.c.bf16 %v80_v62, %v76_v61  ;;  %v127_v60 = vld [vmem:[%s4900_s0 + $0x368] sm:$0xff]  ;;  %v125_v61 = vld [vmem:[%s4900_s0 + $0x358] sm:$0xff] }
  0x4f   :  { %v129_v62 = vld [vmem:[%s4900_s0 + $0x378] sm:$0xff]  ;;  %v327_v2 = vpack.c.bf16 %v127_v60, %v123_v59 }
  0x50   :  { %v329_v3 = vpack.c.bf16 %v129_v62, %v125_v61 }
  0x53   :  { %547 = vmatmul.mubr.bf16.gmra.mrb[8].mxu1 %v282_v8  ;;  %v82_v8 = vld [vmem:[%s4900_s0 + $0x200] sm:$0xff] }
  0x54   :  { %836 = vmatmul.mubr.bf16.gmra.mrb[8].mxu0 %v284_v9  ;;  %554 = vmatprep.mubr.bf16.mxu1 %v287_v10  ;;  %v86_v9 = vld [vmem:[%s4900_s0 + $0x220] sm:$0xff]  ;;  %v84_v10 = vld [vmem:[%s4900_s0 + $0x210] sm:$0xff] }
  0x55   :  { %843 = vmatprep.mubr.bf16.mxu0 %v289_v11  ;;  %v88_v11 = vld [vmem:[%s4900_s0 + $0x230] sm:$0xff]  ;;  %v306_v16 = vpack.c.bf16 %v86_v9, %v82_v8  ;;  %v131_v8 = vld [vmem:[%s4900_s0 + $0x388] sm:$0xff] }
  0x56   :  { %v308_v17 = vpack.c.bf16 %v88_v11, %v84_v10  ;;  %v135_v9 = vld [vmem:[%s4900_s0 + $0x3a8] sm:$0xff]  ;;  %v133_v10 = vld [vmem:[%s4900_s0 + $0x398] sm:$0xff] }
  0x57   :  { %v137_v11 = vld [vmem:[%s4900_s0 + $0x3b8] sm:$0xff]  ;;  %v331_v14 = vpack.c.bf16 %v135_v9, %v131_v8 }
  0x58   :  { %v333_v15 = vpack.c.bf16 %v137_v11, %v133_v10 }
  0x5b   :  { %555 = vmatmul.mubr.bf16.gmra.mrb[12].mxu1 %v286_v20  ;;  %v90_v20 = vld [vmem:[%s4900_s0 + $0x240] sm:$0xff] }
  0x5c   :  { %844 = vmatmul.mubr.bf16.gmra.mrb[12].mxu0 %v288_v21  ;;  %562 = vmatprep.mubr.bf16.mxu1 %v291_v22  ;;  %v94_v21 = vld [vmem:[%s4900_s0 + $0x260] sm:$0xff]  ;;  %v92_v22 = vld [vmem:[%s4900_s0 + $0x250] sm:$0xff] }
  0x5d   :  { %851 = vmatprep.mubr.bf16.mxu0 %v293_v23  ;;  %v96_v23 = vld [vmem:[%s4900_s0 + $0x270] sm:$0xff]  ;;  %v310_v28 = vpack.c.bf16 %v94_v21, %v90_v20  ;;  %v139_v20 = vld [vmem:[%s4900_s0 + $0x3c8] sm:$0xff] }
  0x5e   :  { %v312_v29 = vpack.c.bf16 %v96_v23, %v92_v22  ;;  %v143_v21 = vld [vmem:[%s4900_s0 + $0x3e8] sm:$0xff]  ;;  %v141_v22 = vld [vmem:[%s4900_s0 + $0x3d8] sm:$0xff] }
  0x5f   :  { %v145_v23 = vld [vmem:[%s4900_s0 + $0x3f8] sm:$0xff]  ;;  %v335_v26 = vpack.c.bf16 %v143_v21, %v139_v20 }
  0x60   :  { %v337_v27 = vpack.c.bf16 %v145_v23, %v141_v22 }
  0x63   :  { %563 = vmatmul.mubr.bf16.gmra.mrb[16].mxu1 %v290_v32  ;;  %v98_v32 = vld [vmem:[%s4900_s0 + $0x280] sm:$0xff] }
  0x64   :  { %852 = vmatmul.mubr.bf16.gmra.mrb[16].mxu0 %v292_v33  ;;  %570 = vmatprep.mubr.bf16.mxu1 %v295_v34  ;;  %v102_v33 = vld [vmem:[%s4900_s0 + $0x2a0] sm:$0xff]  ;;  %v100_v34 = vld [vmem:[%s4900_s0 + $0x290] sm:$0xff] }
  0x65   :  { %859 = vmatprep.mubr.bf16.mxu0 %v297_v35  ;;  %v104_v35 = vld [vmem:[%s4900_s0 + $0x2b0] sm:$0xff]  ;;  %v314_v40 = vpack.c.bf16 %v102_v33, %v98_v32  ;;  %v147_v32 = vld [vmem:[%s4900_s0 + $0x408] sm:$0xff] }
  0x66   :  { %v316_v41 = vpack.c.bf16 %v104_v35, %v100_v34  ;;  %v151_v33 = vld [vmem:[%s4900_s0 + $0x428] sm:$0xff]  ;;  %v149_v34 = vld [vmem:[%s4900_s0 + $0x418] sm:$0xff] }
  0x67   :  { %v153_v35 = vld [vmem:[%s4900_s0 + $0x438] sm:$0xff]  ;;  %v339_v38 = vpack.c.bf16 %v151_v33, %v147_v32 }
  0x68   :  { %v341_v39 = vpack.c.bf16 %v153_v35, %v149_v34 }
  0x6b   :  { %571 = vmatmul.mubr.bf16.gmra.mrb[20].mxu1 %v294_v44  ;;  %v106_v44 = vld [vmem:[%s4900_s0 + $0x2c0] sm:$0xff] }
  0x6c   :  { %860 = vmatmul.mubr.bf16.gmra.mrb[20].mxu0 %v296_v45  ;;  %578 = vmatprep.mubr.bf16.mxu1 %v299_v46  ;;  %v110_v45 = vld [vmem:[%s4900_s0 + $0x2e0] sm:$0xff]  ;;  %v108_v46 = vld [vmem:[%s4900_s0 + $0x2d0] sm:$0xff] }
  0x6d   :  { %867 = vmatprep.mubr.bf16.mxu0 %v301_v47  ;;  %v112_v47 = vld [vmem:[%s4900_s0 + $0x2f0] sm:$0xff]  ;;  %v318_v0 = vpack.c.bf16 %v110_v45, %v106_v44  ;;  %v155_v44 = vld [vmem:[%s4900_s0 + $0x448] sm:$0xff] }
  0x6e   :  { %v320_v52 = vpack.c.bf16 %v112_v47, %v108_v46  ;;  %v159_v45 = vld [vmem:[%s4900_s0 + $0x468] sm:$0xff]  ;;  %v157_v46 = vld [vmem:[%s4900_s0 + $0x458] sm:$0xff] }
  0x6f   :  { %v161_v47 = vld [vmem:[%s4900_s0 + $0x478] sm:$0xff]  ;;  %v343_v50 = vpack.c.bf16 %v159_v45, %v155_v44 }
  0x70   :  { %v345_v51 = vpack.c.bf16 %v161_v47, %v157_v46 }
  0x73   :  { %579 = vmatmul.mubr.bf16.gmra.mrb[24].mxu1 %v298_v55  ;;  %v114_v55 = vld [vmem:[%s4900_s0 + $0x300] sm:$0xff] }
  0x74   :  { %868 = vmatmul.mubr.bf16.gmra.mrb[24].mxu0 %v300_v56  ;;  %586 = vmatprep.mubr.bf16.mxu1 %v303_v57  ;;  %v118_v56 = vld [vmem:[%s4900_s0 + $0x320] sm:$0xff]  ;;  %v116_v57 = vld [vmem:[%s4900_s0 + $0x310] sm:$0xff] }
  0x75   :  { %875 = vmatprep.mubr.bf16.mxu0 %v305_v58  ;;  %v120_v58 = vld [vmem:[%s4900_s0 + $0x330] sm:$0xff]  ;;  %v322_v63 = vpack.c.bf16 %v118_v56, %v114_v55  ;;  %v163_v55 = vld [vmem:[%s4900_s0 + $0x488] sm:$0xff] }
  0x76   :  { %v324_v1 = vpack.c.bf16 %v120_v58, %v116_v57  ;;  %v167_v56 = vld [vmem:[%s4900_s0 + $0x4a8] sm:$0xff]  ;;  %v165_v57 = vld [vmem:[%s4900_s0 + $0x498] sm:$0xff] }
  0x77   :  { %v169_v58 = vld [vmem:[%s4900_s0 + $0x4b8] sm:$0xff]  ;;  %v347_v61 = vpack.c.bf16 %v167_v56, %v163_v55 }
  0x78   :  { %v349_v62 = vpack.c.bf16 %v169_v58, %v165_v57 }
  0x7b   :  { %587 = vmatmul.mubr.bf16.gmra.mrb[28].mxu1 %v302_v4  ;;  %v122_v4 = vld [vmem:[%s4900_s0 + $0x340] sm:$0xff] }
  0x7c   :  { %876 = vmatmul.mubr.bf16.gmra.mrb[28].mxu0 %v304_v5  ;;  %594 = vmatprep.mubr.bf16.mxu1 %v307_v6  ;;  %v126_v5 = vld [vmem:[%s4900_s0 + $0x360] sm:$0xff]  ;;  %v124_v6 = vld [vmem:[%s4900_s0 + $0x350] sm:$0xff] }
  0x7d   :  { %883 = vmatprep.mubr.bf16.mxu0 %v309_v7  ;;  %v128_v7 = vld [vmem:[%s4900_s0 + $0x370] sm:$0xff]  ;;  %v326_v12 = vpack.c.bf16 %v126_v5, %v122_v4  ;;  %v171_v4 = vld [vmem:[%s4900_s0 + $0x4c8] sm:$0xff] }
  0x7e   :  { %v328_v13 = vpack.c.bf16 %v128_v7, %v124_v6  ;;  %v175_v5 = vld [vmem:[%s4900_s0 + $0x4e8] sm:$0xff]  ;;  %v173_v6 = vld [vmem:[%s4900_s0 + $0x4d8] sm:$0xff] }
  0x7f   :  { %v177_v7 = vld [vmem:[%s4900_s0 + $0x4f8] sm:$0xff]  ;;  %v351_v10 = vpack.c.bf16 %v175_v5, %v171_v4 }
  0x80   :  { %v353_v11 = vpack.c.bf16 %v177_v7, %v173_v6 }
  0x83   :  { %595 = vmatmul.mubr.bf16.gmra.mrb[32].mxu1 %v306_v16  ;;  %v130_v16 = vld [vmem:[%s4900_s0 + $0x380] sm:$0xff] }
  0x84   :  { %884 = vmatmul.mubr.bf16.gmra.mrb[32].mxu0 %v308_v17  ;;  %602 = vmatprep.mubr.bf16.mxu1 %v311_v18  ;;  %v134_v17 = vld [vmem:[%s4900_s0 + $0x3a0] sm:$0xff]  ;;  %v132_v18 = vld [vmem:[%s4900_s0 + $0x390] sm:$0xff] }
  0x85   :  { %891 = vmatprep.mubr.bf16.mxu0 %v313_v19  ;;  %v136_v19 = vld [vmem:[%s4900_s0 + $0x3b0] sm:$0xff]  ;;  %v330_v24 = vpack.c.bf16 %v134_v17, %v130_v16  ;;  %v179_v16 = vld [vmem:[%s4900_s0 + $0x508] sm:$0xff] }
  0x86   :  { %v332_v25 = vpack.c.bf16 %v136_v19, %v132_v18  ;;  %v183_v17 = vld [vmem:[%s4900_s0 + $0x528] sm:$0xff]  ;;  %v181_v18 = vld [vmem:[%s4900_s0 + $0x518] sm:$0xff] }
  0x87   :  { %v185_v19 = vld [vmem:[%s4900_s0 + $0x538] sm:$0xff]  ;;  %v355_v22 = vpack.c.bf16 %v183_v17, %v179_v16 }
  0x88   :  { %v357_v23 = vpack.c.bf16 %v185_v19, %v181_v18 }
  0x8b   :  { %603 = vmatmul.mubr.bf16.gmra.mrb[36].mxu1 %v310_v28  ;;  %v138_v28 = vld [vmem:[%s4900_s0 + $0x3c0] sm:$0xff] }
  0x8c   :  { %892 = vmatmul.mubr.bf16.gmra.mrb[36].mxu0 %v312_v29  ;;  %610 = vmatprep.mubr.bf16.mxu1 %v315_v30  ;;  %v142_v29 = vld [vmem:[%s4900_s0 + $0x3e0] sm:$0xff]  ;;  %v140_v30 = vld [vmem:[%s4900_s0 + $0x3d0] sm:$0xff] }
  0x8d   :  { %899 = vmatprep.mubr.bf16.mxu0 %v317_v31  ;;  %v144_v31 = vld [vmem:[%s4900_s0 + $0x3f0] sm:$0xff]  ;;  %v334_v36 = vpack.c.bf16 %v142_v29, %v138_v28  ;;  %v187_v28 = vld [vmem:[%s4900_s0 + $0x548] sm:$0xff] }
  0x8e   :  { %v336_v37 = vpack.c.bf16 %v144_v31, %v140_v30  ;;  %v191_v29 = vld [vmem:[%s4900_s0 + $0x568] sm:$0xff]  ;;  %v189_v30 = vld [vmem:[%s4900_s0 + $0x558] sm:$0xff] }
  0x8f   :  { %v193_v31 = vld [vmem:[%s4900_s0 + $0x578] sm:$0xff]  ;;  %v359_v34 = vpack.c.bf16 %v191_v29, %v187_v28 }
  0x90   :  { %v361_v35 = vpack.c.bf16 %v193_v31, %v189_v30 }
  0x93   :  { %611 = vmatmul.mubr.bf16.gmra.mrb[40].mxu1 %v314_v40  ;;  %v146_v40 = vld [vmem:[%s4900_s0 + $0x400] sm:$0xff] }
  0x94   :  { %900 = vmatmul.mubr.bf16.gmra.mrb[40].mxu0 %v316_v41  ;;  %618 = vmatprep.mubr.bf16.mxu1 %v319_v42  ;;  %v150_v41 = vld [vmem:[%s4900_s0 + $0x420] sm:$0xff]  ;;  %v148_v42 = vld [vmem:[%s4900_s0 + $0x410] sm:$0xff] }
  0x95   :  { %907 = vmatprep.mubr.bf16.mxu0 %v321_v43  ;;  %v152_v43 = vld [vmem:[%s4900_s0 + $0x430] sm:$0xff]  ;;  %v338_v48 = vpack.c.bf16 %v150_v41, %v146_v40  ;;  %v195_v40 = vld [vmem:[%s4900_s0 + $0x588] sm:$0xff] }
  0x96   :  { %v340_v49 = vpack.c.bf16 %v152_v43, %v148_v42  ;;  %v199_v41 = vld [vmem:[%s4900_s0 + $0x5a8] sm:$0xff]  ;;  %v197_v42 = vld [vmem:[%s4900_s0 + $0x598] sm:$0xff] }
  0x97   :  { %v201_v43 = vld [vmem:[%s4900_s0 + $0x5b8] sm:$0xff]  ;;  %v363_v46 = vpack.c.bf16 %v199_v41, %v195_v40 }
  0x98   :  { %v365_v47 = vpack.c.bf16 %v201_v43, %v197_v42 }
  0x9b   :  { %619 = vmatmul.mubr.bf16.gmra.mrb[44].mxu1 %v318_v0  ;;  %v154_v0 = vld [vmem:[%s4900_s0 + $0x440] sm:$0xff] }
  0x9c   :  { %908 = vmatmul.mubr.bf16.gmra.mrb[44].mxu0 %v320_v52  ;;  %626 = vmatprep.mubr.bf16.mxu1 %v323_v53  ;;  %v158_v52 = vld [vmem:[%s4900_s0 + $0x460] sm:$0xff]  ;;  %v156_v53 = vld [vmem:[%s4900_s0 + $0x450] sm:$0xff] }
  0x9d   :  { %915 = vmatprep.mubr.bf16.mxu0 %v325_v54  ;;  %v160_v54 = vld [vmem:[%s4900_s0 + $0x470] sm:$0xff]  ;;  %v342_v59 = vpack.c.bf16 %v158_v52, %v154_v0  ;;  %v203_v0 = vld [vmem:[%s4900_s0 + $0x5c8] sm:$0xff] }
  0x9e   :  { %v344_v60 = vpack.c.bf16 %v160_v54, %v156_v53  ;;  %v207_v52 = vld [vmem:[%s4900_s0 + $0x5e8] sm:$0xff]  ;;  %v205_v53 = vld [vmem:[%s4900_s0 + $0x5d8] sm:$0xff] }
  0x9f   :  { %v209_v54 = vld [vmem:[%s4900_s0 + $0x5f8] sm:$0xff]  ;;  %v367_v57 = vpack.c.bf16 %v207_v52, %v203_v0 }
  0xa0   :  { %v369_v58 = vpack.c.bf16 %v209_v54, %v205_v53  ;;  %v249_v0 = vld [vmem:[%s4900_s0 + $0x738] sm:$0xff] }
  0xa3   :  { %627 = vmatmul.mubr.bf16.gmra.mrb[48].mxu1 %v322_v63  ;;  %v162_v63 = vld [vmem:[%s4900_s0 + $0x480] sm:$0xff] }
  0xa4   :  { %916 = vmatmul.mubr.bf16.gmra.mrb[48].mxu0 %v324_v1  ;;  %634 = vmatprep.mubr.bf16.mxu1 %v327_v2  ;;  %v166_v1 = vld [vmem:[%s4900_s0 + $0x4a0] sm:$0xff]  ;;  %v164_v2 = vld [vmem:[%s4900_s0 + $0x490] sm:$0xff] }
  0xa5   :  { %923 = vmatprep.mubr.bf16.mxu0 %v329_v3  ;;  %v168_v3 = vld [vmem:[%s4900_s0 + $0x4b0] sm:$0xff]  ;;  %v346_v8 = vpack.c.bf16 %v166_v1, %v162_v63  ;;  %v211_v63 = vld [vmem:[%s4900_s0 + $0x608] sm:$0xff] }
  0xa6   :  { %v348_v9 = vpack.c.bf16 %v168_v3, %v164_v2  ;;  %v215_v1 = vld [vmem:[%s4900_s0 + $0x628] sm:$0xff]  ;;  %v213_v2 = vld [vmem:[%s4900_s0 + $0x618] sm:$0xff] }
  0xa7   :  { %v217_v3 = vld [vmem:[%s4900_s0 + $0x638] sm:$0xff]  ;;  %v371_v6 = vpack.c.bf16 %v215_v1, %v211_v63 }
  0xa8   :  { %v373_v7 = vpack.c.bf16 %v217_v3, %v213_v2  ;;  %v242_v2 = vld [vmem:[%s4900_s0 + $0x700] sm:$0xff] }
  0xa9   :  { %v246_v3 = vld [vmem:[%s4900_s0 + $0x720] sm:$0xff] }
  0xab   :  { %635 = vmatmul.mubr.bf16.gmra.mrb[52].mxu1 %v326_v12  ;;  %v170_v12 = vld [vmem:[%s4900_s0 + $0x4c0] sm:$0xff] }
  0xac   :  { %924 = vmatmul.mubr.bf16.gmra.mrb[52].mxu0 %v328_v13  ;;  %642 = vmatprep.mubr.bf16.mxu1 %v331_v14  ;;  %v174_v13 = vld [vmem:[%s4900_s0 + $0x4e0] sm:$0xff]  ;;  %v172_v14 = vld [vmem:[%s4900_s0 + $0x4d0] sm:$0xff] }
  0xad   :  { %931 = vmatprep.mubr.bf16.mxu0 %v333_v15  ;;  %v176_v15 = vld [vmem:[%s4900_s0 + $0x4f0] sm:$0xff]  ;;  %v350_v20 = vpack.c.bf16 %v174_v13, %v170_v12  ;;  %v219_v12 = vld [vmem:[%s4900_s0 + $0x648] sm:$0xff] }
  0xae   :  { %v352_v21 = vpack.c.bf16 %v176_v15, %v172_v14  ;;  %v223_v13 = vld [vmem:[%s4900_s0 + $0x668] sm:$0xff]  ;;  %v221_v14 = vld [vmem:[%s4900_s0 + $0x658] sm:$0xff] }
  0xaf   :  { %v225_v15 = vld [vmem:[%s4900_s0 + $0x678] sm:$0xff]  ;;  %v375_v18 = vpack.c.bf16 %v223_v13, %v219_v12  ;;  %v386_v13 = vpack.c.bf16 %v246_v3, %v242_v2 }
  0xb0   :  { %v377_v19 = vpack.c.bf16 %v225_v15, %v221_v14 }
  0xb3   :  { %643 = vmatmul.mubr.bf16.gmra.mrb[56].mxu1 %v330_v24  ;;  %v178_v24 = vld [vmem:[%s4900_s0 + $0x500] sm:$0xff] }
  0xb4   :  { %932 = vmatmul.mubr.bf16.gmra.mrb[56].mxu0 %v332_v25  ;;  %650 = vmatprep.mubr.bf16.mxu1 %v335_v26  ;;  %v182_v25 = vld [vmem:[%s4900_s0 + $0x520] sm:$0xff]  ;;  %v180_v26 = vld [vmem:[%s4900_s0 + $0x510] sm:$0xff] }
  0xb5   :  { %939 = vmatprep.mubr.bf16.mxu0 %v337_v27  ;;  %v184_v27 = vld [vmem:[%s4900_s0 + $0x530] sm:$0xff]  ;;  %v354_v32 = vpack.c.bf16 %v182_v25, %v178_v24  ;;  %v227_v24 = vld [vmem:[%s4900_s0 + $0x688] sm:$0xff] }
  0xb6   :  { %v356_v33 = vpack.c.bf16 %v184_v27, %v180_v26  ;;  %v231_v25 = vld [vmem:[%s4900_s0 + $0x6a8] sm:$0xff]  ;;  %v229_v26 = vld [vmem:[%s4900_s0 + $0x698] sm:$0xff] }
  0xb7   :  { %v233_v27 = vld [vmem:[%s4900_s0 + $0x6b8] sm:$0xff]  ;;  %v379_v30 = vpack.c.bf16 %v231_v25, %v227_v24  ;;  %v250_v24 = vld [vmem:[%s4900_s0 + $0x740] sm:$0xff] }
  0xb8   :  { %v381_v31 = vpack.c.bf16 %v233_v27, %v229_v26  ;;  %v254_v25 = vld [vmem:[%s4900_s0 + $0x760] sm:$0xff]  ;;  %v252_v26 = vld [vmem:[%s4900_s0 + $0x750] sm:$0xff] }
  0xb9   :  { %v256_v27 = vld [vmem:[%s4900_s0 + $0x770] sm:$0xff] }
  0xbb   :  { %651 = vmatmul.mubr.bf16.gmra.mrb[60].mxu1 %v334_v36  ;;  %v186_v36 = vld [vmem:[%s4900_s0 + $0x540] sm:$0xff] }
  0xbc   :  { %940 = vmatmul.mubr.bf16.gmra.mrb[60].mxu0 %v336_v37  ;;  %658 = vmatprep.mubr.bf16.mxu1 %v339_v38  ;;  %v190_v37 = vld [vmem:[%s4900_s0 + $0x560] sm:$0xff]  ;;  %v188_v38 = vld [vmem:[%s4900_s0 + $0x550] sm:$0xff] }
  0xbd   :  { %947 = vmatprep.mubr.bf16.mxu0 %v341_v39  ;;  %v192_v39 = vld [vmem:[%s4900_s0 + $0x570] sm:$0xff]  ;;  %v358_v44 = vpack.c.bf16 %v190_v37, %v186_v36  ;;  %v235_v36 = vld [vmem:[%s4900_s0 + $0x6c8] sm:$0xff] }
  0xbe   :  { %v360_v45 = vpack.c.bf16 %v192_v39, %v188_v38  ;;  %v239_v37 = vld [vmem:[%s4900_s0 + $0x6e8] sm:$0xff]  ;;  %v237_v38 = vld [vmem:[%s4900_s0 + $0x6d8] sm:$0xff] }
  0xbf   :  { %v241_v39 = vld [vmem:[%s4900_s0 + $0x6f8] sm:$0xff]  ;;  %v383_v42 = vpack.c.bf16 %v239_v37, %v235_v36 }
  0xc0   :  { %v385_v43 = vpack.c.bf16 %v241_v39, %v237_v38  ;;  %v392_v39 = vpack.c.bf16 %v256_v27, %v252_v26 }
  0xc3   :  { %659 = vmatmul.mubr.bf16.gmra.mrb[64].mxu1 %v338_v48  ;;  %v194_v48 = vld [vmem:[%s4900_s0 + $0x580] sm:$0xff] }
  0xc4   :  { %948 = vmatmul.mubr.bf16.gmra.mrb[64].mxu0 %v340_v49  ;;  %666 = vmatprep.mubr.bf16.mxu1 %v343_v50  ;;  %v198_v49 = vld [vmem:[%s4900_s0 + $0x5a0] sm:$0xff]  ;;  %v196_v50 = vld [vmem:[%s4900_s0 + $0x590] sm:$0xff] }
  0xc5   :  { %955 = vmatprep.mubr.bf16.mxu0 %v345_v51  ;;  %v200_v51 = vld [vmem:[%s4900_s0 + $0x5b0] sm:$0xff]  ;;  %v362_v55 = vpack.c.bf16 %v198_v49, %v194_v48  ;;  %v243_v48 = vld [vmem:[%s4900_s0 + $0x708] sm:$0xff] }
  0xc6   :  { %v364_v56 = vpack.c.bf16 %v200_v51, %v196_v50  ;;  %v247_v49 = vld [vmem:[%s4900_s0 + $0x728] sm:$0xff]  ;;  %v245_v51 = vld [vmem:[%s4900_s0 + $0x718] sm:$0xff] }
  0xcb   :  { %667 = vmatmul.mubr.bf16.gmra.mrb[68].mxu1 %v342_v59  ;;  %v202_v59 = vld [vmem:[%s4900_s0 + $0x5c0] sm:$0xff] }
  0xcc   :  { %956 = vmatmul.mubr.bf16.gmra.mrb[68].mxu0 %v344_v60  ;;  %674 = vmatprep.mubr.bf16.mxu1 %v347_v61  ;;  %v206_v60 = vld [vmem:[%s4900_s0 + $0x5e0] sm:$0xff]  ;;  %v204_v61 = vld [vmem:[%s4900_s0 + $0x5d0] sm:$0xff] }
  0xcd   :  { %963 = vmatprep.mubr.bf16.mxu0 %v349_v62  ;;  %v208_v62 = vld [vmem:[%s4900_s0 + $0x5f0] sm:$0xff]  ;;  %v366_v4 = vpack.c.bf16 %v206_v60, %v202_v59  ;;  %v387_v59 = vpack.c.bf16 %v247_v49, %v243_v48 }
  0xce   :  { %v368_v5 = vpack.c.bf16 %v208_v62, %v204_v61  ;;  %v389_v62 = vpack.c.bf16 %v249_v0, %v245_v51  ;;  %v260_v48 = vld [vmem:[%s4900_s0 + $0x790] sm:$0xff]  ;;  %v271_v51 = vld [vmem:[%s4900_s0 + $0x7e8] sm:$0xff] }
  0xcf   :  { %v264_v49 = vld [vmem:[%s4900_s0 + $0x7b0] sm:$0xff] }
  0xd3   :  { %675 = vmatmul.mubr.bf16.gmra.mrb[72].mxu1 %v346_v8  ;;  %v210_v8 = vld [vmem:[%s4900_s0 + $0x600] sm:$0xff] }
  0xd4   :  { %964 = vmatmul.mubr.bf16.gmra.mrb[72].mxu0 %v348_v9  ;;  %682 = vmatprep.mubr.bf16.mxu1 %v351_v10  ;;  %v214_v9 = vld [vmem:[%s4900_s0 + $0x620] sm:$0xff]  ;;  %v212_v10 = vld [vmem:[%s4900_s0 + $0x610] sm:$0xff] }
  0xd5   :  { %971 = vmatprep.mubr.bf16.mxu0 %v353_v11  ;;  %v216_v11 = vld [vmem:[%s4900_s0 + $0x630] sm:$0xff]  ;;  %v370_v16 = vpack.c.bf16 %v214_v9, %v210_v8  ;;  %v253_v9 = vld [vmem:[%s4900_s0 + $0x758] sm:$0xff] }
  0xd6   :  { %v372_v17 = vpack.c.bf16 %v216_v11, %v212_v10  ;;  %v257_v10 = vld [vmem:[%s4900_s0 + $0x778] sm:$0xff] }
  0xdb   :  { %683 = vmatmul.mubr.bf16.gmra.mrb[76].mxu1 %v350_v20  ;;  %v218_v20 = vld [vmem:[%s4900_s0 + $0x640] sm:$0xff] }
  0xdc   :  { %972 = vmatmul.mubr.bf16.gmra.mrb[76].mxu0 %v352_v21  ;;  %690 = vmatprep.mubr.bf16.mxu1 %v355_v22  ;;  %v222_v21 = vld [vmem:[%s4900_s0 + $0x660] sm:$0xff]  ;;  %v220_v22 = vld [vmem:[%s4900_s0 + $0x650] sm:$0xff] }
  0xdd   :  { %979 = vmatprep.mubr.bf16.mxu0 %v357_v23  ;;  %v224_v23 = vld [vmem:[%s4900_s0 + $0x670] sm:$0xff]  ;;  %v374_v28 = vpack.c.bf16 %v222_v21, %v218_v20  ;;  %v393_v21 = vpack.c.bf16 %v257_v10, %v253_v9 }
  0xde   :  { %v376_v29 = vpack.c.bf16 %v224_v23, %v220_v22  ;;  %v272_v9 = vld [vmem:[%s4900_s0 + $0x7f0] sm:$0xff] }
  0xe3   :  { %691 = vmatmul.mubr.bf16.gmra.mrb[80].mxu1 %v354_v32  ;;  %v226_v32 = vld [vmem:[%s4900_s0 + $0x680] sm:$0xff] }
  0xe4   :  { %980 = vmatmul.mubr.bf16.gmra.mrb[80].mxu0 %v356_v33  ;;  %698 = vmatprep.mubr.bf16.mxu1 %v359_v34  ;;  %v230_v33 = vld [vmem:[%s4900_s0 + $0x6a0] sm:$0xff]  ;;  %v228_v34 = vld [vmem:[%s4900_s0 + $0x690] sm:$0xff] }
  0xe5   :  { %987 = vmatprep.mubr.bf16.mxu0 %v361_v35  ;;  %v232_v35 = vld [vmem:[%s4900_s0 + $0x6b0] sm:$0xff]  ;;  %v378_v40 = vpack.c.bf16 %v230_v33, %v226_v32  ;;  %v265_v32 = vld [vmem:[%s4900_s0 + $0x7b8] sm:$0xff] }
  0xe6   :  { %v380_v41 = vpack.c.bf16 %v232_v35, %v228_v34  ;;  %v390_v35 = vpack.c.bf16 %v254_v25, %v250_v24 }
  0xeb   :  { %699 = vmatmul.mubr.bf16.gmra.mrb[84].mxu1 %v358_v44  ;;  %v234_v44 = vld [vmem:[%s4900_s0 + $0x6c0] sm:$0xff] }
  0xec   :  { %988 = vmatmul.mubr.bf16.gmra.mrb[84].mxu0 %v360_v45  ;;  %706 = vmatprep.mubr.bf16.mxu1 %v363_v46  ;;  %v238_v45 = vld [vmem:[%s4900_s0 + $0x6e0] sm:$0xff]  ;;  %v236_v46 = vld [vmem:[%s4900_s0 + $0x6d0] sm:$0xff] }
  0xed   :  { %995 = vmatprep.mubr.bf16.mxu0 %v365_v47  ;;  %v240_v47 = vld [vmem:[%s4900_s0 + $0x6f0] sm:$0xff]  ;;  %v382_v54 = vpack.c.bf16 %v238_v45, %v234_v44 }
  0xf3   :  { %707 = vmatmul.mubr.bf16.gmra.mrb[88].mxu1 %v362_v55 }
  0xf4   :  { %996 = vmatmul.mubr.bf16.gmra.mrb[88].mxu0 %v364_v56  ;;  %714 = vmatprep.mubr.bf16.mxu1 %v367_v57 }
  0xf5   :  { %1003 = vmatprep.mubr.bf16.mxu0 %v369_v58  ;;  %v384_v58 = vpack.c.bf16 %v240_v47, %v236_v46  ;;  %v258_v46 = vld [vmem:[%s4900_s0 + $0x780] sm:$0xff] }
  0xf6   :  { %v262_v47 = vld [vmem:[%s4900_s0 + $0x7a0] sm:$0xff] }
  0xfb   :  { %715 = vmatmul.mubr.bf16.gmra.mrb[92].mxu1 %v366_v4  ;;  %v244_v4 = vld [vmem:[%s4900_s0 + $0x710] sm:$0xff] }
  0xfc   :  { %1004 = vmatmul.mubr.bf16.gmra.mrb[92].mxu0 %v368_v5  ;;  %722 = vmatprep.mubr.bf16.mxu1 %v371_v6  ;;  %v248_v5 = vld [vmem:[%s4900_s0 + $0x730] sm:$0xff]  ;;  %v251_v6 = vld [vmem:[%s4900_s0 + $0x748] sm:$0xff] }
  0xfd   :  { %1011 = vmatprep.mubr.bf16.mxu0 %v373_v7  ;;  %v255_v7 = vld [vmem:[%s4900_s0 + $0x768] sm:$0xff] }
 0x103   :  { %723 = vmatmul.mubr.bf16.gmra.mrb[96].mxu1 %v370_v16 }
 0x104   :  { %1012 = vmatmul.mubr.bf16.gmra.mrb[96].mxu0 %v372_v17  ;;  %730 = vmatprep.mubr.bf16.mxu1 %v375_v18  ;;  %v388_v17 = vpack.c.bf16 %v248_v5, %v244_v4  ;;  %v391_v18 = vpack.c.bf16 %v255_v7, %v251_v6  ;;  %v266_v6 = vld [vmem:[%s4900_s0 + $0x7c0] sm:$0xff] }
 0x105   :  { %1019 = vmatprep.mubr.bf16.mxu0 %v377_v19  ;;  %v270_v7 = vld [vmem:[%s4900_s0 + $0x7e0] sm:$0xff] }
 0x10b   :  { %731 = vmatmul.mubr.bf16.gmra.mrb[100].mxu1 %v374_v28  ;;  %v259_v28 = vld [vmem:[%s4900_s0 + $0x788] sm:$0xff] }
 0x10c   :  { %1020 = vmatmul.mubr.bf16.gmra.mrb[100].mxu0 %v376_v29  ;;  %738 = vmatprep.mubr.bf16.mxu1 %v379_v30  ;;  %v263_v29 = vld [vmem:[%s4900_s0 + $0x7a8] sm:$0xff] }
 0x10d   :  { %1027 = vmatprep.mubr.bf16.mxu0 %v381_v31  ;;  %v261_v31 = vld [vmem:[%s4900_s0 + $0x798] sm:$0xff] }
 0x113   :  { %739 = vmatmul.mubr.bf16.gmra.mrb[104].mxu1 %v378_v40  ;;  %v395_v40 = vpack.c.bf16 %v263_v29, %v259_v28 }
 0x114   :  { %1028 = vmatmul.mubr.bf16.gmra.mrb[104].mxu0 %v380_v41  ;;  %746 = vmatprep.mubr.bf16.mxu1 %v383_v42 }
 0x115   :  { %1035 = vmatprep.mubr.bf16.mxu0 %v385_v43  ;;  %v397_v43 = vpack.c.bf16 %v265_v32, %v261_v31 }
 0x116   :  { %v532_v50 = vpop.f32.mrb[0].mxu1 }
 0x117   :  { %v821_v52 = vpop.f32.mrb[0].mxu0  ;;  %v534_v53 = vpop.f32.mrb[1].mxu1 }
 0x118   :  { %v2881_v55 = vadd.f32 %v821_v52, %v532_v50  ;;  %v823_v56 = vpop.f32.mrb[1].mxu0  ;;  %v535_v57 = vpop.f32.mrb[2].mxu1  ;;  %v267_v50 = vld [vmem:[%s4900_s0 + $0x7c8] sm:$0xff]  ;;  %v269_v52 = vld [vmem:[%s4900_s0 + $0x7d8] sm:$0xff] }
 0x119   :  { %v824_v60 = vpop.f32.mrb[2].mxu0  ;;  %v537_v61 = vpop.f32.mrb[3].mxu1  ;;  %v273_v53 = vld [vmem:[%s4900_s0 + $0x7f8] sm:$0xff] }
 0x11a   :  { %v2883_v63 = vadd.f32 %v824_v60, %v535_v57  ;;  %v826_v1 = vpop.f32.mrb[3].mxu0  ;;  %v394_v57 = vpack.c.bf16 %v262_v47, %v258_v46  ;;  %v396_v61 = vpack.c.bf16 %v264_v49, %v260_v48  ;;  %v401_v3 = vpack.c.bf16 %v273_v53, %v269_v52 }
 0x11b   :  { %747 = vmatmul.mubr.bf16.gmra.mrb[108].mxu1 %v382_v54 }
 0x11c   :  { %1036 = vmatmul.mubr.bf16.gmra.mrb[108].mxu0 %v384_v58  ;;  %754 = vmatprep.mubr.bf16.mxu1 %v387_v59  ;;  %v1078_v53 = vsel %vm1076_vm0, %v2883_v63, 0.0 }
 0x11d   :  { %1043 = vmatprep.mubr.bf16.mxu0 %v389_v62  ;;  %v399_v62 = vpack.c.bf16 %v271_v51, %v267_v50 }
 0x11e   :  { %v540_v8 = vpop.f32.mrb[4].mxu1 }
 0x11f   :  { %v829_v11 = vpop.f32.mrb[4].mxu0  ;;  %v542_v12 = vpop.f32.mrb[5].mxu1 }
 0x120   :  { %v2909_v14 = vadd.f32 %v829_v11, %v540_v8  ;;  %v831_v15 = vpop.f32.mrb[5].mxu0  ;;  %v543_v16 = vpop.f32.mrb[6].mxu1  ;;  %v268_v8 = vld [vmem:[%s4900_s0 + $0x7d0] sm:$0xff] }
 0x121   :  { %v832_v19 = vpop.f32.mrb[6].mxu0  ;;  %v545_v20 = vpop.f32.mrb[7].mxu1 }
 0x122   :  { %v2911_v22 = vadd.f32 %v832_v19, %v543_v16  ;;  %v834_v23 = vpop.f32.mrb[7].mxu0 }
 0x123   :  { %755 = vmatmul.mubr.bf16.gmra.mrb[112].mxu1 %v386_v13  ;;  %v398_v13 = vpack.c.bf16 %v270_v7, %v266_v6 }
 0x124   :  { %1044 = vmatmul.mubr.bf16.gmra.mrb[112].mxu0 %v388_v17  ;;  %762 = vmatprep.mubr.bf16.mxu1 %v391_v18  ;;  %v400_v18 = vpack.c.bf16 %v272_v9, %v268_v8 }
 0x125   :  { %1051 = vmatprep.mubr.bf16.mxu0 %v393_v21 }
 0x126   :  { %v548_v30 = vpop.f32.mrb[8].mxu1 }
 0x127   :  { %v837_v33 = vpop.f32.mrb[8].mxu0  ;;  %v550_v34 = vpop.f32.mrb[9].mxu1 }
 0x128   :  { %v2937_v36 = vadd.f32 %v837_v33, %v548_v30  ;;  %v839_v37 = vpop.f32.mrb[9].mxu0  ;;  %v551_v38 = vpop.f32.mrb[10].mxu1 }
 0x129   :  { %v840_v41 = vpop.f32.mrb[10].mxu0  ;;  %v553_v42 = vpop.f32.mrb[11].mxu1 }
 0x12a   :  { %v2939_v44 = vadd.f32 %v840_v41, %v551_v38  ;;  %v842_v45 = vpop.f32.mrb[11].mxu0 }
 0x12b   :  { %763 = vmatmul.mubr.bf16.gmra.mrb[116].mxu1 %v390_v35 }
 0x12c   :  { %1052 = vmatmul.mubr.bf16.gmra.mrb[116].mxu0 %v392_v39  ;;  %770 = vmatprep.mubr.bf16.mxu1 %v395_v40 }
 0x12d   :  { %1059 = vmatprep.mubr.bf16.mxu0 %v397_v43 }
 0x12e   :  { %v556_v0 = vpop.f32.mrb[12].mxu1 }
 0x12f   :  { %v845_v54 = vpop.f32.mrb[12].mxu0  ;;  %v558_v56 = vpop.f32.mrb[13].mxu1 }
 0x130   :  { %v2965_v58 = vadd.f32 %v845_v54, %v556_v0  ;;  %v847_v59 = vpop.f32.mrb[13].mxu0  ;;  %v559_v60 = vpop.f32.mrb[14].mxu1 }
 0x131   :  { %v848_v1 = vpop.f32.mrb[14].mxu0  ;;  %v561_v2 = vpop.f32.mrb[15].mxu1  ;;  %v1080_v59 = vsel %vm1076_vm0, %v2909_v14, 0.0 }
 0x132   :  { %v2967_v4 = vadd.f32 %v848_v1, %v559_v60  ;;  %v850_v5 = vpop.f32.mrb[15].mxu0 }
 0x133   :  { %771 = vmatmul.mubr.bf16.gmra.mrb[120].mxu1 %v394_v57  ;;  %v1077_v57 = vsel %vm1076_vm0, %v2881_v55, 0.0 }
 0x134   :  { %1060 = vmatmul.mubr.bf16.gmra.mrb[120].mxu0 %v396_v61  ;;  %778 = vmatprep.mubr.bf16.mxu1 %v399_v62  ;;  %v1079_v60 = vadd.f32 %v1078_v53, %v1077_v57 }
 0x135   :  { %1067 = vmatprep.mubr.bf16.mxu0 %v401_v3  ;;  %v1082_v3 = vsel %vm1076_vm0, %v2911_v22, 0.0 }
 0x136   :  { %v564_v10 = vpop.f32.mrb[16].mxu1  ;;  %v1081_v62 = vadd.f32 %v1080_v59, %v1079_v60 }
 0x137   :  { %v853_v11 = vpop.f32.mrb[16].mxu0  ;;  %v566_v12 = vpop.f32.mrb[17].mxu1 }
 0x138   :  { %v2981_v15 = vadd.f32 %v853_v11, %v564_v10  ;;  %v855_v16 = vpop.f32.mrb[17].mxu0  ;;  %v567_v17 = vpop.f32.mrb[18].mxu1  ;;  %v1084_v10 = vsel %vm1076_vm0, %v2937_v36, 0.0 }
 0x139   :  { %v856_v19 = vpop.f32.mrb[18].mxu0  ;;  %v569_v20 = vpop.f32.mrb[19].mxu1 }
 0x13a   :  { %v2983_v21 = vadd.f32 %v856_v19, %v567_v17  ;;  %v858_v23 = vpop.f32.mrb[19].mxu0  ;;  %v1086_v17 = vsel %vm1076_vm0, %v2939_v44, 0.0 }
 0x13b   :  { %779 = vmatmul.mubr.bf16.gmra.mrb[124].mxu1 %v398_v13  ;;  %v1083_v13 = vadd.f32 %v1082_v3, %v1081_v62  ;;  %v1088_v23 = vsel %vm1076_vm0, %v2965_v58, 0.0 }
 0x13c   :  { %1068 = vmatmul.mubr.bf16.gmra.mrb[124].mxu0 %v400_v18 }
 0x13d   :  { %v1085_v16 = vadd.f32 %v1084_v10, %v1083_v13 }
 0x13e   :  { %v572_v24 = vpop.f32.mrb[20].mxu1 }
 0x13f   :  { %v861_v25 = vpop.f32.mrb[20].mxu0  ;;  %v574_v26 = vpop.f32.mrb[21].mxu1 }
 0x140   :  { %v2985_v27 = vadd.f32 %v861_v25, %v572_v24  ;;  %v863_v28 = vpop.f32.mrb[21].mxu0  ;;  %v575_v29 = vpop.f32.mrb[22].mxu1 }
 0x141   :  { %v864_v30 = vpop.f32.mrb[22].mxu0  ;;  %v577_v31 = vpop.f32.mrb[23].mxu1  ;;  %v1087_v28 = vadd.f32 %v1086_v17, %v1085_v16 }
 0x142   :  { %v2987_v32 = vadd.f32 %v864_v30, %v575_v29  ;;  %v866_v33 = vpop.f32.mrb[23].mxu0 }
 0x146   :  { %v580_v34 = vpop.f32.mrb[24].mxu1 }
 0x147   :  { %v869_v35 = vpop.f32.mrb[24].mxu0  ;;  %v582_v37 = vpop.f32.mrb[25].mxu1 }
 0x148   :  { %v2989_v38 = vadd.f32 %v869_v35, %v580_v34  ;;  %v871_v39 = vpop.f32.mrb[25].mxu0  ;;  %v583_v40 = vpop.f32.mrb[26].mxu1  ;;  %v1089_v34 = vadd.f32 %v1088_v23, %v1087_v28  ;;  %v1090_v35 = vsel %vm1076_vm0, %v2967_v4, 0.0  ;;  %v1092_v37 = vsel %vm1076_vm0, %v2981_v15, 0.0 }
 0x149   :  { %v872_v41 = vpop.f32.mrb[26].mxu0  ;;  %v585_v42 = vpop.f32.mrb[27].mxu1 }
 0x14a   :  { %v2991_v43 = vadd.f32 %v872_v41, %v583_v40  ;;  %v874_v45 = vpop.f32.mrb[27].mxu0  ;;  %v1091_v40 = vadd.f32 %v1090_v35, %v1089_v34 }
 0x14c   :  { %v1102_v17 = vsel %vm1076_vm0, %v2991_v43, 0.0 }
 0x14e   :  { %v588_v46 = vpop.f32.mrb[28].mxu1 }
 0x14f   :  { %v877_v47 = vpop.f32.mrb[28].mxu0  ;;  %v590_v48 = vpop.f32.mrb[29].mxu1 }
 0x150   :  { %v2993_v49 = vadd.f32 %v877_v47, %v588_v46  ;;  %v879_v50 = vpop.f32.mrb[29].mxu0  ;;  %v591_v51 = vpop.f32.mrb[30].mxu1  ;;  %v1093_v48 = vadd.f32 %v1092_v37, %v1091_v40 }
 0x151   :  { %v880_v0 = vpop.f32.mrb[30].mxu0  ;;  %v593_v52 = vpop.f32.mrb[31].mxu1 }
 0x152   :  { %v2997_v54 = vadd.f32 %v880_v0, %v591_v51  ;;  %v882_v56 = vpop.f32.mrb[31].mxu0  ;;  %v1094_v0 = vsel %vm1076_vm0, %v2983_v21, 0.0  ;;  %v1104_v23 = vsel %vm1076_vm0, %v2993_v49, 0.0 }
 0x153   :  { %v1096_v56 = vsel %vm1076_vm0, %v2985_v27, 0.0  ;;  %v1095_v57 = vadd.f32 %v1094_v0, %v1093_v48 }
 0x155   :  { %v1097_v60 = vadd.f32 %v1096_v56, %v1095_v57 }
 0x156   :  { %v596_v61 = vpop.f32.mrb[32].mxu1 }
 0x157   :  { %v885_v1 = vpop.f32.mrb[32].mxu0  ;;  %v598_v2 = vpop.f32.mrb[33].mxu1 }
 0x158   :  { %v3005_v5 = vadd.f32 %v885_v1, %v596_v61  ;;  %v887_v6 = vpop.f32.mrb[33].mxu0  ;;  %v599_v7 = vpop.f32.mrb[34].mxu1  ;;  %v1098_v1 = vsel %vm1076_vm0, %v2987_v32, 0.0 }
 0x159   :  { %v888_v8 = vpop.f32.mrb[34].mxu0  ;;  %v601_v9 = vpop.f32.mrb[35].mxu1  ;;  %v1099_v13 = vadd.f32 %v1098_v1, %v1097_v60 }
 0x15a   :  { %v3009_v11 = vadd.f32 %v888_v8, %v599_v7  ;;  %v890_v12 = vpop.f32.mrb[35].mxu0  ;;  %v1100_v9 = vsel %vm1076_vm0, %v2989_v38, 0.0  ;;  %v1108_v40 = vsel %vm1076_vm0, %v3005_v5, 0.0 }
 0x15b   :  { %v1101_v16 = vadd.f32 %v1100_v9, %v1099_v13 }
 0x15c   :  { %v1110_v57 = vsel %vm1076_vm0, %v3009_v11, 0.0 }
 0x15e   :  { %v604_v18 = vpop.f32.mrb[36].mxu1 }
 0x15f   :  { %v893_v19 = vpop.f32.mrb[36].mxu0  ;;  %v606_v20 = vpop.f32.mrb[37].mxu1 }
 0x160   :  { %v3015_v24 = vadd.f32 %v893_v19, %v604_v18  ;;  %v895_v25 = vpop.f32.mrb[37].mxu0  ;;  %v607_v26 = vpop.f32.mrb[38].mxu1 }
 0x161   :  { %v896_v29 = vpop.f32.mrb[38].mxu0  ;;  %v609_v30 = vpop.f32.mrb[39].mxu1 }
 0x162   :  { %v3017_v31 = vadd.f32 %v896_v29, %v607_v26  ;;  %v898_v33 = vpop.f32.mrb[39].mxu0  ;;  %v1103_v29 = vadd.f32 %v1102_v17, %v1101_v16 }
 0x164   :  { %v1105_v37 = vadd.f32 %v1104_v23, %v1103_v29 }
 0x166   :  { %v612_v39 = vpop.f32.mrb[40].mxu1 }
 0x167   :  { %v901_v41 = vpop.f32.mrb[40].mxu0  ;;  %v614_v42 = vpop.f32.mrb[41].mxu1 }
 0x168   :  { %v3023_v45 = vadd.f32 %v901_v41, %v612_v39  ;;  %v903_v46 = vpop.f32.mrb[41].mxu0  ;;  %v615_v47 = vpop.f32.mrb[42].mxu1  ;;  %v1106_v39 = vsel %vm1076_vm0, %v2997_v54, 0.0 }
 0x169   :  { %v904_v50 = vpop.f32.mrb[42].mxu0  ;;  %v617_v51 = vpop.f32.mrb[43].mxu1  ;;  %v1107_v42 = vadd.f32 %v1106_v39, %v1105_v37 }
 0x16a   :  { %v3027_v52 = vadd.f32 %v904_v50, %v615_v47  ;;  %v906_v53 = vpop.f32.mrb[43].mxu0 }
 0x16b   :  { %v1109_v0 = vadd.f32 %v1108_v40, %v1107_v42 }
 0x16e   :  { %v620_v59 = vpop.f32.mrb[44].mxu1 }
 0x16f   :  { %v909_v61 = vpop.f32.mrb[44].mxu0  ;;  %v622_v62 = vpop.f32.mrb[45].mxu1 }
 0x170   :  { %v3033_v2 = vadd.f32 %v909_v61, %v620_v59  ;;  %v911_v3 = vpop.f32.mrb[45].mxu0  ;;  %v623_v6 = vpop.f32.mrb[46].mxu1  ;;  %v1112_v61 = vsel %vm1076_vm0, %v3015_v24, 0.0  ;;  %v1111_v62 = vadd.f32 %v1110_v57, %v1109_v0 }
 0x171   :  { %v912_v7 = vpop.f32.mrb[46].mxu0  ;;  %v625_v8 = vpop.f32.mrb[47].mxu1 }
 0x172   :  { %v3037_v10 = vadd.f32 %v912_v7, %v623_v6  ;;  %v914_v12 = vpop.f32.mrb[47].mxu0  ;;  %v1113_v3 = vadd.f32 %v1112_v61, %v1111_v62  ;;  %v1114_v8 = vsel %vm1076_vm0, %v3017_v31, 0.0 }
 0x174   :  { %v1115_v23 = vadd.f32 %v1114_v8, %v1113_v3  ;;  %v1122_v0 = vsel %vm1076_vm0, %v3037_v10, 0.0 }
 0x176   :  { %v628_v18 = vpop.f32.mrb[48].mxu1 }
 0x177   :  { %v917_v19 = vpop.f32.mrb[48].mxu0  ;;  %v630_v20 = vpop.f32.mrb[49].mxu1 }
 0x178   :  { %v3043_v25 = vadd.f32 %v917_v19, %v628_v18  ;;  %v919_v26 = vpop.f32.mrb[49].mxu0  ;;  %v631_v28 = vpop.f32.mrb[50].mxu1  ;;  %v1116_v18 = vsel %vm1076_vm0, %v3023_v45, 0.0 }
 0x179   :  { %v920_v30 = vpop.f32.mrb[50].mxu0  ;;  %v633_v33 = vpop.f32.mrb[51].mxu1  ;;  %v1117_v26 = vadd.f32 %v1116_v18, %v1115_v23 }
 0x17a   :  { %v3045_v34 = vadd.f32 %v920_v30, %v631_v28  ;;  %v922_v35 = vpop.f32.mrb[51].mxu0  ;;  %v1118_v28 = vsel %vm1076_vm0, %v3027_v52, 0.0 }
 0x17b   :  { %v1120_v35 = vsel %vm1076_vm0, %v3033_v2, 0.0 }
 0x17e   :  { %v636_v41 = vpop.f32.mrb[52].mxu1 }
 0x17f   :  { %v925_v46 = vpop.f32.mrb[52].mxu0  ;;  %v638_v47 = vpop.f32.mrb[53].mxu1 }
 0x180   :  { %v3051_v48 = vadd.f32 %v925_v46, %v636_v41  ;;  %v927_v50 = vpop.f32.mrb[53].mxu0  ;;  %v639_v51 = vpop.f32.mrb[54].mxu1  ;;  %v1119_v41 = vadd.f32 %v1118_v28, %v1117_v26 }
 0x181   :  { %v928_v53 = vpop.f32.mrb[54].mxu0  ;;  %v641_v56 = vpop.f32.mrb[55].mxu1 }
 0x182   :  { %v3055_v59 = vadd.f32 %v928_v53, %v639_v51  ;;  %v930_v60 = vpop.f32.mrb[55].mxu0  ;;  %v1121_v51 = vadd.f32 %v1120_v35, %v1119_v41  ;;  %v1124_v53 = vsel %vm1076_vm0, %v3043_v25, 0.0 }
 0x184   :  { %v1123_v57 = vadd.f32 %v1122_v0, %v1121_v51 }
 0x186   :  { %v644_v1 = vpop.f32.mrb[56].mxu1 }
 0x187   :  { %v933_v6 = vpop.f32.mrb[56].mxu0  ;;  %v646_v7 = vpop.f32.mrb[57].mxu1 }
 0x188   :  { %v3061_v9 = vadd.f32 %v933_v6, %v644_v1  ;;  %v935_v12 = vpop.f32.mrb[57].mxu0  ;;  %v647_v13 = vpop.f32.mrb[58].mxu1  ;;  %v1125_v6 = vadd.f32 %v1124_v53, %v1123_v57 }
 0x189   :  { %v936_v16 = vpop.f32.mrb[58].mxu0  ;;  %v649_v17 = vpop.f32.mrb[59].mxu1  ;;  %v1126_v12 = vsel %vm1076_vm0, %v3045_v34, 0.0 }
 0x18a   :  { %v3065_v19 = vadd.f32 %v936_v16, %v647_v13  ;;  %v938_v20 = vpop.f32.mrb[59].mxu0  ;;  %v1128_v17 = vsel %vm1076_vm0, %v3051_v48, 0.0  ;;  %v1127_v18 = vadd.f32 %v1126_v12, %v1125_v6  ;;  %v1132_v41 = vsel %vm1076_vm0, %v3061_v9, 0.0 }
 0x18c   :  { %v1129_v23 = vadd.f32 %v1128_v17, %v1127_v18  ;;  %v1134_v0 = vsel %vm1076_vm0, %v3065_v19, 0.0 }
 0x18e   :  { %v652_v29 = vpop.f32.mrb[60].mxu1 }
 0x18f   :  { %v941_v30 = vpop.f32.mrb[60].mxu0  ;;  %v654_v33 = vpop.f32.mrb[61].mxu1 }
 0x190   :  { %v3071_v37 = vadd.f32 %v941_v30, %v652_v29  ;;  %v943_v39 = vpop.f32.mrb[61].mxu0  ;;  %v655_v40 = vpop.f32.mrb[62].mxu1  ;;  %v1130_v29 = vsel %vm1076_vm0, %v3055_v59, 0.0 }
 0x191   :  { %v944_v42 = vpop.f32.mrb[62].mxu0  ;;  %v657_v46 = vpop.f32.mrb[63].mxu1 }
 0x192   :  { %v3073_v47 = vadd.f32 %v944_v42, %v655_v40  ;;  %v946_v50 = vpop.f32.mrb[63].mxu0 }
 0x193   :  { %v1131_v50 = vadd.f32 %v1130_v29, %v1129_v23 }
 0x194   :  { %v1138_v18 = vsel %vm1076_vm0, %v3073_v47, 0.0 }
 0x195   :  { %v1133_v51 = vadd.f32 %v1132_v41, %v1131_v50 }
 0x196   :  { %v660_v56 = vpop.f32.mrb[64].mxu1 }
 0x197   :  { %v949_v60 = vpop.f32.mrb[64].mxu0  ;;  %v662_v61 = vpop.f32.mrb[65].mxu1  ;;  %v1135_v6 = vadd.f32 %v1134_v0, %v1133_v51 }
 0x198   :  { %v3079_v62 = vadd.f32 %v949_v60, %v660_v56  ;;  %v951_v1 = vpop.f32.mrb[65].mxu0  ;;  %v663_v3 = vpop.f32.mrb[66].mxu1  ;;  %v1136_v60 = vsel %vm1076_vm0, %v3071_v37, 0.0 }
 0x199   :  { %v952_v7 = vpop.f32.mrb[66].mxu0  ;;  %v665_v8 = vpop.f32.mrb[67].mxu1  ;;  %v1137_v17 = vadd.f32 %v1136_v60, %v1135_v6 }
 0x19a   :  { %v3083_v13 = vadd.f32 %v952_v7, %v663_v3  ;;  %v954_v16 = vpop.f32.mrb[67].mxu0 }
 0x19c   :  { %v1142_v50 = vsel %vm1076_vm0, %v3083_v13, 0.0 }
 0x19e   :  { %v668_v20 = vpop.f32.mrb[68].mxu1 }
 0x19f   :  { %v957_v26 = vpop.f32.mrb[68].mxu0  ;;  %v670_v28 = vpop.f32.mrb[69].mxu1 }
 0x1a0   :  { %v3089_v30 = vadd.f32 %v957_v26, %v668_v20  ;;  %v959_v33 = vpop.f32.mrb[69].mxu0  ;;  %v671_v35 = vpop.f32.mrb[70].mxu1  ;;  %v1140_v20 = vsel %vm1076_vm0, %v3079_v62, 0.0  ;;  %v1139_v26 = vadd.f32 %v1138_v18, %v1137_v17 }
 0x1a1   :  { %v960_v39 = vpop.f32.mrb[70].mxu0  ;;  %v673_v40 = vpop.f32.mrb[71].mxu1 }
 0x1a2   :  { %v3093_v42 = vadd.f32 %v960_v39, %v671_v35  ;;  %v962_v46 = vpop.f32.mrb[71].mxu0  ;;  %v1141_v40 = vadd.f32 %v1140_v20, %v1139_v26 }
 0x1a4   :  { %4966 = vst [vmem:[#allocation2_spill] sm:$0xff] %v3093_v42  ;;  %v1146_v6 = vsel %vm1076_vm0, %v3093_v42, 0.0 }
 0x1a6   :  { %v676_v53 = vpop.f32.mrb[72].mxu1 }
 0x1a7   :  { %v965_v56 = vpop.f32.mrb[72].mxu0  ;;  %v678_v57 = vpop.f32.mrb[73].mxu1 }
 0x1a8   :  { %v3099_v61 = vadd.f32 %v965_v56, %v676_v53  ;;  %v967_v1 = vpop.f32.mrb[73].mxu0  ;;  %v679_v3 = vpop.f32.mrb[74].mxu1  ;;  %v1144_v53 = vsel %vm1076_vm0, %v3089_v30, 0.0  ;;  %v1143_v56 = vadd.f32 %v1142_v50, %v1141_v40 }
 0x1a9   :  { %v968_v7 = vpop.f32.mrb[74].mxu0  ;;  %v681_v8 = vpop.f32.mrb[75].mxu1 }
 0x1aa   :  { %4967 = vst [vmem:[#allocation3_spill] sm:$0xff] %v3099_v61  ;;  %v3101_v12 = vadd.f32 %v968_v7, %v679_v3  ;;  %v970_v16 = vpop.f32.mrb[75].mxu0  ;;  %v1145_v60 = vadd.f32 %v1144_v53, %v1143_v56  ;;  %v1148_v20 = vsel %vm1076_vm0, %v3099_v61, 0.0 }
 0x1ac   :  { %4968 = vst [vmem:[#allocation4_spill] sm:$0xff] %v3101_v12 }
 0x1ae   :  { %v684_v23 = vpop.f32.mrb[76].mxu1 }
 0x1af   :  { %v973_v28 = vpop.f32.mrb[76].mxu0  ;;  %v686_v29 = vpop.f32.mrb[77].mxu1 }
 0x1b0   :  { %v3107_v33 = vadd.f32 %v973_v28, %v684_v23  ;;  %v975_v35 = vpop.f32.mrb[77].mxu0  ;;  %v687_v39 = vpop.f32.mrb[78].mxu1  ;;  %v1147_v28 = vadd.f32 %v1146_v6, %v1145_v60 }
 0x1b1   :  { %v976_v41 = vpop.f32.mrb[78].mxu0  ;;  %v689_v46 = vpop.f32.mrb[79].mxu1  ;;  %v1150_v35 = vsel %vm1076_vm0, %v3101_v12, 0.0 }
 0x1b2   :  { %4969 = vst [vmem:[#allocation5_spill] sm:$0xff] %v3107_v33  ;;  %v3111_v51 = vadd.f32 %v976_v41, %v687_v39  ;;  %v978_v0 = vpop.f32.mrb[79].mxu0  ;;  %v1149_v29 = vadd.f32 %v1148_v20, %v1147_v28  ;;  %v1152_v46 = vsel %vm1076_vm0, %v3107_v33, 0.0 }
 0x1b4   :  { %4970 = vst [vmem:[#allocation6_spill] sm:$0xff] %v3111_v51  ;;  %v1151_v56 = vadd.f32 %v1150_v35, %v1149_v29 }
 0x1b6   :  { %v692_v57 = vpop.f32.mrb[80].mxu1  ;;  %v1153_v6 = vadd.f32 %v1152_v46, %v1151_v56 }
 0x1b7   :  { %v981_v1 = vpop.f32.mrb[80].mxu0  ;;  %v694_v3 = vpop.f32.mrb[81].mxu1 }
 0x1b8   :  { %v3117_v7 = vadd.f32 %v981_v1, %v692_v57  ;;  %v983_v8 = vpop.f32.mrb[81].mxu0  ;;  %v695_v16 = vpop.f32.mrb[82].mxu1 }
 0x1b9   :  { %v984_v17 = vpop.f32.mrb[82].mxu0  ;;  %v697_v18 = vpop.f32.mrb[83].mxu1  ;;  %v1154_v8 = vsel %vm1076_vm0, %v3111_v51, 0.0 }
 0x1ba   :  { %4971 = vst [vmem:[#allocation7_spill] sm:$0xff] %v3117_v7  ;;  %v3121_v23 = vadd.f32 %v984_v17, %v695_v16  ;;  %v986_v26 = vpop.f32.mrb[83].mxu0  ;;  %v1156_v16 = vsel %vm1076_vm0, %v3117_v7, 0.0  ;;  %v1155_v18 = vadd.f32 %v1154_v8, %v1153_v6 }
 0x1bc   :  { %4972 = vst [vmem:[#allocation8_spill] sm:$0xff] %v3121_v23  ;;  %v1157_v35 = vadd.f32 %v1156_v16, %v1155_v18  ;;  %v1158_v46 = vsel %vm1076_vm0, %v3121_v23, 0.0 }
 0x1be   :  { %v700_v39 = vpop.f32.mrb[84].mxu1 }
 0x1bf   :  { %v989_v40 = vpop.f32.mrb[84].mxu0  ;;  %v702_v41 = vpop.f32.mrb[85].mxu1 }
 0x1c0   :  { %v3127_v50 = vadd.f32 %v989_v40, %v700_v39  ;;  %v991_v0 = vpop.f32.mrb[85].mxu0  ;;  %v703_v53 = vpop.f32.mrb[86].mxu1 }
 0x1c1   :  { %v992_v57 = vpop.f32.mrb[86].mxu0  ;;  %v705_v1 = vpop.f32.mrb[87].mxu1 }
 0x1c2   :  { %4973 = vst [vmem:[#allocation9_spill] sm:$0xff] %v3127_v50  ;;  %v3129_v3 = vadd.f32 %v992_v57, %v703_v53  ;;  %v994_v60 = vpop.f32.mrb[87].mxu0  ;;  %v1160_v56 = vsel %vm1076_vm0, %v3127_v50, 0.0  ;;  %v1159_v57 = vadd.f32 %v1158_v46, %v1157_v35 }
 0x1c4   :  { %4974 = vst [vmem:[#allocation10_spill] sm:$0xff] %v3129_v3  ;;  %v1161_v60 = vadd.f32 %v1160_v56, %v1159_v57 }
 0x1c6   :  { %v708_v17 = vpop.f32.mrb[88].mxu1 }
 0x1c7   :  { %v997_v20 = vpop.f32.mrb[88].mxu0  ;;  %v710_v26 = vpop.f32.mrb[89].mxu1 }
 0x1c8   :  { %v3135_v28 = vadd.f32 %v997_v20, %v708_v17  ;;  %v999_v39 = vpop.f32.mrb[89].mxu0  ;;  %v711_v29 = vpop.f32.mrb[90].mxu1  ;;  %v1162_v17 = vsel %vm1076_vm0, %v3129_v3, 0.0 }
 0x1c9   :  { %v1000_v40 = vpop.f32.mrb[90].mxu0  ;;  %v713_v41 = vpop.f32.mrb[91].mxu1  ;;  %v1163_v35 = vadd.f32 %v1162_v17, %v1161_v60 }
 0x1ca   :  { %4975 = vst [vmem:[#allocation11_spill] sm:$0xff] %v3135_v28  ;;  %v3139_v0 = vadd.f32 %v1000_v40, %v711_v29  ;;  %v1002_v53 = vpop.f32.mrb[91].mxu0  ;;  %v1164_v29 = vsel %vm1076_vm0, %v3135_v28, 0.0 }
 0x1cb   :  { %v1165_v46 = vadd.f32 %v1164_v29, %v1163_v35 }
 0x1cc   :  { %4976 = vst [vmem:[#allocation12_spill] sm:$0xff] %v3139_v0  ;;  %v1166_v53 = vsel %vm1076_vm0, %v3139_v0, 0.0 }
 0x1cd   :  { %v1167_v3 = vadd.f32 %v1166_v53, %v1165_v46 }
 0x1ce   :  { %v716_v1 = vpop.f32.mrb[92].mxu1 }
 0x1cf   :  { %v1005_v6 = vpop.f32.mrb[92].mxu0  ;;  %v718_v8 = vpop.f32.mrb[93].mxu1 }
 0x1d0   :  { %v3145_v16 = vadd.f32 %v1005_v6, %v716_v1  ;;  %v1007_v18 = vpop.f32.mrb[93].mxu0  ;;  %v719_v20 = vpop.f32.mrb[94].mxu1 }
 0x1d1   :  { %v1008_v26 = vpop.f32.mrb[94].mxu0  ;;  %v721_v39 = vpop.f32.mrb[95].mxu1 }
 0x1d2   :  { %4977 = vst [vmem:[#allocation13_spill] sm:$0xff] %v3145_v16  ;;  %v3149_v40 = vadd.f32 %v1008_v26, %v719_v20  ;;  %v1010_v41 = vpop.f32.mrb[95].mxu0  ;;  %v1168_v1 = vsel %vm1076_vm0, %v3145_v16, 0.0 }
 0x1d3   :  { %v1169_v17 = vadd.f32 %v1168_v1, %v1167_v3 }
 0x1d4   :  { %4978 = vst [vmem:[#allocation14_spill] sm:$0xff] %v3149_v40  ;;  %v1170_v29 = vsel %vm1076_vm0, %v3149_v40, 0.0 }
 0x1d6   :  { %v724_v56 = vpop.f32.mrb[96].mxu1 }
 0x1d7   :  { %v1013_v57 = vpop.f32.mrb[96].mxu0  ;;  %v726_v8 = vpop.f32.mrb[97].mxu1 }
 0x1d8   :  { %v3155_v6 = vadd.f32 %v1013_v57, %v724_v56  ;;  %v1015_v18 = vpop.f32.mrb[97].mxu0  ;;  %v727_v39 = vpop.f32.mrb[98].mxu1  ;;  %v1171_v8 = vadd.f32 %v1170_v29, %v1169_v17 }
 0x1d9   :  { %v1016_v28 = vpop.f32.mrb[98].mxu0  ;;  %v729_v20 = vpop.f32.mrb[99].mxu1 }
 0x1da   :  { %4979 = vst [vmem:[#allocation15_spill] sm:$0xff] %v3155_v6  ;;  %v3157_v26 = vadd.f32 %v1016_v28, %v727_v39  ;;  %v1018_v60 = vpop.f32.mrb[99].mxu0  ;;  %v1172_v41 = vsel %vm1076_vm0, %v3155_v6, 0.0 }
 0x1db   :  { %v1173_v53 = vadd.f32 %v1172_v41, %v1171_v8 }
 0x1dc   :  { %4980 = vst [vmem:[#allocation16_spill] sm:$0xff] %v3157_v26  ;;  %v1174_v3 = vsel %vm1076_vm0, %v3157_v26, 0.0 }
 0x1dd   :  { %v1175_v6 = vadd.f32 %v1174_v3, %v1173_v53 }
 0x1de   :  { %v732_v35 = vpop.f32.mrb[100].mxu1 }
 0x1df   :  { %v1021_v16 = vpop.f32.mrb[100].mxu0  ;;  %v734_v56 = vpop.f32.mrb[101].mxu1 }
 0x1e0   :  { %v3163_v57 = vadd.f32 %v1021_v16, %v732_v35  ;;  %v1023_v18 = vpop.f32.mrb[101].mxu0  ;;  %v735_v46 = vpop.f32.mrb[102].mxu1 }
 0x1e1   :  { %v1024_v20 = vpop.f32.mrb[102].mxu0  ;;  %v737_v28 = vpop.f32.mrb[103].mxu1 }
 0x1e2   :  { %4981 = vst [vmem:[#allocation17_spill] sm:$0xff] %v3163_v57  ;;  %v3167_v1 = vadd.f32 %v1024_v20, %v735_v46  ;;  %v1026_v39 = vpop.f32.mrb[103].mxu0  ;;  %v1176_v60 = vsel %vm1076_vm0, %v3163_v57, 0.0 }
 0x1e3   :  { %v1177_v29 = vadd.f32 %v1176_v60, %v1175_v6 }
 0x1e4   :  { %4982 = vst [vmem:[#allocation18_spill] sm:$0xff] %v3167_v1  ;;  %v1178_v35 = vsel %vm1076_vm0, %v3167_v1, 0.0 }
 0x1e5   :  { %v1179_v53 = vadd.f32 %v1178_v35, %v1177_v29 }
 0x1e6   :  { %v740_v17 = vpop.f32.mrb[104].mxu1 }
 0x1e7   :  { %v1029_v56 = vpop.f32.mrb[104].mxu0  ;;  %v742_v16 = vpop.f32.mrb[105].mxu1 }
 0x1e8   :  { %v3173_v41 = vadd.f32 %v1029_v56, %v740_v17  ;;  %v1031_v8 = vpop.f32.mrb[105].mxu0  ;;  %v743_v18 = vpop.f32.mrb[106].mxu1 }
 0x1e9   :  { %v1032_v28 = vpop.f32.mrb[106].mxu0  ;;  %v745_v26 = vpop.f32.mrb[107].mxu1 }
 0x1ea   :  { %4983 = vst [vmem:[#allocation19_spill] sm:$0xff] %v3173_v41  ;;  %v1180_v46 = vsel %vm1076_vm0, %v3173_v41, 0.0  ;;  %v3177_v20 = vadd.f32 %v1032_v28, %v743_v18  ;;  %v1034_v39 = vpop.f32.mrb[107].mxu0 }
 0x1eb   :  { %v1181_v3 = vadd.f32 %v1180_v46, %v1179_v53 }
 0x1ec   :  { %4984 = vst [vmem:[#allocation20_spill] sm:$0xff] %v3177_v20  ;;  %v1182_v6 = vsel %vm1076_vm0, %v3177_v20, 0.0 }
 0x1ed   :  { %v1183_v57 = vadd.f32 %v1182_v6, %v1181_v3 }
 0x1ee   :  { %v748_v60 = vpop.f32.mrb[108].mxu1 }
 0x1ef   :  { %v1037_v16 = vpop.f32.mrb[108].mxu0  ;;  %v750_v1 = vpop.f32.mrb[109].mxu1 }
 0x1f0   :  { %v3181_v17 = vadd.f32 %v1037_v16, %v748_v60  ;;  %v1039_v56 = vpop.f32.mrb[109].mxu0  ;;  %v751_v8 = vpop.f32.mrb[110].mxu1 }
 0x1f1   :  { %v1040_v26 = vpop.f32.mrb[110].mxu0  ;;  %v753_v40 = vpop.f32.mrb[111].mxu1 }
 0x1f2   :  { %v1184_v18 = vsel %vm1076_vm0, %v3181_v17, 0.0  ;;  %v3185_v28 = vadd.f32 %v1040_v26, %v751_v8  ;;  %v1042_v29 = vpop.f32.mrb[111].mxu0 }
 0x1f3   :  { %v1185_v35 = vadd.f32 %v1184_v18, %v1183_v57 }
 0x1f4   :  { %v1186_v46 = vsel %vm1076_vm0, %v3185_v28, 0.0 }
 0x1f5   :  { %v1187_v39 = vadd.f32 %v1186_v46, %v1185_v35 }
 0x1f6   :  { %v756_v53 = vpop.f32.mrb[112].mxu1 }
 0x1f7   :  { %v1045_v1 = vpop.f32.mrb[112].mxu0  ;;  %v758_v60 = vpop.f32.mrb[113].mxu1 }
 0x1f8   :  { %v1046_v16 = vadd.f32 %v1045_v1, %v756_v53  ;;  %v1047_v56 = vpop.f32.mrb[113].mxu0  ;;  %v759_v20 = vpop.f32.mrb[114].mxu1 }
 0x1f9   :  { %v1048_v3 = vpop.f32.mrb[114].mxu0  ;;  %v761_v6 = vpop.f32.mrb[115].mxu1 }
 0x1fa   :  { %v1188_v40 = vsel %vm1076_vm0, %v1046_v16, 0.0  ;;  %v1049_v41 = vadd.f32 %v1048_v3, %v759_v20  ;;  %v1050_v0 = vpop.f32.mrb[115].mxu0 }
 0x1fb   :  { %v1189_v8 = vadd.f32 %v1188_v40, %v1187_v39 }
 0x1fc   :  { %v1190_v26 = vsel %vm1076_vm0, %v1049_v41, 0.0 }
 0x1fd   :  { %v1191_v57 = vadd.f32 %v1190_v26, %v1189_v8 }
 0x1fe   :  { %v764_v18 = vpop.f32.mrb[116].mxu1 }
 0x1ff   :  { %v1053_v29 = vpop.f32.mrb[116].mxu0  ;;  %v766_v50 = vpop.f32.mrb[117].mxu1 }
 0x200   :  { %v1054_v35 = vadd.f32 %v1053_v29, %v764_v18  ;;  %v1055_v46 = vpop.f32.mrb[117].mxu0  ;;  %v767_v23 = vpop.f32.mrb[118].mxu1 }
 0x201   :  { %v1056_v60 = vpop.f32.mrb[118].mxu0  ;;  %v769_v53 = vpop.f32.mrb[119].mxu1 }
 0x202   :  { %v1192_v1 = vsel %vm1076_vm0, %v1054_v35, 0.0  ;;  %v1057_v56 = vadd.f32 %v1056_v60, %v767_v23  ;;  %v1058_v6 = vpop.f32.mrb[119].mxu0 }
 0x203   :  { %v1193_v7 = vadd.f32 %v1192_v1, %v1191_v57 }
 0x204   :  { %v1194_v20 = vsel %vm1076_vm0, %v1057_v56, 0.0 }
 0x205   :  { %v1195_v0 = vadd.f32 %v1194_v20, %v1193_v7 }
 0x206   :  { %v772_v39 = vpop.f32.mrb[120].mxu1 }
 0x207   :  { %v1061_v3 = vpop.f32.mrb[120].mxu0  ;;  %v774_v40 = vpop.f32.mrb[121].mxu1 }
 0x208   :  { %v1062_v8 = vadd.f32 %v1061_v3, %v772_v39  ;;  %v1063_v26 = vpop.f32.mrb[121].mxu0  ;;  %v775_v51 = vpop.f32.mrb[122].mxu1 }
 0x209   :  { %v1064_v50 = vpop.f32.mrb[122].mxu0  ;;  %v777_v18 = vpop.f32.mrb[123].mxu1 }
 0x20a   :  { %v1196_v29 = vsel %vm1076_vm0, %v1062_v8, 0.0  ;;  %v1065_v46 = vadd.f32 %v1064_v50, %v775_v51  ;;  %v1066_v53 = vpop.f32.mrb[123].mxu0 }
 0x20b   :  { %v1197_v33 = vadd.f32 %v1196_v29, %v1195_v0 }
 0x20c   :  { %v1198_v23 = vsel %vm1076_vm0, %v1065_v46, 0.0 }
 0x20d   :  { %v1199_v60 = vadd.f32 %v1198_v23, %v1197_v33 }
 0x20e   :  { %v780_v57 = vpop.f32.mrb[124].mxu1 }
 0x20f   :  { %v1069_v1 = vpop.f32.mrb[124].mxu0  ;;  %v782_v6 = vpop.f32.mrb[125].mxu1 }
 0x210   :  { %v1070_v7 = vadd.f32 %v1069_v1, %v780_v57  ;;  %v1071_v20 = vpop.f32.mrb[125].mxu0  ;;  %v783_v12 = vpop.f32.mrb[126].mxu1 }
 0x211   :  { %v1072_v40 = vpop.f32.mrb[126].mxu0  ;;  %v785_v39 = vpop.f32.mrb[127].mxu1 }
 0x212   :  { %v1200_v3 = vsel %vm1076_vm0, %v1070_v7, 0.0  ;;  %v1073_v26 = vadd.f32 %v1072_v40, %v783_v12  ;;  %v1074_v18 = vpop.f32.mrb[127].mxu0 }
 0x213   :  { %v1201_v61 = vadd.f32 %v1200_v3, %v1199_v60 }
 0x214   :  { %v1202_v51 = vsel %vm1076_vm0, %v1073_v26, 0.0 }
 0x215   :  { %v1203_v50 = vadd.f32 %v1202_v51, %v1201_v61 }
 0x217   :  { %v1204_v0 = vrot.slane %v1203_v50, 4 }
 0x219   :  { %v1205_v29 = vadd.f32 %v1204_v0, %v1203_v50 }
 0x21b   :  { %v1206_v53 = vrot.slane %v1205_v29, 2 }
 0x21d   :  { %v1207_v33 = vadd.f32 %v1206_v53, %v1205_v29 }
 0x21f   :  { %v1208_v23 = vrot.slane %v1207_v33, 1 }
 0x221   :  { %v1209_v42 = vadd.f32 %v1208_v23, %v1207_v33 }
 0x223   :  { %v3197_v6 = vmul.f32 0.001953125, %v1209_v42 }
 0x225   :  { %v3201_v57 = vsub.f32 %v3181_v17, %v3197_v6  ;;  %v3205_v12 = vsub.f32 %v3185_v28, %v3197_v6  ;;  %v3208_v60 = vsub.f32 %v1046_v16, %v3197_v6  ;;  %v3211_v61 = vsub.f32 %v1049_v41, %v3197_v6 }
 0x226   :  { %v3214_v1 = vsub.f32 %v1054_v35, %v3197_v6  ;;  %v3217_v42 = vsub.f32 %v1057_v56, %v3197_v6  ;;  %v3220_v20 = vsub.f32 %v1062_v8, %v3197_v6  ;;  %v3223_v17 = vsub.f32 %v1065_v46, %v3197_v6 }
 0x227   :  { %v3226_v28 = vsub.f32 %v1070_v7, %v3197_v6  ;;  %v3229_v16 = vsub.f32 %v1073_v26, %v3197_v6  ;;  %v3233_v41 = vsub.f32 %v2881_v55, %v3197_v6  ;;  %v3237_v35 = vsub.f32 %v2883_v63, %v3197_v6 }
 0x228   :  { %4985 = vst [vmem:[#allocation21_spill] sm:$0xff] %v3214_v1  ;;  %4986 = vst [vmem:[#allocation22_spill] sm:$0xff] %v3217_v42  ;;  %v3241_v56 = vsub.f32 %v2909_v14, %v3197_v6  ;;  %v3245_v8 = vsub.f32 %v2911_v22, %v3197_v6  ;;  %v3253_v55 = vsub.f32 %v2937_v36, %v3197_v6 }
 0x229   :  { %4987 = vst [vmem:[#allocation23_spill] sm:$0xff] %v3220_v20  ;;  %4988 = vst [vmem:[#allocation24_spill] sm:$0xff] %v3223_v17  ;;  %v1276_v46 = vmul.f32 %v3233_v41, %v3233_v41  ;;  %v1277_v7 = vmul.f32 %v3237_v35, %v3237_v35  ;;  %v3259_v14 = vsub.f32 %v2939_v44, %v3197_v6 }
 0x22a   :  { %4989 = vst [vmem:[#allocation25_spill] sm:$0xff] %v3226_v28  ;;  %4990 = vst [vmem:[#allocation26_spill] sm:$0xff] %v3229_v16  ;;  %v1278_v63 = vmul.f32 %v3241_v56, %v3241_v56  ;;  %v1279_v22 = vmul.f32 %v3245_v8, %v3245_v8  ;;  %v3267_v26 = vsub.f32 %v2965_v58, %v3197_v6 }
 0x22b   :  { %v1340_v40 = vsel %vm1076_vm0, %v1276_v46, 0.0  ;;  %v1341_v39 = vsel %vm1076_vm0, %v1277_v7, 0.0  ;;  %v1280_v36 = vmul.f32 %v3253_v55, %v3253_v55  ;;  %v3274_v44 = vsub.f32 %v2967_v4, %v3197_v6 }
 0x22c   :  { %v1342_v3 = vadd.f32 %v1341_v39, %v1340_v40  ;;  %v1343_v18 = vsel %vm1076_vm0, %v1278_v63, 0.0  ;;  %v1281_v50 = vmul.f32 %v3259_v14, %v3259_v14  ;;  %v1345_v0 = vsel %vm1076_vm0, %v1279_v22, 0.0 }
 0x22d   :  { %v3281_v58 = vsub.f32 %v2981_v15, %v3197_v6  ;;  %v1282_v53 = vmul.f32 %v3267_v26, %v3267_v26  ;;  %v1347_v33 = vsel %vm1076_vm0, %v1280_v36, 0.0  ;;  %v3288_v4 = vsub.f32 %v2983_v21, %v3197_v6 }
 0x22e   :  { %v1344_v51 = vadd.f32 %v1343_v18, %v1342_v3  ;;  %v1283_v46 = vmul.f32 %v3274_v44, %v3274_v44  ;;  %v1349_v7 = vsel %vm1076_vm0, %v1281_v50, 0.0  ;;  %v3295_v15 = vsub.f32 %v2985_v27, %v3197_v6 }
 0x22f   :  { %v1284_v22 = vmul.f32 %v3281_v58, %v3281_v58  ;;  %v1351_v40 = vsel %vm1076_vm0, %v1282_v53, 0.0  ;;  %v3302_v21 = vsub.f32 %v2987_v32, %v3197_v6  ;;  %v1285_v3 = vmul.f32 %v3288_v4, %v3288_v4 }
 0x230   :  { %v1346_v29 = vadd.f32 %v1345_v0, %v1344_v51  ;;  %v1353_v36 = vsel %vm1076_vm0, %v1283_v46, 0.0  ;;  %v3309_v27 = vsub.f32 %v2989_v38, %v3197_v6  ;;  %v1286_v51 = vmul.f32 %v3295_v15, %v3295_v15 }
 0x231   :  { %v1355_v50 = vsel %vm1076_vm0, %v1284_v22, 0.0  ;;  %v3316_v32 = vsub.f32 %v2991_v43, %v3197_v6  ;;  %v1357_v53 = vsel %vm1076_vm0, %v1285_v3, 0.0  ;;  %v3323_v38 = vsub.f32 %v2993_v49, %v3197_v6 }
 0x232   :  { %v1348_v23 = vadd.f32 %v1347_v33, %v1346_v29  ;;  %v1287_v29 = vmul.f32 %v3302_v21, %v3302_v21  ;;  %v1359_v46 = vsel %vm1076_vm0, %v1286_v51, 0.0  ;;  %v3330_v43 = vsub.f32 %v2997_v54, %v3197_v6 }
 0x233   :  { %v3337_v49 = vsub.f32 %v3005_v5, %v3197_v6  ;;  %v3344_v54 = vsub.f32 %v3009_v11, %v3197_v6  ;;  %v3351_v5 = vsub.f32 %v3015_v24, %v3197_v6  ;;  %v3358_v11 = vsub.f32 %v3017_v31, %v3197_v6 }
 0x234   :  { %v1350_v63 = vadd.f32 %v1349_v7, %v1348_v23  ;;  %v1288_v23 = vmul.f32 %v3309_v27, %v3309_v27  ;;  %v1361_v22 = vsel %vm1076_vm0, %v1287_v29, 0.0  ;;  %v3365_v24 = vsub.f32 %v3023_v45, %v3197_v6 }
 0x235   :  { %v3372_v31 = vsub.f32 %v3027_v52, %v3197_v6  ;;  %v3379_v45 = vsub.f32 %v3033_v2, %v3197_v6  ;;  %v3386_v52 = vsub.f32 %v3037_v10, %v3197_v6  ;;  %v3393_v2 = vsub.f32 %v3043_v25, %v3197_v6 }
 0x236   :  { %v1352_v39 = vadd.f32 %v1351_v40, %v1350_v63  ;;  %v1289_v63 = vmul.f32 %v3316_v32, %v3316_v32  ;;  %v1363_v3 = vsel %vm1076_vm0, %v1288_v23, 0.0  ;;  %v3400_v10 = vsub.f32 %v3045_v34, %v3197_v6 }
 0x237   :  { %v3407_v25 = vsub.f32 %v3051_v48, %v3197_v6  ;;  %v3414_v34 = vsub.f32 %v3055_v59, %v3197_v6  ;;  %v3421_v48 = vsub.f32 %v3061_v9, %v3197_v6  ;;  %v3428_v59 = vsub.f32 %v3065_v19, %v3197_v6 }
 0x238   :  { %v1354_v18 = vadd.f32 %v1353_v36, %v1352_v39  ;;  %v1290_v39 = vmul.f32 %v3323_v38, %v3323_v38  ;;  %v1365_v51 = vsel %vm1076_vm0, %v1289_v63, 0.0  ;;  %v3435_v9 = vsub.f32 %v3071_v37, %v3197_v6 }
 0x239   :  { %v3442_v19 = vsub.f32 %v3073_v47, %v3197_v6  ;;  %v3449_v37 = vsub.f32 %v3079_v62, %v3197_v6  ;;  %v3456_v47 = vsub.f32 %v3083_v13, %v3197_v6  ;;  %v3463_v62 = vsub.f32 %v3089_v30, %v3197_v6 }
 0x23a   :  { %v1356_v0 = vadd.f32 %v1355_v50, %v1354_v18  ;;  %v1291_v18 = vmul.f32 %v3330_v43, %v3330_v43  ;;  %v1367_v29 = vsel %vm1076_vm0, %v1290_v39, 0.0 }
 0x23c   :  { %v1358_v33 = vadd.f32 %v1357_v53, %v1356_v0  ;;  %v1292_v0 = vmul.f32 %v3337_v49, %v3337_v49  ;;  %v1369_v23 = vsel %vm1076_vm0, %v1291_v18, 0.0 }
 0x23e   :  { %v1360_v7 = vadd.f32 %v1359_v46, %v1358_v33  ;;  %v1293_v33 = vmul.f32 %v3344_v54, %v3344_v54  ;;  %v1371_v63 = vsel %vm1076_vm0, %v1292_v0, 0.0 }
 0x240   :  { %v1362_v40 = vadd.f32 %v1361_v22, %v1360_v7  ;;  %v1294_v7 = vmul.f32 %v3351_v5, %v3351_v5  ;;  %v1373_v39 = vsel %vm1076_vm0, %v1293_v33, 0.0 }
 0x242   :  { %v1364_v36 = vadd.f32 %v1363_v3, %v1362_v40  ;;  %v1295_v40 = vmul.f32 %v3358_v11, %v3358_v11  ;;  %v1375_v18 = vsel %vm1076_vm0, %v1294_v7, 0.0 }
 0x244   :  { %v1366_v50 = vadd.f32 %v1365_v51, %v1364_v36  ;;  %v1296_v36 = vmul.f32 %v3365_v24, %v3365_v24  ;;  %v1377_v0 = vsel %vm1076_vm0, %v1295_v40, 0.0 }
 0x246   :  { %v1368_v53 = vadd.f32 %v1367_v29, %v1366_v50  ;;  %v1297_v50 = vmul.f32 %v3372_v31, %v3372_v31  ;;  %v1379_v33 = vsel %vm1076_vm0, %v1296_v36, 0.0 }
 0x248   :  { %v1370_v46 = vadd.f32 %v1369_v23, %v1368_v53  ;;  %v1298_v53 = vmul.f32 %v3379_v45, %v3379_v45  ;;  %v1381_v7 = vsel %vm1076_vm0, %v1297_v50, 0.0 }
 0x24a   :  { %v1372_v22 = vadd.f32 %v1371_v63, %v1370_v46  ;;  %v1299_v46 = vmul.f32 %v3386_v52, %v3386_v52  ;;  %v1383_v40 = vsel %vm1076_vm0, %v1298_v53, 0.0 }
 0x24c   :  { %v1374_v3 = vadd.f32 %v1373_v39, %v1372_v22  ;;  %v1300_v22 = vmul.f32 %v3393_v2, %v3393_v2  ;;  %v1385_v36 = vsel %vm1076_vm0, %v1299_v46, 0.0 }
 0x24e   :  { %v1376_v51 = vadd.f32 %v1375_v18, %v1374_v3  ;;  %v1301_v3 = vmul.f32 %v3400_v10, %v3400_v10  ;;  %v1387_v50 = vsel %vm1076_vm0, %v1300_v22, 0.0 }
 0x250   :  { %v1378_v29 = vadd.f32 %v1377_v0, %v1376_v51  ;;  %v1302_v51 = vmul.f32 %v3407_v25, %v3407_v25  ;;  %v1389_v53 = vsel %vm1076_vm0, %v1301_v3, 0.0 }
 0x252   :  { %v1380_v23 = vadd.f32 %v1379_v33, %v1378_v29  ;;  %v1303_v29 = vmul.f32 %v3414_v34, %v3414_v34  ;;  %v1391_v46 = vsel %vm1076_vm0, %v1302_v51, 0.0 }
 0x254   :  { %v1382_v63 = vadd.f32 %v1381_v7, %v1380_v23  ;;  %v1304_v23 = vmul.f32 %v3421_v48, %v3421_v48  ;;  %v1393_v22 = vsel %vm1076_vm0, %v1303_v29, 0.0 }
 0x256   :  { %v1384_v39 = vadd.f32 %v1383_v40, %v1382_v63  ;;  %v1305_v63 = vmul.f32 %v3428_v59, %v3428_v59  ;;  %v1395_v3 = vsel %vm1076_vm0, %v1304_v23, 0.0  ;;  %v1309_v23 = vmul.f32 %v3456_v47, %v3456_v47 }
 0x258   :  { %v1386_v18 = vadd.f32 %v1385_v36, %v1384_v39  ;;  %v1306_v39 = vmul.f32 %v3435_v9, %v3435_v9  ;;  %v1397_v51 = vsel %vm1076_vm0, %v1305_v63, 0.0  ;;  %v4992_v63 = vld [vmem:[#allocation3_spill] sm:$0xff] }
 0x259   :  { %v3477_v30 = vsub.f32 %v4992_v63, %v3197_v6 }
 0x25a   :  { %v1388_v0 = vadd.f32 %v1387_v50, %v1386_v18  ;;  %v1307_v18 = vmul.f32 %v3442_v19, %v3442_v19  ;;  %v1399_v29 = vsel %vm1076_vm0, %v1306_v39, 0.0 }
 0x25c   :  { %v1390_v33 = vadd.f32 %v1389_v53, %v1388_v0  ;;  %v1308_v0 = vmul.f32 %v3449_v37, %v3449_v37 }
 0x25e   :  { %v1392_v7 = vadd.f32 %v1391_v46, %v1390_v33  ;;  %v4991_v33 = vld [vmem:[#allocation2_spill] sm:$0xff]  ;;  %v1401_v46 = vsel %vm1076_vm0, %v1307_v18, 0.0  ;;  %v1405_v18 = vsel %vm1076_vm0, %v1309_v23, 0.0 }
 0x25f   :  { %v3470_v13 = vsub.f32 %v4991_v33, %v3197_v6  ;;  %4993 = vst [vmem:[#allocation2_spill] sm:$0xff] %v3477_v30  ;;  %v1312_v33 = vmul.f32 %v3477_v30, %v3477_v30 }
 0x260   :  { %v1394_v40 = vadd.f32 %v1393_v22, %v1392_v7  ;;  %v1310_v22 = vmul.f32 %v3463_v62, %v3463_v62 }
 0x262   :  { %v1396_v36 = vadd.f32 %v1395_v3, %v1394_v40  ;;  %v1403_v40 = vsel %vm1076_vm0, %v1308_v0, 0.0  ;;  %v4994_v3 = vld [vmem:[#allocation4_spill] sm:$0xff]  ;;  %v1407_v0 = vsel %vm1076_vm0, %v1310_v22, 0.0  ;;  %v1411_v22 = vsel %vm1076_vm0, %v1312_v33, 0.0 }
 0x264   :  { %v1398_v50 = vadd.f32 %v1397_v51, %v1396_v36  ;;  %v3484_v36 = vsub.f32 %v4994_v3, %v3197_v6  ;;  %v1311_v51 = vmul.f32 %v3470_v13, %v3470_v13  ;;  %v5000_v3 = vld [vmem:[#allocation7_spill] sm:$0xff] }
 0x266   :  { %v1400_v53 = vadd.f32 %v1399_v29, %v1398_v50  ;;  %4995 = vst [vmem:[#allocation3_spill] sm:$0xff] %v3484_v36  ;;  %v4996_v29 = vld [vmem:[#allocation5_spill] sm:$0xff]  ;;  %v1409_v23 = vsel %vm1076_vm0, %v1311_v51, 0.0 }
 0x268   :  { %v1402_v7 = vadd.f32 %v1401_v46, %v1400_v53  ;;  %v3491_v53 = vsub.f32 %v4996_v29, %v3197_v6 }
 0x26a   :  { %v1404_v39 = vadd.f32 %v1403_v40, %v1402_v7  ;;  %4997 = vst [vmem:[#allocation4_spill] sm:$0xff] %v3491_v53  ;;  %v4998_v7 = vld [vmem:[#allocation6_spill] sm:$0xff]  ;;  %v1313_v40 = vmul.f32 %v3484_v36, %v3484_v36  ;;  %v1314_v29 = vmul.f32 %v3491_v53, %v3491_v53 }
 0x26b   :  { %v3498_v63 = vsub.f32 %v4998_v7, %v3197_v6 }
 0x26c   :  { %v1406_v50 = vadd.f32 %v1405_v18, %v1404_v39  ;;  %v3505_v18 = vsub.f32 %v5000_v3, %v3197_v6  ;;  %v1413_v51 = vsel %vm1076_vm0, %v1313_v40, 0.0  ;;  %v1415_v33 = vsel %vm1076_vm0, %v1314_v29, 0.0 }
 0x26d   :  { %4999 = vst [vmem:[#allocation5_spill] sm:$0xff] %v3498_v63  ;;  %v1315_v36 = vmul.f32 %v3498_v63, %v3498_v63 }
 0x26e   :  { %v1408_v46 = vadd.f32 %v1407_v0, %v1406_v50  ;;  %5001 = vst [vmem:[#allocation6_spill] sm:$0xff] %v3505_v18  ;;  %v5002_v0 = vld [vmem:[#allocation8_spill] sm:$0xff]  ;;  %v1316_v53 = vmul.f32 %v3505_v18, %v3505_v18 }
 0x26f   :  { %v3512_v7 = vsub.f32 %v5002_v0, %v3197_v6  ;;  %v1417_v40 = vsel %vm1076_vm0, %v1315_v36, 0.0 }
 0x270   :  { %v1410_v39 = vadd.f32 %v1409_v23, %v1408_v46  ;;  %v5004_v23 = vld [vmem:[#allocation9_spill] sm:$0xff]  ;;  %v1419_v29 = vsel %vm1076_vm0, %v1316_v53, 0.0 }
 0x271   :  { %5003 = vst [vmem:[#allocation7_spill] sm:$0xff] %v3512_v7  ;;  %v3519_v3 = vsub.f32 %v5004_v23, %v3197_v6  ;;  %v1317_v63 = vmul.f32 %v3512_v7, %v3512_v7 }
 0x272   :  { %v1412_v50 = vadd.f32 %v1411_v22, %v1410_v39  ;;  %v5006_v22 = vld [vmem:[#allocation10_spill] sm:$0xff] }
 0x273   :  { %5005 = vst [vmem:[#allocation8_spill] sm:$0xff] %v3519_v3  ;;  %v3526_v0 = vsub.f32 %v5006_v22, %v3197_v6  ;;  %v1318_v18 = vmul.f32 %v3519_v3, %v3519_v3  ;;  %v1421_v36 = vsel %vm1076_vm0, %v1317_v63, 0.0 }
 0x274   :  { %v1414_v46 = vadd.f32 %v1413_v51, %v1412_v50  ;;  %v5008_v51 = vld [vmem:[#allocation11_spill] sm:$0xff] }
 0x275   :  { %5007 = vst [vmem:[#allocation9_spill] sm:$0xff] %v3526_v0  ;;  %v3533_v23 = vsub.f32 %v5008_v51, %v3197_v6  ;;  %v1319_v7 = vmul.f32 %v3526_v0, %v3526_v0  ;;  %v1423_v53 = vsel %vm1076_vm0, %v1318_v18, 0.0 }
 0x276   :  { %v1416_v39 = vadd.f32 %v1415_v33, %v1414_v46  ;;  %v5010_v33 = vld [vmem:[#allocation12_spill] sm:$0xff] }
 0x277   :  { %5009 = vst [vmem:[#allocation10_spill] sm:$0xff] %v3533_v23  ;;  %v3540_v22 = vsub.f32 %v5010_v33, %v3197_v6  ;;  %v1320_v3 = vmul.f32 %v3533_v23, %v3533_v23  ;;  %v1425_v63 = vsel %vm1076_vm0, %v1319_v7, 0.0 }
 0x278   :  { %v1418_v50 = vadd.f32 %v1417_v40, %v1416_v39  ;;  %v5012_v40 = vld [vmem:[#allocation13_spill] sm:$0xff] }
 0x279   :  { %5011 = vst [vmem:[#allocation11_spill] sm:$0xff] %v3540_v22  ;;  %v3547_v51 = vsub.f32 %v5012_v40, %v3197_v6  ;;  %v1321_v0 = vmul.f32 %v3540_v22, %v3540_v22  ;;  %v1427_v18 = vsel %vm1076_vm0, %v1320_v3, 0.0 }
 0x27a   :  { %v1420_v46 = vadd.f32 %v1419_v29, %v1418_v50  ;;  %v5014_v29 = vld [vmem:[#allocation14_spill] sm:$0xff] }
 0x27b   :  { %5013 = vst [vmem:[#allocation12_spill] sm:$0xff] %v3547_v51  ;;  %v3554_v33 = vsub.f32 %v5014_v29, %v3197_v6  ;;  %v1322_v23 = vmul.f32 %v3547_v51, %v3547_v51  ;;  %v1429_v7 = vsel %vm1076_vm0, %v1321_v0, 0.0 }
 0x27c   :  { %v1422_v39 = vadd.f32 %v1421_v36, %v1420_v46  ;;  %v5016_v36 = vld [vmem:[#allocation15_spill] sm:$0xff] }
 0x27d   :  { %5015 = vst [vmem:[#allocation13_spill] sm:$0xff] %v3554_v33  ;;  %v3561_v40 = vsub.f32 %v5016_v36, %v3197_v6  ;;  %v1323_v22 = vmul.f32 %v3554_v33, %v3554_v33  ;;  %v1431_v3 = vsel %vm1076_vm0, %v1322_v23, 0.0 }
 0x27e   :  { %v1424_v50 = vadd.f32 %v1423_v53, %v1422_v39  ;;  %v5018_v53 = vld [vmem:[#allocation16_spill] sm:$0xff] }
 0x27f   :  { %5017 = vst [vmem:[#allocation14_spill] sm:$0xff] %v3561_v40  ;;  %v3568_v29 = vsub.f32 %v5018_v53, %v3197_v6  ;;  %v1324_v51 = vmul.f32 %v3561_v40, %v3561_v40  ;;  %v1433_v0 = vsel %vm1076_vm0, %v1323_v22, 0.0 }
 0x280   :  { %v1426_v46 = vadd.f32 %v1425_v63, %v1424_v50  ;;  %v5020_v63 = vld [vmem:[#allocation17_spill] sm:$0xff] }
 0x281   :  { %5019 = vst [vmem:[#allocation15_spill] sm:$0xff] %v3568_v29  ;;  %v3575_v36 = vsub.f32 %v5020_v63, %v3197_v6  ;;  %v1325_v33 = vmul.f32 %v3568_v29, %v3568_v29  ;;  %v1435_v23 = vsel %vm1076_vm0, %v1324_v51, 0.0 }
 0x282   :  { %v1428_v39 = vadd.f32 %v1427_v18, %v1426_v46  ;;  %v5021_v18 = vld [vmem:[#allocation18_spill] sm:$0xff] }
 0x283   :  { %v3582_v53 = vsub.f32 %v5021_v18, %v3197_v6  ;;  %v1326_v40 = vmul.f32 %v3575_v36, %v3575_v36  ;;  %v1437_v22 = vsel %vm1076_vm0, %v1325_v33, 0.0  ;;  %v1331_v33 = vmul.f32 %v3205_v12, %v3205_v12 }
 0x284   :  { %v1430_v50 = vadd.f32 %v1429_v7, %v1428_v39  ;;  %v5023_v7 = vld [vmem:[#allocation19_spill] sm:$0xff] }
 0x285   :  { %5022 = vst [vmem:[#allocation16_spill] sm:$0xff] %v3582_v53  ;;  %v3589_v63 = vsub.f32 %v5023_v7, %v3197_v6  ;;  %v1327_v29 = vmul.f32 %v3582_v53, %v3582_v53  ;;  %v1439_v7 = vsel %vm1076_vm0, %v1326_v40, 0.0  ;;  %v1332_v40 = vmul.f32 %v3208_v60, %v3208_v60 }
 0x286   :  { %v1432_v46 = vadd.f32 %v1431_v3, %v1430_v50  ;;  %v5024_v3 = vld [vmem:[#allocation20_spill] sm:$0xff] }
 0x287   :  { %v3596_v18 = vsub.f32 %v5024_v3, %v3197_v6  ;;  %v1330_v6 = vmul.f32 %v3201_v57, %v3201_v57 }
 0x288   :  { %v1434_v39 = vadd.f32 %v1433_v0, %v1432_v46  ;;  %v1328_v0 = vmul.f32 %v3589_v63, %v3589_v63 }
 0x289   :  { %v1329_v51 = vmul.f32 %v3596_v18, %v3596_v18 }
 0x28a   :  { %v1436_v50 = vadd.f32 %v1435_v23, %v1434_v39  ;;  %v1441_v39 = vsel %vm1076_vm0, %v1327_v29, 0.0  ;;  %v1443_v3 = vsel %vm1076_vm0, %v1328_v0, 0.0  ;;  %v1449_v29 = vsel %vm1076_vm0, %v1331_v33, 0.0 }
 0x28b   :  { %v1334_v0 = vmul.f32 %v3214_v1, %v3214_v1  ;;  %v1337_v33 = vmul.f32 %v3223_v17, %v3223_v17 }
 0x28c   :  { %v1438_v46 = vadd.f32 %v1437_v22, %v1436_v50  ;;  %v1445_v50 = vsel %vm1076_vm0, %v1329_v51, 0.0 }
 0x28e   :  { %v1440_v30 = vadd.f32 %v1439_v7, %v1438_v46  ;;  %v1447_v46 = vsel %vm1076_vm0, %v1330_v6, 0.0  ;;  %v1336_v6 = vmul.f32 %v3220_v20, %v3220_v20 }
 0x290   :  { %v1442_v23 = vadd.f32 %v1441_v39, %v1440_v30  ;;  %v1333_v30 = vmul.f32 %v3211_v61, %v3211_v61 }
 0x292   :  { %v1444_v53 = vadd.f32 %v1443_v3, %v1442_v23  ;;  %v1451_v23 = vsel %vm1076_vm0, %v1332_v40, 0.0  ;;  %v1453_v51 = vsel %vm1076_vm0, %v1333_v30, 0.0  ;;  %v1338_v40 = vmul.f32 %v3226_v28, %v3226_v28 }
 0x293   :  { %v1339_v30 = vmul.f32 %v3229_v16, %v3229_v16 }
 0x294   :  { %v1446_v22 = vadd.f32 %v1445_v50, %v1444_v53  ;;  %v1335_v53 = vmul.f32 %v3217_v42, %v3217_v42 }
 0x296   :  { %v1448_v7 = vadd.f32 %v1447_v46, %v1446_v22  ;;  %v1455_v22 = vsel %vm1076_vm0, %v1334_v0, 0.0  ;;  %v1463_v0 = vsel %vm1076_vm0, %v1338_v40, 0.0 }
 0x298   :  { %v1450_v39 = vadd.f32 %v1449_v29, %v1448_v7  ;;  %v1457_v7 = vsel %vm1076_vm0, %v1335_v53, 0.0 }
 0x29a   :  { %v1452_v3 = vadd.f32 %v1451_v23, %v1450_v39  ;;  %v1459_v39 = vsel %vm1076_vm0, %v1336_v6, 0.0 }
 0x29c   :  { %v1454_v50 = vadd.f32 %v1453_v51, %v1452_v3  ;;  %v1461_v3 = vsel %vm1076_vm0, %v1337_v33, 0.0  ;;  %v1474_v33 = vld [vmem:[%s4901_s2] sm:$0x1] }
 0x29e   :  { %v1456_v46 = vadd.f32 %v1455_v22, %v1454_v50  ;;  %v1465_v22 = vsel %vm1076_vm0, %v1339_v30, 0.0 }
 0x2a0   :  { %v1458_v29 = vadd.f32 %v1457_v7, %v1456_v46 }
 0x2a2   :  { %v1460_v23 = vadd.f32 %v1459_v39, %v1458_v29  ;;  %v1479_v39 = vlaneseq }
 0x2a4   :  { %v1462_v51 = vadd.f32 %v1461_v3, %v1460_v23  ;;  %v1480_v16 = vshrl.u32 %v1479_v39, 7  ;;  %v5026_v3 = vld [vmem:[#allocation3_spill] sm:$0xff]  ;;  %v5033_v39 = vld [vmem:[#allocation10_spill] sm:$0xff] }
 0x2a6   :  { %v1464_v50 = vadd.f32 %v1463_v0, %v1462_v51  ;;  %v1481_v23 = vsub.s32 0, %v1480_v16  ;;  %v5027_v51 = vld [vmem:[#allocation4_spill] sm:$0xff]  ;;  %v5028_v0 = vld [vmem:[#allocation5_spill] sm:$0xff] }
 0x2a8   :  { %v1466_v17 = vadd.f32 %v1465_v22, %v1464_v50  ;;  %v5029_v50 = vld [vmem:[#allocation6_spill] sm:$0xff]  ;;  %v5030_v22 = vld [vmem:[#allocation7_spill] sm:$0xff] }
 0x2aa   :  { %v1467_v53 = vrot.slane %v1466_v17, 4 }
 0x2ac   :  { %v1468_v46 = vadd.f32 %v1467_v53, %v1466_v17 }
 0x2ae   :  { %v1469_v7 = vrot.slane %v1468_v46, 2 }
 0x2b0   :  { %v1470_v20 = vadd.f32 %v1469_v7, %v1468_v46  ;;  %v5031_v46 = vld [vmem:[#allocation8_spill] sm:$0xff] }
 0x2b2   :  { %v1471_v28 = vrot.slane %v1470_v20, 1 }
 0x2b4   :  { %v1472_v42 = vadd.f32 %v1471_v28, %v1470_v20 }
 0x2b6   :  { %v1473_v6 = vmul.f32 0.001953125, %v1472_v42 }
 0x2b8   :  { %v1475_v29 = vadd.f32 1e-05, %v1473_v6  ;;  %v5032_v6 = vld [vmem:[#allocation9_spill] sm:$0xff] }
 0x2ba   :  { %1945 = vrsqrt.f32 %v1475_v29 }
 0x2c4   :  { %v1946_v1 = vpop.eup %1945 }
 0x2c5   :  { %v1477_v40 = vmul.f32 %v1946_v1, %v1474_v33 }
 0x2c7   :  { %v3642_v30 = vrot.slane %v1477_v40, %v1481_v23  ;;  %v5034_v40 = vld [vmem:[#allocation11_spill] sm:$0xff] }
 0x2c9   :  { %v3646_v17 = vmul.f32 %v3642_v30, %v3233_v41  ;;  %v3650_v42 = vmul.f32 %v3642_v30, %v3237_v35  ;;  %v3654_v20 = vmul.f32 %v3642_v30, %v3241_v56  ;;  %v3658_v28 = vmul.f32 %v3642_v30, %v3245_v8 }
 0x2ca   :  { %v3662_v1 = vmul.f32 %v3642_v30, %v3253_v55  ;;  %v3666_v16 = vmul.f32 %v3642_v30, %v3259_v14  ;;  %v3670_v41 = vmul.f32 %v3642_v30, %v3267_v26  ;;  %v3674_v35 = vmul.f32 %v3642_v30, %v3274_v44 }
 0x2cb   :  { %v3678_v56 = vmul.f32 %v3642_v30, %v3281_v58  ;;  %v3682_v8 = vmul.f32 %v3642_v30, %v3288_v4  ;;  %v3686_v55 = vmul.f32 %v3642_v30, %v3295_v15  ;;  %v3690_v14 = vmul.f32 %v3642_v30, %v3302_v21 }
 0x2cc   :  { %v3694_v26 = vmul.f32 %v3642_v30, %v3309_v27  ;;  %v3698_v44 = vmul.f32 %v3642_v30, %v3316_v32  ;;  %v3702_v58 = vmul.f32 %v3642_v30, %v3323_v38  ;;  %v3706_v4 = vmul.f32 %v3642_v30, %v3330_v43 }
 0x2cd   :  { %v3710_v15 = vmul.f32 %v3642_v30, %v3337_v49  ;;  %v3714_v21 = vmul.f32 %v3642_v30, %v3344_v54  ;;  %v3718_v27 = vmul.f32 %v3642_v30, %v3351_v5  ;;  %v3722_v32 = vmul.f32 %v3642_v30, %v3358_v11 }
 0x2ce   :  { %v3726_v38 = vmul.f32 %v3642_v30, %v3365_v24  ;;  %v3730_v43 = vmul.f32 %v3642_v30, %v3372_v31  ;;  %v3734_v49 = vmul.f32 %v3642_v30, %v3379_v45  ;;  %v3738_v54 = vmul.f32 %v3642_v30, %v3386_v52 }
 0x2cf   :  { %v3742_v5 = vmul.f32 %v3642_v30, %v3393_v2  ;;  %v3746_v11 = vmul.f32 %v3642_v30, %v3400_v10  ;;  %v3750_v24 = vmul.f32 %v3642_v30, %v3407_v25  ;;  %v3754_v31 = vmul.f32 %v3642_v30, %v3414_v34 }
 0x2d0   :  { %v3758_v45 = vmul.f32 %v3642_v30, %v3421_v48  ;;  %v3762_v52 = vmul.f32 %v3642_v30, %v3428_v59  ;;  %v3766_v2 = vmul.f32 %v3642_v30, %v3435_v9  ;;  %v3770_v10 = vmul.f32 %v3642_v30, %v3442_v19  ;;  %v5025_v9 = vld [vmem:[#allocation2_spill] sm:$0xff] }
 0x2d1   :  { %v3774_v25 = vmul.f32 %v3642_v30, %v3449_v37  ;;  %v3778_v34 = vmul.f32 %v3642_v30, %v3456_v47  ;;  %v3782_v48 = vmul.f32 %v3642_v30, %v3463_v62  ;;  %v3786_v59 = vmul.f32 %v3642_v30, %v3470_v13 }
 0x2d2   :  { %v3790_v19 = vmul.f32 %v3642_v30, %v5025_v9  ;;  %v3794_v37 = vmul.f32 %v3642_v30, %v5026_v3  ;;  %v3798_v47 = vmul.f32 %v3642_v30, %v5027_v51  ;;  %v3802_v62 = vmul.f32 %v3642_v30, %v5028_v0  ;;  %v5035_v9 = vld [vmem:[#allocation12_spill] sm:$0xff]  ;;  %v5036_v51 = vld [vmem:[#allocation13_spill] sm:$0xff] }
 0x2d3   :  { %v3806_v13 = vmul.f32 %v3642_v30, %v5029_v50  ;;  %v3810_v53 = vmul.f32 %v3642_v30, %v5030_v22  ;;  %v3814_v7 = vmul.f32 %v3642_v30, %v5031_v46  ;;  %v3818_v29 = vmul.f32 %v3642_v30, %v5032_v6  ;;  %v5037_v50 = vld [vmem:[#allocation14_spill] sm:$0xff]  ;;  %v5038_v46 = vld [vmem:[#allocation15_spill] sm:$0xff] }
 0x2d4   :  { %v3822_v33 = vmul.f32 %v3642_v30, %v5033_v39  ;;  %v3826_v23 = vmul.f32 %v3642_v30, %v5034_v40  ;;  %v3830_v3 = vmul.f32 %v3642_v30, %v5035_v9  ;;  %v3834_v0 = vmul.f32 %v3642_v30, %v5036_v51  ;;  %v5039_v40 = vld [vmem:[#allocation16_spill] sm:$0xff] }
 0x2d5   :  { %v3838_v22 = vmul.f32 %v3642_v30, %v5037_v50  ;;  %v3842_v6 = vmul.f32 %v3642_v30, %v5038_v46  ;;  %v3846_v39 = vmul.f32 %v3642_v30, %v3575_v36  ;;  %v3850_v9 = vmul.f32 %v3642_v30, %v5039_v40  ;;  %v3867_v36 = vld [vmem:[%s4902_s3] ss:$0 sm:$0xff] }
 0x2d6   :  { %v3854_v51 = vmul.f32 %v3642_v30, %v3589_v63  ;;  %v3858_v50 = vmul.f32 %v3642_v30, %v3596_v18  ;;  %v3862_v46 = vmul.f32 %v3642_v30, %v3201_v57  ;;  %v3871_v40 = vmul.f32 %v3642_v30, %v3205_v12 }
 0x2d7   :  { %5040 = vst [vmem:[#allocation17_spill] sm:$0xff] %v3850_v9  ;;  %v3875_v63 = vmul.f32 %v3642_v30, %v3208_v60  ;;  %v3879_v18 = vmul.f32 %v3642_v30, %v3211_v61  ;;  %v5049_v9 = vld [vmem:[#allocation23_spill] sm:$0xff] }
 0x2d8   :  { %5041 = vst [vmem:[#allocation18_spill] sm:$0xff] %v3854_v51  ;;  %5042 = vst [vmem:[#allocation19_spill] sm:$0xff] %v3858_v50  ;;  %v5047_v50 = vld [vmem:[#allocation21_spill] sm:$0xff]  ;;  %v3891_v12 = vmul.f32 %v3642_v30, %v5049_v9  ;;  %v3911_v9 = vadd.f32 %v3867_v36, %v3650_v42  ;;  %v3931_v42 = vadd.f32 %v3867_v36, %v3670_v41 }
 0x2d9   :  { %5043 = vst [vmem:[#allocation20_spill] sm:$0xff] %v3862_v46  ;;  %5044 = vst [vmem:[#allocation2_spill] sm:$0xff] %v3871_v40  ;;  %v3883_v57 = vmul.f32 %v3642_v30, %v5047_v50  ;;  %v5048_v46 = vld [vmem:[#allocation22_spill] sm:$0xff]  ;;  %v5050_v40 = vld [vmem:[#allocation24_spill] sm:$0xff]  ;;  %v3951_v41 = vadd.f32 %v3867_v36, %v3690_v14  ;;  %v3971_v14 = vadd.f32 %v3867_v36, %v3710_v15 }
 0x2da   :  { %5045 = vst [vmem:[#allocation3_spill] sm:$0xff] %v3875_v63  ;;  %5046 = vst [vmem:[#allocation4_spill] sm:$0xff] %v3879_v18  ;;  %v3887_v51 = vmul.f32 %v3642_v30, %v5048_v46  ;;  %v3895_v60 = vmul.f32 %v3642_v30, %v5050_v40  ;;  %v5051_v63 = vld [vmem:[#allocation25_spill] sm:$0xff]  ;;  %v5052_v18 = vld [vmem:[#allocation26_spill] sm:$0xff]  ;;  %v3907_v46 = vadd.f32 %v3867_v36, %v3646_v17  ;;  %vm1620_vm2 = vcmp.gt.f32.partialorder %v3911_v9, 0.0 }
 0x2db   :  { %v3899_v61 = vmul.f32 %v3642_v30, %v5051_v63  ;;  %v3903_v50 = vmul.f32 %v3642_v30, %v5052_v18  ;;  %v3915_v40 = vadd.f32 %v3867_v36, %v3654_v20  ;;  %v3919_v63 = vadd.f32 %v3867_v36, %v3658_v28 }
 0x2dc   :  { %v3923_v30 = vadd.f32 %v3867_v36, %v3662_v1  ;;  %v3927_v17 = vadd.f32 %v3867_v36, %v3666_v16  ;;  %v3935_v20 = vadd.f32 %v3867_v36, %v3674_v35  ;;  %v3939_v28 = vadd.f32 %v3867_v36, %v3678_v56 }
 0x2dd   :  { %v3943_v1 = vadd.f32 %v3867_v36, %v3682_v8  ;;  %v3947_v16 = vadd.f32 %v3867_v36, %v3686_v55  ;;  %v3955_v35 = vadd.f32 %v3867_v36, %v3694_v26  ;;  %v3959_v56 = vadd.f32 %v3867_v36, %v3698_v44 }
 0x2de   :  { %v3963_v8 = vadd.f32 %v3867_v36, %v3702_v58  ;;  %v3967_v55 = vadd.f32 %v3867_v36, %v3706_v4  ;;  %v3975_v26 = vadd.f32 %v3867_v36, %v3714_v21  ;;  %v3979_v44 = vadd.f32 %v3867_v36, %v3718_v27  ;;  %v5058_v18 = vld [vmem:[#allocation17_spill] sm:$0xff] }
 0x2df   :  { %v3983_v58 = vadd.f32 %v3867_v36, %v3722_v32  ;;  %v3987_v4 = vadd.f32 %v3867_v36, %v3726_v38  ;;  %v3991_v15 = vadd.f32 %v3867_v36, %v3730_v43  ;;  %v3995_v21 = vadd.f32 %v3867_v36, %v3734_v49 }
 0x2e0   :  { %v3999_v27 = vadd.f32 %v3867_v36, %v3738_v54  ;;  %v4003_v32 = vadd.f32 %v3867_v36, %v3742_v5  ;;  %v4007_v38 = vadd.f32 %v3867_v36, %v3746_v11  ;;  %v4011_v43 = vadd.f32 %v3867_v36, %v3750_v24 }
 0x2e1   :  { %v4015_v49 = vadd.f32 %v3867_v36, %v3754_v31  ;;  %v4019_v54 = vadd.f32 %v3867_v36, %v3758_v45  ;;  %v4023_v5 = vadd.f32 %v3867_v36, %v3762_v52  ;;  %v4027_v11 = vadd.f32 %v3867_v36, %v3766_v2 }
 0x2e2   :  { %v4031_v24 = vadd.f32 %v3867_v36, %v3770_v10  ;;  %v4035_v31 = vadd.f32 %v3867_v36, %v3774_v25  ;;  %v4039_v45 = vadd.f32 %v3867_v36, %v3778_v34  ;;  %v4043_v52 = vadd.f32 %v3867_v36, %v3782_v48 }
 0x2e3   :  { %v4047_v2 = vadd.f32 %v3867_v36, %v3786_v59  ;;  %v4051_v10 = vadd.f32 %v3867_v36, %v3790_v19  ;;  %v4055_v25 = vadd.f32 %v3867_v36, %v3794_v37  ;;  %v4059_v34 = vadd.f32 %v3867_v36, %v3798_v47 }
 0x2e4   :  { %v4063_v48 = vadd.f32 %v3867_v36, %v3802_v62  ;;  %v4067_v59 = vadd.f32 %v3867_v36, %v3806_v13  ;;  %v4071_v19 = vadd.f32 %v3867_v36, %v3810_v53  ;;  %v4075_v37 = vadd.f32 %v3867_v36, %v3814_v7 }
 0x2e5   :  { %v4079_v47 = vadd.f32 %v3867_v36, %v3818_v29  ;;  %v4083_v62 = vadd.f32 %v3867_v36, %v3822_v33  ;;  %v4087_v13 = vadd.f32 %v3867_v36, %v3826_v23  ;;  %v4091_v53 = vadd.f32 %v3867_v36, %v3830_v3 }
 0x2e6   :  { %v4095_v7 = vadd.f32 %v3867_v36, %v3834_v0  ;;  %v4099_v29 = vadd.f32 %v3867_v36, %v3838_v22  ;;  %v4103_v33 = vadd.f32 %v3867_v36, %v3842_v6  ;;  %v4107_v23 = vadd.f32 %v3867_v36, %v3846_v39 }
 0x2e7   :  { %5053 = vst [vmem:[#allocation5_spill] sm:$0xff] %v4091_v53  ;;  %v4111_v3 = vadd.f32 %v3867_v36, %v5058_v18  ;;  %v5060_v53 = vld [vmem:[#allocation18_spill] sm:$0xff]  ;;  %vm1619_vm1 = vcmp.gt.f32.partialorder %v3907_v46, 0.0  ;;  %vm1621_vm3 = vcmp.gt.f32.partialorder %v3915_v40, 0.0  ;;  %vm1622_vm4 = vcmp.gt.f32.partialorder %v3919_v63, 0.0 }
 0x2e8   :  { %5054 = vst [vmem:[#allocation6_spill] sm:$0xff] %v4095_v7  ;;  %5055 = vst [vmem:[#allocation7_spill] sm:$0xff] %v4099_v29  ;;  %v4115_v0 = vadd.f32 %v3867_v36, %v5060_v53  ;;  %v5061_v7 = vld [vmem:[#allocation19_spill] sm:$0xff]  ;;  %v5063_v29 = vld [vmem:[#allocation20_spill] sm:$0xff]  ;;  %vm1623_vm5 = vcmp.gt.f32.partialorder %v3923_v30, 0.0  ;;  %vm1624_vm6 = vcmp.gt.f32.partialorder %v3927_v17, 0.0 }
 0x2e9   :  { %5056 = vst [vmem:[#allocation8_spill] sm:$0xff] %v4103_v33  ;;  %5057 = vst [vmem:[#allocation9_spill] sm:$0xff] %v4107_v23  ;;  %v4119_v22 = vadd.f32 %v3867_v36, %v5061_v7  ;;  %v4123_v6 = vadd.f32 %v3867_v36, %v5063_v29  ;;  %v5065_v33 = vld [vmem:[#allocation2_spill] sm:$0xff]  ;;  %v5067_v23 = vld [vmem:[#allocation3_spill] sm:$0xff]  ;;  %v4139_v7 = vadd.f32 %v3867_v36, %v3883_v57  ;;  %vm1625_vm7 = vcmp.gt.f32.partialorder %v3931_v42, 0.0 }
 0x2ea   :  { %5059 = vst [vmem:[#allocation10_spill] sm:$0xff] %v4111_v3  ;;  %v4127_v39 = vadd.f32 %v3867_v36, %v5065_v33  ;;  %v4131_v18 = vadd.f32 %v3867_v36, %v5067_v23  ;;  %v5069_v3 = vld [vmem:[#allocation4_spill] sm:$0xff]  ;;  %v4143_v29 = vadd.f32 %v3867_v36, %v3887_v51  ;;  %v4147_v33 = vadd.f32 %v3867_v36, %v3891_v12 }
 0x2eb   :  { %5062 = vst [vmem:[#allocation11_spill] sm:$0xff] %v4119_v22  ;;  %5064 = vst [vmem:[#allocation12_spill] sm:$0xff] %v4123_v6  ;;  %v4135_v53 = vadd.f32 %v3867_v36, %v5069_v3  ;;  %v4151_v23 = vadd.f32 %v3867_v36, %v3895_v60  ;;  %vm1626_vm8 = vcmp.gt.f32.partialorder %v3935_v20, 0.0  ;;  %vm1627_vm9 = vcmp.gt.f32.partialorder %v3939_v28, 0.0 }
 0x2ec   :  { %5066 = vst [vmem:[#allocation13_spill] sm:$0xff] %v4127_v39  ;;  %5068 = vst [vmem:[#allocation14_spill] sm:$0xff] %v4131_v18  ;;  %v4164_v51 = vadd.f32 %v3867_v36, %v3899_v61  ;;  %vm1628_vm10 = vcmp.gt.f32.partialorder %v3943_v1, 0.0  ;;  %v1683_v57 = vmul.f32 0.2, %v3907_v46  ;;  %v4172_v3 = vadd.f32 %v3867_v36, %v3903_v50 }
 0x2ed   :  { %5070 = vst [vmem:[#allocation15_spill] sm:$0xff] %v4135_v53  ;;  %5071 = vst [vmem:[#allocation16_spill] sm:$0xff] %v4139_v7  ;;  %v1684_v12 = vmul.f32 0.2, %v3911_v9  ;;  %v1685_v60 = vmul.f32 0.2, %v3915_v40 }
 0x2ee   :  { %5072 = vst [vmem:[#allocation21_spill] sm:$0xff] %v4143_v29  ;;  %5073 = vst [vmem:[#allocation22_spill] sm:$0xff] %v4147_v33  ;;  %vm1629_vm11 = vcmp.gt.f32.partialorder %v3947_v16, 0.0  ;;  %v1687_v33 = vmul.f32 0.2, %v3923_v30  ;;  %vm1630_vm12 = vcmp.gt.f32.partialorder %v3951_v41, 0.0  ;;  %v1747_v36 = vsel %vm1619_vm1, %v3907_v46, %v1683_v57 }
 0x2ef   :  { %5074 = vst [vmem:[#allocation23_spill] sm:$0xff] %v4151_v23  ;;  %5075 = vst [vmem:[#allocation24_spill] sm:$0xff] %v4164_v51  ;;  %v1686_v23 = vmul.f32 0.2, %v3919_v63  ;;  %v1688_v61 = vmul.f32 0.2, %v3927_v17  ;;  %v1748_v18 = vsel %vm1620_vm2, %v3911_v9, %v1684_v12  ;;  %v1749_v9 = vsel %vm1621_vm3, %v3915_v40, %v1685_v60 }
 0x2f0   :  { %5076 = vst [vmem:[#allocation25_spill] sm:$0xff] %v4172_v3  ;;  %v1689_v51 = vmul.f32 0.2, %v3931_v42  ;;  %v1690_v29 = vmul.f32 0.2, %v3935_v20  ;;  %vm1631_vm13 = vcmp.gt.f32.partialorder %v3955_v35, 0.0 }
 0x2f1   :  { %v1691_v7 = vmul.f32 0.2, %v3939_v28  ;;  %v1692_v50 = vmul.f32 0.2, %v3943_v1  ;;  %v4188_v3 = vmul.f32 0.2, %v3947_v16  ;;  %v1750_v40 = vsel %vm1622_vm4, %v3919_v63, %v1686_v23 }
 0x2f2   :  { %v4191_v53 = vmul.f32 0.2, %v3951_v41  ;;  %1811 = vst.msk [vmem:[%s4903_s4] sm:$0xff] %vm1076_vm0, %v1747_v36  ;;  %vm1632_vm14 = vcmp.gt.f32.partialorder %v3959_v56, 0.0  ;;  %v4202_v46 = vmul.f32 0.2, %v3955_v35  ;;  %v1751_v63 = vsel %vm1623_vm5, %v3923_v30, %v1687_v33 }
 0x2f3   :  { %v4205_v57 = vmul.f32 0.2, %v3959_v56  ;;  %v4208_v39 = vmul.f32 0.2, %v3963_v8  ;;  %1812 = vst.msk [vmem:[%s4903_s4 + $0x8] sm:$0xff] %vm1076_vm0, %v1748_v18  ;;  %vm1633_vm15 = vcmp.gt.f32.partialorder %v3963_v8, 0.0  ;;  %v1752_v30 = vsel %vm1624_vm6, %v3927_v17, %v1688_v61 }
 0x2f4   :  { %v4219_v12 = vmul.f32 0.2, %v3967_v55  ;;  %v4222_v36 = vmul.f32 0.2, %v3971_v14  ;;  %v4225_v6 = vmul.f32 0.2, %v3975_v26  ;;  %v1753_v17 = vsel %vm1625_vm7, %v3931_v42, %v1689_v51 }
 0x2f5   :  { %1813 = vst.msk [vmem:[%s4903_s4 + $0x10] sm:$0xff] %vm1076_vm0, %v1749_v9  ;;  %vm1634_vm1 = vcmp.gt.f32.partialorder %v3967_v55, 0.0  ;;  %v4236_v18 = vmul.f32 0.2, %v3979_v44  ;;  %v4239_v60 = vmul.f32 0.2, %v3983_v58  ;;  %v1754_v42 = vsel %vm1626_vm8, %v3935_v20, %v1690_v29 }
 0x2f6   :  { %5077 = vst [vmem:[#allocation26_spill] sm:$0xff] %v4222_v36  ;;  %v4242_v36 = vmul.f32 0.2, %v3987_v4  ;;  %1814 = vst.msk [vmem:[%s4903_s4 + $0x18] sm:$0xff] %vm1076_vm0, %v1750_v40  ;;  %vm1635_vm2 = vcmp.gt.f32.partialorder %v3971_v14, 0.0  ;;  %vm1636_vm3 = vcmp.gt.f32.partialorder %v3975_v26, 0.0  ;;  %v1755_v20 = vsel %vm1627_vm9, %v3939_v28, %v1691_v7 }
 0x2f7   :  { %5078 = vst [vmem:[#allocation17_spill] sm:$0xff] %v4239_v60  ;;  %v4253_v23 = vmul.f32 0.2, %v3991_v15  ;;  %v4256_v9 = vmul.f32 0.2, %v3995_v21  ;;  %1815 = vst.msk [vmem:[%s4903_s4 + $0x20] sm:$0xff] %vm1076_vm0, %v1751_v63  ;;  %v1756_v7 = vsel %vm1628_vm10, %v3943_v1, %v1692_v50  ;;  %v1757_v50 = vsel %vm1629_vm11, %v3947_v16, %v4188_v3 }
 0x2f8   :  { %v4259_v60 = vmul.f32 0.2, %v3999_v27  ;;  %v4270_v33 = vmul.f32 0.2, %v4003_v32  ;;  %v4273_v40 = vmul.f32 0.2, %v4007_v38  ;;  %v1758_v3 = vsel %vm1630_vm12, %v3951_v41, %v4191_v53 }
 0x2f9   :  { %5079 = vst [vmem:[#allocation18_spill] sm:$0xff] %v4256_v9  ;;  %v4276_v9 = vmul.f32 0.2, %v4011_v43  ;;  %1816 = vst.msk [vmem:[%s4903_s4 + $0x28] sm:$0xff] %vm1076_vm0, %v1752_v30  ;;  %vm1637_vm4 = vcmp.gt.f32.partialorder %v3979_v44, 0.0  ;;  %vm1641_vm8 = vcmp.gt.f32.partialorder %v3995_v21, 0.0  ;;  %v1759_v53 = vsel %vm1631_vm13, %v3955_v35, %v4202_v46 }
 0x2fa   :  { %5080 = vst [vmem:[#allocation19_spill] sm:$0xff] %v4273_v40  ;;  %v4287_v61 = vmul.f32 0.2, %v4015_v49  ;;  %v4290_v63 = vmul.f32 0.2, %v4019_v54  ;;  %1817 = vst.msk [vmem:[%s4903_s4 + $0x30] sm:$0xff] %vm1076_vm0, %v1753_v17 }
 0x2fb   :  { %v4293_v40 = vmul.f32 0.2, %v4023_v5  ;;  %v4306_v51 = vmul.f32 0.2, %v4027_v11  ;;  %v4309_v30 = vmul.f32 0.2, %v4031_v24 }
 0x2fc   :  { %1818 = vst.msk [vmem:[%s4903_s4 + $0x38] sm:$0xff] %vm1076_vm0, %v1754_v42  ;;  %v4326_v29 = vmul.f32 0.2, %v4039_v45  ;;  %v4329_v17 = vmul.f32 0.2, %v4043_v52  ;;  %1819 = vst.msk [vmem:[%s4903_s4 + $0x40] sm:$0xff] %vm1076_vm0, %v1755_v20 }
 0x2fd   :  { %5081 = vst [vmem:[#allocation20_spill] sm:$0xff] %v4293_v40  ;;  %v4312_v40 = vmul.f32 0.2, %v4035_v31  ;;  %v4332_v28 = vmul.f32 0.2, %v4047_v2  ;;  %vm1645_vm9 = vcmp.gt.f32.partialorder %v4011_v43, 0.0 }
 0x2fe   :  { %v4346_v42 = vmul.f32 0.2, %v4051_v10  ;;  %v4352_v1 = vmul.f32 0.2, %v4059_v34  ;;  %1820 = vst.msk [vmem:[%s4903_s4 + $0x48] sm:$0xff] %vm1076_vm0, %v1756_v7  ;;  %vm1649_vm10 = vcmp.gt.f32.partialorder %v4027_v11, 0.0 }
 0x2ff   :  { %5082 = vst [vmem:[#allocation2_spill] sm:$0xff] %v4332_v28  ;;  %v4349_v28 = vmul.f32 0.2, %v4055_v25  ;;  %v4367_v20 = vmul.f32 0.2, %v4063_v48  ;;  %1821 = vst.msk [vmem:[%s4903_s4 + $0x50] sm:$0xff] %vm1076_vm0, %v1757_v50 }
 0x300   :  { %5083 = vst [vmem:[#allocation3_spill] sm:$0xff] %v4352_v1  ;;  %v4370_v1 = vmul.f32 0.2, %v4067_v59  ;;  %v4373_v16 = vmul.f32 0.2, %v4071_v19  ;;  %vm1653_vm11 = vcmp.gt.f32.partialorder %v4043_v52, 0.0 }
 0x301   :  { %v4388_v7 = vmul.f32 0.2, %v4075_v37  ;;  %v4394_v41 = vmul.f32 0.2, %v4083_v62  ;;  %1822 = vst.msk [vmem:[%s4903_s4 + $0x58] sm:$0xff] %vm1076_vm0, %v1758_v3  ;;  %vm1657_vm12 = vcmp.gt.f32.partialorder %v4059_v34, 0.0  ;;  %v1760_v3 = vsel %vm1632_vm14, %v3959_v56, %v4205_v57 }
 0x302   :  { %5084 = vst [vmem:[#allocation4_spill] sm:$0xff] %v4373_v16  ;;  %v4391_v16 = vmul.f32 0.2, %v4079_v47  ;;  %v4409_v50 = vmul.f32 0.2, %v4087_v13  ;;  %v5091_v35 = vld [vmem:[#allocation6_spill] sm:$0xff] }
 0x303   :  { %5085 = vst [vmem:[#allocation27_spill] sm:$0xff] %v4388_v7  ;;  %5087 = vst [vmem:[#allocation29_spill] sm:$0xff] %v4394_v41  ;;  %v5089_v41 = vld [vmem:[#allocation5_spill] sm:$0xff]  ;;  %v4415_v46 = vmul.f32 0.2, %v5091_v35  ;;  %vm1661_vm13 = vcmp.gt.f32.partialorder %v4075_v37, 0.0 }
 0x304   :  { %5086 = vst [vmem:[#allocation28_spill] sm:$0xff] %v4391_v16  ;;  %5088 = vst [vmem:[#allocation30_spill] sm:$0xff] %v4409_v50  ;;  %v4412_v16 = vmul.f32 0.2, %v5089_v41  ;;  %v5095_v50 = vld [vmem:[#allocation8_spill] sm:$0xff]  ;;  %v5097_v56 = vld [vmem:[#allocation9_spill] sm:$0xff] }
 0x305   :  { %5092 = vst [vmem:[#allocation6_spill] sm:$0xff] %v4415_v46  ;;  %1823 = vst.msk [vmem:[%s4903_s4 + $0x60] sm:$0xff] %vm1076_vm0, %v1759_v53  ;;  %v4433_v7 = vmul.f32 0.2, %v5095_v50  ;;  %v4436_v57 = vmul.f32 0.2, %v5097_v56  ;;  %v1761_v53 = vsel %vm1633_vm15, %v3963_v8, %v4208_v39  ;;  %v1762_v39 = vsel %vm1634_vm1, %v3967_v55, %v4219_v12 }
 0x306   :  { %5090 = vst [vmem:[#allocation5_spill] sm:$0xff] %v4412_v16  ;;  %v5093_v16 = vld [vmem:[#allocation7_spill] sm:$0xff]  ;;  %1824 = vst.msk [vmem:[%s4903_s4 + $0x68] sm:$0xff] %vm1076_vm0, %v1760_v3  ;;  %vm1665_vm14 = vcmp.gt.f32.partialorder %v5089_v41, 0.0  ;;  %v4457_v8 = vmul.f32 0.2, %v4119_v22 }
 0x307   :  { %v4430_v46 = vmul.f32 0.2, %v5093_v16  ;;  %5096 = vst [vmem:[#allocation31_spill] sm:$0xff] %v4433_v7  ;;  %5098 = vst [vmem:[#allocation9_spill] sm:$0xff] %v4436_v57  ;;  %v5099_v7 = vld [vmem:[#allocation10_spill] sm:$0xff]  ;;  %vm1669_vm15 = vcmp.gt.f32.partialorder %v5097_v56, 0.0 }
 0x308   :  { %v4451_v57 = vmul.f32 0.2, %v5099_v7  ;;  %5102 = vst [vmem:[#allocation33_spill] sm:$0xff] %v4457_v8  ;;  %1825 = vst.msk [vmem:[%s4903_s4 + $0x70] sm:$0xff] %vm1076_vm0, %v1761_v53  ;;  %v5103_v3 = vld [vmem:[#allocation12_spill] sm:$0xff]  ;;  %v5107_v55 = vld [vmem:[#allocation14_spill] sm:$0xff] }
 0x309   :  { %5094 = vst [vmem:[#allocation7_spill] sm:$0xff] %v4430_v46  ;;  %v4454_v46 = vmul.f32 0.2, %v4115_v0  ;;  %v4472_v8 = vmul.f32 0.2, %v5103_v3  ;;  %v5109_v50 = vld [vmem:[#allocation26_spill] sm:$0xff] }
 0x30a   :  { %5100 = vst [vmem:[#allocation10_spill] sm:$0xff] %v4451_v57  ;;  %v4478_v12 = vmul.f32 0.2, %v5107_v55  ;;  %v1763_v53 = vsel %vm1635_vm2, %v3971_v14, %v5109_v50  ;;  %1826 = vst.msk [vmem:[%s4903_s4 + $0x78] sm:$0xff] %vm1076_vm0, %v1762_v39  ;;  %vm1673_vm1 = vcmp.gt.f32.partialorder %v5103_v3, 0.0  ;;  %v5114_v14 = vld [vmem:[#allocation21_spill] sm:$0xff]  ;;  %v1764_v39 = vsel %vm1636_vm3, %v3975_v26, %v4225_v6 }
 0x30b   :  { %5101 = vst [vmem:[#allocation32_spill] sm:$0xff] %v4454_v46  ;;  %5104 = vst [vmem:[#allocation12_spill] sm:$0xff] %v4472_v8  ;;  %v5105_v46 = vld [vmem:[#allocation13_spill] sm:$0xff]  ;;  %v5112_v8 = vld [vmem:[#allocation16_spill] sm:$0xff]  ;;  %v4499_v50 = vmul.f32 0.2, %v5114_v14 }
 0x30c   :  { %v4475_v57 = vmul.f32 0.2, %v5105_v46  ;;  %5108 = vst [vmem:[#allocation14_spill] sm:$0xff] %v4478_v12  ;;  %v4496_v22 = vmul.f32 0.2, %v5112_v8  ;;  %1827 = vst.msk [vmem:[%s4903_s4 + $0x80] sm:$0xff] %vm1076_vm0, %v1763_v53  ;;  %v1765_v53 = vsel %vm1637_vm4, %v3979_v44, %v4236_v18 }
 0x30d   :  { %5115 = vst [vmem:[#allocation21_spill] sm:$0xff] %v4499_v50  ;;  %vm1677_vm2 = vcmp.gt.f32.partialorder %v5112_v8, 0.0  ;;  %v5119_v26 = vld [vmem:[#allocation24_spill] sm:$0xff]  ;;  %1828 = vst.msk [vmem:[%s4903_s4 + $0x88] sm:$0xff] %vm1076_vm0, %v1764_v39  ;;  %vm5123_vm6 = vcmp.gt.f32.partialorder %v3983_v58, 0.0  ;;  %vm5124_vm4 = vcmp.gt.f32.partialorder %v3987_v4, 0.0 }
 0x30e   :  { %5106 = vst [vmem:[#allocation13_spill] sm:$0xff] %v4475_v57  ;;  %v5110_v57 = vld [vmem:[#allocation15_spill] sm:$0xff]  ;;  %5113 = vst [vmem:[#allocation16_spill] sm:$0xff] %v4496_v22  ;;  %v4520_v6 = vmul.f32 0.2, %v5119_v26  ;;  %vm1681_vm3 = vcmp.gt.f32.partialorder %v5119_v26, 0.0  ;;  %v1767_v44 = vsel %vm5124_vm4, %v3987_v4, %v4242_v36 }
 0x30f   :  { %v4493_v12 = vmul.f32 0.2, %v5110_v57  ;;  %v5116_v57 = vld [vmem:[#allocation22_spill] sm:$0xff]  ;;  %v5117_v22 = vld [vmem:[#allocation23_spill] sm:$0xff]  ;;  %vm5125_vm5 = vcmp.gt.f32.partialorder %v3991_v15, 0.0  ;;  %1829 = vst.msk [vmem:[%s4903_s4 + $0x90] sm:$0xff] %vm1076_vm0, %v1765_v53 }
 0x310   :  { %v4514_v50 = vmul.f32 0.2, %v5116_v57  ;;  %5120 = vst [vmem:[#allocation24_spill] sm:$0xff] %v4520_v6  ;;  %v5121_v57 = vld [vmem:[#allocation25_spill] sm:$0xff]  ;;  %v1768_v18 = vsel %vm5125_vm5, %v3991_v15, %v4253_v23  ;;  %v5126_v39 = vld [vmem:[#allocation18_spill] sm:$0xff]  ;;  %vm5128_vm4 = vcmp.gt.f32.partialorder %v4003_v32, 0.0 }
 0x311   :  { %5111 = vst [vmem:[#allocation26_spill] sm:$0xff] %v4493_v12  ;;  %v4517_v12 = vmul.f32 0.2, %v5117_v22  ;;  %vm1682_vm7 = vcmp.gt.f32.partialorder %v5121_v57, 0.0  ;;  %v4533_v22 = vmul.f32 0.2, %v5121_v57  ;;  %v1771_v15 = vsel %vm5128_vm4, %v4003_v32, %v4270_v33 }
 0x312   :  { %v5129_v36 = vld [vmem:[#allocation19_spill] sm:$0xff]  ;;  %vm5130_vm5 = vcmp.gt.f32.partialorder %v4007_v38, 0.0  ;;  %1831 = vst.msk [vmem:[%s4903_s4 + $0xa0] sm:$0xff] %vm1076_vm0, %v1767_v44  ;;  %1832 = vst.msk [vmem:[%s4903_s4 + $0xa8] sm:$0xff] %vm1076_vm0, %v1768_v18  ;;  %vm5134_vm4 = vcmp.gt.f32.partialorder %v4023_v5, 0.0  ;;  %v5145_v33 = vld [vmem:[#allocation4_spill] sm:$0xff] }
 0x313   :  { %5118 = vst [vmem:[#allocation34_spill] sm:$0xff] %v4517_v12  ;;  %v5122_v12 = vld [vmem:[#allocation17_spill] sm:$0xff]  ;;  %v1772_v23 = vsel %vm5130_vm5, %v4007_v38, %v5129_v36  ;;  %v5133_v38 = vld [vmem:[#allocation20_spill] sm:$0xff]  ;;  %1835 = vst.msk [vmem:[%s4903_s4 + $0xc0] sm:$0xff] %vm1076_vm0, %v1771_v15  ;;  %vm5136_vm5 = vcmp.gt.f32.partialorder %v4035_v31, 0.0 }
 0x314   :  { %v1766_v6 = vsel %vm5123_vm6, %v3983_v58, %v5122_v12  ;;  %v1769_v58 = vsel %vm1641_vm8, %v3995_v21, %v5126_v39  ;;  %vm5127_vm6 = vcmp.gt.f32.partialorder %v3999_v27, 0.0  ;;  %v1773_v21 = vsel %vm1645_vm9, %v4011_v43, %v4276_v9  ;;  %1836 = vst.msk [vmem:[%s4903_s4 + $0xc8] sm:$0xff] %vm1076_vm0, %v1772_v23  ;;  %v5165_v12 = vld [vmem:[#allocation32_spill] sm:$0xff]  ;;  %v5167_v53 = vld [vmem:[#allocation33_spill] sm:$0xff]  ;;  %v5168_v44 = vld [vmem:[#allocation11_spill] sm:$0xff] }
 0x315   :  { %v1770_v4 = vsel %vm5127_vm6, %v3999_v27, %v4259_v60  ;;  %1830 = vst.msk [vmem:[%s4903_s4 + $0x98] sm:$0xff] %vm1076_vm0, %v1766_v6  ;;  %vm5131_vm8 = vcmp.gt.f32.partialorder %v4015_v49, 0.0  ;;  %vm5132_vm6 = vcmp.gt.f32.partialorder %v4019_v54, 0.0  ;;  %v1776_v60 = vsel %vm5134_vm4, %v4023_v5, %v5133_v38  ;;  %1833 = vst.msk [vmem:[%s4903_s4 + $0xb0] sm:$0xff] %vm1076_vm0, %v1769_v58  ;;  %v5173_v58 = vld [vmem:[#allocation14_spill] sm:$0xff]  ;;  %v5176_v36 = vld [vmem:[#allocation15_spill] sm:$0xff] }
 0x316   :  { %v1774_v27 = vsel %vm5131_vm8, %v4015_v49, %v4287_v61  ;;  %v1775_v32 = vsel %vm5132_vm6, %v4019_v54, %v4290_v63  ;;  %1834 = vst.msk [vmem:[%s4903_s4 + $0xb8] sm:$0xff] %vm1076_vm0, %v1770_v4  ;;  %v1777_v43 = vsel %vm1649_vm10, %v4027_v11, %v4306_v51  ;;  %vm5135_vm9 = vcmp.gt.f32.partialorder %v4031_v24, 0.0  ;;  %1837 = vst.msk [vmem:[%s4903_s4 + $0xd0] sm:$0xff] %vm1076_vm0, %v1773_v21  ;;  %v5150_v61 = vld [vmem:[#allocation29_spill] sm:$0xff]  ;;  %v5152_v51 = vld [vmem:[#allocation30_spill] sm:$0xff] }
 0x317   :  { %v1778_v49 = vsel %vm5135_vm9, %v4031_v24, %v4309_v30  ;;  %v1779_v54 = vsel %vm5136_vm5, %v4035_v31, %v4312_v40  ;;  %vm5137_vm8 = vcmp.gt.f32.partialorder %v4039_v45, 0.0  ;;  %1838 = vst.msk [vmem:[%s4903_s4 + $0xd8] sm:$0xff] %vm1076_vm0, %v1774_v27  ;;  %1839 = vst.msk [vmem:[%s4903_s4 + $0xe0] sm:$0xff] %vm1076_vm0, %v1775_v32  ;;  %v1781_v11 = vsel %vm1653_vm11, %v4043_v52, %v4329_v17  ;;  %v5138_v24 = vld [vmem:[#allocation2_spill] sm:$0xff]  ;;  %v5142_v52 = vld [vmem:[#allocation3_spill] sm:$0xff] }
 0x318   :  { %v1780_v5 = vsel %vm5137_vm8, %v4039_v45, %v4326_v29  ;;  %1840 = vst.msk [vmem:[%s4903_s4 + $0xe8] sm:$0xff] %vm1076_vm0, %v1776_v60  ;;  %vm5139_vm10 = vcmp.gt.f32.partialorder %v4047_v2, 0.0  ;;  %vm5140_vm6 = vcmp.gt.f32.partialorder %v4051_v10, 0.0  ;;  %vm5141_vm4 = vcmp.gt.f32.partialorder %v4055_v25, 0.0  ;;  %1841 = vst.msk [vmem:[%s4903_s4 + $0xf0] sm:$0xff] %vm1076_vm0, %v1777_v43  ;;  %v5157_v29 = vld [vmem:[#allocation7_spill] sm:$0xff] }
 0x319   :  { %v1782_v31 = vsel %vm5139_vm10, %v4047_v2, %v5138_v24  ;;  %v1783_v45 = vsel %vm5140_vm6, %v4051_v10, %v4346_v42  ;;  %v1784_v9 = vsel %vm5141_vm4, %v4055_v25, %v4349_v28  ;;  %1842 = vst.msk [vmem:[%s4903_s4 + $0xf8] sm:$0xff] %vm1076_vm0, %v1778_v49  ;;  %1843 = vst.msk [vmem:[%s4903_s4 + $0x100] sm:$0xff] %vm1076_vm0, %v1779_v54  ;;  %vm5143_vm11 = vcmp.gt.f32.partialorder %v4063_v48, 0.0  ;;  %v5159_v28 = vld [vmem:[#allocation31_spill] sm:$0xff]  ;;  %v5160_v42 = vld [vmem:[#allocation8_spill] sm:$0xff] }
 0x31a   :  { %1844 = vst.msk [vmem:[%s4903_s4 + $0x108] sm:$0xff] %vm1076_vm0, %v1780_v5  ;;  %v1785_v2 = vsel %vm1657_vm12, %v4059_v34, %v5142_v52  ;;  %v1786_v10 = vsel %vm5143_vm11, %v4063_v48, %v4367_v20  ;;  %vm5144_vm9 = vcmp.gt.f32.partialorder %v4067_v59, 0.0  ;;  %vm5146_vm5 = vcmp.gt.f32.partialorder %v4071_v19, 0.0  ;;  %1845 = vst.msk [vmem:[%s4903_s4 + $0x110] sm:$0xff] %vm1076_vm0, %v1781_v11  ;;  %v5147_v34 = vld [vmem:[#allocation27_spill] sm:$0xff]  ;;  %v5162_v20 = vld [vmem:[#allocation9_spill] sm:$0xff] }
 0x31b   :  { %v1787_v25 = vsel %vm5144_vm9, %v4067_v59, %v4370_v1  ;;  %v1788_v40 = vsel %vm5146_vm5, %v4071_v19, %v5145_v33  ;;  %1846 = vst.msk [vmem:[%s4903_s4 + $0x118] sm:$0xff] %vm1076_vm0, %v1782_v31  ;;  %1847 = vst.msk [vmem:[%s4903_s4 + $0x120] sm:$0xff] %vm1076_vm0, %v1783_v45  ;;  %v1789_v48 = vsel %vm1661_vm13, %v4075_v37, %v5147_v34  ;;  %v5148_v59 = vld [vmem:[#allocation28_spill] sm:$0xff]  ;;  %vm5149_vm12 = vcmp.gt.f32.partialorder %v4079_v47, 0.0  ;;  %v5154_v37 = vld [vmem:[#allocation5_spill] sm:$0xff] }
 0x31c   :  { %1848 = vst.msk [vmem:[%s4903_s4 + $0x128] sm:$0xff] %vm1076_vm0, %v1784_v9  ;;  %v1790_v19 = vsel %vm5149_vm12, %v4079_v47, %v5148_v59  ;;  %vm5151_vm8 = vcmp.gt.f32.partialorder %v4083_v62, 0.0  ;;  %vm5153_vm10 = vcmp.gt.f32.partialorder %v4087_v13, 0.0  ;;  %1849 = vst.msk [vmem:[%s4903_s4 + $0x130] sm:$0xff] %vm1076_vm0, %v1785_v2  ;;  %v1793_v47 = vsel %vm1665_vm14, %v5089_v41, %v5154_v37  ;;  %v5163_v41 = vld [vmem:[#allocation10_spill] sm:$0xff]  ;;  %v5184_v60 = vld [vmem:[#allocation23_spill] sm:$0xff] }
 0x31d   :  { %v1791_v63 = vsel %vm5151_vm8, %v4083_v62, %v5150_v61  ;;  %v1792_v30 = vsel %vm5153_vm10, %v4087_v13, %v5152_v51  ;;  %1850 = vst.msk [vmem:[%s4903_s4 + $0x138] sm:$0xff] %vm1076_vm0, %v1786_v10  ;;  %1851 = vst.msk [vmem:[%s4903_s4 + $0x140] sm:$0xff] %vm1076_vm0, %v1787_v25  ;;  %v5155_v62 = vld [vmem:[#allocation6_spill] sm:$0xff]  ;;  %vm5156_vm13 = vcmp.gt.f32.partialorder %v5091_v35, 0.0  ;;  %vm5158_vm6 = vcmp.gt.f32.partialorder %v5093_v16, 0.0 }
 0x31e   :  { %1852 = vst.msk [vmem:[%s4903_s4 + $0x148] sm:$0xff] %vm1076_vm0, %v1788_v40  ;;  %v1794_v13 = vsel %vm5156_vm13, %v5091_v35, %v5155_v62  ;;  %v1795_v17 = vsel %vm5158_vm6, %v5093_v16, %v5157_v29  ;;  %vm5161_vm4 = vcmp.gt.f32.partialorder %v5160_v42, 0.0  ;;  %1853 = vst.msk [vmem:[%s4903_s4 + $0x150] sm:$0xff] %vm1076_vm0, %v1789_v48  ;;  %v1797_v16 = vsel %vm1669_vm15, %v5097_v56, %v5162_v20  ;;  %v5171_v56 = vld [vmem:[#allocation13_spill] sm:$0xff]  ;;  %v5175_v15 = vld [vmem:[#allocation26_spill] sm:$0xff] }
 0x31f   :  { %v1796_v1 = vsel %vm5161_vm4, %v5160_v42, %v5159_v28  ;;  %1854 = vst.msk [vmem:[%s4903_s4 + $0x158] sm:$0xff] %vm1076_vm0, %v1790_v19  ;;  %1855 = vst.msk [vmem:[%s4903_s4 + $0x160] sm:$0xff] %vm1076_vm0, %v1791_v63  ;;  %vm5164_vm14 = vcmp.gt.f32.partialorder %v5099_v7, 0.0  ;;  %vm5166_vm11 = vcmp.gt.f32.partialorder %v4115_v0, 0.0  ;;  %vm5169_vm9 = vcmp.gt.f32.partialorder %v5168_v44, 0.0  ;;  %v5181_v27 = vld [vmem:[#allocation22_spill] sm:$0xff] }
 0x320   :  { %1856 = vst.msk [vmem:[%s4903_s4 + $0x168] sm:$0xff] %vm1076_vm0, %v1792_v30  ;;  %v1798_v35 = vsel %vm5164_vm14, %v5099_v7, %v5163_v41  ;;  %v1799_v6 = vsel %vm5166_vm11, %v4115_v0, %v5165_v12  ;;  %v1800_v18 = vsel %vm5169_vm9, %v5168_v44, %v5167_v53  ;;  %1857 = vst.msk [vmem:[%s4903_s4 + $0x170] sm:$0xff] %vm1076_vm0, %v1793_v47  ;;  %v5170_v0 = vld [vmem:[#allocation12_spill] sm:$0xff]  ;;  %vm5172_vm15 = vcmp.gt.f32.partialorder %v5105_v46, 0.0  ;;  %v5183_v38 = vld [vmem:[#allocation34_spill] sm:$0xff] }
 0x321   :  { %1858 = vst.msk [vmem:[%s4903_s4 + $0x178] sm:$0xff] %vm1076_vm0, %v1794_v13  ;;  %1859 = vst.msk [vmem:[%s4903_s4 + $0x180] sm:$0xff] %vm1076_vm0, %v1795_v17  ;;  %v1801_v7 = vsel %vm1673_vm1, %v5103_v3, %v5170_v0  ;;  %v1802_v39 = vsel %vm5172_vm15, %v5105_v46, %v5171_v56  ;;  %vm5174_vm5 = vcmp.gt.f32.partialorder %v5107_v55, 0.0  ;;  %vm5177_vm12 = vcmp.gt.f32.partialorder %v5176_v36, 0.0  ;;  %v5178_v46 = vld [vmem:[#allocation16_spill] sm:$0xff] }
 0x322   :  { %1860 = vst.msk [vmem:[%s4903_s4 + $0x188] sm:$0xff] %vm1076_vm0, %v1796_v1  ;;  %v1803_v4 = vsel %vm5174_vm5, %v5107_v55, %v5173_v58  ;;  %v1804_v23 = vsel %vm5177_vm12, %v5176_v36, %v5175_v15  ;;  %1861 = vst.msk [vmem:[%s4903_s4 + $0x190] sm:$0xff] %vm1076_vm0, %v1797_v16  ;;  %v1805_v3 = vsel %vm1677_vm2, %v5112_v8, %v5178_v46  ;;  %v5179_v55 = vld [vmem:[#allocation21_spill] sm:$0xff]  ;;  %vm5180_vm1 = vcmp.gt.f32.partialorder %v5114_v14, 0.0  ;;  %v5186_v8 = vld [vmem:[#allocation24_spill] sm:$0xff] }
 0x323   :  { %1862 = vst.msk [vmem:[%s4903_s4 + $0x198] sm:$0xff] %vm1076_vm0, %v1798_v35  ;;  %1863 = vst.msk [vmem:[%s4903_s4 + $0x1a0] sm:$0xff] %vm1076_vm0, %v1799_v6  ;;  %v1806_v21 = vsel %vm5180_vm1, %v5114_v14, %v5179_v55  ;;  %vm5182_vm8 = vcmp.gt.f32.partialorder %v5181_v27, 0.0  ;;  %vm5185_vm10 = vcmp.gt.f32.partialorder %v5184_v60, 0.0  ;;  %v1809_v14 = vsel %vm1681_vm3, %v5119_v26, %v5186_v8 }
 0x324   :  { %1864 = vst.msk [vmem:[%s4903_s4 + $0x1a8] sm:$0xff] %vm1076_vm0, %v1800_v18  ;;  %v1807_v32 = vsel %vm5182_vm8, %v5181_v27, %v4514_v50  ;;  %v1808_v43 = vsel %vm5185_vm10, %v5184_v60, %v5183_v38  ;;  %1865 = vst.msk [vmem:[%s4903_s4 + $0x1b0] sm:$0xff] %vm1076_vm0, %v1801_v7  ;;  %v1810_v50 = vsel %vm1682_vm7, %v5121_v57, %v4533_v22 }
 0x325   :  { %1866 = vst.msk [vmem:[%s4903_s4 + $0x1b8] sm:$0xff] %vm1076_vm0, %v1802_v39  ;;  %1867 = vst.msk [vmem:[%s4903_s4 + $0x1c0] sm:$0xff] %vm1076_vm0, %v1803_v4 }
 0x326   :  { %1868 = vst.msk [vmem:[%s4903_s4 + $0x1c8] sm:$0xff] %vm1076_vm0, %v1804_v23  ;;  %1869 = vst.msk [vmem:[%s4903_s4 + $0x1d0] sm:$0xff] %vm1076_vm0, %v1805_v3 }
 0x327   :  { %1870 = vst.msk [vmem:[%s4903_s4 + $0x1d8] sm:$0xff] %vm1076_vm0, %v1806_v21  ;;  %1871 = vst.msk [vmem:[%s4903_s4 + $0x1e0] sm:$0xff] %vm1076_vm0, %v1807_v32 }
 0x328   :  { %1872 = vst.msk [vmem:[%s4903_s4 + $0x1e8] sm:$0xff] %vm1076_vm0, %v1808_v43  ;;  %1873 = vst.msk [vmem:[%s4903_s4 + $0x1f0] sm:$0xff] %vm1076_vm0, %v1809_v14 }
 0x329   :  { %1874 = vst.msk [vmem:[%s4903_s4 + $0x1f8] sm:$0xff] %vm1076_vm0, %v1810_v50 }

// kernel: discriminator_forward.7
= control target key start
LH: loop header
LB: loop body
LE: loop exit
PB: predicated region body
PF: predicated region fallthrough
CT: control target
= control target key end

     0   :  { %s2274_s1 = inlined_call_operand.vmem [shape: f32[1024,128], index: 1, kind: input, shape index: {}]   ;;  %s2275_s0 = inlined_call_operand.vmem [shape: f32[128,1024], index: 0, kind: input, shape index: {}]   ;;  %s2276_s2 = inlined_call_operand.vmem [shape: f32[1,128], index: 2, kind: input, shape index: {}]   ;;  %s2277_s3 = inlined_call_operand.vmem [shape: f32[1,128], index: 3, kind: input, shape index: {}]   ;;  %s2278_s4 = inlined_call_operand.vmem [shape: f32[128,128], index: 4, kind: output, shape index: {}]  }
   0x1   :  { %v226_v0 = vld [vmem:[%s2274_s1 + $0x80] sm:$0xff]  ;;  %v227_v1 = vld [vmem:[%s2274_s1 + $0x88] sm:$0xff]  ;;  %v228_v11 = vld [vmem:[%s2274_s1 + $0x90] sm:$0xff] }
   0x2   :  { %v258_v2 = vld [vmem:[%s2274_s1 + $0x180] sm:$0xff]  ;;  %v346_v3 = vpack.c.bf16 %v227_v1, %v226_v0  ;;  %v259_v4 = vld [vmem:[%s2274_s1 + $0x188] sm:$0xff]  ;;  %v229_v13 = vld [vmem:[%s2274_s1 + $0x98] sm:$0xff] }
   0x3   :  { %v210_v5 = vld [vmem:[%s2274_s1] sm:$0xff]  ;;  %v211_v6 = vld [vmem:[%s2274_s1 + $0x8] sm:$0xff]  ;;  %v362_v7 = vpack.c.bf16 %v259_v4, %v258_v2  ;;  %v260_v14 = vld [vmem:[%s2274_s1 + $0x190] sm:$0xff]  ;;  %v347_v16 = vpack.c.bf16 %v229_v13, %v228_v11 }
   0x4   :  { %v338_v8 = vpack.c.bf16 %v211_v6, %v210_v5  ;;  %v242_v9 = vld [vmem:[%s2274_s1 + $0x100] sm:$0xff]  ;;  %v243_v10 = vld [vmem:[%s2274_s1 + $0x108] sm:$0xff]  ;;  %985 = vmatprep.subr.bf16.mxu0 %v346_v3  ;;  %v261_v15 = vld [vmem:[%s2274_s1 + $0x198] sm:$0xff] }
   0x5   :  { %v354_v12 = vpack.c.bf16 %v243_v10, %v242_v9  ;;  %1049 = vmatprep.subr.bf16.mxu1 %v362_v7  ;;  %v363_v17 = vpack.c.bf16 %v261_v15, %v260_v14  ;;  %v212_v18 = vld [vmem:[%s2274_s1 + $0x10] sm:$0xff]  ;;  %v213_v19 = vld [vmem:[%s2274_s1 + $0x18] sm:$0xff]  ;;  %v230_v23 = vld [vmem:[%s2274_s1 + $0xa0] sm:$0xff] }
   0x6   :  { %986 = vmatpush3.bf16.msra.mxu0 %v338_v8  ;;  %v244_v20 = vld [vmem:[%s2274_s1 + $0x110] sm:$0xff]  ;;  %v339_v21 = vpack.c.bf16 %v213_v19, %v212_v18  ;;  %v245_v22 = vld [vmem:[%s2274_s1 + $0x118] sm:$0xff]  ;;  %v231_v24 = vld [vmem:[%s2274_s1 + $0xa8] sm:$0xff] }
   0x7   :  { %1050 = vmatpush3.bf16.msra.mxu1 %v354_v12  ;;  %987 = vmatprep.subr.bf16.mxu0 %v347_v16  ;;  %v355_v25 = vpack.c.bf16 %v245_v22, %v244_v20  ;;  %v348_v26 = vpack.c.bf16 %v231_v24, %v230_v23  ;;  %v262_v27 = vld [vmem:[%s2274_s1 + $0x1a0] sm:$0xff]  ;;  %v263_v28 = vld [vmem:[%s2274_s1 + $0x1a8] sm:$0xff]  ;;  %v232_v35 = vld [vmem:[%s2274_s1 + $0xb0] sm:$0xff] }
   0x8   :  { %1051 = vmatprep.subr.bf16.mxu1 %v363_v17  ;;  %v214_v29 = vld [vmem:[%s2274_s1 + $0x20] sm:$0xff]  ;;  %v364_v30 = vpack.c.bf16 %v263_v28, %v262_v27  ;;  %v215_v31 = vld [vmem:[%s2274_s1 + $0x28] sm:$0xff]  ;;  %v233_v36 = vld [vmem:[%s2274_s1 + $0xb8] sm:$0xff] }
   0x9   :  { %v246_v32 = vld [vmem:[%s2274_s1 + $0x120] sm:$0xff]  ;;  %v247_v33 = vld [vmem:[%s2274_s1 + $0x128] sm:$0xff]  ;;  %v340_v34 = vpack.c.bf16 %v215_v31, %v214_v29  ;;  %v264_v37 = vld [vmem:[%s2274_s1 + $0x1b0] sm:$0xff]  ;;  %v349_v39 = vpack.c.bf16 %v233_v36, %v232_v35 }
   0xa   :  { %988 = vmatpush3.bf16.msra.mxu0 %v339_v21  ;;  %v356_v38 = vpack.c.bf16 %v247_v33, %v246_v32  ;;  %v265_v40 = vld [vmem:[%s2274_s1 + $0x1b8] sm:$0xff]  ;;  %v216_v41 = vld [vmem:[%s2274_s1 + $0x30] sm:$0xff]  ;;  %v234_v46 = vld [vmem:[%s2274_s1 + $0xc0] sm:$0xff] }
   0xb   :  { %1052 = vmatpush3.bf16.msra.mxu1 %v355_v25  ;;  %989 = vmatprep.subr.bf16.mxu0 %v348_v26  ;;  %v217_v42 = vld [vmem:[%s2274_s1 + $0x38] sm:$0xff]  ;;  %v365_v43 = vpack.c.bf16 %v265_v40, %v264_v37  ;;  %v248_v44 = vld [vmem:[%s2274_s1 + $0x130] sm:$0xff]  ;;  %v235_v47 = vld [vmem:[%s2274_s1 + $0xc8] sm:$0xff] }
   0xc   :  { %1053 = vmatprep.subr.bf16.mxu1 %v364_v30  ;;  %v249_v45 = vld [vmem:[%s2274_s1 + $0x138] sm:$0xff]  ;;  %v266_v48 = vld [vmem:[%s2274_s1 + $0x1c0] sm:$0xff]  ;;  %v267_v49 = vld [vmem:[%s2274_s1 + $0x1c8] sm:$0xff]  ;;  %v341_v50 = vpack.c.bf16 %v217_v42, %v216_v41  ;;  %v350_v52 = vpack.c.bf16 %v235_v47, %v234_v46 }
   0xd   :  { %v357_v51 = vpack.c.bf16 %v249_v45, %v248_v44  ;;  %v218_v53 = vld [vmem:[%s2274_s1 + $0x40] sm:$0xff]  ;;  %v219_v54 = vld [vmem:[%s2274_s1 + $0x48] sm:$0xff]  ;;  %v366_v56 = vpack.c.bf16 %v267_v49, %v266_v48  ;;  %v236_v58 = vld [vmem:[%s2274_s1 + $0xd0] sm:$0xff] }
   0xe   :  { %990 = vmatpush3.bf16.msra.mxu0 %v340_v34  ;;  %v250_v55 = vld [vmem:[%s2274_s1 + $0x140] sm:$0xff]  ;;  %v251_v57 = vld [vmem:[%s2274_s1 + $0x148] sm:$0xff]  ;;  %v237_v59 = vld [vmem:[%s2274_s1 + $0xd8] sm:$0xff]  ;;  %v342_v62 = vpack.c.bf16 %v219_v54, %v218_v53 }
   0xf   :  { %1054 = vmatpush3.bf16.msra.mxu1 %v356_v38  ;;  %991 = vmatprep.subr.bf16.mxu0 %v349_v39  ;;  %v268_v60 = vld [vmem:[%s2274_s1 + $0x1d0] sm:$0xff]  ;;  %v269_v61 = vld [vmem:[%s2274_s1 + $0x1d8] sm:$0xff]  ;;  %v358_v63 = vpack.c.bf16 %v251_v57, %v250_v55  ;;  %v351_v0 = vpack.c.bf16 %v237_v59, %v236_v58  ;;  %v238_v6 = vld [vmem:[%s2274_s1 + $0xe0] sm:$0xff] }
  0x10   :  { %1055 = vmatprep.subr.bf16.mxu1 %v365_v43  ;;  %v220_v1 = vld [vmem:[%s2274_s1 + $0x50] sm:$0xff]  ;;  %v221_v2 = vld [vmem:[%s2274_s1 + $0x58] sm:$0xff]  ;;  %v367_v4 = vpack.c.bf16 %v269_v61, %v268_v60  ;;  %v239_v7 = vld [vmem:[%s2274_s1 + $0xe8] sm:$0xff] }
  0x11   :  { %v252_v3 = vld [vmem:[%s2274_s1 + $0x150] sm:$0xff]  ;;  %v253_v5 = vld [vmem:[%s2274_s1 + $0x158] sm:$0xff]  ;;  %v270_v8 = vld [vmem:[%s2274_s1 + $0x1e0] sm:$0xff]  ;;  %v343_v11 = vpack.c.bf16 %v221_v2, %v220_v1  ;;  %v352_v16 = vpack.c.bf16 %v239_v7, %v238_v6 }
  0x12   :  { %992 = vmatpush3.bf16.msra.mxu0 %v341_v50  ;;  %v271_v9 = vld [vmem:[%s2274_s1 + $0x1e8] sm:$0xff]  ;;  %v222_v10 = vld [vmem:[%s2274_s1 + $0x60] sm:$0xff]  ;;  %v359_v15 = vpack.c.bf16 %v253_v5, %v252_v3  ;;  %v240_v17 = vld [vmem:[%s2274_s1 + $0xf0] sm:$0xff] }
  0x13   :  { %1056 = vmatpush3.bf16.msra.mxu1 %v357_v51  ;;  %993 = vmatprep.subr.bf16.mxu0 %v350_v52  ;;  %v223_v12 = vld [vmem:[%s2274_s1 + $0x68] sm:$0xff]  ;;  %v254_v13 = vld [vmem:[%s2274_s1 + $0x160] sm:$0xff]  ;;  %v368_v20 = vpack.c.bf16 %v271_v9, %v270_v8  ;;  %v241_v21 = vld [vmem:[%s2274_s1 + $0xf8] sm:$0xff] }
  0x14   :  { %1057 = vmatprep.subr.bf16.mxu1 %v366_v56  ;;  %v255_v14 = vld [vmem:[%s2274_s1 + $0x168] sm:$0xff]  ;;  %v21_v23 = vld [vmem:[%s2275_s0 + $0x18] sm:$0xff]  ;;  %v272_v25 = vld [vmem:[%s2274_s1 + $0x1f0] sm:$0xff]  ;;  %v344_v28 = vpack.c.bf16 %v223_v12, %v222_v10  ;;  %v353_v31 = vpack.c.bf16 %v241_v21, %v240_v17 }
  0x15   :  { %v19_v18 = vld [vmem:[%s2275_s0 + $0x8] sm:$0xff]  ;;  %v29_v24 = vld [vmem:[%s2275_s0 + $0x58] sm:$0xff]  ;;  %v224_v29 = vld [vmem:[%s2274_s1 + $0x70] sm:$0xff]  ;;  %v360_v30 = vpack.c.bf16 %v255_v14, %v254_v13 }
  0x16   :  { %994 = vmatpush3.bf16.msra.mxu0 %v342_v62  ;;  %v27_v19 = vld [vmem:[%s2275_s0 + $0x48] sm:$0xff]  ;;  %v273_v26 = vld [vmem:[%s2274_s1 + $0x1f8] sm:$0xff]  ;;  %v149_v27 = vpack.c.bf16 %v29_v24, %v21_v23  ;;  %v256_v33 = vld [vmem:[%s2274_s1 + $0x170] sm:$0xff] }
  0x17   :  { %1058 = vmatpush3.bf16.msra.mxu1 %v358_v63  ;;  %995 = vmatprep.subr.bf16.mxu0 %v351_v0  ;;  %v147_v22 = vpack.c.bf16 %v27_v19, %v19_v18  ;;  %v225_v32 = vld [vmem:[%s2274_s1 + $0x78] sm:$0xff]  ;;  %v369_v35 = vpack.c.bf16 %v273_v26, %v272_v25  ;;  %v18_v36 = vld [vmem:[%s2275_s0] sm:$0xff]  ;;  %v291_v38 = vld [vmem:[%s2274_s1 + $0x288] sm:$0xff] }
  0x18   :  { %1059 = vmatprep.subr.bf16.mxu1 %v367_v4  ;;  %v257_v34 = vld [vmem:[%s2274_s1 + $0x178] sm:$0xff]  ;;  %531 = vmatprep.mubr.bf16.mxu1 %v149_v27  ;;  %v290_v37 = vld [vmem:[%s2274_s1 + $0x280] sm:$0xff]  ;;  %v323_v41 = vld [vmem:[%s2274_s1 + $0x388] sm:$0xff]  ;;  %v345_v42 = vpack.c.bf16 %v225_v32, %v224_v29 }
  0x19   :  { %434 = vmatprep.mubr.bf16.mxu0 %v147_v22  ;;  %v26_v39 = vld [vmem:[%s2275_s0 + $0x40] sm:$0xff]  ;;  %v20_v43 = vld [vmem:[%s2275_s0 + $0x10] sm:$0xff]  ;;  %v361_v46 = vpack.c.bf16 %v257_v34, %v256_v33  ;;  %v378_v47 = vpack.c.bf16 %v291_v38, %v290_v37  ;;  %v275_v48 = vld [vmem:[%s2274_s1 + $0x208] sm:$0xff] }
  0x1a   :  { %996 = vmatpush3.bf16.msra.mxu0 %v343_v11  ;;  %v322_v40 = vld [vmem:[%s2274_s1 + $0x380] sm:$0xff]  ;;  %v28_v44 = vld [vmem:[%s2275_s0 + $0x50] sm:$0xff]  ;;  %v307_v50 = vld [vmem:[%s2274_s1 + $0x308] sm:$0xff]  ;;  %v146_v55 = vpack.c.bf16 %v26_v39, %v18_v36 }
  0x1b   :  { %1060 = vmatpush3.bf16.msra.mxu1 %v359_v15  ;;  %997 = vmatprep.subr.bf16.mxu0 %v352_v16  ;;  %v274_v45 = vld [vmem:[%s2274_s1 + $0x200] sm:$0xff]  ;;  %v394_v51 = vpack.c.bf16 %v323_v41, %v322_v40  ;;  %v35_v52 = vld [vmem:[%s2275_s0 + $0x88] sm:$0xff]  ;;  %v37_v54 = vld [vmem:[%s2275_s0 + $0x98] sm:$0xff]  ;;  %v148_v59 = vpack.c.bf16 %v28_v44, %v20_v43 }
  0x1c   :  { %1061 = vmatprep.subr.bf16.mxu1 %v368_v20  ;;  %v306_v49 = vld [vmem:[%s2274_s1 + $0x300] sm:$0xff]  ;;  %v43_v53 = vld [vmem:[%s2275_s0 + $0xc8] sm:$0xff]  ;;  %v45_v56 = vld [vmem:[%s2275_s0 + $0xd8] sm:$0xff]  ;;  %v370_v60 = vpack.c.bf16 %v275_v48, %v274_v45 }
  0x1d   :  { %v292_v57 = vld [vmem:[%s2274_s1 + $0x290] sm:$0xff]  ;;  %v293_v58 = vld [vmem:[%s2274_s1 + $0x298] sm:$0xff]  ;;  %v386_v63 = vpack.c.bf16 %v307_v50, %v306_v49  ;;  %v155_v0 = vpack.c.bf16 %v43_v53, %v35_v52  ;;  %v157_v3 = vpack.c.bf16 %v45_v56, %v37_v54  ;;  %v34_v4 = vld [vmem:[%s2275_s0 + $0x80] sm:$0xff] }
  0x1e   :  { %998 = vmatpush3.bf16.msra.mxu0 %v344_v28  ;;  %v324_v61 = vld [vmem:[%s2274_s1 + $0x390] sm:$0xff]  ;;  %v325_v62 = vld [vmem:[%s2274_s1 + $0x398] sm:$0xff]  ;;  %v379_v5 = vpack.c.bf16 %v293_v58, %v292_v57  ;;  %v294_v8 = vld [vmem:[%s2274_s1 + $0x2a0] sm:$0xff] }
  0x1f   :  { %1062 = vmatpush3.bf16.msra.mxu1 %v360_v30  ;;  %999 = vmatprep.subr.bf16.mxu0 %v353_v31  ;;  %v276_v1 = vld [vmem:[%s2274_s1 + $0x210] sm:$0xff]  ;;  %v277_v2 = vld [vmem:[%s2274_s1 + $0x218] sm:$0xff]  ;;  %v42_v9 = vld [vmem:[%s2275_s0 + $0xc0] sm:$0xff]  ;;  %v395_v11 = vpack.c.bf16 %v325_v62, %v324_v61 }
  0x20   :  { %1063 = vmatprep.subr.bf16.mxu1 %v369_v35  ;;  %v308_v6 = vld [vmem:[%s2274_s1 + $0x310] sm:$0xff]  ;;  %v309_v7 = vld [vmem:[%s2274_s1 + $0x318] sm:$0xff]  ;;  %v295_v12 = vld [vmem:[%s2274_s1 + $0x2a8] sm:$0xff]  ;;  %v371_v14 = vpack.c.bf16 %v277_v2, %v276_v1  ;;  %v154_v26 = vpack.c.bf16 %v42_v9, %v34_v4 }
  0x21   :  { %v36_v10 = vld [vmem:[%s2275_s0 + $0x90] sm:$0xff]  ;;  %v326_v15 = vld [vmem:[%s2274_s1 + $0x3a0] sm:$0xff]  ;;  %v327_v16 = vld [vmem:[%s2274_s1 + $0x3a8] sm:$0xff]  ;;  %v387_v17 = vpack.c.bf16 %v309_v7, %v308_v6  ;;  %v380_v21 = vpack.c.bf16 %v295_v12, %v294_v8 }
  0x22   :  { %1000 = vmatpush3.bf16.msra.mxu0 %v345_v42  ;;  %v44_v13 = vld [vmem:[%s2275_s0 + $0xd0] sm:$0xff]  ;;  %v51_v18 = vld [vmem:[%s2275_s0 + $0x108] sm:$0xff]  ;;  %v53_v20 = vld [vmem:[%s2275_s0 + $0x118] sm:$0xff]  ;;  %v396_v25 = vpack.c.bf16 %v327_v16, %v326_v15 }
  0x23   :  { %1064 = vmatpush3.bf16.msra.mxu1 %v361_v46  ;;  %1113 = vmatprep.subr.bf16.mxu0 %v378_v47  ;;  %v59_v19 = vld [vmem:[%s2275_s0 + $0x148] sm:$0xff]  ;;  %v61_v22 = vld [vmem:[%s2275_s0 + $0x158] sm:$0xff]  ;;  %v278_v23 = vld [vmem:[%s2274_s1 + $0x220] sm:$0xff]  ;;  %v156_v29 = vpack.c.bf16 %v44_v13, %v36_v10 }
  0x24   :  { %1177 = vmatprep.subr.bf16.mxu1 %v394_v51  ;;  %v279_v24 = vld [vmem:[%s2274_s1 + $0x228] sm:$0xff]  ;;  %v310_v27 = vld [vmem:[%s2274_s1 + $0x320] sm:$0xff]  ;;  %v163_v30 = vpack.c.bf16 %v59_v19, %v51_v18  ;;  %v296_v31 = vld [vmem:[%s2274_s1 + $0x2b0] sm:$0xff]  ;;  %v165_v33 = vpack.c.bf16 %v61_v22, %v53_v20 }
  0x25   :  { %435 = vmatmul.mubr.bf16.vlgmr.msra.gmra.mrb[0].mxu0 %v146_v55  ;;  %v311_v28 = vld [vmem:[%s2274_s1 + $0x328] sm:$0xff]  ;;  %v297_v32 = vld [vmem:[%s2274_s1 + $0x2b8] sm:$0xff]  ;;  %v372_v34 = vpack.c.bf16 %v279_v24, %v278_v23  ;;  %v328_v35 = vld [vmem:[%s2274_s1 + $0x3b0] sm:$0xff] }
  0x26   :  { %532 = vmatmul.mubr.bf16.vlgmr.msra.gmra.mrb[0].mxu1 %v148_v59  ;;  %1114 = vmatpush3.bf16.msra.mxu0 %v370_v60  ;;  %v329_v36 = vld [vmem:[%s2274_s1 + $0x3b8] sm:$0xff]  ;;  %v50_v37 = vld [vmem:[%s2275_s0 + $0x100] sm:$0xff]  ;;  %v388_v39 = vpack.c.bf16 %v311_v28, %v310_v27  ;;  %v381_v40 = vpack.c.bf16 %v297_v32, %v296_v31  ;;  %v280_v41 = vld [vmem:[%s2274_s1 + $0x230] sm:$0xff] }
  0x27   :  { %1178 = vmatpush3.bf16.msra.mxu1 %v386_v63  ;;  %442 = vmatprep.mubr.bf16.mxu0 %v155_v0  ;;  %v58_v38 = vld [vmem:[%s2275_s0 + $0x140] sm:$0xff]  ;;  %v281_v42 = vld [vmem:[%s2274_s1 + $0x238] sm:$0xff]  ;;  %v52_v43 = vld [vmem:[%s2275_s0 + $0x110] sm:$0xff]  ;;  %v397_v45 = vpack.c.bf16 %v329_v36, %v328_v35 }
  0x28   :  { %539 = vmatprep.mubr.bf16.mxu1 %v157_v3  ;;  %1115 = vmatprep.subr.bf16.mxu0 %v379_v5  ;;  %v60_v44 = vld [vmem:[%s2275_s0 + $0x150] sm:$0xff]  ;;  %v313_v47 = vld [vmem:[%s2274_s1 + $0x338] sm:$0xff]  ;;  %v67_v48 = vld [vmem:[%s2275_s0 + $0x188] sm:$0xff]  ;;  %v373_v52 = vpack.c.bf16 %v281_v42, %v280_v41  ;;  %v162_v60 = vpack.c.bf16 %v58_v38, %v50_v37 }
  0x29   :  { %1179 = vmatprep.subr.bf16.mxu1 %v395_v11  ;;  %v312_v46 = vld [vmem:[%s2274_s1 + $0x330] sm:$0xff]  ;;  %v75_v49 = vld [vmem:[%s2275_s0 + $0x1c8] sm:$0xff]  ;;  %v69_v50 = vld [vmem:[%s2275_s0 + $0x198] sm:$0xff]  ;;  %v164_v0 = vpack.c.bf16 %v60_v44, %v52_v43 }
  0x2a   :  { %1116 = vmatpush3.bf16.msra.mxu0 %v371_v14  ;;  %v77_v51 = vld [vmem:[%s2275_s0 + $0x1d8] sm:$0xff]  ;;  %v298_v53 = vld [vmem:[%s2274_s1 + $0x2c0] sm:$0xff]  ;;  %v299_v54 = vld [vmem:[%s2274_s1 + $0x2c8] sm:$0xff]  ;;  %v389_v55 = vpack.c.bf16 %v313_v47, %v312_v46  ;;  %v171_v1 = vpack.c.bf16 %v75_v49, %v67_v48 }
  0x2b   :  { %1180 = vmatpush3.bf16.msra.mxu1 %v387_v17  ;;  %1117 = vmatprep.subr.bf16.mxu0 %v380_v21  ;;  %v382_v56 = vpack.c.bf16 %v299_v54, %v298_v53  ;;  %v282_v57 = vld [vmem:[%s2274_s1 + $0x240] sm:$0xff]  ;;  %v283_v58 = vld [vmem:[%s2274_s1 + $0x248] sm:$0xff]  ;;  %v173_v3 = vpack.c.bf16 %v77_v51, %v69_v50  ;;  %v300_v8 = vld [vmem:[%s2274_s1 + $0x2d0] sm:$0xff] }
  0x2c   :  { %1181 = vmatprep.subr.bf16.mxu1 %v396_v25  ;;  %v330_v59 = vld [vmem:[%s2274_s1 + $0x3c0] sm:$0xff]  ;;  %v331_v61 = vld [vmem:[%s2274_s1 + $0x3c8] sm:$0xff]  ;;  %v374_v4 = vpack.c.bf16 %v283_v58, %v282_v57  ;;  %v68_v9 = vld [vmem:[%s2275_s0 + $0x190] sm:$0xff] }
  0x2d   :  { %443 = vmatmul.mubr.bf16.gmra.mrb[4].mxu0 %v154_v26  ;;  %v314_v62 = vld [vmem:[%s2274_s1 + $0x340] sm:$0xff]  ;;  %v315_v63 = vld [vmem:[%s2274_s1 + $0x348] sm:$0xff]  ;;  %v398_v2 = vpack.c.bf16 %v331_v61, %v330_v59  ;;  %v76_v10 = vld [vmem:[%s2275_s0 + $0x1d0] sm:$0xff] }
  0x2e   :  { %540 = vmatmul.mubr.bf16.gmra.mrb[4].mxu1 %v156_v29  ;;  %450 = vmatprep.mubr.bf16.mxu0 %v163_v30  ;;  %v66_v5 = vld [vmem:[%s2275_s0 + $0x180] sm:$0xff]  ;;  %v390_v7 = vpack.c.bf16 %v315_v63, %v314_v62  ;;  %v301_v11 = vld [vmem:[%s2274_s1 + $0x2d8] sm:$0xff]  ;;  %v284_v12 = vld [vmem:[%s2274_s1 + $0x250] sm:$0xff]  ;;  %v172_v27 = vpack.c.bf16 %v76_v10, %v68_v9 }
  0x2f   :  { %547 = vmatprep.mubr.bf16.mxu1 %v165_v33  ;;  %1118 = vmatpush3.bf16.msra.mxu0 %v372_v34  ;;  %v74_v6 = vld [vmem:[%s2275_s0 + $0x1c0] sm:$0xff]  ;;  %v285_v13 = vld [vmem:[%s2274_s1 + $0x258] sm:$0xff]  ;;  %v383_v14 = vpack.c.bf16 %v301_v11, %v300_v8  ;;  %v332_v15 = vld [vmem:[%s2274_s1 + $0x3d0] sm:$0xff] }
  0x30   :  { %1182 = vmatpush3.bf16.msra.mxu1 %v388_v39  ;;  %1119 = vmatprep.subr.bf16.mxu0 %v381_v40  ;;  %v333_v16 = vld [vmem:[%s2274_s1 + $0x3d8] sm:$0xff]  ;;  %v316_v17 = vld [vmem:[%s2274_s1 + $0x350] sm:$0xff]  ;;  %v83_v18 = vld [vmem:[%s2275_s0 + $0x208] sm:$0xff]  ;;  %v375_v20 = vpack.c.bf16 %v285_v13, %v284_v12  ;;  %v170_v26 = vpack.c.bf16 %v74_v6, %v66_v5 }
  0x31   :  { %1183 = vmatprep.subr.bf16.mxu1 %v397_v45  ;;  %v91_v19 = vld [vmem:[%s2275_s0 + $0x248] sm:$0xff]  ;;  %v399_v21 = vpack.c.bf16 %v333_v16, %v332_v15  ;;  %v317_v22 = vld [vmem:[%s2274_s1 + $0x358] sm:$0xff]  ;;  %v302_v29 = vld [vmem:[%s2274_s1 + $0x2e0] sm:$0xff] }
  0x32   :  { %v85_v23 = vld [vmem:[%s2275_s0 + $0x218] sm:$0xff]  ;;  %v391_v25 = vpack.c.bf16 %v317_v22, %v316_v17  ;;  %v179_v28 = vpack.c.bf16 %v91_v19, %v83_v18  ;;  %v303_v30 = vld [vmem:[%s2274_s1 + $0x2e8] sm:$0xff]  ;;  %v286_v31 = vld [vmem:[%s2274_s1 + $0x260] sm:$0xff] }
  0x33   :  { %1120 = vmatpush3.bf16.msra.mxu0 %v373_v52  ;;  %v93_v24 = vld [vmem:[%s2275_s0 + $0x258] sm:$0xff]  ;;  %v384_v33 = vpack.c.bf16 %v303_v30, %v302_v29  ;;  %v287_v34 = vld [vmem:[%s2274_s1 + $0x268] sm:$0xff]  ;;  %v334_v35 = vld [vmem:[%s2274_s1 + $0x3e0] sm:$0xff] }
  0x34   :  { %1184 = vmatpush3.bf16.msra.mxu1 %v389_v55  ;;  %1121 = vmatprep.subr.bf16.mxu0 %v382_v56  ;;  %v181_v32 = vpack.c.bf16 %v93_v24, %v85_v23  ;;  %v335_v36 = vld [vmem:[%s2274_s1 + $0x3e8] sm:$0xff]  ;;  %v82_v37 = vld [vmem:[%s2275_s0 + $0x200] sm:$0xff]  ;;  %v376_v38 = vpack.c.bf16 %v287_v34, %v286_v31  ;;  %v84_v43 = vld [vmem:[%s2275_s0 + $0x210] sm:$0xff] }
  0x35   :  { %451 = vmatmul.mubr.bf16.gmra.mrb[8].mxu0 %v162_v60  ;;  %1185 = vmatprep.subr.bf16.mxu1 %v398_v2  ;;  %v400_v39 = vpack.c.bf16 %v335_v36, %v334_v35  ;;  %v318_v40 = vld [vmem:[%s2274_s1 + $0x360] sm:$0xff]  ;;  %v319_v41 = vld [vmem:[%s2274_s1 + $0x368] sm:$0xff]  ;;  %v92_v44 = vld [vmem:[%s2275_s0 + $0x250] sm:$0xff] }
  0x36   :  { %548 = vmatmul.mubr.bf16.gmra.mrb[8].mxu1 %v164_v0  ;;  %458 = vmatprep.mubr.bf16.mxu0 %v171_v1  ;;  %v90_v42 = vld [vmem:[%s2275_s0 + $0x240] sm:$0xff]  ;;  %v392_v45 = vpack.c.bf16 %v319_v41, %v318_v40  ;;  %v99_v46 = vld [vmem:[%s2275_s0 + $0x288] sm:$0xff]  ;;  %v101_v48 = vld [vmem:[%s2275_s0 + $0x298] sm:$0xff]  ;;  %v180_v61 = vpack.c.bf16 %v92_v44, %v84_v43 }
  0x37   :  { %555 = vmatprep.mubr.bf16.mxu1 %v173_v3  ;;  %1122 = vmatpush3.bf16.msra.mxu0 %v374_v4  ;;  %v107_v47 = vld [vmem:[%s2275_s0 + $0x2c8] sm:$0xff]  ;;  %v109_v49 = vld [vmem:[%s2275_s0 + $0x2d8] sm:$0xff]  ;;  %v304_v50 = vld [vmem:[%s2274_s1 + $0x2f0] sm:$0xff]  ;;  %v178_v56 = vpack.c.bf16 %v90_v42, %v82_v37 }
  0x38   :  { %1186 = vmatpush3.bf16.msra.mxu1 %v390_v7  ;;  %1123 = vmatprep.subr.bf16.mxu0 %v383_v14  ;;  %v305_v51 = vld [vmem:[%s2274_s1 + $0x2f8] sm:$0xff]  ;;  %v288_v53 = vld [vmem:[%s2274_s1 + $0x270] sm:$0xff]  ;;  %v187_v62 = vpack.c.bf16 %v107_v47, %v99_v46  ;;  %v189_v1 = vpack.c.bf16 %v109_v49, %v101_v48  ;;  %v98_v2 = vld [vmem:[%s2275_s0 + $0x280] sm:$0xff] }
  0x39   :  { %1187 = vmatprep.subr.bf16.mxu1 %v399_v21  ;;  %v385_v52 = vpack.c.bf16 %v305_v51, %v304_v50  ;;  %v289_v54 = vld [vmem:[%s2274_s1 + $0x278] sm:$0xff]  ;;  %v336_v55 = vld [vmem:[%s2274_s1 + $0x3f0] sm:$0xff]  ;;  %v106_v3 = vld [vmem:[%s2275_s0 + $0x2c0] sm:$0xff] }
  0x3a   :  { %v377_v57 = vpack.c.bf16 %v289_v54, %v288_v53  ;;  %v337_v58 = vld [vmem:[%s2274_s1 + $0x3f8] sm:$0xff]  ;;  %v320_v59 = vld [vmem:[%s2274_s1 + $0x370] sm:$0xff]  ;;  %v115_v6 = vld [vmem:[%s2275_s0 + $0x308] sm:$0xff]  ;;  %v186_v10 = vpack.c.bf16 %v106_v3, %v98_v2 }
  0x3b   :  { %1124 = vmatpush3.bf16.msra.mxu0 %v375_v20  ;;  %v321_v60 = vld [vmem:[%s2274_s1 + $0x378] sm:$0xff]  ;;  %v401_v63 = vpack.c.bf16 %v337_v58, %v336_v55  ;;  %v100_v4 = vld [vmem:[%s2275_s0 + $0x290] sm:$0xff]  ;;  %v123_v7 = vld [vmem:[%s2275_s0 + $0x348] sm:$0xff] }
  0x3c   :  { %1188 = vmatpush3.bf16.msra.mxu1 %v391_v25  ;;  %1125 = vmatprep.subr.bf16.mxu0 %v384_v33  ;;  %v393_v0 = vpack.c.bf16 %v321_v60, %v320_v59  ;;  %v108_v5 = vld [vmem:[%s2275_s0 + $0x2d0] sm:$0xff]  ;;  %v117_v8 = vld [vmem:[%s2275_s0 + $0x318] sm:$0xff]  ;;  %v195_v12 = vpack.c.bf16 %v123_v7, %v115_v6  ;;  %v114_v14 = vld [vmem:[%s2275_s0 + $0x300] sm:$0xff] }
  0x3d   :  { %459 = vmatmul.mubr.bf16.gmra.mrb[12].mxu0 %v170_v26  ;;  %1189 = vmatprep.subr.bf16.mxu1 %v400_v39  ;;  %v125_v9 = vld [vmem:[%s2275_s0 + $0x358] sm:$0xff]  ;;  %v188_v11 = vpack.c.bf16 %v108_v5, %v100_v4  ;;  %v122_v15 = vld [vmem:[%s2275_s0 + $0x340] sm:$0xff]  ;;  %v116_v16 = vld [vmem:[%s2275_s0 + $0x310] sm:$0xff] }
  0x3e   :  { %556 = vmatmul.mubr.bf16.gmra.mrb[12].mxu1 %v172_v27  ;;  %466 = vmatprep.mubr.bf16.mxu0 %v179_v28  ;;  %v197_v13 = vpack.c.bf16 %v125_v9, %v117_v8  ;;  %v124_v17 = vld [vmem:[%s2275_s0 + $0x350] sm:$0xff]  ;;  %v131_v18 = vld [vmem:[%s2275_s0 + $0x388] sm:$0xff]  ;;  %v133_v20 = vld [vmem:[%s2275_s0 + $0x398] sm:$0xff]  ;;  %v194_v22 = vpack.c.bf16 %v122_v15, %v114_v14 }
  0x3f   :  { %563 = vmatprep.mubr.bf16.mxu1 %v181_v32  ;;  %1126 = vmatpush3.bf16.msra.mxu0 %v376_v38  ;;  %v139_v19 = vld [vmem:[%s2275_s0 + $0x3c8] sm:$0xff]  ;;  %v141_v21 = vld [vmem:[%s2275_s0 + $0x3d8] sm:$0xff]  ;;  %v196_v23 = vpack.c.bf16 %v124_v17, %v116_v16  ;;  %v130_v26 = vld [vmem:[%s2275_s0 + $0x380] sm:$0xff] }
  0x40   :  { %1190 = vmatpush3.bf16.msra.mxu1 %v392_v45  ;;  %1127 = vmatprep.subr.bf16.mxu0 %v385_v52  ;;  %v203_v24 = vpack.c.bf16 %v139_v19, %v131_v18  ;;  %v205_v25 = vpack.c.bf16 %v141_v21, %v133_v20  ;;  %v138_v27 = vld [vmem:[%s2275_s0 + $0x3c0] sm:$0xff]  ;;  %v132_v28 = vld [vmem:[%s2275_s0 + $0x390] sm:$0xff]  ;;  %v23_v30 = vld [vmem:[%s2275_s0 + $0x28] sm:$0xff] }
  0x41   :  { %1191 = vmatprep.subr.bf16.mxu1 %v401_v63  ;;  %v140_v29 = vld [vmem:[%s2275_s0 + $0x3d0] sm:$0xff]  ;;  %v31_v31 = vld [vmem:[%s2275_s0 + $0x68] sm:$0xff]  ;;  %v25_v32 = vld [vmem:[%s2275_s0 + $0x38] sm:$0xff]  ;;  %v202_v34 = vpack.c.bf16 %v138_v27, %v130_v26 }
  0x42   :  { %v33_v33 = vld [vmem:[%s2275_s0 + $0x78] sm:$0xff]  ;;  %v204_v35 = vpack.c.bf16 %v140_v29, %v132_v28  ;;  %v151_v36 = vpack.c.bf16 %v31_v31, %v23_v30  ;;  %v22_v38 = vld [vmem:[%s2275_s0 + $0x20] sm:$0xff]  ;;  %v24_v40 = vld [vmem:[%s2275_s0 + $0x30] sm:$0xff] }
  0x43   :  { %1128 = vmatpush3.bf16.msra.mxu0 %v377_v57  ;;  %v153_v37 = vpack.c.bf16 %v33_v33, %v25_v32  ;;  %v30_v39 = vld [vmem:[%s2275_s0 + $0x60] sm:$0xff]  ;;  %v32_v41 = vld [vmem:[%s2275_s0 + $0x70] sm:$0xff]  ;;  %v39_v42 = vld [vmem:[%s2275_s0 + $0xa8] sm:$0xff] }
  0x44   :  { %1192 = vmatpush3.bf16.msra.mxu1 %v393_v0  ;;  %v47_v43 = vld [vmem:[%s2275_s0 + $0xe8] sm:$0xff]  ;;  %v41_v44 = vld [vmem:[%s2275_s0 + $0xb8] sm:$0xff]  ;;  %v150_v46 = vpack.c.bf16 %v30_v39, %v22_v38  ;;  %v152_v47 = vpack.c.bf16 %v32_v41, %v24_v40  ;;  %v38_v50 = vld [vmem:[%s2275_s0 + $0xa0] sm:$0xff] }
  0x45   :  { %467 = vmatmul.mubr.bf16.gmra.mrb[16].mxu0 %v178_v56  ;;  %v49_v45 = vld [vmem:[%s2275_s0 + $0xf8] sm:$0xff]  ;;  %v159_v48 = vpack.c.bf16 %v47_v43, %v39_v42  ;;  %v46_v51 = vld [vmem:[%s2275_s0 + $0xe0] sm:$0xff]  ;;  %v40_v52 = vld [vmem:[%s2275_s0 + $0xb0] sm:$0xff] }
  0x46   :  { %564 = vmatmul.mubr.bf16.gmra.mrb[16].mxu1 %v180_v61  ;;  %474 = vmatprep.mubr.bf16.mxu0 %v187_v62  ;;  %v161_v49 = vpack.c.bf16 %v49_v45, %v41_v44  ;;  %v48_v53 = vld [vmem:[%s2275_s0 + $0xf0] sm:$0xff]  ;;  %v55_v54 = vld [vmem:[%s2275_s0 + $0x128] sm:$0xff]  ;;  %v57_v56 = vld [vmem:[%s2275_s0 + $0x138] sm:$0xff]  ;;  %v158_v58 = vpack.c.bf16 %v46_v51, %v38_v50 }
  0x47   :  { %571 = vmatprep.mubr.bf16.mxu1 %v189_v1  ;;  %v63_v55 = vld [vmem:[%s2275_s0 + $0x168] sm:$0xff]  ;;  %v65_v57 = vld [vmem:[%s2275_s0 + $0x178] sm:$0xff]  ;;  %v160_v59 = vpack.c.bf16 %v48_v53, %v40_v52  ;;  %v54_v62 = vld [vmem:[%s2275_s0 + $0x120] sm:$0xff] }
  0x48   :  { %v167_v60 = vpack.c.bf16 %v63_v55, %v55_v54  ;;  %v169_v61 = vpack.c.bf16 %v65_v57, %v57_v56  ;;  %v62_v63 = vld [vmem:[%s2275_s0 + $0x160] sm:$0xff]  ;;  %v56_v0 = vld [vmem:[%s2275_s0 + $0x130] sm:$0xff]  ;;  %v71_v2 = vld [vmem:[%s2275_s0 + $0x1a8] sm:$0xff] }
  0x49   :  { %v64_v1 = vld [vmem:[%s2275_s0 + $0x170] sm:$0xff]  ;;  %v79_v3 = vld [vmem:[%s2275_s0 + $0x1e8] sm:$0xff]  ;;  %v73_v4 = vld [vmem:[%s2275_s0 + $0x1b8] sm:$0xff]  ;;  %v166_v6 = vpack.c.bf16 %v62_v63, %v54_v62 }
  0x4a   :  { %v81_v5 = vld [vmem:[%s2275_s0 + $0x1f8] sm:$0xff]  ;;  %v168_v7 = vpack.c.bf16 %v64_v1, %v56_v0  ;;  %v175_v8 = vpack.c.bf16 %v79_v3, %v71_v2  ;;  %v87_v14 = vld [vmem:[%s2275_s0 + $0x228] sm:$0xff] }
  0x4b   :  { %v177_v9 = vpack.c.bf16 %v81_v5, %v73_v4  ;;  %v95_v15 = vld [vmem:[%s2275_s0 + $0x268] sm:$0xff]  ;;  %v89_v16 = vld [vmem:[%s2275_s0 + $0x238] sm:$0xff] }
  0x4c   :  { %v97_v17 = vld [vmem:[%s2275_s0 + $0x278] sm:$0xff]  ;;  %v183_v20 = vpack.c.bf16 %v95_v15, %v87_v14  ;;  %v103_v26 = vld [vmem:[%s2275_s0 + $0x2a8] sm:$0xff] }
  0x4d   :  { %475 = vmatmul.mubr.bf16.gmra.mrb[20].mxu0 %v186_v10  ;;  %v70_v10 = vld [vmem:[%s2275_s0 + $0x1a0] sm:$0xff]  ;;  %v185_v21 = vpack.c.bf16 %v97_v17, %v89_v16  ;;  %v111_v27 = vld [vmem:[%s2275_s0 + $0x2e8] sm:$0xff]  ;;  %v105_v28 = vld [vmem:[%s2275_s0 + $0x2b8] sm:$0xff] }
  0x4e   :  { %572 = vmatmul.mubr.bf16.gmra.mrb[20].mxu1 %v188_v11  ;;  %482 = vmatprep.mubr.bf16.mxu0 %v195_v12  ;;  %v78_v11 = vld [vmem:[%s2275_s0 + $0x1e0] sm:$0xff]  ;;  %v72_v12 = vld [vmem:[%s2275_s0 + $0x1b0] sm:$0xff]  ;;  %v113_v29 = vld [vmem:[%s2275_s0 + $0x2f8] sm:$0xff]  ;;  %v191_v32 = vpack.c.bf16 %v111_v27, %v103_v26 }
  0x4f   :  { %579 = vmatprep.mubr.bf16.mxu1 %v197_v13  ;;  %v80_v13 = vld [vmem:[%s2275_s0 + $0x1f0] sm:$0xff]  ;;  %v174_v18 = vpack.c.bf16 %v78_v11, %v70_v10  ;;  %v193_v33 = vpack.c.bf16 %v113_v29, %v105_v28  ;;  %v119_v38 = vld [vmem:[%s2275_s0 + $0x328] sm:$0xff]  ;;  %v121_v40 = vld [vmem:[%s2275_s0 + $0x338] sm:$0xff] }
  0x50   :  { %v176_v19 = vpack.c.bf16 %v80_v13, %v72_v12  ;;  %v127_v39 = vld [vmem:[%s2275_s0 + $0x368] sm:$0xff]  ;;  %v129_v41 = vld [vmem:[%s2275_s0 + $0x378] sm:$0xff] }
  0x51   :  { %v199_v44 = vpack.c.bf16 %v127_v39, %v119_v38  ;;  %v201_v45 = vpack.c.bf16 %v129_v41, %v121_v40  ;;  %v135_v50 = vld [vmem:[%s2275_s0 + $0x3a8] sm:$0xff]  ;;  %v137_v52 = vld [vmem:[%s2275_s0 + $0x3b8] sm:$0xff] }
  0x52   :  { %v143_v51 = vld [vmem:[%s2275_s0 + $0x3e8] sm:$0xff]  ;;  %v145_v53 = vld [vmem:[%s2275_s0 + $0x3f8] sm:$0xff] }
  0x53   :  { %v207_v56 = vpack.c.bf16 %v143_v51, %v135_v50  ;;  %v209_v57 = vpack.c.bf16 %v145_v53, %v137_v52 }
  0x55   :  { %483 = vmatmul.mubr.bf16.gmra.mrb[24].mxu0 %v194_v22  ;;  %v86_v22 = vld [vmem:[%s2275_s0 + $0x220] sm:$0xff] }
  0x56   :  { %580 = vmatmul.mubr.bf16.gmra.mrb[24].mxu1 %v196_v23  ;;  %490 = vmatprep.mubr.bf16.mxu0 %v203_v24  ;;  %v94_v23 = vld [vmem:[%s2275_s0 + $0x260] sm:$0xff]  ;;  %v88_v24 = vld [vmem:[%s2275_s0 + $0x230] sm:$0xff] }
  0x57   :  { %587 = vmatprep.mubr.bf16.mxu1 %v205_v25  ;;  %v96_v25 = vld [vmem:[%s2275_s0 + $0x270] sm:$0xff]  ;;  %v182_v30 = vpack.c.bf16 %v94_v23, %v86_v22 }
  0x58   :  { %v184_v31 = vpack.c.bf16 %v96_v25, %v88_v24 }
  0x5d   :  { %491 = vmatmul.mubr.bf16.gmra.mrb[28].mxu0 %v202_v34  ;;  %v102_v34 = vld [vmem:[%s2275_s0 + $0x2a0] sm:$0xff] }
  0x5e   :  { %588 = vmatmul.mubr.bf16.gmra.mrb[28].mxu1 %v204_v35  ;;  %628 = vmatprep.mubr.bf16.mxu0 %v151_v36  ;;  %v110_v35 = vld [vmem:[%s2275_s0 + $0x2e0] sm:$0xff]  ;;  %v104_v36 = vld [vmem:[%s2275_s0 + $0x2b0] sm:$0xff] }
  0x5f   :  { %725 = vmatprep.mubr.bf16.mxu1 %v153_v37  ;;  %v112_v37 = vld [vmem:[%s2275_s0 + $0x2f0] sm:$0xff]  ;;  %v190_v42 = vpack.c.bf16 %v110_v35, %v102_v34 }
  0x60   :  { %v192_v43 = vpack.c.bf16 %v112_v37, %v104_v36 }
  0x65   :  { %629 = vmatmul.mubr.bf16.vlgmr.msra.gmra.mrb[32].mxu0 %v150_v46  ;;  %v118_v46 = vld [vmem:[%s2275_s0 + $0x320] sm:$0xff] }
  0x66   :  { %726 = vmatmul.mubr.bf16.vlgmr.msra.gmra.mrb[32].mxu1 %v152_v47  ;;  %636 = vmatprep.mubr.bf16.mxu0 %v159_v48  ;;  %v126_v47 = vld [vmem:[%s2275_s0 + $0x360] sm:$0xff]  ;;  %v120_v48 = vld [vmem:[%s2275_s0 + $0x330] sm:$0xff] }
  0x67   :  { %733 = vmatprep.mubr.bf16.mxu1 %v161_v49  ;;  %v128_v49 = vld [vmem:[%s2275_s0 + $0x370] sm:$0xff]  ;;  %v198_v54 = vpack.c.bf16 %v126_v47, %v118_v46 }
  0x68   :  { %v200_v55 = vpack.c.bf16 %v128_v49, %v120_v48 }
  0x6d   :  { %637 = vmatmul.mubr.bf16.gmra.mrb[36].mxu0 %v158_v58  ;;  %v134_v58 = vld [vmem:[%s2275_s0 + $0x3a0] sm:$0xff] }
  0x6e   :  { %734 = vmatmul.mubr.bf16.gmra.mrb[36].mxu1 %v160_v59  ;;  %644 = vmatprep.mubr.bf16.mxu0 %v167_v60  ;;  %v142_v59 = vld [vmem:[%s2275_s0 + $0x3e0] sm:$0xff]  ;;  %v136_v60 = vld [vmem:[%s2275_s0 + $0x3b0] sm:$0xff] }
  0x6f   :  { %741 = vmatprep.mubr.bf16.mxu1 %v169_v61  ;;  %v144_v61 = vld [vmem:[%s2275_s0 + $0x3f0] sm:$0xff]  ;;  %v206_v62 = vpack.c.bf16 %v142_v59, %v134_v58 }
  0x70   :  { %v208_v63 = vpack.c.bf16 %v144_v61, %v136_v60 }
  0x75   :  { %645 = vmatmul.mubr.bf16.gmra.mrb[40].mxu0 %v166_v6 }
  0x76   :  { %742 = vmatmul.mubr.bf16.gmra.mrb[40].mxu1 %v168_v7  ;;  %652 = vmatprep.mubr.bf16.mxu0 %v175_v8 }
  0x77   :  { %749 = vmatprep.mubr.bf16.mxu1 %v177_v9 }
  0x7d   :  { %653 = vmatmul.mubr.bf16.gmra.mrb[44].mxu0 %v174_v18 }
  0x7e   :  { %750 = vmatmul.mubr.bf16.gmra.mrb[44].mxu1 %v176_v19  ;;  %660 = vmatprep.mubr.bf16.mxu0 %v183_v20 }
  0x7f   :  { %757 = vmatprep.mubr.bf16.mxu1 %v185_v21 }
  0x85   :  { %661 = vmatmul.mubr.bf16.gmra.mrb[48].mxu0 %v182_v30 }
  0x86   :  { %758 = vmatmul.mubr.bf16.gmra.mrb[48].mxu1 %v184_v31  ;;  %668 = vmatprep.mubr.bf16.mxu0 %v191_v32 }
  0x87   :  { %765 = vmatprep.mubr.bf16.mxu1 %v193_v33 }
  0x8d   :  { %669 = vmatmul.mubr.bf16.gmra.mrb[52].mxu0 %v190_v42 }
  0x8e   :  { %766 = vmatmul.mubr.bf16.gmra.mrb[52].mxu1 %v192_v43  ;;  %676 = vmatprep.mubr.bf16.mxu0 %v199_v44 }
  0x8f   :  { %773 = vmatprep.mubr.bf16.mxu1 %v201_v45 }
  0x95   :  { %677 = vmatmul.mubr.bf16.gmra.mrb[56].mxu0 %v198_v54 }
  0x96   :  { %774 = vmatmul.mubr.bf16.gmra.mrb[56].mxu1 %v200_v55  ;;  %684 = vmatprep.mubr.bf16.mxu0 %v207_v56 }
  0x97   :  { %781 = vmatprep.mubr.bf16.mxu1 %v209_v57 }
  0x9d   :  { %685 = vmatmul.mubr.bf16.gmra.mrb[60].mxu0 %v206_v62 }
  0x9e   :  { %782 = vmatmul.mubr.bf16.gmra.mrb[60].mxu1 %v208_v63 }
  0xf8   :  { %v1001_v0 = vpop.f32.mrb[0].mxu0 }
  0xf9   :  { %v1065_v1 = vpop.f32.mrb[0].mxu1  ;;  %v1002_v2 = vpop.f32.mrb[1].mxu0 }
  0xfa   :  { %v1003_v3 = vadd.f32 %v1002_v2, %v1001_v0  ;;  %v1066_v4 = vpop.f32.mrb[1].mxu1  ;;  %v1004_v5 = vpop.f32.mrb[2].mxu0 }
  0xfb   :  { %v1067_v6 = vadd.f32 %v1066_v4, %v1065_v1  ;;  %v1068_v7 = vpop.f32.mrb[2].mxu1  ;;  %v1005_v8 = vpop.f32.mrb[3].mxu0 }
  0xfc   :  { %v1006_v9 = vadd.f32 %v1005_v8, %v1004_v5  ;;  %v1069_v10 = vpop.f32.mrb[3].mxu1 }
  0xfd   :  { %v2036_v11 = vadd.f32 %v1067_v6, %v1003_v3  ;;  %v1070_v12 = vadd.f32 %v1069_v10, %v1068_v7 }
  0xff   :  { %v2038_v13 = vadd.f32 %v1070_v12, %v1006_v9 }
 0x100   :  { %v1007_v14 = vpop.f32.mrb[4].mxu0 }
 0x101   :  { %v1071_v15 = vpop.f32.mrb[4].mxu1  ;;  %v1008_v16 = vpop.f32.mrb[5].mxu0 }
 0x102   :  { %v1009_v17 = vadd.f32 %v1008_v16, %v1007_v14  ;;  %v1072_v18 = vpop.f32.mrb[5].mxu1  ;;  %v1010_v19 = vpop.f32.mrb[6].mxu0 }
 0x103   :  { %v1073_v20 = vadd.f32 %v1072_v18, %v1071_v15  ;;  %v1074_v21 = vpop.f32.mrb[6].mxu1  ;;  %v1011_v22 = vpop.f32.mrb[7].mxu0 }
 0x104   :  { %v1012_v23 = vadd.f32 %v1011_v22, %v1010_v19  ;;  %v1075_v24 = vpop.f32.mrb[7].mxu1 }
 0x105   :  { %v2040_v25 = vadd.f32 %v1073_v20, %v1009_v17  ;;  %v1076_v26 = vadd.f32 %v1075_v24, %v1074_v21 }
 0x107   :  { %v2042_v27 = vadd.f32 %v1076_v26, %v1012_v23 }
 0x108   :  { %v1013_v28 = vpop.f32.mrb[8].mxu0 }
 0x109   :  { %v1077_v29 = vpop.f32.mrb[8].mxu1  ;;  %v1014_v30 = vpop.f32.mrb[9].mxu0 }
 0x10a   :  { %v1015_v31 = vadd.f32 %v1014_v30, %v1013_v28  ;;  %v1078_v32 = vpop.f32.mrb[9].mxu1  ;;  %v1016_v33 = vpop.f32.mrb[10].mxu0 }
 0x10b   :  { %v1079_v34 = vadd.f32 %v1078_v32, %v1077_v29  ;;  %v1080_v35 = vpop.f32.mrb[10].mxu1  ;;  %v1017_v36 = vpop.f32.mrb[11].mxu0 }
 0x10c   :  { %v1018_v37 = vadd.f32 %v1017_v36, %v1016_v33  ;;  %v1081_v38 = vpop.f32.mrb[11].mxu1 }
 0x10d   :  { %v2044_v39 = vadd.f32 %v1079_v34, %v1015_v31  ;;  %v1082_v40 = vadd.f32 %v1081_v38, %v1080_v35 }
 0x10f   :  { %v2046_v41 = vadd.f32 %v1082_v40, %v1018_v37 }
 0x110   :  { %v1019_v42 = vpop.f32.mrb[12].mxu0 }
 0x111   :  { %v1083_v43 = vpop.f32.mrb[12].mxu1  ;;  %v1020_v44 = vpop.f32.mrb[13].mxu0 }
 0x112   :  { %v1021_v45 = vadd.f32 %v1020_v44, %v1019_v42  ;;  %v1084_v46 = vpop.f32.mrb[13].mxu1  ;;  %v1022_v47 = vpop.f32.mrb[14].mxu0 }
 0x113   :  { %v1085_v48 = vadd.f32 %v1084_v46, %v1083_v43  ;;  %v1086_v49 = vpop.f32.mrb[14].mxu1  ;;  %v1023_v50 = vpop.f32.mrb[15].mxu0 }
 0x114   :  { %v1024_v51 = vadd.f32 %v1023_v50, %v1022_v47  ;;  %v1087_v52 = vpop.f32.mrb[15].mxu1 }
 0x115   :  { %v2048_v53 = vadd.f32 %v1085_v48, %v1021_v45  ;;  %v1088_v54 = vadd.f32 %v1087_v52, %v1086_v49 }
 0x117   :  { %v2050_v55 = vadd.f32 %v1088_v54, %v1024_v51 }
 0x118   :  { %v1025_v56 = vpop.f32.mrb[16].mxu0 }
 0x119   :  { %v1089_v57 = vpop.f32.mrb[16].mxu1  ;;  %v1026_v58 = vpop.f32.mrb[17].mxu0 }
 0x11a   :  { %v1027_v59 = vadd.f32 %v1026_v58, %v1025_v56  ;;  %v1090_v60 = vpop.f32.mrb[17].mxu1  ;;  %v1028_v61 = vpop.f32.mrb[18].mxu0 }
 0x11b   :  { %v1091_v62 = vadd.f32 %v1090_v60, %v1089_v57  ;;  %v1092_v63 = vpop.f32.mrb[18].mxu1  ;;  %v1029_v0 = vpop.f32.mrb[19].mxu0 }
 0x11c   :  { %v1030_v1 = vadd.f32 %v1029_v0, %v1028_v61  ;;  %v1093_v2 = vpop.f32.mrb[19].mxu1 }
 0x11d   :  { %v2052_v3 = vadd.f32 %v1091_v62, %v1027_v59  ;;  %v1094_v4 = vadd.f32 %v1093_v2, %v1092_v63 }
 0x11f   :  { %v2054_v5 = vadd.f32 %v1094_v4, %v1030_v1 }
 0x120   :  { %v1031_v6 = vpop.f32.mrb[20].mxu0 }
 0x121   :  { %v1095_v7 = vpop.f32.mrb[20].mxu1  ;;  %v1032_v8 = vpop.f32.mrb[21].mxu0 }
 0x122   :  { %v1033_v9 = vadd.f32 %v1032_v8, %v1031_v6  ;;  %v1096_v10 = vpop.f32.mrb[21].mxu1  ;;  %v1034_v12 = vpop.f32.mrb[22].mxu0 }
 0x123   :  { %v1097_v14 = vadd.f32 %v1096_v10, %v1095_v7  ;;  %v1098_v15 = vpop.f32.mrb[22].mxu1  ;;  %v1035_v16 = vpop.f32.mrb[23].mxu0 }
 0x124   :  { %v1036_v17 = vadd.f32 %v1035_v16, %v1034_v12  ;;  %v1099_v18 = vpop.f32.mrb[23].mxu1 }
 0x125   :  { %v2056_v19 = vadd.f32 %v1097_v14, %v1033_v9  ;;  %v1100_v20 = vadd.f32 %v1099_v18, %v1098_v15 }
 0x127   :  { %v2058_v21 = vadd.f32 %v1100_v20, %v1036_v17 }
 0x128   :  { %v1037_v22 = vpop.f32.mrb[24].mxu0 }
 0x129   :  { %v1101_v23 = vpop.f32.mrb[24].mxu1  ;;  %v1038_v24 = vpop.f32.mrb[25].mxu0 }
 0x12a   :  { %v1039_v26 = vadd.f32 %v1038_v24, %v1037_v22  ;;  %v1102_v28 = vpop.f32.mrb[25].mxu1  ;;  %v1040_v29 = vpop.f32.mrb[26].mxu0 }
 0x12b   :  { %v1103_v30 = vadd.f32 %v1102_v28, %v1101_v23  ;;  %v1104_v31 = vpop.f32.mrb[26].mxu1  ;;  %v1041_v32 = vpop.f32.mrb[27].mxu0 }
 0x12c   :  { %v1042_v33 = vadd.f32 %v1041_v32, %v1040_v29  ;;  %v1105_v34 = vpop.f32.mrb[27].mxu1 }
 0x12d   :  { %v2060_v35 = vadd.f32 %v1103_v30, %v1039_v26  ;;  %v1106_v36 = vadd.f32 %v1105_v34, %v1104_v31 }
 0x12f   :  { %v2062_v37 = vadd.f32 %v1106_v36, %v1042_v33 }
 0x130   :  { %v1043_v38 = vpop.f32.mrb[28].mxu0 }
 0x131   :  { %v1107_v40 = vpop.f32.mrb[28].mxu1  ;;  %v1044_v42 = vpop.f32.mrb[29].mxu0 }
 0x132   :  { %v1045_v43 = vadd.f32 %v1044_v42, %v1043_v38  ;;  %v1108_v44 = vpop.f32.mrb[29].mxu1  ;;  %v1046_v45 = vpop.f32.mrb[30].mxu0 }
 0x133   :  { %v1109_v46 = vadd.f32 %v1108_v44, %v1107_v40  ;;  %v1110_v47 = vpop.f32.mrb[30].mxu1  ;;  %v1047_v48 = vpop.f32.mrb[31].mxu0 }
 0x134   :  { %v1048_v49 = vadd.f32 %v1047_v48, %v1046_v45  ;;  %v1111_v50 = vpop.f32.mrb[31].mxu1 }
 0x135   :  { %v2064_v51 = vadd.f32 %v1109_v46, %v1045_v43  ;;  %v1112_v52 = vadd.f32 %v1111_v50, %v1110_v47 }
 0x137   :  { %v2066_v54 = vadd.f32 %v1112_v52, %v1048_v49 }
 0x138   :  { %v1129_v56 = vpop.f32.mrb[32].mxu0 }
 0x139   :  { %v1193_v57 = vpop.f32.mrb[32].mxu1  ;;  %v1130_v58 = vpop.f32.mrb[33].mxu0 }
 0x13a   :  { %v1131_v59 = vadd.f32 %v1130_v58, %v1129_v56  ;;  %v1194_v60 = vpop.f32.mrb[33].mxu1  ;;  %v1132_v61 = vpop.f32.mrb[34].mxu0 }
 0x13b   :  { %v1195_v62 = vadd.f32 %v1194_v60, %v1193_v57  ;;  %v1196_v63 = vpop.f32.mrb[34].mxu1  ;;  %v1133_v0 = vpop.f32.mrb[35].mxu0 }
 0x13c   :  { %v631_v1 = vadd.f32 %v1131_v59, %v2036_v11  ;;  %v1134_v2 = vadd.f32 %v1133_v0, %v1132_v61  ;;  %v1197_v4 = vpop.f32.mrb[35].mxu1 }
 0x13d   :  { %v1198_v6 = vadd.f32 %v1197_v4, %v1196_v63 }
 0x13e   :  { %v2069_v7 = vadd.f32 %v1195_v62, %v631_v1  ;;  %v634_v8 = vadd.f32 %v1134_v2, %v2038_v13 }
 0x140   :  { %v2072_v9 = vadd.f32 %v1198_v6, %v634_v8  ;;  %v1135_v10 = vpop.f32.mrb[36].mxu0 }
 0x141   :  { %v1199_v12 = vpop.f32.mrb[36].mxu1  ;;  %v1136_v14 = vpop.f32.mrb[37].mxu0 }
 0x142   :  { %v790_v15 = vadd.f32 %v2072_v9, %v2069_v7  ;;  %v1137_v16 = vadd.f32 %v1136_v14, %v1135_v10  ;;  %v1200_v17 = vpop.f32.mrb[37].mxu1  ;;  %v1138_v18 = vpop.f32.mrb[38].mxu0 }
 0x143   :  { %v1201_v20 = vadd.f32 %v1200_v17, %v1199_v12  ;;  %v1202_v11 = vpop.f32.mrb[38].mxu1  ;;  %v1139_v22 = vpop.f32.mrb[39].mxu0 }
 0x144   :  { %v639_v23 = vadd.f32 %v1137_v16, %v2040_v25  ;;  %v1140_v24 = vadd.f32 %v1139_v22, %v1138_v18  ;;  %v1203_v26 = vpop.f32.mrb[39].mxu1 }
 0x145   :  { %v1204_v28 = vadd.f32 %v1203_v26, %v1202_v11 }
 0x146   :  { %v2077_v13 = vadd.f32 %v1201_v20, %v639_v23  ;;  %v642_v29 = vadd.f32 %v1140_v24, %v2042_v27 }
 0x148   :  { %v791_v30 = vadd.f32 %v790_v15, %v2077_v13  ;;  %v2081_v31 = vadd.f32 %v1204_v28, %v642_v29  ;;  %v1141_v32 = vpop.f32.mrb[40].mxu0 }
 0x149   :  { %v1205_v33 = vpop.f32.mrb[40].mxu1  ;;  %v1142_v34 = vpop.f32.mrb[41].mxu0 }
 0x14a   :  { %v792_v36 = vadd.f32 %v791_v30, %v2081_v31  ;;  %v1143_v38 = vadd.f32 %v1142_v34, %v1141_v32  ;;  %v1206_v40 = vpop.f32.mrb[41].mxu1  ;;  %v1144_v42 = vpop.f32.mrb[42].mxu0 }
 0x14b   :  { %v1207_v25 = vadd.f32 %v1206_v40, %v1205_v33  ;;  %v1208_v43 = vpop.f32.mrb[42].mxu1  ;;  %v1145_v44 = vpop.f32.mrb[43].mxu0 }
 0x14c   :  { %v647_v45 = vadd.f32 %v1143_v38, %v2044_v39  ;;  %v1146_v46 = vadd.f32 %v1145_v44, %v1144_v42  ;;  %v1209_v47 = vpop.f32.mrb[43].mxu1 }
 0x14d   :  { %v1210_v27 = vadd.f32 %v1209_v47, %v1208_v43 }
 0x14e   :  { %v2085_v48 = vadd.f32 %v1207_v25, %v647_v45  ;;  %v650_v49 = vadd.f32 %v1146_v46, %v2046_v41 }
 0x150   :  { %v793_v50 = vadd.f32 %v792_v36, %v2085_v48  ;;  %v2089_v52 = vadd.f32 %v1210_v27, %v650_v49  ;;  %v1147_v56 = vpop.f32.mrb[44].mxu0 }
 0x151   :  { %v1211_v57 = vpop.f32.mrb[44].mxu1  ;;  %v1148_v58 = vpop.f32.mrb[45].mxu0 }
 0x152   :  { %v794_v59 = vadd.f32 %v793_v50, %v2089_v52  ;;  %v1149_v60 = vadd.f32 %v1148_v58, %v1147_v56  ;;  %v1212_v61 = vpop.f32.mrb[45].mxu1  ;;  %v1150_v62 = vpop.f32.mrb[46].mxu0 }
 0x153   :  { %v1213_v39 = vadd.f32 %v1212_v61, %v1211_v57  ;;  %v1214_v63 = vpop.f32.mrb[46].mxu1  ;;  %v1151_v0 = vpop.f32.mrb[47].mxu0 }
 0x154   :  { %v655_v1 = vadd.f32 %v1149_v60, %v2048_v53  ;;  %v1152_v2 = vadd.f32 %v1151_v0, %v1150_v62  ;;  %v1215_v4 = vpop.f32.mrb[47].mxu1 }
 0x155   :  { %v1216_v41 = vadd.f32 %v1215_v4, %v1214_v63 }
 0x156   :  { %v2093_v6 = vadd.f32 %v1213_v39, %v655_v1  ;;  %v658_v8 = vadd.f32 %v1152_v2, %v2050_v55 }
 0x158   :  { %v795_v10 = vadd.f32 %v794_v59, %v2093_v6  ;;  %v2097_v12 = vadd.f32 %v1216_v41, %v658_v8  ;;  %v1153_v14 = vpop.f32.mrb[48].mxu0 }
 0x159   :  { %v1217_v15 = vpop.f32.mrb[48].mxu1  ;;  %v1154_v16 = vpop.f32.mrb[49].mxu0 }
 0x15a   :  { %v796_v17 = vadd.f32 %v795_v10, %v2097_v12  ;;  %v1155_v18 = vadd.f32 %v1154_v16, %v1153_v14  ;;  %v1218_v20 = vpop.f32.mrb[49].mxu1  ;;  %v1156_v11 = vpop.f32.mrb[50].mxu0 }
 0x15b   :  { %v1219_v53 = vadd.f32 %v1218_v20, %v1217_v15  ;;  %v1220_v22 = vpop.f32.mrb[50].mxu1  ;;  %v1157_v23 = vpop.f32.mrb[51].mxu0 }
 0x15c   :  { %v663_v24 = vadd.f32 %v1155_v18, %v2052_v3  ;;  %v1158_v26 = vadd.f32 %v1157_v23, %v1156_v11  ;;  %v1221_v28 = vpop.f32.mrb[51].mxu1 }
 0x15d   :  { %v1222_v55 = vadd.f32 %v1221_v28, %v1220_v22 }
 0x15e   :  { %v2101_v29 = vadd.f32 %v1219_v53, %v663_v24  ;;  %v666_v30 = vadd.f32 %v1158_v26, %v2054_v5 }
 0x160   :  { %v797_v32 = vadd.f32 %v796_v17, %v2101_v29  ;;  %v2105_v33 = vadd.f32 %v1222_v55, %v666_v30  ;;  %v1159_v34 = vpop.f32.mrb[52].mxu0 }
 0x161   :  { %v1223_v36 = vpop.f32.mrb[52].mxu1  ;;  %v1160_v38 = vpop.f32.mrb[53].mxu0 }
 0x162   :  { %v798_v40 = vadd.f32 %v797_v32, %v2105_v33  ;;  %v1161_v42 = vadd.f32 %v1160_v38, %v1159_v34  ;;  %v1224_v25 = vpop.f32.mrb[53].mxu1  ;;  %v1162_v43 = vpop.f32.mrb[54].mxu0 }
 0x163   :  { %v1225_v3 = vadd.f32 %v1224_v25, %v1223_v36  ;;  %v1226_v44 = vpop.f32.mrb[54].mxu1  ;;  %v1163_v45 = vpop.f32.mrb[55].mxu0 }
 0x164   :  { %v671_v46 = vadd.f32 %v1161_v42, %v2056_v19  ;;  %v1164_v47 = vadd.f32 %v1163_v45, %v1162_v43  ;;  %v1227_v27 = vpop.f32.mrb[55].mxu1 }
 0x165   :  { %v1228_v5 = vadd.f32 %v1227_v27, %v1226_v44 }
 0x166   :  { %v768_v49 = vadd.f32 %v1225_v3, %v671_v46  ;;  %v674_v50 = vadd.f32 %v1164_v47, %v2058_v21 }
 0x168   :  { %v799_v56 = vadd.f32 %v798_v40, %v768_v49  ;;  %v771_v57 = vadd.f32 %v1228_v5, %v674_v50  ;;  %v1165_v58 = vpop.f32.mrb[56].mxu0 }
 0x169   :  { %v1229_v59 = vpop.f32.mrb[56].mxu1  ;;  %v1166_v60 = vpop.f32.mrb[57].mxu0 }
 0x16a   :  { %v800_v61 = vadd.f32 %v799_v56, %v771_v57  ;;  %v1167_v62 = vadd.f32 %v1166_v60, %v1165_v58  ;;  %v1230_v39 = vpop.f32.mrb[57].mxu1  ;;  %v1168_v63 = vpop.f32.mrb[58].mxu0 }
 0x16b   :  { %v1231_v0 = vadd.f32 %v1230_v39, %v1229_v59  ;;  %v1232_v1 = vpop.f32.mrb[58].mxu1  ;;  %v1169_v2 = vpop.f32.mrb[59].mxu0 }
 0x16c   :  { %v679_v19 = vadd.f32 %v1167_v62, %v2060_v35  ;;  %v1170_v4 = vadd.f32 %v1169_v2, %v1168_v63  ;;  %v1233_v41 = vpop.f32.mrb[59].mxu1 }
 0x16d   :  { %v1234_v8 = vadd.f32 %v1233_v41, %v1232_v1 }
 0x16e   :  { %v776_v10 = vadd.f32 %v1231_v0, %v679_v19  ;;  %v682_v21 = vadd.f32 %v1170_v4, %v2062_v37 }
 0x170   :  { %v801_v14 = vadd.f32 %v800_v61, %v776_v10  ;;  %v779_v15 = vadd.f32 %v1234_v8, %v682_v21  ;;  %v1171_v16 = vpop.f32.mrb[60].mxu0 }
 0x171   :  { %v1235_v17 = vpop.f32.mrb[60].mxu1  ;;  %v1172_v18 = vpop.f32.mrb[61].mxu0 }
 0x172   :  { %v802_v20 = vadd.f32 %v801_v14, %v779_v15  ;;  %v1173_v11 = vadd.f32 %v1172_v18, %v1171_v16  ;;  %v1236_v53 = vpop.f32.mrb[61].mxu1  ;;  %v1174_v22 = vpop.f32.mrb[62].mxu0 }
 0x173   :  { %v1237_v23 = vadd.f32 %v1236_v53, %v1235_v17  ;;  %v1238_v24 = vpop.f32.mrb[62].mxu1  ;;  %v1175_v26 = vpop.f32.mrb[63].mxu0 }
 0x174   :  { %v687_v35 = vadd.f32 %v1173_v11, %v2064_v51  ;;  %v1176_v28 = vadd.f32 %v1175_v26, %v1174_v22  ;;  %v1239_v55 = vpop.f32.mrb[63].mxu1 }
 0x175   :  { %v1240_v30 = vadd.f32 %v1239_v55, %v1238_v24 }
 0x176   :  { %v784_v32 = vadd.f32 %v1237_v23, %v687_v35  ;;  %v690_v37 = vadd.f32 %v1176_v28, %v2066_v54 }
 0x178   :  { %v803_v34 = vadd.f32 %v802_v20, %v784_v32  ;;  %v787_v36 = vadd.f32 %v1240_v30, %v690_v37 }
 0x17a   :  { %v804_v38 = vadd.f32 %v803_v34, %v787_v36 }
 0x17c   :  { %v805_v40 = vrot.slane %v804_v38, 4 }
 0x17e   :  { %v806_v42 = vadd.f32 %v805_v40, %v804_v38  ;;  %v867_v40 = vld [vmem:[%s2276_s2] sm:$0x1] }
 0x180   :  { %v807_v25 = vrot.slane %v806_v42, 2 }
 0x182   :  { %v808_v43 = vadd.f32 %v807_v25, %v806_v42 }
 0x184   :  { %v809_v3 = vrot.slane %v808_v43, 1 }
 0x186   :  { %v810_v44 = vadd.f32 %v809_v3, %v808_v43 }
 0x188   :  { %v812_v45 = vmul.f32 0.0078125, %v810_v44 }
 0x18a   :  { %v2115_v46 = vsub.f32 %v2069_v7, %v812_v45  ;;  %v2118_v51 = vsub.f32 %v2072_v9, %v812_v45  ;;  %v2121_v47 = vsub.f32 %v2077_v13, %v812_v45  ;;  %v2124_v54 = vsub.f32 %v2081_v31, %v812_v45 }
 0x18b   :  { %v2127_v27 = vsub.f32 %v2085_v48, %v812_v45  ;;  %v2130_v5 = vsub.f32 %v2089_v52, %v812_v45  ;;  %v2133_v50 = vsub.f32 %v2093_v6, %v812_v45  ;;  %v2136_v7 = vsub.f32 %v2097_v12, %v812_v45 }
 0x18c   :  { %v2139_v9 = vsub.f32 %v2101_v29, %v812_v45  ;;  %v2142_v13 = vsub.f32 %v2105_v33, %v812_v45  ;;  %v2144_v31 = vsub.f32 %v768_v49, %v812_v45  ;;  %v2146_v56 = vsub.f32 %v771_v57, %v812_v45 }
 0x18d   :  { %v2148_v48 = vsub.f32 %v776_v10, %v812_v45  ;;  %v2150_v52 = vsub.f32 %v779_v15, %v812_v45  ;;  %v2152_v58 = vsub.f32 %v784_v32, %v812_v45  ;;  %v2154_v6 = vsub.f32 %v787_v36, %v812_v45 }
 0x18e   :  { %v829_v12 = vmul.f32 %v2115_v46, %v2115_v46  ;;  %v830_v29 = vmul.f32 %v2118_v51, %v2118_v51  ;;  %v831_v33 = vmul.f32 %v2121_v47, %v2121_v47  ;;  %v832_v57 = vmul.f32 %v2124_v54, %v2124_v54 }
 0x18f   :  { %v833_v60 = vmul.f32 %v2127_v27, %v2127_v27  ;;  %v834_v62 = vmul.f32 %v2130_v5, %v2130_v5  ;;  %v835_v63 = vmul.f32 %v2133_v50, %v2133_v50  ;;  %v836_v1 = vmul.f32 %v2136_v7, %v2136_v7 }
 0x190   :  { %v845_v49 = vadd.f32 %v830_v29, %v829_v12  ;;  %v837_v19 = vmul.f32 %v2139_v9, %v2139_v9  ;;  %v838_v41 = vmul.f32 %v2142_v13, %v2142_v13  ;;  %v839_v10 = vmul.f32 %v2144_v31, %v2144_v31 }
 0x191   :  { %v840_v14 = vmul.f32 %v2146_v56, %v2146_v56  ;;  %v841_v16 = vmul.f32 %v2148_v48, %v2148_v48  ;;  %v842_v18 = vmul.f32 %v2150_v52, %v2150_v52  ;;  %v843_v11 = vmul.f32 %v2152_v58, %v2152_v58 }
 0x192   :  { %v846_v59 = vadd.f32 %v845_v49, %v831_v33  ;;  %v844_v22 = vmul.f32 %v2154_v6, %v2154_v6  ;;  %v872_v36 = vlaneseq }
 0x194   :  { %v847_v61 = vadd.f32 %v846_v59, %v832_v57  ;;  %v873_v38 = vshrl.u32 %v872_v36, 7 }
 0x196   :  { %v848_v39 = vadd.f32 %v847_v61, %v833_v60  ;;  %v874_v42 = vsub.s32 0, %v873_v38  ;;  %v984_v60 = vld [vmem:[%s2277_s3] ss:$0 sm:$0xff] }
 0x198   :  { %v849_v0 = vadd.f32 %v848_v39, %v834_v62 }
 0x19a   :  { %v850_v2 = vadd.f32 %v849_v0, %v835_v63 }
 0x19c   :  { %v851_v4 = vadd.f32 %v850_v2, %v836_v1 }
 0x19e   :  { %v852_v8 = vadd.f32 %v851_v4, %v837_v19 }
 0x1a0   :  { %v853_v21 = vadd.f32 %v852_v8, %v838_v41 }
 0x1a2   :  { %v854_v15 = vadd.f32 %v853_v21, %v839_v10 }
 0x1a4   :  { %v855_v17 = vadd.f32 %v854_v15, %v840_v14 }
 0x1a6   :  { %v856_v20 = vadd.f32 %v855_v17, %v841_v16 }
 0x1a8   :  { %v857_v53 = vadd.f32 %v856_v20, %v842_v18 }
 0x1aa   :  { %v858_v23 = vadd.f32 %v857_v53, %v843_v11 }
 0x1ac   :  { %v859_v24 = vadd.f32 %v858_v23, %v844_v22 }
 0x1ae   :  { %v860_v26 = vrot.slane %v859_v24, 4 }
 0x1b0   :  { %v861_v35 = vadd.f32 %v860_v26, %v859_v24 }
 0x1b2   :  { %v862_v28 = vrot.slane %v861_v35, 2 }
 0x1b4   :  { %v863_v55 = vadd.f32 %v862_v28, %v861_v35 }
 0x1b6   :  { %v864_v30 = vrot.slane %v863_v55, 1 }
 0x1b8   :  { %v865_v32 = vadd.f32 %v864_v30, %v863_v55 }
 0x1ba   :  { %v866_v37 = vmul.f32 0.0078125, %v865_v32 }
 0x1bc   :  { %v868_v34 = vadd.f32 1e-05, %v866_v37 }
 0x1be   :  { %1241 = vrsqrt.f32 %v868_v34 }
 0x1c8   :  { %v1242_v25 = vpop.eup %1241 }
 0x1c9   :  { %v870_v43 = vmul.f32 %v1242_v25, %v867_v40 }
 0x1cb   :  { %v875_v3 = vrot.slane %v870_v43, %v874_v42 }
 0x1cd   :  { %v877_v44 = vmul.f32 %v875_v3, %v2115_v46  ;;  %v878_v45 = vmul.f32 %v875_v3, %v2118_v51  ;;  %v879_v12 = vmul.f32 %v875_v3, %v2121_v47  ;;  %v880_v29 = vmul.f32 %v875_v3, %v2124_v54 }
 0x1ce   :  { %v881_v33 = vmul.f32 %v875_v3, %v2127_v27  ;;  %v882_v49 = vmul.f32 %v875_v3, %v2130_v5  ;;  %v883_v57 = vmul.f32 %v875_v3, %v2133_v50  ;;  %v884_v59 = vmul.f32 %v875_v3, %v2136_v7 }
 0x1cf   :  { %v885_v46 = vmul.f32 %v875_v3, %v2139_v9  ;;  %v886_v51 = vmul.f32 %v875_v3, %v2142_v13  ;;  %v887_v47 = vmul.f32 %v875_v3, %v2144_v31  ;;  %v888_v54 = vmul.f32 %v875_v3, %v2146_v56 }
 0x1d0   :  { %v889_v27 = vmul.f32 %v875_v3, %v2148_v48  ;;  %v890_v5 = vmul.f32 %v875_v3, %v2150_v52  ;;  %v891_v50 = vmul.f32 %v875_v3, %v2152_v58  ;;  %v892_v7 = vmul.f32 %v875_v3, %v2154_v6 }
 0x1d1   :  { %v900_v61 = vadd.f32 %v984_v60, %v877_v44  ;;  %v901_v62 = vadd.f32 %v984_v60, %v878_v45  ;;  %v902_v39 = vadd.f32 %v984_v60, %v879_v12  ;;  %v903_v63 = vadd.f32 %v984_v60, %v880_v29 }
 0x1d2   :  { %v904_v0 = vadd.f32 %v984_v60, %v881_v33  ;;  %v905_v9 = vadd.f32 %v984_v60, %v882_v49  ;;  %v906_v1 = vadd.f32 %v984_v60, %v883_v57  ;;  %v907_v13 = vadd.f32 %v984_v60, %v884_v59 }
 0x1d3   :  { %v908_v2 = vadd.f32 %v984_v60, %v885_v46  ;;  %v909_v31 = vadd.f32 %v984_v60, %v886_v51  ;;  %v910_v19 = vadd.f32 %v984_v60, %v887_v47  ;;  %v911_v56 = vadd.f32 %v984_v60, %v888_v54 }
 0x1d4   :  { %v912_v4 = vadd.f32 %v984_v60, %v889_v27  ;;  %v913_v48 = vadd.f32 %v984_v60, %v890_v5  ;;  %v914_v41 = vadd.f32 %v984_v60, %v891_v50  ;;  %v915_v52 = vadd.f32 %v984_v60, %v892_v7 }
 0x1d5   :  { %vm916_vm0 = vcmp.gt.f32.partialorder %v900_v61, 0.0  ;;  %vm917_vm1 = vcmp.gt.f32.partialorder %v901_v62, 0.0  ;;  %vm918_vm2 = vcmp.gt.f32.partialorder %v902_v39, 0.0  ;;  %vm919_vm3 = vcmp.gt.f32.partialorder %v903_v63, 0.0 }
 0x1d6   :  { %vm920_vm4 = vcmp.gt.f32.partialorder %v904_v0, 0.0  ;;  %vm921_vm5 = vcmp.gt.f32.partialorder %v905_v9, 0.0  ;;  %vm922_vm6 = vcmp.gt.f32.partialorder %v906_v1, 0.0  ;;  %vm923_vm7 = vcmp.gt.f32.partialorder %v907_v13, 0.0 }
 0x1d7   :  { %vm924_vm8 = vcmp.gt.f32.partialorder %v908_v2, 0.0  ;;  %vm925_vm9 = vcmp.gt.f32.partialorder %v909_v31, 0.0  ;;  %vm926_vm10 = vcmp.gt.f32.partialorder %v910_v19, 0.0  ;;  %vm927_vm11 = vcmp.gt.f32.partialorder %v911_v56, 0.0 }
 0x1d8   :  { %vm928_vm12 = vcmp.gt.f32.partialorder %v912_v4, 0.0  ;;  %vm929_vm13 = vcmp.gt.f32.partialorder %v913_v48, 0.0  ;;  %vm930_vm14 = vcmp.gt.f32.partialorder %v914_v41, 0.0  ;;  %vm931_vm15 = vcmp.gt.f32.partialorder %v915_v52, 0.0 }
 0x1d9   :  { %v932_v58 = vmul.f32 0.2, %v900_v61  ;;  %v933_v6 = vmul.f32 0.2, %v901_v62  ;;  %v934_v8 = vmul.f32 0.2, %v902_v39 }
 0x1da   :  { %v935_v10 = vmul.f32 0.2, %v903_v63  ;;  %v936_v21 = vmul.f32 0.2, %v904_v0  ;;  %v937_v14 = vmul.f32 0.2, %v905_v9 }
 0x1db   :  { %v938_v15 = vmul.f32 0.2, %v906_v1  ;;  %v939_v16 = vmul.f32 0.2, %v907_v13  ;;  %v940_v17 = vmul.f32 0.2, %v908_v2  ;;  %v948_v18 = vsel %vm916_vm0, %v900_v61, %v932_v58 }
 0x1dc   :  { %v941_v20 = vmul.f32 0.2, %v909_v31  ;;  %v942_v11 = vmul.f32 0.2, %v910_v19  ;;  %v943_v53 = vmul.f32 0.2, %v911_v56  ;;  %v949_v22 = vsel %vm917_vm1, %v901_v62, %v933_v6  ;;  %964 = vst [vmem:[%s2278_s4] sm:$0xff] %v948_v18 }
 0x1dd   :  { %v944_v23 = vmul.f32 0.2, %v912_v4  ;;  %v945_v24 = vmul.f32 0.2, %v913_v48  ;;  %v946_v26 = vmul.f32 0.2, %v914_v41  ;;  %v950_v35 = vsel %vm918_vm2, %v902_v39, %v934_v8 }
 0x1de   :  { %965 = vst [vmem:[%s2278_s4 + $0x8] sm:$0xff] %v949_v22  ;;  %v947_v28 = vmul.f32 0.2, %v915_v52  ;;  %v951_v55 = vsel %vm919_vm3, %v903_v63, %v935_v10  ;;  %v952_v30 = vsel %vm920_vm4, %v904_v0, %v936_v21  ;;  %v953_v32 = vsel %vm921_vm5, %v905_v9, %v937_v14  ;;  %966 = vst [vmem:[%s2278_s4 + $0x10] sm:$0xff] %v950_v35 }
 0x1df   :  { %v954_v37 = vsel %vm922_vm6, %v906_v1, %v938_v15  ;;  %v955_v34 = vsel %vm923_vm7, %v907_v13, %v939_v16  ;;  %v956_v36 = vsel %vm924_vm8, %v908_v2, %v940_v17  ;;  %v957_v38 = vsel %vm925_vm9, %v909_v31, %v941_v20  ;;  %967 = vst [vmem:[%s2278_s4 + $0x18] sm:$0xff] %v951_v55 }
 0x1e0   :  { %968 = vst [vmem:[%s2278_s4 + $0x20] sm:$0xff] %v952_v30  ;;  %969 = vst [vmem:[%s2278_s4 + $0x28] sm:$0xff] %v953_v32  ;;  %v958_v40 = vsel %vm926_vm10, %v910_v19, %v942_v11  ;;  %v959_v42 = vsel %vm927_vm11, %v911_v56, %v943_v53  ;;  %v960_v25 = vsel %vm928_vm12, %v912_v4, %v944_v23 }
 0x1e1   :  { %v961_v43 = vsel %vm929_vm13, %v913_v48, %v945_v24  ;;  %970 = vst [vmem:[%s2278_s4 + $0x30] sm:$0xff] %v954_v37  ;;  %971 = vst [vmem:[%s2278_s4 + $0x38] sm:$0xff] %v955_v34  ;;  %v962_v3 = vsel %vm930_vm14, %v914_v41, %v946_v26  ;;  %v963_v44 = vsel %vm931_vm15, %v915_v52, %v947_v28 }
 0x1e2   :  { %972 = vst [vmem:[%s2278_s4 + $0x40] sm:$0xff] %v956_v36  ;;  %973 = vst [vmem:[%s2278_s4 + $0x48] sm:$0xff] %v957_v38 }
 0x1e3   :  { %974 = vst [vmem:[%s2278_s4 + $0x50] sm:$0xff] %v958_v40  ;;  %975 = vst [vmem:[%s2278_s4 + $0x58] sm:$0xff] %v959_v42 }
 0x1e4   :  { %976 = vst [vmem:[%s2278_s4 + $0x60] sm:$0xff] %v960_v25  ;;  %977 = vst [vmem:[%s2278_s4 + $0x68] sm:$0xff] %v961_v43 }
 0x1e5   :  { %978 = vst [vmem:[%s2278_s4 + $0x70] sm:$0xff] %v962_v3  ;;  %979 = vst [vmem:[%s2278_s4 + $0x78] sm:$0xff] %v963_v44 }

// kernel: discriminator_forward.9
= control target key start
LH: loop header
LB: loop body
LE: loop exit
PB: predicated region body
PF: predicated region fallthrough
CT: control target
= control target key end

     0   :  { %v27_v0 = vlaneseq  ;;  %v567_v2 = vmov 1983009808   ;;  %vm483_vm0 = vcmask 1041408   ;;  %vm555_vm1 = vcmask 1024   ;;  %s736_s1 = inlined_call_operand.vmem [shape: f32[1,4096], index: 1, kind: input, shape index: {}]   ;;  %s737_s0 = inlined_call_operand.vmem [shape: f32[2,4096], index: 0, kind: input, shape index: {}]   ;;  %s738_s2 = inlined_call_operand.vmem [shape: f32[2,1], index: 2, kind: output, shape index: {}]  }
   0x1   :  { %v158_v3 = vunpack.c.l.s4 %v567_v2  ;;  %v19_v5 = vld [vmem:[%s736_s1] sm:$0xff]  ;;  %v20_v27 = vld [vmem:[%s736_s1 + $0x8] sm:$0xff]  ;;  %v21_v53 = vld [vmem:[%s736_s1 + $0x10] sm:$0xff] }
   0x2   :  { %v28_v1 = vshrl.u32 %v27_v0, 7  ;;  %v11_v31 = vld [vmem:[%s737_s0] sm:$0xff]  ;;  %v12_v43 = vld [vmem:[%s737_s0 + $0x8] sm:$0xff]  ;;  %v13_v61 = vld [vmem:[%s737_s0 + $0x10] sm:$0xff] }
   0x3   :  { %v159_v9 = vunpack.c.0.s8 %v158_v3 }
   0x4   :  { %v583_v4 = vsub.s32 0, %v28_v1  ;;  %v588_v6 = vsub.s32 1, %v28_v1  ;;  %v590_v7 = vsub.s32 2, %v28_v1  ;;  %v592_v8 = vsub.s32 3, %v28_v1 }
   0x5   :  { %v595_v11 = vsub.s32 4, %v28_v1  ;;  %v597_v12 = vsub.s32 5, %v28_v1  ;;  %v599_v13 = vsub.s32 6, %v28_v1  ;;  %v604_v17 = vsub.s32 7, %v28_v1 }
   0x6   :  { %v30_v10 = vrot.slane %v19_v5, %v583_v4  ;;  %v34_v14 = vrot.slane %v19_v5, %v588_v6  ;;  %v38_v15 = vrot.slane %v19_v5, %v590_v7  ;;  %v42_v16 = vrot.slane %v19_v5, %v592_v8 }
   0x7   :  { %v46_v18 = vrot.slane %v19_v5, %v595_v11  ;;  %v50_v19 = vrot.slane %v19_v5, %v597_v12  ;;  %v54_v20 = vrot.slane %v19_v5, %v599_v13  ;;  %v58_v21 = vrot.slane %v19_v5, %v604_v17 }
   0x8   :  { %v155_v22 = vcombine.low %v30_v10, %v34_v14  ;;  %v156_v23 = vcombine.low %v38_v15, %v42_v16  ;;  %v610_v24 = vsub.s32 %v159_v9, %v28_v1  ;;  %v62_v32 = vrot.slane %v20_v27, %v583_v4 }
   0x9   :  { %v172_v28 = vcombine.low %v46_v18, %v50_v19  ;;  %v173_v29 = vcombine.low %v54_v20, %v58_v21  ;;  %v66_v33 = vrot.slane %v20_v27, %v588_v6  ;;  %v70_v34 = vrot.slane %v20_v27, %v590_v7 }
   0xa   :  { %v163_v25 = vrot.slane %v155_v22, %v610_v24  ;;  %v170_v26 = vrot.slane %v156_v23, %v610_v24  ;;  %v74_v35 = vrot.slane %v20_v27, %v592_v8  ;;  %v78_v45 = vrot.slane %v20_v27, %v595_v11 }
   0xb   :  { %v180_v36 = vrot.slane %v172_v28, %v610_v24  ;;  %v187_v37 = vrot.slane %v173_v29, %v610_v24  ;;  %v189_v40 = vcombine.low %v62_v32, %v66_v33  ;;  %v82_v46 = vrot.slane %v20_v27, %v597_v12 }
   0xc   :  { %v171_v30 = vcombine.low %v163_v25, %v170_v26  ;;  %v190_v41 = vcombine.low %v70_v34, %v74_v35  ;;  %v86_v47 = vrot.slane %v20_v27, %v599_v13  ;;  %v90_v48 = vrot.slane %v20_v27, %v604_v17 }
   0xd   :  { %v188_v39 = vcombine.low %v180_v36, %v187_v37  ;;  %v197_v49 = vrot.slane %v189_v40, %v610_v24  ;;  %v206_v55 = vcombine.low %v78_v45, %v82_v46  ;;  %v94_v62 = vrot.slane %v21_v53, %v583_v4 }
   0xe   :  { %v299_v38 = vmul.f32 %v171_v30, %v11_v31  ;;  %v204_v50 = vrot.slane %v190_v41, %v610_v24  ;;  %v207_v56 = vcombine.low %v86_v47, %v90_v48  ;;  %v98_v0 = vrot.slane %v21_v53, %v588_v6  ;;  %v14_v31 = vld [vmem:[%s737_s0 + $0x18] sm:$0xff] }
   0xf   :  { %v300_v51 = vmul.f32 %v188_v39, %v12_v43  ;;  %v102_v1 = vrot.slane %v21_v53, %v590_v7  ;;  %v106_v5 = vrot.slane %v21_v53, %v592_v8  ;;  %v214_v9 = vrot.slane %v206_v55, %v610_v24  ;;  %v22_v47 = vld [vmem:[%s736_s1 + $0x18] sm:$0xff] }
  0x10   :  { %v315_v42 = vcombine.high %v299_v38, %v299_v38  ;;  %v322_v44 = vrot.slane %v299_v38, %v610_v24  ;;  %v205_v57 = vcombine.low %v197_v49, %v204_v50  ;;  %v221_v10 = vrot.slane %v207_v56, %v610_v24  ;;  %v15_v56 = vld [vmem:[%s737_s0 + $0x20] sm:$0xff] }
  0x11   :  { %v332_v59 = vcombine.high %v300_v51, %v300_v51  ;;  %v339_v60 = vrot.slane %v300_v51, %v610_v24  ;;  %v223_v23 = vcombine.low %v94_v62, %v98_v0  ;;  %v224_v25 = vcombine.low %v102_v1, %v106_v5 }
  0x12   :  { %v329_v52 = vrot.slane %v315_v42, %v610_v24  ;;  %v330_v54 = vcombine.high %v322_v44, %v322_v44  ;;  %v484_v63 = vsel %vm483_vm0, %v322_v44, 0.0  ;;  %v301_v15 = vmul.f32 %v205_v57, %v13_v61 }
  0x13   :  { %v346_v16 = vrot.slane %v332_v59, %v610_v24  ;;  %v347_v18 = vcombine.high %v339_v60, %v339_v60  ;;  %v491_v21 = vsel %vm483_vm0, %v339_v60, 0.0  ;;  %v222_v22 = vcombine.low %v214_v9, %v221_v10 }
  0x14   :  { %v331_v58 = vcombine.high %v329_v52, %v329_v52  ;;  %v485_v2 = vsel %vm483_vm0, %v330_v54, 0.0  ;;  %v487_v3 = vsel %vm483_vm0, %v329_v52, 0.0  ;;  %v349_v28 = vcombine.high %v301_v15, %v301_v15 }
  0x15   :  { %v486_v14 = vadd.f32 %v485_v2, %v484_v63  ;;  %v348_v27 = vcombine.high %v346_v16, %v346_v16  ;;  %v356_v29 = vrot.slane %v301_v15, %v610_v24  ;;  %v493_v30 = vsel %vm483_vm0, %v347_v18, 0.0 }
  0x16   :  { %v489_v19 = vsel %vm483_vm0, %v331_v58, 0.0  ;;  %v110_v33 = vrot.slane %v21_v53, %v595_v11  ;;  %v114_v34 = vrot.slane %v21_v53, %v597_v12  ;;  %v118_v35 = vrot.slane %v21_v53, %v599_v13 }
  0x17   :  { %v488_v20 = vadd.f32 %v487_v3, %v486_v14  ;;  %v495_v36 = vsel %vm483_vm0, %v346_v16, 0.0  ;;  %v122_v37 = vrot.slane %v21_v53, %v604_v17  ;;  %v231_v38 = vrot.slane %v223_v23, %v610_v24 }
  0x18   :  { %v238_v39 = vrot.slane %v224_v25, %v610_v24  ;;  %v302_v41 = vmul.f32 %v222_v22, %v14_v31  ;;  %v363_v42 = vrot.slane %v349_v28, %v610_v24  ;;  %v364_v43 = vcombine.high %v356_v29, %v356_v29 }
  0x19   :  { %v490_v26 = vadd.f32 %v489_v19, %v488_v20  ;;  %v497_v44 = vsel %vm483_vm0, %v348_v27, 0.0  ;;  %v499_v46 = vsel %vm483_vm0, %v356_v29, 0.0  ;;  %v240_v49 = vcombine.low %v110_v33, %v114_v34  ;;  %v16_v20 = vld [vmem:[%s737_s0 + $0x28] sm:$0xff] }
  0x1a   :  { %v239_v48 = vcombine.low %v231_v38, %v238_v39  ;;  %v241_v50 = vcombine.low %v118_v35, %v122_v37  ;;  %v365_v52 = vcombine.high %v363_v42, %v363_v42  ;;  %v366_v53 = vcombine.high %v302_v41, %v302_v41 }
  0x1b   :  { %v492_v32 = vadd.f32 %v491_v21, %v490_v26  ;;  %v373_v54 = vrot.slane %v302_v41, %v610_v24  ;;  %v501_v55 = vsel %vm483_vm0, %v364_v43, 0.0  ;;  %v126_v58 = vrot.slane %v22_v47, %v583_v4  ;;  %v17_v41 = vld [vmem:[%s737_s0 + $0x30] sm:$0xff] }
  0x1c   :  { %v130_v59 = vrot.slane %v22_v47, %v588_v6  ;;  %v134_v60 = vrot.slane %v22_v47, %v590_v7  ;;  %v503_v61 = vsel %vm483_vm0, %v363_v42, 0.0  ;;  %v138_v62 = vrot.slane %v22_v47, %v592_v8 }
  0x1d   :  { %v494_v40 = vadd.f32 %v493_v30, %v492_v32  ;;  %v248_v63 = vrot.slane %v240_v49, %v610_v24  ;;  %v255_v0 = vrot.slane %v241_v50, %v610_v24  ;;  %v303_v2 = vmul.f32 %v239_v48, %v15_v56 }
  0x1e   :  { %v380_v3 = vrot.slane %v366_v53, %v610_v24  ;;  %v381_v5 = vcombine.high %v373_v54, %v373_v54  ;;  %v505_v9 = vsel %vm483_vm0, %v365_v52, 0.0  ;;  %v507_v6 = vsel %vm483_vm0, %v373_v54, 0.0 }
  0x1f   :  { %v496_v45 = vadd.f32 %v495_v36, %v494_v40  ;;  %v256_v10 = vcombine.low %v248_v63, %v255_v0  ;;  %v257_v7 = vcombine.low %v126_v58, %v130_v59  ;;  %v258_v14 = vcombine.low %v134_v60, %v138_v62  ;;  %v18_v59 = vld [vmem:[%s737_s0 + $0x38] sm:$0xff] }
  0x20   :  { %v382_v16 = vcombine.high %v380_v3, %v380_v3  ;;  %v383_v8 = vcombine.high %v303_v2, %v303_v2  ;;  %v390_v18 = vrot.slane %v303_v2, %v610_v24  ;;  %v509_v19 = vsel %vm483_vm0, %v381_v5, 0.0 }
  0x21   :  { %v498_v51 = vadd.f32 %v497_v44, %v496_v45  ;;  %v142_v22 = vrot.slane %v22_v47, %v595_v11  ;;  %v146_v23 = vrot.slane %v22_v47, %v597_v12  ;;  %v150_v25 = vrot.slane %v22_v47, %v599_v13 }
  0x22   :  { %v511_v26 = vsel %vm483_vm0, %v380_v3, 0.0  ;;  %v154_v27 = vrot.slane %v22_v47, %v604_v17  ;;  %v265_v28 = vrot.slane %v257_v7, %v610_v24  ;;  %v272_v29 = vrot.slane %v258_v14, %v610_v24 }
  0x23   :  { %v500_v57 = vadd.f32 %v499_v46, %v498_v51  ;;  %v304_v31 = vmul.f32 %v256_v10, %v16_v20  ;;  %v397_v32 = vrot.slane %v383_v8, %v610_v24  ;;  %v398_v33 = vcombine.high %v390_v18, %v390_v18 }
  0x24   :  { %v513_v34 = vsel %vm483_vm0, %v382_v16, 0.0  ;;  %v515_v12 = vsel %vm483_vm0, %v390_v18, 0.0  ;;  %v273_v35 = vcombine.low %v265_v28, %v272_v29  ;;  %v274_v13 = vcombine.low %v142_v22, %v146_v23 }
  0x25   :  { %v502_v1 = vadd.f32 %v501_v55, %v500_v57  ;;  %v275_v36 = vcombine.low %v150_v25, %v154_v27  ;;  %v399_v38 = vcombine.high %v397_v32, %v397_v32  ;;  %v400_v17 = vcombine.high %v304_v31, %v304_v31 }
  0x26   :  { %v407_v39 = vrot.slane %v304_v31, %v610_v24  ;;  %v517_v40 = vsel %vm483_vm0, %v398_v33, 0.0  ;;  %v519_v43 = vsel %vm483_vm0, %v397_v32, 0.0  ;;  %v282_v44 = vrot.slane %v274_v13, %v610_v24 }
  0x27   :  { %v504_v4 = vadd.f32 %v503_v61, %v502_v1  ;;  %v289_v45 = vrot.slane %v275_v36, %v610_v24  ;;  %v305_v47 = vmul.f32 %v273_v35, %v17_v41  ;;  %v414_v48 = vrot.slane %v400_v17, %v610_v24 }
  0x28   :  { %v415_v49 = vcombine.high %v407_v39, %v407_v39  ;;  %v521_v50 = vsel %vm483_vm0, %v399_v38, 0.0  ;;  %v523_v52 = vsel %vm483_vm0, %v407_v39, 0.0 }
  0x29   :  { %v506_v15 = vadd.f32 %v505_v9, %v504_v4  ;;  %v290_v53 = vcombine.low %v282_v44, %v289_v45  ;;  %v416_v55 = vcombine.high %v414_v48, %v414_v48  ;;  %v417_v56 = vcombine.high %v305_v47, %v305_v47 }
  0x2a   :  { %v424_v57 = vrot.slane %v305_v47, %v610_v24  ;;  %v525_v58 = vsel %vm483_vm0, %v415_v49, 0.0  ;;  %v527_v61 = vsel %vm483_vm0, %v414_v48, 0.0 }
  0x2b   :  { %v508_v21 = vadd.f32 %v507_v6, %v506_v15  ;;  %v306_v63 = vmul.f32 %v290_v53, %v18_v59  ;;  %v431_v0 = vrot.slane %v417_v56, %v610_v24  ;;  %v529_v2 = vsel %vm483_vm0, %v416_v55, 0.0 }
  0x2c   :  { %v432_v1 = vcombine.high %v424_v57, %v424_v57  ;;  %v531_v5 = vsel %vm483_vm0, %v424_v57, 0.0 }
  0x2d   :  { %v510_v30 = vadd.f32 %v509_v19, %v508_v21  ;;  %v433_v4 = vcombine.high %v431_v0, %v431_v0  ;;  %v434_v6 = vcombine.high %v306_v63, %v306_v63  ;;  %v441_v10 = vrot.slane %v306_v63, %v610_v24 }
  0x2e   :  { %v533_v7 = vsel %vm483_vm0, %v432_v1, 0.0  ;;  %v535_v15 = vsel %vm483_vm0, %v431_v0, 0.0 }
  0x2f   :  { %v512_v11 = vadd.f32 %v511_v26, %v510_v30  ;;  %v448_v8 = vrot.slane %v434_v6, %v610_v24  ;;  %v449_v18 = vcombine.high %v441_v10, %v441_v10  ;;  %v537_v19 = vsel %vm483_vm0, %v433_v4, 0.0 }
  0x30   :  { %v539_v21 = vsel %vm483_vm0, %v441_v10, 0.0 }
  0x31   :  { %v514_v37 = vadd.f32 %v513_v34, %v512_v11  ;;  %v450_v23 = vcombine.high %v448_v8, %v448_v8  ;;  %v541_v25 = vsel %vm483_vm0, %v449_v18, 0.0  ;;  %v543_v27 = vsel %vm483_vm0, %v448_v8, 0.0 }
  0x33   :  { %v516_v42 = vadd.f32 %v515_v12, %v514_v37  ;;  %v545_v29 = vsel %vm483_vm0, %v450_v23, 0.0 }
  0x35   :  { %v518_v46 = vadd.f32 %v517_v40, %v516_v42 }
  0x37   :  { %v520_v51 = vadd.f32 %v519_v43, %v518_v46 }
  0x39   :  { %v522_v54 = vadd.f32 %v521_v50, %v520_v51 }
  0x3b   :  { %v524_v60 = vadd.f32 %v523_v52, %v522_v54 }
  0x3d   :  { %v526_v62 = vadd.f32 %v525_v58, %v524_v60 }
  0x3f   :  { %v528_v3 = vadd.f32 %v527_v61, %v526_v62 }
  0x41   :  { %v530_v9 = vadd.f32 %v529_v2, %v528_v3 }
  0x43   :  { %v532_v14 = vadd.f32 %v531_v5, %v530_v9 }
  0x45   :  { %v534_v16 = vadd.f32 %v533_v7, %v532_v14 }
  0x47   :  { %v536_v20 = vadd.f32 %v535_v15, %v534_v16 }
  0x49   :  { %v538_v22 = vadd.f32 %v537_v19, %v536_v20 }
  0x4b   :  { %v540_v26 = vadd.f32 %v539_v21, %v538_v22 }
  0x4d   :  { %v542_v28 = vadd.f32 %v541_v25, %v540_v26 }
  0x4f   :  { %v544_v30 = vadd.f32 %v543_v27, %v542_v28 }
  0x51   :  { %v546_v31 = vadd.f32 %v545_v29, %v544_v30 }
  0x53   :  { %547 = vadd.xlane.f32.xlu0 %v546_v31 }
  0xe0   :  { %v548_v24 = vpop.xlane.xlu0 %547 }
  0xe1   :  { %v561_v32 = vmul.f32 -1.442695, %v548_v24 }
  0xe3   :  { %563 = vpow2.f32 %v561_v32 }
  0xed   :  { %v564_v33 = vpop.eup %563 }
  0xee   :  { %v552_v34 = vadd.f32 1.0, %v564_v33 }
  0xf0   :  { %565 = vrcp.f32 %v552_v34 }
  0xfa   :  { %v566_v11 = vpop.eup %565 }
  0xfb   :  { %556 = vst.msk [vmem:[%s738_s2] sm:$0x3] %vm555_vm1, %v566_v11 }

// kernel: discriminator_forward.8
= control target key start
LH: loop header
LB: loop body
LE: loop exit
PB: predicated region body
PF: predicated region fallthrough
CT: control target
= control target key end

     0   :  { %s3329_s1 = inlined_call_operand.vmem [shape: f32[2048,256], index: 1, kind: input, shape index: {}]   ;;  %s3330_s0 = inlined_call_operand.vmem [shape: f32[32,2048], index: 0, kind: input, shape index: {}]   ;;  %s3331_s2 = inlined_call_operand.vmem [shape: f32[1,256], index: 2, kind: input, shape index: {}]   ;;  %s3332_s3 = inlined_call_operand.vmem [shape: f32[1,256], index: 3, kind: input, shape index: {}]   ;;  %s3333_s4 = inlined_call_operand.vmem [shape: f32[32,256], index: 4, kind: output, shape index: {}]  }
   0x1   :  { %v114_v0 = vld [vmem:[%s3329_s1 + $0x8] sm:$0xff]  ;;  %v116_v1 = vld [vmem:[%s3329_s1 + $0x18] sm:$0xff]  ;;  %v113_v5 = vld [vmem:[%s3329_s1] sm:$0xff] }
   0x2   :  { %v370_v2 = vld [vmem:[%s3329_s1 + $0x808] sm:$0xff]  ;;  %v626_v3 = vpack.c.bf16 %v116_v1, %v114_v0  ;;  %v372_v4 = vld [vmem:[%s3329_s1 + $0x818] sm:$0xff]  ;;  %v115_v6 = vld [vmem:[%s3329_s1 + $0x10] sm:$0xff] }
   0x3   :  { %v754_v7 = vpack.c.bf16 %v372_v4, %v370_v2  ;;  %v625_v8 = vpack.c.bf16 %v115_v6, %v113_v5  ;;  %v369_v9 = vld [vmem:[%s3329_s1 + $0x800] sm:$0xff]  ;;  %v371_v10 = vld [vmem:[%s3329_s1 + $0x810] sm:$0xff]  ;;  %v118_v11 = vld [vmem:[%s3329_s1 + $0x28] sm:$0xff] }
   0x4   :  { %881 = vmatprep.subr.bf16.mxu1 %v626_v3  ;;  %v753_v12 = vpack.c.bf16 %v371_v10, %v369_v9  ;;  %v120_v13 = vld [vmem:[%s3329_s1 + $0x38] sm:$0xff]  ;;  %v374_v14 = vld [vmem:[%s3329_s1 + $0x828] sm:$0xff]  ;;  %v117_v18 = vld [vmem:[%s3329_s1 + $0x20] sm:$0xff] }
   0x5   :  { %v376_v15 = vld [vmem:[%s3329_s1 + $0x838] sm:$0xff]  ;;  %1093 = vmatprep.subr.bf16.mxu0 %v754_v7  ;;  %882 = vmatpush1.bf16.msra.mxu1 %v625_v8  ;;  %v628_v16 = vpack.c.bf16 %v120_v13, %v118_v11  ;;  %v119_v19 = vld [vmem:[%s3329_s1 + $0x30] sm:$0xff]  ;;  %v373_v20 = vld [vmem:[%s3329_s1 + $0x820] sm:$0xff] }
   0x6   :  { %v756_v17 = vpack.c.bf16 %v376_v15, %v374_v14  ;;  %1094 = vmatpush1.bf16.msra.mxu0 %v753_v12  ;;  %v627_v21 = vpack.c.bf16 %v119_v19, %v117_v18  ;;  %v375_v22 = vld [vmem:[%s3329_s1 + $0x830] sm:$0xff]  ;;  %v122_v23 = vld [vmem:[%s3329_s1 + $0x48] sm:$0xff]  ;;  %v124_v24 = vld [vmem:[%s3329_s1 + $0x58] sm:$0xff] }
   0x7   :  { %883 = vmatprep.subr.bf16.mxu1 %v628_v16  ;;  %v755_v25 = vpack.c.bf16 %v375_v22, %v373_v20  ;;  %v630_v26 = vpack.c.bf16 %v124_v24, %v122_v23  ;;  %v378_v27 = vld [vmem:[%s3329_s1 + $0x848] sm:$0xff]  ;;  %v380_v28 = vld [vmem:[%s3329_s1 + $0x858] sm:$0xff]  ;;  %v121_v29 = vld [vmem:[%s3329_s1 + $0x40] sm:$0xff] }
   0x8   :  { %1095 = vmatprep.subr.bf16.mxu0 %v756_v17  ;;  %v758_v30 = vpack.c.bf16 %v380_v28, %v378_v27  ;;  %v123_v31 = vld [vmem:[%s3329_s1 + $0x50] sm:$0xff]  ;;  %v377_v32 = vld [vmem:[%s3329_s1 + $0x840] sm:$0xff]  ;;  %v126_v35 = vld [vmem:[%s3329_s1 + $0x68] sm:$0xff] }
   0x9   :  { %v379_v33 = vld [vmem:[%s3329_s1 + $0x850] sm:$0xff]  ;;  %884 = vmatpush1.bf16.msra.mxu1 %v627_v21  ;;  %v629_v34 = vpack.c.bf16 %v123_v31, %v121_v29  ;;  %v128_v36 = vld [vmem:[%s3329_s1 + $0x78] sm:$0xff]  ;;  %v382_v37 = vld [vmem:[%s3329_s1 + $0x868] sm:$0xff] }
   0xa   :  { %1096 = vmatpush1.bf16.msra.mxu0 %v755_v25  ;;  %885 = vmatprep.subr.bf16.mxu1 %v630_v26  ;;  %v757_v38 = vpack.c.bf16 %v379_v33, %v377_v32  ;;  %v632_v39 = vpack.c.bf16 %v128_v36, %v126_v35  ;;  %v384_v40 = vld [vmem:[%s3329_s1 + $0x878] sm:$0xff]  ;;  %v125_v41 = vld [vmem:[%s3329_s1 + $0x60] sm:$0xff]  ;;  %v127_v42 = vld [vmem:[%s3329_s1 + $0x70] sm:$0xff] }
   0xb   :  { %1097 = vmatprep.subr.bf16.mxu0 %v758_v30  ;;  %v760_v43 = vpack.c.bf16 %v384_v40, %v382_v37  ;;  %v381_v44 = vld [vmem:[%s3329_s1 + $0x860] sm:$0xff]  ;;  %v383_v45 = vld [vmem:[%s3329_s1 + $0x870] sm:$0xff]  ;;  %v130_v46 = vld [vmem:[%s3329_s1 + $0x88] sm:$0xff]  ;;  %v631_v50 = vpack.c.bf16 %v127_v42, %v125_v41 }
   0xc   :  { %v132_v47 = vld [vmem:[%s3329_s1 + $0x98] sm:$0xff]  ;;  %v386_v48 = vld [vmem:[%s3329_s1 + $0x888] sm:$0xff]  ;;  %v759_v51 = vpack.c.bf16 %v383_v45, %v381_v44  ;;  %v129_v53 = vld [vmem:[%s3329_s1 + $0x80] sm:$0xff] }
   0xd   :  { %v388_v49 = vld [vmem:[%s3329_s1 + $0x898] sm:$0xff]  ;;  %886 = vmatpush1.bf16.msra.mxu1 %v629_v34  ;;  %v634_v52 = vpack.c.bf16 %v132_v47, %v130_v46  ;;  %v131_v54 = vld [vmem:[%s3329_s1 + $0x90] sm:$0xff]  ;;  %v385_v55 = vld [vmem:[%s3329_s1 + $0x880] sm:$0xff] }
   0xe   :  { %1098 = vmatpush1.bf16.msra.mxu0 %v757_v38  ;;  %887 = vmatprep.subr.bf16.mxu1 %v632_v39  ;;  %v762_v56 = vpack.c.bf16 %v388_v49, %v386_v48  ;;  %v387_v57 = vld [vmem:[%s3329_s1 + $0x890] sm:$0xff]  ;;  %v134_v58 = vld [vmem:[%s3329_s1 + $0xa8] sm:$0xff]  ;;  %v136_v59 = vld [vmem:[%s3329_s1 + $0xb8] sm:$0xff]  ;;  %v633_v62 = vpack.c.bf16 %v131_v54, %v129_v53 }
   0xf   :  { %1099 = vmatprep.subr.bf16.mxu0 %v760_v43  ;;  %v390_v60 = vld [vmem:[%s3329_s1 + $0x8a8] sm:$0xff]  ;;  %v392_v61 = vld [vmem:[%s3329_s1 + $0x8b8] sm:$0xff]  ;;  %v761_v63 = vpack.c.bf16 %v387_v57, %v385_v55  ;;  %v636_v0 = vpack.c.bf16 %v136_v59, %v134_v58  ;;  %v133_v1 = vld [vmem:[%s3329_s1 + $0xa0] sm:$0xff] }
  0x10   :  { %v135_v2 = vld [vmem:[%s3329_s1 + $0xb0] sm:$0xff]  ;;  %v389_v3 = vld [vmem:[%s3329_s1 + $0x8a0] sm:$0xff]  ;;  %v764_v4 = vpack.c.bf16 %v392_v61, %v390_v60  ;;  %v138_v6 = vld [vmem:[%s3329_s1 + $0xc8] sm:$0xff] }
  0x11   :  { %888 = vmatpush1.bf16.msra.mxu1 %v631_v50  ;;  %v391_v5 = vld [vmem:[%s3329_s1 + $0x8b0] sm:$0xff]  ;;  %v140_v7 = vld [vmem:[%s3329_s1 + $0xd8] sm:$0xff]  ;;  %v394_v8 = vld [vmem:[%s3329_s1 + $0x8c8] sm:$0xff]  ;;  %v635_v10 = vpack.c.bf16 %v135_v2, %v133_v1 }
  0x12   :  { %1100 = vmatpush1.bf16.msra.mxu0 %v759_v51  ;;  %889 = vmatprep.subr.bf16.mxu1 %v634_v52  ;;  %v396_v9 = vld [vmem:[%s3329_s1 + $0x8d8] sm:$0xff]  ;;  %v763_v11 = vpack.c.bf16 %v391_v5, %v389_v3  ;;  %v638_v12 = vpack.c.bf16 %v140_v7, %v138_v6  ;;  %v137_v13 = vld [vmem:[%s3329_s1 + $0xc0] sm:$0xff]  ;;  %v139_v14 = vld [vmem:[%s3329_s1 + $0xd0] sm:$0xff] }
  0x13   :  { %1101 = vmatprep.subr.bf16.mxu0 %v762_v56  ;;  %v393_v15 = vld [vmem:[%s3329_s1 + $0x8c0] sm:$0xff]  ;;  %v766_v16 = vpack.c.bf16 %v396_v9, %v394_v8  ;;  %v395_v17 = vld [vmem:[%s3329_s1 + $0x8d0] sm:$0xff]  ;;  %v142_v18 = vld [vmem:[%s3329_s1 + $0xe8] sm:$0xff]  ;;  %v637_v22 = vpack.c.bf16 %v139_v14, %v137_v13 }
  0x14   :  { %v144_v19 = vld [vmem:[%s3329_s1 + $0xf8] sm:$0xff]  ;;  %v398_v20 = vld [vmem:[%s3329_s1 + $0x8e8] sm:$0xff]  ;;  %v765_v23 = vpack.c.bf16 %v395_v17, %v393_v15  ;;  %v141_v25 = vld [vmem:[%s3329_s1 + $0xe0] sm:$0xff] }
  0x15   :  { %890 = vmatpush1.bf16.msra.mxu1 %v633_v62  ;;  %v400_v21 = vld [vmem:[%s3329_s1 + $0x8f8] sm:$0xff]  ;;  %v640_v24 = vpack.c.bf16 %v144_v19, %v142_v18  ;;  %v143_v26 = vld [vmem:[%s3329_s1 + $0xf0] sm:$0xff]  ;;  %v397_v27 = vld [vmem:[%s3329_s1 + $0x8e0] sm:$0xff] }
  0x16   :  { %1102 = vmatpush1.bf16.msra.mxu0 %v761_v63  ;;  %891 = vmatprep.subr.bf16.mxu1 %v636_v0  ;;  %v768_v28 = vpack.c.bf16 %v400_v21, %v398_v20  ;;  %v399_v29 = vld [vmem:[%s3329_s1 + $0x8f0] sm:$0xff]  ;;  %v146_v30 = vld [vmem:[%s3329_s1 + $0x108] sm:$0xff]  ;;  %v148_v31 = vld [vmem:[%s3329_s1 + $0x118] sm:$0xff]  ;;  %v639_v34 = vpack.c.bf16 %v143_v26, %v141_v25 }
  0x17   :  { %1103 = vmatprep.subr.bf16.mxu0 %v764_v4  ;;  %v402_v32 = vld [vmem:[%s3329_s1 + $0x908] sm:$0xff]  ;;  %v404_v33 = vld [vmem:[%s3329_s1 + $0x918] sm:$0xff]  ;;  %v767_v35 = vpack.c.bf16 %v399_v29, %v397_v27  ;;  %v642_v36 = vpack.c.bf16 %v148_v31, %v146_v30  ;;  %v145_v37 = vld [vmem:[%s3329_s1 + $0x100] sm:$0xff] }
  0x18   :  { %v147_v38 = vld [vmem:[%s3329_s1 + $0x110] sm:$0xff]  ;;  %v401_v39 = vld [vmem:[%s3329_s1 + $0x900] sm:$0xff]  ;;  %v770_v40 = vpack.c.bf16 %v404_v33, %v402_v32  ;;  %v150_v42 = vld [vmem:[%s3329_s1 + $0x128] sm:$0xff] }
  0x19   :  { %892 = vmatpush1.bf16.msra.mxu1 %v635_v10  ;;  %v403_v41 = vld [vmem:[%s3329_s1 + $0x910] sm:$0xff]  ;;  %v152_v43 = vld [vmem:[%s3329_s1 + $0x138] sm:$0xff]  ;;  %v406_v44 = vld [vmem:[%s3329_s1 + $0x928] sm:$0xff]  ;;  %v641_v46 = vpack.c.bf16 %v147_v38, %v145_v37 }
  0x1a   :  { %1104 = vmatpush1.bf16.msra.mxu0 %v763_v11  ;;  %893 = vmatprep.subr.bf16.mxu1 %v638_v12  ;;  %v408_v45 = vld [vmem:[%s3329_s1 + $0x938] sm:$0xff]  ;;  %v769_v47 = vpack.c.bf16 %v403_v41, %v401_v39  ;;  %v644_v48 = vpack.c.bf16 %v152_v43, %v150_v42  ;;  %v149_v49 = vld [vmem:[%s3329_s1 + $0x120] sm:$0xff]  ;;  %v151_v50 = vld [vmem:[%s3329_s1 + $0x130] sm:$0xff] }
  0x1b   :  { %1105 = vmatprep.subr.bf16.mxu0 %v766_v16  ;;  %v405_v51 = vld [vmem:[%s3329_s1 + $0x920] sm:$0xff]  ;;  %v772_v52 = vpack.c.bf16 %v408_v45, %v406_v44  ;;  %v407_v53 = vld [vmem:[%s3329_s1 + $0x930] sm:$0xff]  ;;  %v154_v54 = vld [vmem:[%s3329_s1 + $0x148] sm:$0xff]  ;;  %v643_v58 = vpack.c.bf16 %v151_v50, %v149_v49 }
  0x1c   :  { %v156_v55 = vld [vmem:[%s3329_s1 + $0x158] sm:$0xff]  ;;  %v410_v56 = vld [vmem:[%s3329_s1 + $0x948] sm:$0xff]  ;;  %v771_v59 = vpack.c.bf16 %v407_v53, %v405_v51  ;;  %v153_v61 = vld [vmem:[%s3329_s1 + $0x140] sm:$0xff] }
  0x1d   :  { %894 = vmatpush1.bf16.msra.mxu1 %v637_v22  ;;  %v412_v57 = vld [vmem:[%s3329_s1 + $0x958] sm:$0xff]  ;;  %v646_v60 = vpack.c.bf16 %v156_v55, %v154_v54  ;;  %v155_v62 = vld [vmem:[%s3329_s1 + $0x150] sm:$0xff]  ;;  %v409_v63 = vld [vmem:[%s3329_s1 + $0x940] sm:$0xff] }
  0x1e   :  { %1106 = vmatpush1.bf16.msra.mxu0 %v765_v23  ;;  %895 = vmatprep.subr.bf16.mxu1 %v640_v24  ;;  %v774_v0 = vpack.c.bf16 %v412_v57, %v410_v56  ;;  %v411_v1 = vld [vmem:[%s3329_s1 + $0x950] sm:$0xff]  ;;  %v158_v2 = vld [vmem:[%s3329_s1 + $0x168] sm:$0xff]  ;;  %v160_v3 = vld [vmem:[%s3329_s1 + $0x178] sm:$0xff]  ;;  %v645_v6 = vpack.c.bf16 %v155_v62, %v153_v61 }
  0x1f   :  { %1107 = vmatprep.subr.bf16.mxu0 %v768_v28  ;;  %v414_v4 = vld [vmem:[%s3329_s1 + $0x968] sm:$0xff]  ;;  %v416_v5 = vld [vmem:[%s3329_s1 + $0x978] sm:$0xff]  ;;  %v157_v7 = vld [vmem:[%s3329_s1 + $0x160] sm:$0xff]  ;;  %v773_v8 = vpack.c.bf16 %v411_v1, %v409_v63  ;;  %v648_v9 = vpack.c.bf16 %v160_v3, %v158_v2 }
  0x20   :  { %v159_v10 = vld [vmem:[%s3329_s1 + $0x170] sm:$0xff]  ;;  %v413_v11 = vld [vmem:[%s3329_s1 + $0x960] sm:$0xff]  ;;  %v776_v13 = vpack.c.bf16 %v416_v5, %v414_v4  ;;  %v162_v14 = vld [vmem:[%s3329_s1 + $0x188] sm:$0xff] }
  0x21   :  { %896 = vmatpush1.bf16.msra.mxu1 %v639_v34  ;;  %v415_v12 = vld [vmem:[%s3329_s1 + $0x970] sm:$0xff]  ;;  %v164_v15 = vld [vmem:[%s3329_s1 + $0x198] sm:$0xff]  ;;  %v18_v16 = vld [vmem:[%s3330_s0 + $0x8] sm:$0xff]  ;;  %v647_v20 = vpack.c.bf16 %v159_v10, %v157_v7 }
  0x22   :  { %1108 = vmatpush1.bf16.msra.mxu0 %v767_v35  ;;  %897 = vmatprep.subr.bf16.mxu1 %v642_v36  ;;  %v418_v17 = vld [vmem:[%s3329_s1 + $0x988] sm:$0xff]  ;;  %v420_v18 = vld [vmem:[%s3329_s1 + $0x998] sm:$0xff]  ;;  %v775_v24 = vpack.c.bf16 %v415_v12, %v413_v11  ;;  %v650_v25 = vpack.c.bf16 %v164_v15, %v162_v14  ;;  %v161_v26 = vld [vmem:[%s3329_s1 + $0x180] sm:$0xff] }
  0x23   :  { %1109 = vmatprep.subr.bf16.mxu0 %v770_v40  ;;  %v34_v19 = vld [vmem:[%s3330_s0 + $0x88] sm:$0xff]  ;;  %v163_v27 = vld [vmem:[%s3329_s1 + $0x190] sm:$0xff]  ;;  %v417_v28 = vld [vmem:[%s3329_s1 + $0x980] sm:$0xff]  ;;  %v778_v30 = vpack.c.bf16 %v420_v18, %v418_v17 }
  0x24   :  { %v82_v21 = vpack.c.bf16 %v34_v19, %v18_v16  ;;  %v26_v22 = vld [vmem:[%s3330_s0 + $0x48] sm:$0xff]  ;;  %v419_v31 = vld [vmem:[%s3329_s1 + $0x990] sm:$0xff]  ;;  %v168_v33 = vld [vmem:[%s3329_s1 + $0x1b8] sm:$0xff]  ;;  %v649_v36 = vpack.c.bf16 %v163_v27, %v161_v26 }
  0x25   :  { %898 = vmatpush1.bf16.msra.mxu1 %v641_v46  ;;  %v42_v23 = vld [vmem:[%s3330_s0 + $0xc8] sm:$0xff]  ;;  %v424_v35 = vld [vmem:[%s3329_s1 + $0x9b8] sm:$0xff]  ;;  %v777_v37 = vpack.c.bf16 %v419_v31, %v417_v28  ;;  %v165_v39 = vld [vmem:[%s3329_s1 + $0x1a0] sm:$0xff] }
  0x26   :  { %1110 = vmatpush1.bf16.msra.mxu0 %v769_v47  ;;  %899 = vmatprep.subr.bf16.mxu1 %v644_v48  ;;  %v90_v29 = vpack.c.bf16 %v42_v23, %v26_v22  ;;  %v166_v32 = vld [vmem:[%s3329_s1 + $0x1a8] sm:$0xff]  ;;  %v167_v40 = vld [vmem:[%s3329_s1 + $0x1b0] sm:$0xff]  ;;  %v421_v41 = vld [vmem:[%s3329_s1 + $0x9a0] sm:$0xff] }
  0x27   :  { %1111 = vmatprep.subr.bf16.mxu0 %v772_v52  ;;  %913 = vmatprep.mubr.bf16.mxu1 %v82_v21  ;;  %v422_v34 = vld [vmem:[%s3329_s1 + $0x9a8] sm:$0xff]  ;;  %v652_v38 = vpack.c.bf16 %v168_v33, %v166_v32  ;;  %v423_v43 = vld [vmem:[%s3329_s1 + $0x9b0] sm:$0xff]  ;;  %v172_v45 = vld [vmem:[%s3329_s1 + $0x1d8] sm:$0xff]  ;;  %v651_v48 = vpack.c.bf16 %v167_v40, %v165_v39 }
  0x28   :  { %1125 = vmatprep.mubr.bf16.mxu0 %v90_v29  ;;  %v780_v42 = vpack.c.bf16 %v424_v35, %v422_v34  ;;  %v170_v44 = vld [vmem:[%s3329_s1 + $0x1c8] sm:$0xff]  ;;  %v428_v47 = vld [vmem:[%s3329_s1 + $0x9d8] sm:$0xff]  ;;  %v779_v49 = vpack.c.bf16 %v423_v43, %v421_v41  ;;  %v169_v51 = vld [vmem:[%s3329_s1 + $0x1c0] sm:$0xff] }
  0x29   :  { %900 = vmatpush1.bf16.msra.mxu1 %v643_v58  ;;  %v426_v46 = vld [vmem:[%s3329_s1 + $0x9c8] sm:$0xff]  ;;  %v654_v50 = vpack.c.bf16 %v172_v45, %v170_v44  ;;  %v171_v52 = vld [vmem:[%s3329_s1 + $0x1d0] sm:$0xff]  ;;  %v425_v53 = vld [vmem:[%s3329_s1 + $0x9c0] sm:$0xff] }
  0x2a   :  { %1112 = vmatpush1.bf16.msra.mxu0 %v771_v59  ;;  %901 = vmatprep.subr.bf16.mxu1 %v646_v60  ;;  %v782_v54 = vpack.c.bf16 %v428_v47, %v426_v46  ;;  %v427_v55 = vld [vmem:[%s3329_s1 + $0x9d0] sm:$0xff]  ;;  %v174_v56 = vld [vmem:[%s3329_s1 + $0x1e8] sm:$0xff]  ;;  %v176_v57 = vld [vmem:[%s3329_s1 + $0x1f8] sm:$0xff]  ;;  %v653_v60 = vpack.c.bf16 %v171_v52, %v169_v51 }
  0x2b   :  { %1113 = vmatprep.subr.bf16.mxu0 %v774_v0  ;;  %v430_v58 = vld [vmem:[%s3329_s1 + $0x9e8] sm:$0xff]  ;;  %v432_v59 = vld [vmem:[%s3329_s1 + $0x9f8] sm:$0xff]  ;;  %v781_v61 = vpack.c.bf16 %v427_v55, %v425_v53  ;;  %v656_v62 = vpack.c.bf16 %v176_v57, %v174_v56  ;;  %v173_v63 = vld [vmem:[%s3329_s1 + $0x1e0] sm:$0xff] }
  0x2c   :  { %v175_v0 = vld [vmem:[%s3329_s1 + $0x1f0] sm:$0xff]  ;;  %v429_v1 = vld [vmem:[%s3329_s1 + $0x9e0] sm:$0xff]  ;;  %v784_v2 = vpack.c.bf16 %v432_v59, %v430_v58  ;;  %v178_v4 = vld [vmem:[%s3329_s1 + $0x208] sm:$0xff] }
  0x2d   :  { %902 = vmatpush1.bf16.msra.mxu1 %v645_v6  ;;  %v431_v3 = vld [vmem:[%s3329_s1 + $0x9f0] sm:$0xff]  ;;  %v180_v5 = vld [vmem:[%s3329_s1 + $0x218] sm:$0xff]  ;;  %v434_v6 = vld [vmem:[%s3329_s1 + $0xa08] sm:$0xff] }
  0x2e   :  { %1114 = vmatpush1.bf16.msra.mxu0 %v773_v8  ;;  %903 = vmatprep.subr.bf16.mxu1 %v648_v9  ;;  %v436_v7 = vld [vmem:[%s3329_s1 + $0xa18] sm:$0xff]  ;;  %v17_v8 = vld [vmem:[%s3330_s0] sm:$0xff]  ;;  %v655_v9 = vpack.c.bf16 %v175_v0, %v173_v63  ;;  %v179_v12 = vld [vmem:[%s3329_s1 + $0x210] sm:$0xff]  ;;  %v658_v14 = vpack.c.bf16 %v180_v5, %v178_v4 }
  0x2f   :  { %1115 = vmatprep.subr.bf16.mxu0 %v776_v13  ;;  %v33_v10 = vld [vmem:[%s3330_s0 + $0x80] sm:$0xff]  ;;  %v783_v13 = vpack.c.bf16 %v431_v3, %v429_v1  ;;  %v786_v18 = vpack.c.bf16 %v436_v7, %v434_v6  ;;  %v435_v19 = vld [vmem:[%s3329_s1 + $0xa10] sm:$0xff]  ;;  %v184_v21 = vld [vmem:[%s3329_s1 + $0x238] sm:$0xff] }
  0x30   :  { %v177_v11 = vld [vmem:[%s3329_s1 + $0x200] sm:$0xff]  ;;  %v81_v22 = vpack.c.bf16 %v33_v10, %v17_v8  ;;  %v438_v23 = vld [vmem:[%s3329_s1 + $0xa28] sm:$0xff]  ;;  %v439_v33 = vld [vmem:[%s3329_s1 + $0xa30] sm:$0xff] }
  0x31   :  { %904 = vmatpush1.bf16.msra.mxu1 %v647_v20  ;;  %v25_v15 = vld [vmem:[%s3330_s0 + $0x40] sm:$0xff]  ;;  %v182_v20 = vld [vmem:[%s3329_s1 + $0x228] sm:$0xff]  ;;  %v188_v35 = vld [vmem:[%s3329_s1 + $0x258] sm:$0xff] }
  0x32   :  { %1116 = vmatpush1.bf16.msra.mxu0 %v775_v24  ;;  %905 = vmatprep.subr.bf16.mxu1 %v650_v25  ;;  %v41_v16 = vld [vmem:[%s3330_s0 + $0xc0] sm:$0xff]  ;;  %v440_v24 = vld [vmem:[%s3329_s1 + $0xa38] sm:$0xff]  ;;  %v657_v25 = vpack.c.bf16 %v179_v12, %v177_v11  ;;  %v660_v28 = vpack.c.bf16 %v184_v21, %v182_v20  ;;  %v186_v34 = vld [vmem:[%s3329_s1 + $0x248] sm:$0xff] }
  0x33   :  { %1117 = vmatprep.subr.bf16.mxu0 %v778_v30  ;;  %v433_v17 = vld [vmem:[%s3329_s1 + $0xa00] sm:$0xff]  ;;  %v89_v26 = vpack.c.bf16 %v41_v16, %v25_v15  ;;  %v183_v30 = vld [vmem:[%s3329_s1 + $0x230] sm:$0xff]  ;;  %v788_v32 = vpack.c.bf16 %v440_v24, %v438_v23  ;;  %v662_v40 = vpack.c.bf16 %v188_v35, %v186_v34  ;;  %v190_v46 = vld [vmem:[%s3329_s1 + $0x268] sm:$0xff] }
  0x34   :  { %v785_v27 = vpack.c.bf16 %v435_v19, %v433_v17  ;;  %v181_v29 = vld [vmem:[%s3329_s1 + $0x220] sm:$0xff]  ;;  %v443_v45 = vld [vmem:[%s3329_s1 + $0xa50] sm:$0xff]  ;;  %v192_v47 = vld [vmem:[%s3329_s1 + $0x278] sm:$0xff] }
  0x35   :  { %906 = vmatpush1.bf16.msra.mxu1 %v649_v36  ;;  %v437_v31 = vld [vmem:[%s3329_s1 + $0xa20] sm:$0xff]  ;;  %v442_v36 = vld [vmem:[%s3329_s1 + $0xa48] sm:$0xff]  ;;  %v664_v52 = vpack.c.bf16 %v192_v47, %v190_v46  ;;  %v447_v57 = vld [vmem:[%s3329_s1 + $0xa70] sm:$0xff] }
  0x36   :  { %1118 = vmatpush1.bf16.msra.mxu0 %v777_v37  ;;  %907 = vmatprep.subr.bf16.mxu1 %v652_v38  ;;  %v444_v37 = vld [vmem:[%s3329_s1 + $0xa58] sm:$0xff]  ;;  %v659_v38 = vpack.c.bf16 %v183_v30, %v181_v29  ;;  %v787_v39 = vpack.c.bf16 %v439_v33, %v437_v31  ;;  %v185_v41 = vld [vmem:[%s3329_s1 + $0x240] sm:$0xff]  ;;  %v194_v58 = vld [vmem:[%s3329_s1 + $0x288] sm:$0xff] }
  0x37   :  { %1119 = vmatprep.subr.bf16.mxu0 %v780_v42  ;;  %v187_v42 = vld [vmem:[%s3329_s1 + $0x250] sm:$0xff]  ;;  %v441_v43 = vld [vmem:[%s3329_s1 + $0xa40] sm:$0xff]  ;;  %v790_v44 = vpack.c.bf16 %v444_v37, %v442_v36  ;;  %v196_v59 = vld [vmem:[%s3329_s1 + $0x298] sm:$0xff] }
  0x38   :  { %v789_v51 = vpack.c.bf16 %v443_v45, %v441_v43  ;;  %v189_v53 = vld [vmem:[%s3329_s1 + $0x260] sm:$0xff]  ;;  %v666_v0 = vpack.c.bf16 %v196_v59, %v194_v58  ;;  %v451_v5 = vld [vmem:[%s3329_s1 + $0xa90] sm:$0xff]  ;;  %v198_v6 = vld [vmem:[%s3329_s1 + $0x2a8] sm:$0xff] }
  0x39   :  { %908 = vmatpush1.bf16.msra.mxu1 %v651_v48  ;;  %v446_v48 = vld [vmem:[%s3329_s1 + $0xa68] sm:$0xff]  ;;  %v445_v55 = vld [vmem:[%s3329_s1 + $0xa60] sm:$0xff]  ;;  %v200_v7 = vld [vmem:[%s3329_s1 + $0x2b8] sm:$0xff] }
  0x3a   :  { %1120 = vmatpush1.bf16.msra.mxu0 %v779_v49  ;;  %909 = vmatprep.subr.bf16.mxu1 %v654_v50  ;;  %v448_v49 = vld [vmem:[%s3329_s1 + $0xa78] sm:$0xff]  ;;  %v661_v50 = vpack.c.bf16 %v187_v42, %v185_v41  ;;  %v791_v63 = vpack.c.bf16 %v447_v57, %v445_v55  ;;  %v193_v1 = vld [vmem:[%s3329_s1 + $0x280] sm:$0xff]  ;;  %v454_v8 = vld [vmem:[%s3329_s1 + $0xaa8] sm:$0xff]  ;;  %v668_v15 = vpack.c.bf16 %v200_v7, %v198_v6 }
  0x3b   :  { %1121 = vmatprep.subr.bf16.mxu0 %v782_v54  ;;  %v191_v54 = vld [vmem:[%s3329_s1 + $0x270] sm:$0xff]  ;;  %v792_v56 = vpack.c.bf16 %v448_v49, %v446_v48  ;;  %v449_v3 = vld [vmem:[%s3329_s1 + $0xa80] sm:$0xff]  ;;  %v202_v17 = vld [vmem:[%s3329_s1 + $0x2c8] sm:$0xff] }
  0x3c   :  { %v197_v11 = vld [vmem:[%s3329_s1 + $0x2a0] sm:$0xff]  ;;  %v199_v12 = vld [vmem:[%s3329_s1 + $0x2b0] sm:$0xff]  ;;  %v458_v20 = vld [vmem:[%s3329_s1 + $0xac8] sm:$0xff] }
  0x3d   :  { %910 = vmatpush1.bf16.msra.mxu1 %v653_v60  ;;  %v450_v60 = vld [vmem:[%s3329_s1 + $0xa88] sm:$0xff]  ;;  %v455_v16 = vld [vmem:[%s3329_s1 + $0xab0] sm:$0xff]  ;;  %v460_v21 = vld [vmem:[%s3329_s1 + $0xad8] sm:$0xff] }
  0x3e   :  { %1122 = vmatpush1.bf16.msra.mxu0 %v781_v61  ;;  %911 = vmatprep.subr.bf16.mxu1 %v656_v62  ;;  %v452_v61 = vld [vmem:[%s3329_s1 + $0xa98] sm:$0xff]  ;;  %v663_v62 = vpack.c.bf16 %v191_v54, %v189_v53  ;;  %v201_v23 = vld [vmem:[%s3329_s1 + $0x2c0] sm:$0xff]  ;;  %v203_v24 = vld [vmem:[%s3329_s1 + $0x2d0] sm:$0xff]  ;;  %v798_v37 = vpack.c.bf16 %v460_v21, %v458_v20 }
  0x3f   :  { %1123 = vmatprep.subr.bf16.mxu0 %v784_v2  ;;  %v195_v2 = vld [vmem:[%s3329_s1 + $0x290] sm:$0xff]  ;;  %v794_v4 = vpack.c.bf16 %v452_v61, %v450_v60  ;;  %v58_v29 = vld [vmem:[%s3330_s0 + $0x148] sm:$0xff]  ;;  %v49_v35 = vld [vmem:[%s3330_s0 + $0x100] sm:$0xff]  ;;  %v669_v45 = vpack.c.bf16 %v203_v24, %v201_v23 }
  0x40   :  { %v665_v10 = vpack.c.bf16 %v195_v2, %v193_v1  ;;  %v74_v30 = vld [vmem:[%s3330_s0 + $0x1c8] sm:$0xff]  ;;  %v459_v33 = vld [vmem:[%s3329_s1 + $0xad0] sm:$0xff]  ;;  %v65_v36 = vld [vmem:[%s3330_s0 + $0x180] sm:$0xff] }
  0x41   :  { %912 = vmatpush1.bf16.msra.mxu1 %v655_v9  ;;  %v456_v9 = vld [vmem:[%s3329_s1 + $0xab8] sm:$0xff]  ;;  %v106_v34 = vpack.c.bf16 %v74_v30, %v58_v29  ;;  %v57_v41 = vld [vmem:[%s3330_s0 + $0x140] sm:$0xff]  ;;  %v462_v42 = vld [vmem:[%s3329_s1 + $0xae8] sm:$0xff] }
  0x42   :  { %1124 = vmatpush1.bf16.msra.mxu0 %v783_v13  ;;  %934 = vmatprep.subr.bf16.mxu1 %v658_v14  ;;  %v453_v13 = vld [vmem:[%s3329_s1 + $0xaa0] sm:$0xff]  ;;  %v793_v14 = vpack.c.bf16 %v451_v5, %v449_v3  ;;  %v796_v19 = vpack.c.bf16 %v456_v9, %v454_v8  ;;  %v464_v43 = vld [vmem:[%s3329_s1 + $0xaf8] sm:$0xff]  ;;  %v210_v54 = vld [vmem:[%s3329_s1 + $0x308] sm:$0xff] }
  0x43   :  { %1146 = vmatprep.subr.bf16.mxu0 %v786_v18  ;;  %v204_v18 = vld [vmem:[%s3329_s1 + $0x2d8] sm:$0xff]  ;;  %v795_v31 = vpack.c.bf16 %v455_v16, %v453_v13  ;;  %v205_v46 = vld [vmem:[%s3329_s1 + $0x2e0] sm:$0xff]  ;;  %v800_v53 = vpack.c.bf16 %v464_v43, %v462_v42  ;;  %v466_v57 = vld [vmem:[%s3329_s1 + $0xb08] sm:$0xff] }
  0x44   :  { %914 = vmatmul.mubr.bf16.vlgmr.msra.gmra.mrb[0].mxu1 %v81_v22  ;;  %v50_v22 = vld [vmem:[%s3330_s0 + $0x108] sm:$0xff]  ;;  %v212_v55 = vld [vmem:[%s3329_s1 + $0x318] sm:$0xff]  ;;  %v209_v2 = vld [vmem:[%s3329_s1 + $0x300] sm:$0xff] }
  0x45   :  { %935 = vmatpush1.bf16.msra.mxu1 %v657_v25  ;;  %1126 = vmatmul.mubr.bf16.vlgmr.msra.gmra.mrb[0].mxu0 %v89_v26  ;;  %v66_v25 = vld [vmem:[%s3330_s0 + $0x188] sm:$0xff]  ;;  %v667_v26 = vpack.c.bf16 %v199_v12, %v197_v11  ;;  %v468_v58 = vld [vmem:[%s3329_s1 + $0xb18] sm:$0xff]  ;;  %v674_v1 = vpack.c.bf16 %v212_v55, %v210_v54  ;;  %v211_v3 = vld [vmem:[%s3329_s1 + $0x310] sm:$0xff] }
  0x46   :  { %1147 = vmatpush1.bf16.msra.mxu0 %v785_v27  ;;  %936 = vmatprep.subr.bf16.mxu1 %v660_v28  ;;  %v457_v27 = vld [vmem:[%s3329_s1 + $0xac0] sm:$0xff]  ;;  %v98_v28 = vpack.c.bf16 %v66_v25, %v50_v22  ;;  %v36_v59 = vld [vmem:[%s3330_s0 + $0x98] sm:$0xff]  ;;  %v802_v6 = vpack.c.bf16 %v468_v58, %v466_v57  ;;  %v467_v7 = vld [vmem:[%s3329_s1 + $0xb10] sm:$0xff]  ;;  %v673_v12 = vpack.c.bf16 %v211_v3, %v209_v2 }
  0x47   :  { %1148 = vmatprep.subr.bf16.mxu0 %v788_v32  ;;  %v670_v32 = vpack.c.bf16 %v204_v18, %v202_v17  ;;  %1135 = vmatprep.mubr.bf16.mxu0 %v106_v34  ;;  %v797_v48 = vpack.c.bf16 %v459_v33, %v457_v27  ;;  %v214_v8 = vld [vmem:[%s3329_s1 + $0x328] sm:$0xff]  ;;  %v216_v9 = vld [vmem:[%s3329_s1 + $0x338] sm:$0xff]  ;;  %v215_v16 = vld [vmem:[%s3329_s1 + $0x330] sm:$0xff] }
  0x48   :  { %923 = vmatprep.mubr.bf16.mxu1 %v98_v28  ;;  %v472_v11 = vld [vmem:[%s3329_s1 + $0xb38] sm:$0xff]  ;;  %v469_v17 = vld [vmem:[%s3329_s1 + $0xb20] sm:$0xff]  ;;  %v218_v20 = vld [vmem:[%s3329_s1 + $0x348] sm:$0xff] }
  0x49   :  { %937 = vmatpush1.bf16.msra.mxu1 %v659_v38  ;;  %v206_v38 = vld [vmem:[%s3329_s1 + $0x2e8] sm:$0xff]  ;;  %v220_v21 = vld [vmem:[%s3329_s1 + $0x358] sm:$0xff]  ;;  %v217_v27 = vld [vmem:[%s3329_s1 + $0x340] sm:$0xff] }
  0x4a   :  { %1149 = vmatpush1.bf16.msra.mxu0 %v787_v39  ;;  %938 = vmatprep.subr.bf16.mxu1 %v662_v40  ;;  %v208_v39 = vld [vmem:[%s3329_s1 + $0x2f8] sm:$0xff]  ;;  %v97_v40 = vpack.c.bf16 %v65_v36, %v49_v35  ;;  %v474_v22 = vld [vmem:[%s3329_s1 + $0xb48] sm:$0xff]  ;;  %v219_v28 = vld [vmem:[%s3329_s1 + $0x350] sm:$0xff] }
  0x4b   :  { %1150 = vmatprep.subr.bf16.mxu0 %v790_v44  ;;  %v73_v44 = vld [vmem:[%s3330_s0 + $0x1c0] sm:$0xff]  ;;  %v672_v49 = vpack.c.bf16 %v208_v39, %v206_v38  ;;  %v476_v23 = vld [vmem:[%s3329_s1 + $0xb58] sm:$0xff]  ;;  %v478_v34 = vld [vmem:[%s3329_s1 + $0xb68] sm:$0xff]  ;;  %v677_v36 = vpack.c.bf16 %v219_v28, %v217_v27 }
  0x4c   :  { %v105_v47 = vpack.c.bf16 %v73_v44, %v57_v41  ;;  %924 = vmatmul.mubr.bf16.gmra.mrb[4].mxu1 %v97_v40  ;;  %v473_v29 = vld [vmem:[%s3329_s1 + $0xb40] sm:$0xff]  ;;  %v806_v30 = vpack.c.bf16 %v476_v23, %v474_v22  ;;  %v224_v33 = vld [vmem:[%s3329_s1 + $0x378] sm:$0xff]  ;;  %v223_v40 = vld [vmem:[%s3329_s1 + $0x370] sm:$0xff] }
  0x4d   :  { %939 = vmatpush1.bf16.msra.mxu1 %v661_v50  ;;  %v207_v50 = vld [vmem:[%s3329_s1 + $0x2f0] sm:$0xff]  ;;  %v480_v35 = vld [vmem:[%s3329_s1 + $0xb78] sm:$0xff]  ;;  %v221_v39 = vld [vmem:[%s3329_s1 + $0x360] sm:$0xff] }
  0x4e   :  { %1151 = vmatpush1.bf16.msra.mxu0 %v789_v51  ;;  %940 = vmatprep.subr.bf16.mxu1 %v664_v52  ;;  %v461_v51 = vld [vmem:[%s3329_s1 + $0xae0] sm:$0xff]  ;;  %v463_v52 = vld [vmem:[%s3329_s1 + $0xaf0] sm:$0xff]  ;;  %v671_v60 = vpack.c.bf16 %v207_v50, %v205_v46  ;;  %v808_v42 = vpack.c.bf16 %v480_v35, %v478_v34  ;;  %v226_v44 = vld [vmem:[%s3329_s1 + $0x388] sm:$0xff] }
  0x4f   :  { %1152 = vmatprep.subr.bf16.mxu0 %v792_v56  ;;  %v20_v56 = vld [vmem:[%s3330_s0 + $0x18] sm:$0xff]  ;;  %1136 = vmatmul.mubr.bf16.gmra.mrb[4].mxu0 %v105_v47  ;;  %v477_v41 = vld [vmem:[%s3329_s1 + $0xb60] sm:$0xff]  ;;  %v479_v43 = vld [vmem:[%s3329_s1 + $0xb70] sm:$0xff] }
  0x50   :  { %v84_v61 = vpack.c.bf16 %v36_v59, %v20_v56  ;;  %v482_v46 = vld [vmem:[%s3329_s1 + $0xb88] sm:$0xff]  ;;  %v484_v47 = vld [vmem:[%s3329_s1 + $0xb98] sm:$0xff]  ;;  %v483_v55 = vld [vmem:[%s3329_s1 + $0xb90] sm:$0xff] }
  0x51   :  { %941 = vmatpush1.bf16.msra.mxu1 %v663_v62  ;;  %v28_v62 = vld [vmem:[%s3330_s0 + $0x58] sm:$0xff]  ;;  %v810_v54 = vpack.c.bf16 %v484_v47, %v482_v46  ;;  %v230_v56 = vld [vmem:[%s3329_s1 + $0x3a8] sm:$0xff]  ;;  %v487_v3 = vld [vmem:[%s3329_s1 + $0xbb0] sm:$0xff] }
  0x52   :  { %1153 = vmatpush1.bf16.msra.mxu0 %v791_v63  ;;  %942 = vmatprep.subr.bf16.mxu1 %v666_v0  ;;  %v44_v63 = vld [vmem:[%s3330_s0 + $0xd8] sm:$0xff]  ;;  %v799_v0 = vpack.c.bf16 %v463_v52, %v461_v51  ;;  %v225_v51 = vld [vmem:[%s3329_s1 + $0x380] sm:$0xff]  ;;  %v227_v52 = vld [vmem:[%s3329_s1 + $0x390] sm:$0xff] }
  0x53   :  { %1154 = vmatprep.subr.bf16.mxu0 %v794_v4  ;;  %v465_v4 = vld [vmem:[%s3329_s1 + $0xb00] sm:$0xff]  ;;  %v92_v5 = vpack.c.bf16 %v44_v63, %v28_v62  ;;  %966 = vmatprep.mubr.bf16.mxu1 %v84_v61  ;;  %v232_v57 = vld [vmem:[%s3329_s1 + $0x3b8] sm:$0xff]  ;;  %v486_v58 = vld [vmem:[%s3329_s1 + $0xba8] sm:$0xff] }
  0x54   :  { %v801_v13 = vpack.c.bf16 %v467_v7, %v465_v4  ;;  %v488_v59 = vld [vmem:[%s3329_s1 + $0xbb8] sm:$0xff]  ;;  %v684_v62 = vpack.c.bf16 %v232_v57, %v230_v56  ;;  %v229_v63 = vld [vmem:[%s3329_s1 + $0x3a0] sm:$0xff]  ;;  %v234_v4 = vld [vmem:[%s3329_s1 + $0x3c8] sm:$0xff] }
  0x55   :  { %943 = vmatpush1.bf16.msra.mxu1 %v665_v10  ;;  %v470_v10 = vld [vmem:[%s3329_s1 + $0xb28] sm:$0xff]  ;;  %1178 = vmatprep.mubr.bf16.mxu0 %v92_v5  ;;  %v812_v2 = vpack.c.bf16 %v488_v59, %v486_v58  ;;  %v236_v5 = vld [vmem:[%s3329_s1 + $0x3d8] sm:$0xff]  ;;  %v237_v23 = vld [vmem:[%s3329_s1 + $0x3e0] sm:$0xff] }
  0x56   :  { %1155 = vmatpush1.bf16.msra.mxu0 %v793_v14  ;;  %944 = vmatprep.subr.bf16.mxu1 %v668_v15  ;;  %v676_v14 = vpack.c.bf16 %v216_v9, %v214_v8  ;;  %v213_v15 = vld [vmem:[%s3329_s1 + $0x320] sm:$0xff]  ;;  %v804_v18 = vpack.c.bf16 %v472_v11, %v470_v10  ;;  %v492_v7 = vld [vmem:[%s3329_s1 + $0xbd8] sm:$0xff]  ;;  %v686_v10 = vpack.c.bf16 %v236_v5, %v234_v4  ;;  %v495_v27 = vld [vmem:[%s3329_s1 + $0xbf0] sm:$0xff] }
  0x57   :  { %1156 = vmatprep.subr.bf16.mxu0 %v796_v19  ;;  %v471_v19 = vld [vmem:[%s3329_s1 + $0xb30] sm:$0xff]  ;;  %v675_v24 = vpack.c.bf16 %v215_v16, %v213_v15  ;;  %v233_v11 = vld [vmem:[%s3329_s1 + $0x3c0] sm:$0xff]  ;;  %v238_v16 = vld [vmem:[%s3329_s1 + $0x3e8] sm:$0xff] }
  0x58   :  { %v803_v25 = vpack.c.bf16 %v471_v19, %v469_v17  ;;  %v491_v15 = vld [vmem:[%s3329_s1 + $0xbd0] sm:$0xff]  ;;  %v240_v17 = vld [vmem:[%s3329_s1 + $0x3f8] sm:$0xff]  ;;  %v242_v28 = vld [vmem:[%s3329_s1 + $0x408] sm:$0xff] }
  0x59   :  { %945 = vmatpush1.bf16.msra.mxu1 %v667_v26  ;;  %v678_v26 = vpack.c.bf16 %v220_v21, %v218_v20  ;;  %v496_v19 = vld [vmem:[%s3329_s1 + $0xbf8] sm:$0xff]  ;;  %v688_v22 = vpack.c.bf16 %v240_v17, %v238_v16  ;;  %v35_v34 = vld [vmem:[%s3330_s0 + $0x90] sm:$0xff]  ;;  %v241_v35 = vld [vmem:[%s3329_s1 + $0x400] sm:$0xff] }
  0x5a   :  { %1157 = vmatpush1.bf16.msra.mxu0 %v795_v31  ;;  %946 = vmatprep.subr.bf16.mxu1 %v670_v32  ;;  %v475_v31 = vld [vmem:[%s3329_s1 + $0xb50] sm:$0xff]  ;;  %v222_v32 = vld [vmem:[%s3329_s1 + $0x368] sm:$0xff]  ;;  %v252_v58 = vld [vmem:[%s3329_s1 + $0x458] sm:$0xff] }
  0x5b   :  { %1158 = vmatprep.subr.bf16.mxu0 %v798_v37  ;;  %v805_v37 = vpack.c.bf16 %v475_v31, %v473_v29  ;;  %v680_v38 = vpack.c.bf16 %v224_v33, %v222_v32  ;;  %v244_v29 = vld [vmem:[%s3329_s1 + $0x418] sm:$0xff]  ;;  %v19_v32 = vld [vmem:[%s3330_s0 + $0x10] sm:$0xff]  ;;  %v502_v47 = vld [vmem:[%s3329_s1 + $0xc28] sm:$0xff] }
  0x5c   :  { %v500_v31 = vld [vmem:[%s3329_s1 + $0xc18] sm:$0xff]  ;;  %v83_v46 = vpack.c.bf16 %v35_v34, %v19_v32  ;;  %v503_v56 = vld [vmem:[%s3329_s1 + $0xc30] sm:$0xff]  ;;  %v250_v57 = vld [vmem:[%s3329_s1 + $0x448] sm:$0xff] }
  0x5d   :  { %947 = vmatpush1.bf16.msra.mxu1 %v669_v45  ;;  %v228_v45 = vld [vmem:[%s3329_s1 + $0x398] sm:$0xff]  ;;  %v59_v16 = vld [vmem:[%s3330_s0 + $0x150] sm:$0xff]  ;;  %v510_v17 = vld [vmem:[%s3329_s1 + $0xc68] sm:$0xff] }
  0x5e   :  { %1159 = vmatpush1.bf16.msra.mxu0 %v797_v48  ;;  %948 = vmatprep.subr.bf16.mxu1 %v672_v49  ;;  %v679_v48 = vpack.c.bf16 %v223_v40, %v221_v39  ;;  %v807_v49 = vpack.c.bf16 %v479_v43, %v477_v41  ;;  %v682_v50 = vpack.c.bf16 %v228_v45, %v226_v44  ;;  %v27_v39 = vld [vmem:[%s3330_s0 + $0x50] sm:$0xff]  ;;  %v497_v41 = vld [vmem:[%s3329_s1 + $0xc00] sm:$0xff]  ;;  %v246_v44 = vld [vmem:[%s3329_s1 + $0x428] sm:$0xff] }
  0x5f   :  { %1160 = vmatprep.subr.bf16.mxu0 %v800_v53  ;;  %v481_v53 = vld [vmem:[%s3329_s1 + $0xb80] sm:$0xff]  ;;  %v43_v40 = vld [vmem:[%s3330_s0 + $0xd0] sm:$0xff]  ;;  %v248_v45 = vld [vmem:[%s3329_s1 + $0x438] sm:$0xff] }
  0x60   :  { %v809_v61 = vpack.c.bf16 %v483_v55, %v481_v53  ;;  %v499_v43 = vld [vmem:[%s3329_s1 + $0xc10] sm:$0xff]  ;;  %v501_v53 = vld [vmem:[%s3329_s1 + $0xc20] sm:$0xff]  ;;  %v692_v55 = vpack.c.bf16 %v248_v45, %v246_v44  ;;  %v60_v5 = vld [vmem:[%s3330_s0 + $0x158] sm:$0xff] }
  0x61   :  { %949 = vmatpush1.bf16.msra.mxu1 %v671_v60  ;;  %v681_v60 = vpack.c.bf16 %v227_v52, %v225_v51  ;;  %v245_v51 = vld [vmem:[%s3329_s1 + $0x420] sm:$0xff]  ;;  %v247_v52 = vld [vmem:[%s3329_s1 + $0x430] sm:$0xff]  ;;  %v22_v32 = vld [vmem:[%s3330_s0 + $0x28] sm:$0xff] }
  0x62   :  { %1161 = vmatpush1.bf16.msra.mxu0 %v799_v0  ;;  %950 = vmatprep.subr.bf16.mxu1 %v674_v1  ;;  %v231_v0 = vld [vmem:[%s3329_s1 + $0x3b0] sm:$0xff]  ;;  %v485_v1 = vld [vmem:[%s3329_s1 + $0xba0] sm:$0xff]  ;;  %v516_v34 = vld [vmem:[%s3329_s1 + $0xc98] sm:$0xff] }
  0x63   :  { %1162 = vmatprep.subr.bf16.mxu0 %v802_v6  ;;  %v490_v6 = vld [vmem:[%s3329_s1 + $0xbc8] sm:$0xff]  ;;  %v683_v8 = vpack.c.bf16 %v231_v0, %v229_v63  ;;  %v811_v9 = vpack.c.bf16 %v487_v3, %v485_v1  ;;  %v249_v63 = vld [vmem:[%s3329_s1 + $0x440] sm:$0xff]  ;;  %v251_v0 = vld [vmem:[%s3329_s1 + $0x450] sm:$0xff] }
  0x64   :  { %v68_v1 = vld [vmem:[%s3330_s0 + $0x198] sm:$0xff]  ;;  %v505_v3 = vld [vmem:[%s3329_s1 + $0xc40] sm:$0xff] }
  0x65   :  { %951 = vmatpush1.bf16.msra.mxu1 %v673_v12  ;;  %v235_v12 = vld [vmem:[%s3329_s1 + $0x3d0] sm:$0xff]  ;;  %v513_v44 = vld [vmem:[%s3329_s1 + $0xc80] sm:$0xff] }
  0x66   :  { %1163 = vmatpush1.bf16.msra.mxu0 %v801_v13  ;;  %952 = vmatprep.subr.bf16.mxu1 %v676_v14  ;;  %v489_v13 = vld [vmem:[%s3329_s1 + $0xbc0] sm:$0xff]  ;;  %v814_v14 = vpack.c.bf16 %v492_v7, %v490_v6  ;;  %v685_v20 = vpack.c.bf16 %v235_v12, %v233_v11  ;;  %v76_v6 = vld [vmem:[%s3330_s0 + $0x1d8] sm:$0xff]  ;;  %v819_v7 = vpack.c.bf16 %v503_v56, %v501_v53  ;;  %v51_v11 = vld [vmem:[%s3330_s0 + $0x110] sm:$0xff] }
  0x67   :  { %1164 = vmatprep.subr.bf16.mxu0 %v804_v18  ;;  %v494_v18 = vld [vmem:[%s3329_s1 + $0xbe8] sm:$0xff]  ;;  %v813_v21 = vpack.c.bf16 %v491_v15, %v489_v13  ;;  %v67_v12 = vld [vmem:[%s3330_s0 + $0x190] sm:$0xff]  ;;  %v256_v15 = vld [vmem:[%s3329_s1 + $0x478] sm:$0xff] }
  0x68   :  { %v263_v56 = vld [vmem:[%s3329_s1 + $0x4b0] sm:$0xff] }
  0x69   :  { %953 = vmatpush1.bf16.msra.mxu1 %v675_v24  ;;  %v239_v24 = vld [vmem:[%s3329_s1 + $0x3f0] sm:$0xff] }
  0x6a   :  { %1165 = vmatpush1.bf16.msra.mxu0 %v803_v25  ;;  %954 = vmatprep.subr.bf16.mxu1 %v678_v26  ;;  %v493_v25 = vld [vmem:[%s3329_s1 + $0xbe0] sm:$0xff]  ;;  %v816_v26 = vpack.c.bf16 %v496_v19, %v494_v18  ;;  %v687_v33 = vpack.c.bf16 %v239_v24, %v237_v23  ;;  %v512_v18 = vld [vmem:[%s3329_s1 + $0xc78] sm:$0xff]  ;;  %v99_v19 = vpack.c.bf16 %v67_v12, %v51_v11 }
  0x6b   :  { %1166 = vmatprep.subr.bf16.mxu0 %v806_v30  ;;  %v498_v30 = vld [vmem:[%s3329_s1 + $0xc08] sm:$0xff]  ;;  %v528_v11 = vld [vmem:[%s3329_s1 + $0xcf8] sm:$0xff] }
  0x6d   :  { %955 = vmatpush1.bf16.msra.mxu1 %v677_v36  ;;  %v243_v36 = vld [vmem:[%s3329_s1 + $0x410] sm:$0xff] }
  0x6e   :  { %1167 = vmatpush1.bf16.msra.mxu0 %v805_v37  ;;  %956 = vmatprep.subr.bf16.mxu1 %v680_v38  ;;  %v815_v37 = vpack.c.bf16 %v495_v27, %v493_v25  ;;  %v690_v38 = vpack.c.bf16 %v244_v29, %v242_v28  ;;  %v509_v27 = vld [vmem:[%s3329_s1 + $0xc60] sm:$0xff]  ;;  %v511_v28 = vld [vmem:[%s3329_s1 + $0xc70] sm:$0xff]  ;;  %v824_v29 = vpack.c.bf16 %v512_v18, %v510_v17 }
  0x6f   :  { %1168 = vmatprep.subr.bf16.mxu0 %v808_v42  ;;  %v818_v42 = vpack.c.bf16 %v500_v31, %v498_v30  ;;  %v258_v30 = vld [vmem:[%s3329_s1 + $0x488] sm:$0xff]  ;;  %v260_v31 = vld [vmem:[%s3329_s1 + $0x498] sm:$0xff]  ;;  %v525_v17 = vld [vmem:[%s3329_s1 + $0xce0] sm:$0xff] }
  0x71   :  { %957 = vmatpush1.bf16.msra.mxu1 %v679_v48  ;;  %v504_v48 = vld [vmem:[%s3329_s1 + $0xc38] sm:$0xff] }
  0x72   :  { %1169 = vmatpush1.bf16.msra.mxu0 %v807_v49  ;;  %958 = vmatprep.subr.bf16.mxu1 %v682_v50  ;;  %v689_v49 = vpack.c.bf16 %v243_v36, %v241_v35  ;;  %v91_v50 = vpack.c.bf16 %v43_v40, %v27_v39  ;;  %v820_v59 = vpack.c.bf16 %v504_v48, %v502_v47  ;;  %v38_v35 = vld [vmem:[%s3330_s0 + $0xa8] sm:$0xff]  ;;  %v515_v47 = vld [vmem:[%s3329_s1 + $0xc90] sm:$0xff] }
  0x73   :  { %1170 = vmatprep.subr.bf16.mxu0 %v810_v54  ;;  %v817_v54 = vpack.c.bf16 %v499_v43, %v497_v41  ;;  %v46_v39 = vld [vmem:[%s3330_s0 + $0xe8] sm:$0xff]  ;;  %v823_v40 = vpack.c.bf16 %v511_v28, %v509_v27  ;;  %v698_v41 = vpack.c.bf16 %v260_v31, %v258_v30  ;;  %v259_v43 = vld [vmem:[%s3329_s1 + $0x490] sm:$0xff]  ;;  %v825_v53 = vpack.c.bf16 %v515_v47, %v513_v44  ;;  %v273_v27 = vld [vmem:[%s3329_s1 + $0x500] sm:$0xff] }
  0x74   :  { %v262_v48 = vld [vmem:[%s3329_s1 + $0x4a8] sm:$0xff]  ;;  %v275_v28 = vld [vmem:[%s3329_s1 + $0x510] sm:$0xff]  ;;  %v540_v47 = vld [vmem:[%s3329_s1 + $0xd58] sm:$0xff] }
  0x75   :  { %959 = vmatpush1.bf16.msra.mxu1 %v681_v60  ;;  %v506_v60 = vld [vmem:[%s3329_s1 + $0xc48] sm:$0xff]  ;;  %v531_v31 = vld [vmem:[%s3329_s1 + $0xd10] sm:$0xff] }
  0x76   :  { %1171 = vmatpush1.bf16.msra.mxu0 %v809_v61  ;;  %960 = vmatprep.subr.bf16.mxu1 %v684_v62  ;;  %v508_v61 = vld [vmem:[%s3329_s1 + $0xc58] sm:$0xff]  ;;  %v282_v44 = vld [vmem:[%s3329_s1 + $0x548] sm:$0xff] }
  0x77   :  { %1172 = vmatprep.subr.bf16.mxu0 %v812_v2  ;;  %v52_v62 = vld [vmem:[%s3330_s0 + $0x118] sm:$0xff]  ;;  %v691_v2 = vpack.c.bf16 %v247_v52, %v245_v51  ;;  %v822_v13 = vpack.c.bf16 %v508_v61, %v506_v60  ;;  %v266_v60 = vld [vmem:[%s3329_s1 + $0x4c8] sm:$0xff] }
  0x78   :  { %v100_v4 = vpack.c.bf16 %v68_v1, %v52_v62  ;;  %v520_v51 = vld [vmem:[%s3329_s1 + $0xcb8] sm:$0xff]  ;;  %v522_v62 = vld [vmem:[%s3329_s1 + $0xcc8] sm:$0xff] }
  0x79   :  { %961 = vmatpush1.bf16.msra.mxu1 %v683_v8  ;;  %v694_v8 = vpack.c.bf16 %v252_v58, %v250_v57  ;;  %v517_v57 = vld [vmem:[%s3329_s1 + $0xca0] sm:$0xff]  ;;  %v268_v61 = vld [vmem:[%s3329_s1 + $0x4d8] sm:$0xff] }
  0x7a   :  { %1173 = vmatpush1.bf16.msra.mxu0 %v811_v9  ;;  %962 = vmatprep.subr.bf16.mxu1 %v686_v10  ;;  %v507_v9 = vld [vmem:[%s3329_s1 + $0xc50] sm:$0xff]  ;;  %v108_v10 = vpack.c.bf16 %v76_v6, %v60_v5  ;;  %v521_v5 = vld [vmem:[%s3329_s1 + $0xcc0] sm:$0xff] }
  0x7b   :  { %1174 = vmatprep.subr.bf16.mxu0 %v814_v14  ;;  %v254_v14 = vld [vmem:[%s3329_s1 + $0x468] sm:$0xff]  ;;  %v821_v24 = vpack.c.bf16 %v507_v9, %v505_v3  ;;  %v265_v3 = vld [vmem:[%s3329_s1 + $0x4c0] sm:$0xff]  ;;  %v272_v9 = vld [vmem:[%s3329_s1 + $0x4f8] sm:$0xff] }
  0x7c   :  { %v696_v25 = vpack.c.bf16 %v256_v15, %v254_v14  ;;  %v269_v15 = vld [vmem:[%s3329_s1 + $0x4e0] sm:$0xff] }
  0x7d   :  { %963 = vmatpush1.bf16.msra.mxu1 %v685_v20  ;;  %v75_v20 = vld [vmem:[%s3330_s0 + $0x1d0] sm:$0xff] }
  0x7e   :  { %1175 = vmatpush1.bf16.msra.mxu0 %v813_v21  ;;  %964 = vmatprep.subr.bf16.mxu1 %v688_v22  ;;  %v693_v21 = vpack.c.bf16 %v251_v0, %v249_v63  ;;  %v253_v22 = vld [vmem:[%s3329_s1 + $0x460] sm:$0xff]  ;;  %v107_v23 = vpack.c.bf16 %v75_v20, %v59_v16  ;;  %v524_v63 = vld [vmem:[%s3329_s1 + $0xcd8] sm:$0xff]  ;;  %v271_v16 = vld [vmem:[%s3329_s1 + $0x4f0] sm:$0xff] }
  0x7f   :  { %1176 = vmatprep.subr.bf16.mxu0 %v816_v26  ;;  %v255_v26 = vld [vmem:[%s3329_s1 + $0x470] sm:$0xff]  ;;  %v830_v6 = vpack.c.bf16 %v524_v63, %v522_v62  ;;  %v274_v20 = vld [vmem:[%s3329_s1 + $0x508] sm:$0xff]  ;;  %v285_v63 = vld [vmem:[%s3329_s1 + $0x560] sm:$0xff] }
  0x80   :  { %v695_v36 = vpack.c.bf16 %v255_v26, %v253_v22  ;;  %v530_v22 = vld [vmem:[%s3329_s1 + $0xd08] sm:$0xff] }
  0x81   :  { %965 = vmatpush1.bf16.msra.mxu1 %v687_v33  ;;  %v514_v33 = vld [vmem:[%s3329_s1 + $0xc88] sm:$0xff] }
  0x82   :  { %1177 = vmatpush1.bf16.msra.mxu0 %v815_v37  ;;  %987 = vmatprep.subr.bf16.mxu1 %v690_v38  ;;  %v86_v37 = vpack.c.bf16 %v38_v35, %v22_v32  ;;  %v30_v38 = vld [vmem:[%s3330_s0 + $0x68] sm:$0xff]  ;;  %v536_v35 = vld [vmem:[%s3329_s1 + $0xd38] sm:$0xff] }
  0x83   :  { %1199 = vmatprep.subr.bf16.mxu0 %v818_v42  ;;  %v257_v42 = vld [vmem:[%s3329_s1 + $0x480] sm:$0xff]  ;;  %v94_v45 = vpack.c.bf16 %v46_v39, %v30_v38  ;;  %v278_v32 = vld [vmem:[%s3329_s1 + $0x528] sm:$0xff] }
  0x84   :  { %967 = vmatmul.mubr.bf16.vlgmr.msra.gmra.mrb[0].mxu1 %v83_v46  ;;  %v826_v46 = vpack.c.bf16 %v516_v34, %v514_v33  ;;  %v697_v52 = vpack.c.bf16 %v259_v43, %v257_v42  ;;  %v280_v33 = vld [vmem:[%s3329_s1 + $0x538] sm:$0xff]  ;;  %v534_v34 = vld [vmem:[%s3329_s1 + $0xd28] sm:$0xff]  ;;  %v277_v39 = vld [vmem:[%s3329_s1 + $0x520] sm:$0xff] }
  0x85   :  { %988 = vmatpush1.bf16.msra.mxu1 %v689_v49  ;;  %1179 = vmatmul.mubr.bf16.vlgmr.msra.gmra.mrb[0].mxu0 %v91_v50  ;;  %v264_v49 = vld [vmem:[%s3329_s1 + $0x4b8] sm:$0xff]  ;;  %v518_v50 = vld [vmem:[%s3329_s1 + $0xca8] sm:$0xff]  ;;  %v708_v38 = vpack.c.bf16 %v280_v33, %v278_v32  ;;  %v836_v42 = vpack.c.bf16 %v536_v35, %v534_v34  ;;  %v535_v43 = vld [vmem:[%s3329_s1 + $0xd30] sm:$0xff] }
  0x86   :  { %1200 = vmatpush1.bf16.msra.mxu0 %v817_v54  ;;  %989 = vmatprep.subr.bf16.mxu1 %v692_v55  ;;  %v700_v54 = vpack.c.bf16 %v264_v49, %v262_v48  ;;  %v261_v55 = vld [vmem:[%s3329_s1 + $0x4a0] sm:$0xff]  ;;  %v828_v58 = vpack.c.bf16 %v520_v51, %v518_v50 }
  0x87   :  { %1201 = vmatprep.subr.bf16.mxu0 %v820_v59  ;;  %976 = vmatprep.mubr.bf16.mxu1 %v100_v4  ;;  %v519_v59 = vld [vmem:[%s3329_s1 + $0xcb0] sm:$0xff]  ;;  %v699_v0 = vpack.c.bf16 %v263_v56, %v261_v55  ;;  %v281_v51 = vld [vmem:[%s3329_s1 + $0x540] sm:$0xff]  ;;  %v286_v56 = vld [vmem:[%s3329_s1 + $0x568] sm:$0xff] }
  0x88   :  { %1188 = vmatprep.mubr.bf16.mxu0 %v108_v10  ;;  %v827_v1 = vpack.c.bf16 %v519_v59, %v517_v57  ;;  %v267_v4 = vld [vmem:[%s3329_s1 + $0x4d0] sm:$0xff]  ;;  %v526_v10 = vld [vmem:[%s3329_s1 + $0xce8] sm:$0xff]  ;;  %v288_v57 = vld [vmem:[%s3329_s1 + $0x578] sm:$0xff] }
  0x89   :  { %990 = vmatpush1.bf16.msra.mxu1 %v691_v2  ;;  %v702_v2 = vpack.c.bf16 %v268_v61, %v266_v60  ;;  %v701_v12 = vpack.c.bf16 %v267_v4, %v265_v3  ;;  %v832_v18 = vpack.c.bf16 %v528_v11, %v526_v10  ;;  %v539_v55 = vld [vmem:[%s3329_s1 + $0xd50] sm:$0xff]  ;;  %v544_v59 = vld [vmem:[%s3329_s1 + $0xd78] sm:$0xff]  ;;  %v712_v62 = vpack.c.bf16 %v288_v57, %v286_v56  ;;  %v290_v4 = vld [vmem:[%s3329_s1 + $0x588] sm:$0xff] }
  0x8a   :  { %1202 = vmatpush1.bf16.msra.mxu0 %v819_v7  ;;  %991 = vmatprep.subr.bf16.mxu1 %v694_v8  ;;  %v523_v7 = vld [vmem:[%s3329_s1 + $0xcd0] sm:$0xff]  ;;  %v270_v8 = vld [vmem:[%s3329_s1 + $0x4e8] sm:$0xff]  ;;  %v289_v11 = vld [vmem:[%s3329_s1 + $0x580] sm:$0xff] }
  0x8b   :  { %1203 = vmatprep.subr.bf16.mxu0 %v822_v13  ;;  %v829_v13 = vpack.c.bf16 %v523_v7, %v521_v5  ;;  %v704_v14 = vpack.c.bf16 %v272_v9, %v270_v8  ;;  %v543_v3 = vld [vmem:[%s3329_s1 + $0xd70] sm:$0xff]  ;;  %v292_v5 = vld [vmem:[%s3329_s1 + $0x598] sm:$0xff]  ;;  %v297_v35 = vld [vmem:[%s3329_s1 + $0x5c0] sm:$0xff] }
  0x8c   :  { %977 = vmatmul.mubr.bf16.gmra.mrb[4].mxu1 %v99_v19  ;;  %v527_v19 = vld [vmem:[%s3329_s1 + $0xcf0] sm:$0xff]  ;;  %v548_v7 = vld [vmem:[%s3329_s1 + $0xd98] sm:$0xff]  ;;  %v714_v10 = vpack.c.bf16 %v292_v5, %v290_v4  ;;  %v21_v56 = vld [vmem:[%s3330_s0 + $0x20] sm:$0xff] }
  0x8d   :  { %992 = vmatpush1.bf16.msra.mxu1 %v693_v21  ;;  %1189 = vmatmul.mubr.bf16.gmra.mrb[4].mxu0 %v107_v23  ;;  %v276_v21 = vld [vmem:[%s3329_s1 + $0x518] sm:$0xff]  ;;  %v37_v57 = vld [vmem:[%s3330_s0 + $0xa0] sm:$0xff]  ;;  %v310_v4 = vld [vmem:[%s3329_s1 + $0x628] sm:$0xff] }
  0x8e   :  { %1204 = vmatpush1.bf16.msra.mxu0 %v821_v24  ;;  %993 = vmatprep.subr.bf16.mxu1 %v696_v25  ;;  %v532_v23 = vld [vmem:[%s3329_s1 + $0xd18] sm:$0xff]  ;;  %v703_v24 = vpack.c.bf16 %v271_v16, %v269_v15  ;;  %v831_v25 = vpack.c.bf16 %v527_v19, %v525_v17  ;;  %v706_v26 = vpack.c.bf16 %v276_v21, %v274_v20  ;;  %v547_v15 = vld [vmem:[%s3329_s1 + $0xd90] sm:$0xff]  ;;  %v294_v16 = vld [vmem:[%s3329_s1 + $0x5a8] sm:$0xff] }
  0x8f   :  { %1205 = vmatprep.subr.bf16.mxu0 %v824_v29  ;;  %1019 = vmatprep.mubr.bf16.mxu1 %v86_v37  ;;  %v529_v29 = vld [vmem:[%s3329_s1 + $0xd00] sm:$0xff]  ;;  %v834_v30 = vpack.c.bf16 %v532_v23, %v530_v22  ;;  %v296_v17 = vld [vmem:[%s3329_s1 + $0x5b8] sm:$0xff] }
  0x90   :  { %1231 = vmatprep.mubr.bf16.mxu0 %v94_v45  ;;  %v833_v37 = vpack.c.bf16 %v531_v31, %v529_v29  ;;  %v284_v45 = vld [vmem:[%s3329_s1 + $0x558] sm:$0xff]  ;;  %v716_v22 = vpack.c.bf16 %v296_v17, %v294_v16  ;;  %v293_v23 = vld [vmem:[%s3329_s1 + $0x5a0] sm:$0xff] }
  0x91   :  { %994 = vmatpush1.bf16.msra.mxu1 %v695_v36  ;;  %v705_v36 = vpack.c.bf16 %v275_v28, %v273_v27  ;;  %v710_v50 = vpack.c.bf16 %v284_v45, %v282_v44  ;;  %v552_v19 = vld [vmem:[%s3329_s1 + $0xdb8] sm:$0xff]  ;;  %v551_v27 = vld [vmem:[%s3329_s1 + $0xdb0] sm:$0xff]  ;;  %v298_v28 = vld [vmem:[%s3329_s1 + $0x5c8] sm:$0xff] }
  0x92   :  { %1206 = vmatpush1.bf16.msra.mxu0 %v823_v40  ;;  %995 = vmatprep.subr.bf16.mxu1 %v698_v41  ;;  %v279_v40 = vld [vmem:[%s3329_s1 + $0x530] sm:$0xff]  ;;  %v533_v41 = vld [vmem:[%s3329_s1 + $0xd20] sm:$0xff]  ;;  %v300_v29 = vld [vmem:[%s3329_s1 + $0x5d8] sm:$0xff] }
  0x93   :  { %1207 = vmatprep.subr.bf16.mxu0 %v826_v46  ;;  %v538_v46 = vld [vmem:[%s3329_s1 + $0xd48] sm:$0xff]  ;;  %v707_v48 = vpack.c.bf16 %v279_v40, %v277_v39  ;;  %v835_v49 = vpack.c.bf16 %v535_v43, %v533_v41  ;;  %v556_v31 = vld [vmem:[%s3329_s1 + $0xdd8] sm:$0xff]  ;;  %v718_v34 = vpack.c.bf16 %v300_v29, %v298_v28  ;;  %v555_v39 = vld [vmem:[%s3329_s1 + $0xdd0] sm:$0xff] }
  0x94   :  { %v302_v40 = vld [vmem:[%s3329_s1 + $0x5e8] sm:$0xff]  ;;  %v304_v41 = vld [vmem:[%s3329_s1 + $0x5f8] sm:$0xff]  ;;  %v301_v45 = vld [vmem:[%s3329_s1 + $0x5e0] sm:$0xff] }
  0x95   :  { %996 = vmatpush1.bf16.msra.mxu1 %v697_v52  ;;  %v283_v52 = vld [vmem:[%s3329_s1 + $0x550] sm:$0xff]  ;;  %v560_v43 = vld [vmem:[%s3329_s1 + $0xdf8] sm:$0xff] }
  0x96   :  { %1208 = vmatpush1.bf16.msra.mxu0 %v825_v53  ;;  %997 = vmatprep.subr.bf16.mxu1 %v700_v54  ;;  %v537_v53 = vld [vmem:[%s3329_s1 + $0xd40] sm:$0xff]  ;;  %v838_v54 = vpack.c.bf16 %v540_v47, %v538_v46  ;;  %v709_v60 = vpack.c.bf16 %v283_v52, %v281_v51  ;;  %v720_v47 = vpack.c.bf16 %v304_v41, %v302_v40  ;;  %v306_v52 = vld [vmem:[%s3329_s1 + $0x608] sm:$0xff]  ;;  %v312_v5 = vld [vmem:[%s3329_s1 + $0x638] sm:$0xff] }
  0x97   :  { %1209 = vmatprep.subr.bf16.mxu0 %v828_v58  ;;  %v542_v58 = vld [vmem:[%s3329_s1 + $0xd68] sm:$0xff]  ;;  %v837_v61 = vpack.c.bf16 %v539_v55, %v537_v53  ;;  %v308_v53 = vld [vmem:[%s3329_s1 + $0x618] sm:$0xff]  ;;  %v724_v17 = vpack.c.bf16 %v312_v5, %v310_v4  ;;  %v315_v28 = vld [vmem:[%s3329_s1 + $0x650] sm:$0xff] }
  0x98   :  { %v564_v55 = vld [vmem:[%s3329_s1 + $0xe18] sm:$0xff]  ;;  %v318_v40 = vld [vmem:[%s3329_s1 + $0x668] sm:$0xff]  ;;  %v323_v4 = vld [vmem:[%s3329_s1 + $0x690] sm:$0xff] }
  0x99   :  { %998 = vmatpush1.bf16.msra.mxu1 %v699_v0  ;;  %v287_v0 = vld [vmem:[%s3329_s1 + $0x570] sm:$0xff]  ;;  %v320_v41 = vld [vmem:[%s3329_s1 + $0x678] sm:$0xff]  ;;  %v577_v5 = vld [vmem:[%s3329_s1 + $0xe80] sm:$0xff] }
  0x9a   :  { %1210 = vmatpush1.bf16.msra.mxu0 %v827_v1  ;;  %999 = vmatprep.subr.bf16.mxu1 %v702_v2  ;;  %v541_v1 = vld [vmem:[%s3329_s1 + $0xd60] sm:$0xff]  ;;  %v840_v2 = vpack.c.bf16 %v544_v59, %v542_v58  ;;  %v711_v8 = vpack.c.bf16 %v287_v0, %v285_v63  ;;  %v722_v63 = vpack.c.bf16 %v308_v53, %v306_v52 }
  0x9b   :  { %1211 = vmatprep.subr.bf16.mxu0 %v830_v6  ;;  %v546_v6 = vld [vmem:[%s3329_s1 + $0xd88] sm:$0xff]  ;;  %v839_v9 = vpack.c.bf16 %v543_v3, %v541_v1  ;;  %v305_v59 = vld [vmem:[%s3329_s1 + $0x600] sm:$0xff]  ;;  %v728_v52 = vpack.c.bf16 %v320_v41, %v318_v40  ;;  %v335_v40 = vld [vmem:[%s3329_s1 + $0x6f0] sm:$0xff] }
  0x9c   :  { %v45_v0 = vld [vmem:[%s3330_s0 + $0xe0] sm:$0xff] }
  0x9d   :  { %1000 = vmatpush1.bf16.msra.mxu1 %v701_v12  ;;  %v291_v12 = vld [vmem:[%s3329_s1 + $0x590] sm:$0xff]  ;;  %v561_v1 = vld [vmem:[%s3329_s1 + $0xe00] sm:$0xff] }
  0x9e   :  { %1212 = vmatpush1.bf16.msra.mxu0 %v829_v13  ;;  %1001 = vmatprep.subr.bf16.mxu1 %v704_v14  ;;  %v545_v13 = vld [vmem:[%s3329_s1 + $0xd80] sm:$0xff]  ;;  %v842_v14 = vpack.c.bf16 %v548_v7, %v546_v6  ;;  %v713_v20 = vpack.c.bf16 %v291_v12, %v289_v11  ;;  %v566_v6 = vld [vmem:[%s3329_s1 + $0xe28] sm:$0xff]  ;;  %v85_v7 = vpack.c.bf16 %v37_v57, %v21_v56  ;;  %v575_v57 = vld [vmem:[%s3329_s1 + $0xe70] sm:$0xff] }
  0x9f   :  { %1213 = vmatprep.subr.bf16.mxu0 %v832_v18  ;;  %v550_v18 = vld [vmem:[%s3329_s1 + $0xda8] sm:$0xff]  ;;  %v841_v21 = vpack.c.bf16 %v547_v15, %v545_v13  ;;  %v309_v13 = vld [vmem:[%s3329_s1 + $0x620] sm:$0xff] }
  0xa0   :  { %v78_v15 = vld [vmem:[%s3330_s0 + $0x1e8] sm:$0xff]  ;;  %v317_v53 = vld [vmem:[%s3329_s1 + $0x660] sm:$0xff] }
  0xa1   :  { %1002 = vmatpush1.bf16.msra.mxu1 %v703_v24  ;;  %v295_v24 = vld [vmem:[%s3329_s1 + $0x5b0] sm:$0xff]  ;;  %v589_v41 = vld [vmem:[%s3329_s1 + $0xee0] sm:$0xff] }
  0xa2   :  { %1214 = vmatpush1.bf16.msra.mxu0 %v831_v25  ;;  %1003 = vmatprep.subr.bf16.mxu1 %v706_v26  ;;  %v549_v25 = vld [vmem:[%s3329_s1 + $0xda0] sm:$0xff]  ;;  %v844_v26 = vpack.c.bf16 %v552_v19, %v550_v18  ;;  %v715_v32 = vpack.c.bf16 %v295_v24, %v293_v23  ;;  %v311_v18 = vld [vmem:[%s3329_s1 + $0x630] sm:$0xff]  ;;  %v316_v23 = vld [vmem:[%s3329_s1 + $0x658] sm:$0xff] }
  0xa3   :  { %1215 = vmatprep.subr.bf16.mxu0 %v834_v30  ;;  %v554_v30 = vld [vmem:[%s3329_s1 + $0xdc8] sm:$0xff]  ;;  %v843_v33 = vpack.c.bf16 %v551_v27, %v549_v25  ;;  %v565_v19 = vld [vmem:[%s3329_s1 + $0xe20] sm:$0xff] }
  0xa4   :  { %v570_v24 = vld [vmem:[%s3329_s1 + $0xe48] sm:$0xff]  ;;  %v313_v27 = vld [vmem:[%s3329_s1 + $0x640] sm:$0xff] }
  0xa5   :  { %1004 = vmatpush1.bf16.msra.mxu1 %v705_v36  ;;  %v299_v36 = vld [vmem:[%s3329_s1 + $0x5d0] sm:$0xff] }
  0xa6   :  { %1216 = vmatpush1.bf16.msra.mxu0 %v833_v37  ;;  %1005 = vmatprep.subr.bf16.mxu1 %v708_v38  ;;  %v553_v37 = vld [vmem:[%s3329_s1 + $0xdc0] sm:$0xff]  ;;  %v846_v38 = vpack.c.bf16 %v556_v31, %v554_v30  ;;  %v717_v44 = vpack.c.bf16 %v299_v36, %v297_v35  ;;  %v723_v30 = vpack.c.bf16 %v311_v18, %v309_v13  ;;  %v571_v36 = vld [vmem:[%s3329_s1 + $0xe50] sm:$0xff] }
  0xa7   :  { %1217 = vmatprep.subr.bf16.mxu0 %v836_v42  ;;  %v558_v42 = vld [vmem:[%s3329_s1 + $0xde8] sm:$0xff]  ;;  %v845_v46 = vpack.c.bf16 %v555_v39, %v553_v37  ;;  %v569_v31 = vld [vmem:[%s3329_s1 + $0xe40] sm:$0xff] }
  0xa8   :  { %v848_v51 = vpack.c.bf16 %v560_v43, %v558_v42  ;;  %v61_v37 = vld [vmem:[%s3330_s0 + $0x160] sm:$0xff]  ;;  %v574_v42 = vld [vmem:[%s3329_s1 + $0xe68] sm:$0xff]  ;;  %v576_v43 = vld [vmem:[%s3329_s1 + $0xe78] sm:$0xff] }
  0xa9   :  { %1006 = vmatpush1.bf16.msra.mxu1 %v707_v48  ;;  %v303_v48 = vld [vmem:[%s3329_s1 + $0x5f0] sm:$0xff]  ;;  %v856_v56 = vpack.c.bf16 %v576_v43, %v574_v42 }
  0xaa   :  { %1218 = vmatpush1.bf16.msra.mxu0 %v835_v49  ;;  %1007 = vmatprep.subr.bf16.mxu1 %v710_v50  ;;  %v557_v49 = vld [vmem:[%s3329_s1 + $0xde0] sm:$0xff]  ;;  %v559_v50 = vld [vmem:[%s3329_s1 + $0xdf0] sm:$0xff]  ;;  %v719_v58 = vpack.c.bf16 %v303_v48, %v301_v45  ;;  %v24_v45 = vld [vmem:[%s3330_s0 + $0x38] sm:$0xff] }
  0xab   :  { %1219 = vmatprep.subr.bf16.mxu0 %v838_v54  ;;  %v562_v54 = vld [vmem:[%s3329_s1 + $0xe08] sm:$0xff]  ;;  %v591_v43 = vld [vmem:[%s3329_s1 + $0xef0] sm:$0xff] }
  0xac   :  { %v850_v3 = vpack.c.bf16 %v564_v55, %v562_v54  ;;  %v319_v54 = vld [vmem:[%s3329_s1 + $0x670] sm:$0xff]  ;;  %v573_v55 = vld [vmem:[%s3329_s1 + $0xe60] sm:$0xff] }
  0xad   :  { %1008 = vmatpush1.bf16.msra.mxu1 %v709_v60  ;;  %v307_v60 = vld [vmem:[%s3329_s1 + $0x610] sm:$0xff] }
  0xae   :  { %1220 = vmatpush1.bf16.msra.mxu0 %v837_v61  ;;  %1009 = vmatprep.subr.bf16.mxu1 %v712_v62  ;;  %v29_v61 = vld [vmem:[%s3330_s0 + $0x60] sm:$0xff]  ;;  %v847_v62 = vpack.c.bf16 %v559_v50, %v557_v49  ;;  %v721_v11 = vpack.c.bf16 %v307_v60, %v305_v59  ;;  %v32_v49 = vld [vmem:[%s3330_s0 + $0x78] sm:$0xff] }
  0xaf   :  { %1221 = vmatprep.subr.bf16.mxu0 %v840_v2  ;;  %v563_v2 = vld [vmem:[%s3329_s1 + $0xe10] sm:$0xff]  ;;  %v93_v12 = vpack.c.bf16 %v45_v0, %v29_v61  ;;  %v48_v50 = vld [vmem:[%s3330_s0 + $0xf8] sm:$0xff]  ;;  %v578_v61 = vld [vmem:[%s3329_s1 + $0xe88] sm:$0xff]  ;;  %v727_v0 = vpack.c.bf16 %v319_v54, %v317_v53 }
  0xb0   :  { %v849_v16 = vpack.c.bf16 %v563_v2, %v561_v1  ;;  %v324_v59 = vld [vmem:[%s3329_s1 + $0x698] sm:$0xff]  ;;  %v855_v1 = vpack.c.bf16 %v575_v57, %v573_v55  ;;  %v593_v53 = vld [vmem:[%s3329_s1 + $0xf00] sm:$0xff]  ;;  %v595_v55 = vld [vmem:[%s3329_s1 + $0xf10] sm:$0xff] }
  0xb1   :  { %1010 = vmatpush1.bf16.msra.mxu1 %v711_v8  ;;  %v568_v8 = vld [vmem:[%s3329_s1 + $0xe38] sm:$0xff] }
  0xb2   :  { %1222 = vmatpush1.bf16.msra.mxu0 %v839_v9  ;;  %1011 = vmatprep.subr.bf16.mxu1 %v714_v10  ;;  %v54_v9 = vld [vmem:[%s3330_s0 + $0x128] sm:$0xff]  ;;  %v344_v57 = vld [vmem:[%s3329_s1 + $0x738] sm:$0xff] }
  0xb3   :  { %1223 = vmatprep.subr.bf16.mxu0 %v842_v14  ;;  %v70_v10 = vld [vmem:[%s3330_s0 + $0x1a8] sm:$0xff] }
  0xb4   :  { %v62_v14 = vld [vmem:[%s3330_s0 + $0x168] sm:$0xff]  ;;  %v102_v25 = vpack.c.bf16 %v70_v10, %v54_v9  ;;  %v328_v9 = vld [vmem:[%s3329_s1 + $0x6b8] sm:$0xff] }
  0xb5   :  { %1012 = vmatpush1.bf16.msra.mxu1 %v713_v20  ;;  %v567_v20 = vld [vmem:[%s3329_s1 + $0xe30] sm:$0xff]  ;;  %v110_v29 = vpack.c.bf16 %v78_v15, %v62_v14  ;;  %v582_v10 = vld [vmem:[%s3329_s1 + $0xea8] sm:$0xff]  ;;  %v325_v15 = vld [vmem:[%s3329_s1 + $0x6a0] sm:$0xff] }
  0xb6   :  { %1224 = vmatpush1.bf16.msra.mxu0 %v841_v21  ;;  %1013 = vmatprep.subr.bf16.mxu1 %v716_v22  ;;  %v852_v21 = vpack.c.bf16 %v568_v8, %v566_v6  ;;  %v314_v22 = vld [vmem:[%s3329_s1 + $0x648] sm:$0xff] }
  0xb7   :  { %1225 = vmatprep.subr.bf16.mxu0 %v844_v26  ;;  %v572_v26 = vld [vmem:[%s3329_s1 + $0xe58] sm:$0xff]  ;;  %v726_v35 = vpack.c.bf16 %v316_v23, %v314_v22  ;;  %v326_v8 = vld [vmem:[%s3329_s1 + $0x6a8] sm:$0xff] }
  0xb8   :  { %v854_v39 = vpack.c.bf16 %v572_v26, %v570_v24  ;;  %v732_v14 = vpack.c.bf16 %v328_v9, %v326_v8  ;;  %v586_v22 = vld [vmem:[%s3329_s1 + $0xec8] sm:$0xff]  ;;  %v588_v23 = vld [vmem:[%s3329_s1 + $0xed8] sm:$0xff] }
  0xb9   :  { %1014 = vmatpush1.bf16.msra.mxu1 %v715_v32  ;;  %v53_v32 = vld [vmem:[%s3330_s0 + $0x120] sm:$0xff] }
  0xba   :  { %1226 = vmatpush1.bf16.msra.mxu0 %v843_v33  ;;  %1015 = vmatprep.subr.bf16.mxu1 %v718_v34  ;;  %v69_v33 = vld [vmem:[%s3330_s0 + $0x1a0] sm:$0xff]  ;;  %v851_v34 = vpack.c.bf16 %v567_v20, %v565_v19  ;;  %v583_v19 = vld [vmem:[%s3329_s1 + $0xeb0] sm:$0xff]  ;;  %v330_v20 = vld [vmem:[%s3329_s1 + $0x6c8] sm:$0xff] }
  0xbb   :  { %1227 = vmatprep.subr.bf16.mxu0 %v846_v38  ;;  %v77_v38 = vld [vmem:[%s3330_s0 + $0x1e0] sm:$0xff] }
  0xbc   :  { %v109_v48 = vpack.c.bf16 %v77_v38, %v61_v37 }
  0xbd   :  { %1016 = vmatpush1.bf16.msra.mxu1 %v717_v44  ;;  %v101_v44 = vpack.c.bf16 %v69_v33, %v53_v32  ;;  %v334_v32 = vld [vmem:[%s3329_s1 + $0x6e8] sm:$0xff]  ;;  %v336_v33 = vld [vmem:[%s3329_s1 + $0x6f8] sm:$0xff] }
  0xbe   :  { %1228 = vmatpush1.bf16.msra.mxu0 %v845_v46  ;;  %1017 = vmatprep.subr.bf16.mxu1 %v720_v47  ;;  %v40_v46 = vld [vmem:[%s3330_s0 + $0xb8] sm:$0xff]  ;;  %v725_v47 = vpack.c.bf16 %v315_v28, %v313_v27  ;;  %v329_v27 = vld [vmem:[%s3329_s1 + $0x6c0] sm:$0xff]  ;;  %v331_v28 = vld [vmem:[%s3329_s1 + $0x6d0] sm:$0xff]  ;;  %v736_v38 = vpack.c.bf16 %v336_v33, %v334_v32 }
  0xbf   :  { %1229 = vmatprep.subr.bf16.mxu0 %v848_v51  ;;  %v853_v51 = vpack.c.bf16 %v571_v36, %v569_v31  ;;  %v88_v60 = vpack.c.bf16 %v40_v46, %v24_v45  ;;  %v587_v31 = vld [vmem:[%s3329_s1 + $0xed0] sm:$0xff]  ;;  %v733_v36 = vpack.c.bf16 %v331_v28, %v329_v27  ;;  %v340_v45 = vld [vmem:[%s3329_s1 + $0x718] sm:$0xff]  ;;  %v594_v46 = vld [vmem:[%s3329_s1 + $0xf08] sm:$0xff] }
  0xc0   :  { %v607_v27 = vld [vmem:[%s3329_s1 + $0xf70] sm:$0xff]  ;;  %v354_v28 = vld [vmem:[%s3329_s1 + $0x788] sm:$0xff] }
  0xc1   :  { %1018 = vmatpush1.bf16.msra.mxu1 %v719_v58  ;;  %v322_v58 = vld [vmem:[%s3329_s1 + $0x688] sm:$0xff] }
  0xc2   :  { %1230 = vmatpush1.bf16.msra.mxu0 %v847_v62  ;;  %1040 = vmatprep.subr.bf16.mxu1 %v722_v63  ;;  %v580_v62 = vld [vmem:[%s3329_s1 + $0xe98] sm:$0xff]  ;;  %v96_v63 = vpack.c.bf16 %v48_v50, %v32_v49  ;;  %v730_v2 = vpack.c.bf16 %v324_v59, %v322_v58  ;;  %v863_v49 = vpack.c.bf16 %v591_v43, %v589_v41  ;;  %v598_v58 = vld [vmem:[%s3329_s1 + $0xf28] sm:$0xff] }
  0xc3   :  { %1252 = vmatprep.subr.bf16.mxu0 %v850_v3  ;;  %v321_v3 = vld [vmem:[%s3329_s1 + $0x680] sm:$0xff]  ;;  %v858_v6 = vpack.c.bf16 %v580_v62, %v578_v61  ;;  %v600_v59 = vld [vmem:[%s3329_s1 + $0xf38] sm:$0xff]  ;;  %v865_v61 = vpack.c.bf16 %v595_v55, %v593_v53 }
  0xc4   :  { %1020 = vmatmul.mubr.bf16.vlgmr.msra.gmra.mrb[0].mxu1 %v85_v7  ;;  %v579_v7 = vld [vmem:[%s3329_s1 + $0xe90] sm:$0xff]  ;;  %v360_v41 = vld [vmem:[%s3329_s1 + $0x7b8] sm:$0xff] }
  0xc5   :  { %1041 = vmatpush1.bf16.msra.mxu1 %v721_v11  ;;  %1232 = vmatmul.mubr.bf16.vlgmr.msra.gmra.mrb[0].mxu0 %v93_v12  ;;  %v584_v11 = vld [vmem:[%s3329_s1 + $0xeb8] sm:$0xff]  ;;  %v729_v12 = vpack.c.bf16 %v323_v4, %v321_v3  ;;  %v857_v13 = vpack.c.bf16 %v579_v7, %v577_v5  ;;  %v599_v3 = vld [vmem:[%s3329_s1 + $0xf30] sm:$0xff]  ;;  %v346_v4 = vld [vmem:[%s3329_s1 + $0x748] sm:$0xff] }
  0xc6   :  { %1253 = vmatpush1.bf16.msra.mxu0 %v849_v16  ;;  %1042 = vmatprep.subr.bf16.mxu1 %v724_v17  ;;  %v327_v16 = vld [vmem:[%s3329_s1 + $0x6b0] sm:$0xff]  ;;  %v581_v17 = vld [vmem:[%s3329_s1 + $0xea0] sm:$0xff]  ;;  %v860_v18 = vpack.c.bf16 %v584_v11, %v582_v10  ;;  %v348_v5 = vld [vmem:[%s3329_s1 + $0x758] sm:$0xff] }
  0xc7   :  { %1254 = vmatprep.subr.bf16.mxu0 %v852_v21  ;;  %1029 = vmatprep.mubr.bf16.mxu1 %v102_v25  ;;  %v332_v21 = vld [vmem:[%s3329_s1 + $0x6d8] sm:$0xff]  ;;  %v731_v24 = vpack.c.bf16 %v327_v16, %v325_v15  ;;  %v859_v25 = vpack.c.bf16 %v583_v19, %v581_v17  ;;  %v742_v10 = vpack.c.bf16 %v348_v5, %v346_v4  ;;  %v345_v11 = vld [vmem:[%s3329_s1 + $0x740] sm:$0xff]  ;;  %v603_v15 = vld [vmem:[%s3329_s1 + $0xf50] sm:$0xff] }
  0xc8   :  { %1241 = vmatprep.mubr.bf16.mxu0 %v110_v29  ;;  %v734_v26 = vpack.c.bf16 %v332_v21, %v330_v20  ;;  %v585_v29 = vld [vmem:[%s3329_s1 + $0xec0] sm:$0xff]  ;;  %v604_v7 = vld [vmem:[%s3329_s1 + $0xf58] sm:$0xff]  ;;  %v350_v16 = vld [vmem:[%s3329_s1 + $0x768] sm:$0xff] }
  0xc9   :  { %1043 = vmatpush1.bf16.msra.mxu1 %v723_v30  ;;  %v862_v30 = vpack.c.bf16 %v588_v23, %v586_v22  ;;  %v861_v37 = vpack.c.bf16 %v587_v31, %v585_v29  ;;  %v352_v17 = vld [vmem:[%s3329_s1 + $0x778] sm:$0xff]  ;;  %v349_v23 = vld [vmem:[%s3329_s1 + $0x760] sm:$0xff] }
  0xca   :  { %1255 = vmatpush1.bf16.msra.mxu0 %v851_v34  ;;  %1044 = vmatprep.subr.bf16.mxu1 %v726_v35  ;;  %v590_v34 = vld [vmem:[%s3329_s1 + $0xee8] sm:$0xff]  ;;  %v592_v35 = vld [vmem:[%s3329_s1 + $0xef8] sm:$0xff]  ;;  %v744_v22 = vpack.c.bf16 %v352_v17, %v350_v16  ;;  %v47_v17 = vld [vmem:[%s3330_s0 + $0xf0] sm:$0xff] }
  0xcb   :  { %1256 = vmatprep.subr.bf16.mxu0 %v854_v39  ;;  %v333_v39 = vld [vmem:[%s3329_s1 + $0x6e0] sm:$0xff]  ;;  %v864_v42 = vpack.c.bf16 %v592_v35, %v590_v34  ;;  %v608_v19 = vld [vmem:[%s3329_s1 + $0xf78] sm:$0xff] }
  0xcc   :  { %1030 = vmatmul.mubr.bf16.gmra.mrb[4].mxu1 %v101_v44  ;;  %v338_v44 = vld [vmem:[%s3329_s1 + $0x708] sm:$0xff]  ;;  %v356_v29 = vld [vmem:[%s3329_s1 + $0x798] sm:$0xff]  ;;  %v353_v35 = vld [vmem:[%s3329_s1 + $0x780] sm:$0xff] }
  0xcd   :  { %1045 = vmatpush1.bf16.msra.mxu1 %v725_v47  ;;  %1242 = vmatmul.mubr.bf16.gmra.mrb[4].mxu0 %v109_v48  ;;  %v596_v47 = vld [vmem:[%s3329_s1 + $0xf18] sm:$0xff]  ;;  %v735_v48 = vpack.c.bf16 %v335_v40, %v333_v39  ;;  %v738_v50 = vpack.c.bf16 %v340_v45, %v338_v44  ;;  %v746_v34 = vpack.c.bf16 %v356_v29, %v354_v28  ;;  %v611_v39 = vld [vmem:[%s3329_s1 + $0xf90] sm:$0xff]  ;;  %v358_v40 = vld [vmem:[%s3329_s1 + $0x7a8] sm:$0xff] }
  0xce   :  { %1257 = vmatpush1.bf16.msra.mxu0 %v853_v51  ;;  %1046 = vmatprep.subr.bf16.mxu1 %v728_v52  ;;  %v337_v51 = vld [vmem:[%s3329_s1 + $0x700] sm:$0xff]  ;;  %v339_v52 = vld [vmem:[%s3329_s1 + $0x710] sm:$0xff]  ;;  %v866_v54 = vpack.c.bf16 %v596_v47, %v594_v46  ;;  %v612_v31 = vld [vmem:[%s3329_s1 + $0xf98] sm:$0xff]  ;;  %v748_v46 = vpack.c.bf16 %v360_v41, %v358_v40 }
  0xcf   :  { %1258 = vmatprep.subr.bf16.mxu0 %v856_v56  ;;  %1072 = vmatprep.mubr.bf16.mxu1 %v88_v60  ;;  %v342_v56 = vld [vmem:[%s3329_s1 + $0x728] sm:$0xff]  ;;  %v737_v60 = vpack.c.bf16 %v339_v52, %v337_v51  ;;  %v616_v43 = vld [vmem:[%s3329_s1 + $0xfb8] sm:$0xff]  ;;  %v357_v47 = vld [vmem:[%s3329_s1 + $0x7a0] sm:$0xff] }
  0xd0   :  { %1284 = vmatprep.mubr.bf16.mxu0 %v96_v63  ;;  %v740_v62 = vpack.c.bf16 %v344_v57, %v342_v56  ;;  %v341_v63 = vld [vmem:[%s3329_s1 + $0x720] sm:$0xff]  ;;  %v615_v51 = vld [vmem:[%s3329_s1 + $0xfb0] sm:$0xff]  ;;  %v362_v52 = vld [vmem:[%s3329_s1 + $0x7c8] sm:$0xff] }
  0xd1   :  { %1047 = vmatpush1.bf16.msra.mxu1 %v727_v0  ;;  %v343_v0 = vld [vmem:[%s3329_s1 + $0x730] sm:$0xff]  ;;  %v364_v53 = vld [vmem:[%s3329_s1 + $0x7d8] sm:$0xff] }
  0xd2   :  { %1259 = vmatpush1.bf16.msra.mxu0 %v855_v1  ;;  %1048 = vmatprep.subr.bf16.mxu1 %v730_v2  ;;  %v597_v1 = vld [vmem:[%s3329_s1 + $0xf20] sm:$0xff]  ;;  %v868_v2 = vpack.c.bf16 %v600_v59, %v598_v58  ;;  %v739_v8 = vpack.c.bf16 %v343_v0, %v341_v63  ;;  %v620_v55 = vld [vmem:[%s3329_s1 + $0xfd8] sm:$0xff]  ;;  %v750_v58 = vpack.c.bf16 %v364_v53, %v362_v52  ;;  %v619_v63 = vld [vmem:[%s3329_s1 + $0xfd0] sm:$0xff] }
  0xd3   :  { %1260 = vmatprep.subr.bf16.mxu0 %v858_v6  ;;  %v602_v6 = vld [vmem:[%s3329_s1 + $0xf48] sm:$0xff]  ;;  %v867_v9 = vpack.c.bf16 %v599_v3, %v597_v1  ;;  %v361_v59 = vld [vmem:[%s3329_s1 + $0x7c0] sm:$0xff]  ;;  %v368_v1 = vld [vmem:[%s3329_s1 + $0x7f8] sm:$0xff] }
  0xd4   :  { %v366_v0 = vld [vmem:[%s3329_s1 + $0x7e8] sm:$0xff]  ;;  %v624_v3 = vld [vmem:[%s3329_s1 + $0xff8] sm:$0xff]  ;;  %v63_v28 = vld [vmem:[%s3330_s0 + $0x170] sm:$0xff] }
  0xd5   :  { %1049 = vmatpush1.bf16.msra.mxu1 %v729_v12  ;;  %v347_v12 = vld [vmem:[%s3329_s1 + $0x750] sm:$0xff] }
  0xd6   :  { %1261 = vmatpush1.bf16.msra.mxu0 %v857_v13  ;;  %1050 = vmatprep.subr.bf16.mxu1 %v732_v14  ;;  %v601_v13 = vld [vmem:[%s3329_s1 + $0xf40] sm:$0xff]  ;;  %v870_v14 = vpack.c.bf16 %v604_v7, %v602_v6  ;;  %v741_v20 = vpack.c.bf16 %v347_v12, %v345_v11  ;;  %v752_v6 = vpack.c.bf16 %v368_v1, %v366_v0  ;;  %v623_v11 = vld [vmem:[%s3329_s1 + $0xff0] sm:$0xff] }
  0xd7   :  { %1262 = vmatprep.subr.bf16.mxu0 %v860_v18  ;;  %v606_v18 = vld [vmem:[%s3329_s1 + $0xf68] sm:$0xff]  ;;  %v869_v21 = vpack.c.bf16 %v603_v15, %v601_v13  ;;  %v365_v7 = vld [vmem:[%s3329_s1 + $0x7e0] sm:$0xff]  ;;  %v23_v13 = vld [vmem:[%s3330_s0 + $0x30] sm:$0xff] }
  0xd8   :  { %v31_v15 = vld [vmem:[%s3330_s0 + $0x70] sm:$0xff] }
  0xd9   :  { %1051 = vmatpush1.bf16.msra.mxu1 %v731_v24  ;;  %v351_v24 = vld [vmem:[%s3329_s1 + $0x770] sm:$0xff] }
  0xda   :  { %1263 = vmatpush1.bf16.msra.mxu0 %v859_v25  ;;  %1052 = vmatprep.subr.bf16.mxu1 %v734_v26  ;;  %v605_v25 = vld [vmem:[%s3329_s1 + $0xf60] sm:$0xff]  ;;  %v872_v26 = vpack.c.bf16 %v608_v19, %v606_v18  ;;  %v743_v32 = vpack.c.bf16 %v351_v24, %v349_v23  ;;  %v56_v18 = vld [vmem:[%s3330_s0 + $0x138] sm:$0xff]  ;;  %v95_v23 = vpack.c.bf16 %v47_v17, %v31_v15  ;;  %v79_v29 = vld [vmem:[%s3330_s0 + $0x1f0] sm:$0xff] }
  0xdb   :  { %1264 = vmatprep.subr.bf16.mxu0 %v862_v30  ;;  %v610_v30 = vld [vmem:[%s3329_s1 + $0xf88] sm:$0xff]  ;;  %v871_v33 = vpack.c.bf16 %v607_v27, %v605_v25  ;;  %v72_v19 = vld [vmem:[%s3330_s0 + $0x1b8] sm:$0xff]  ;;  %v71_v27 = vld [vmem:[%s3330_s0 + $0x1b0] sm:$0xff] }
  0xdc   :  { %v104_v24 = vpack.c.bf16 %v72_v19, %v56_v18 }
  0xdd   :  { %1053 = vmatpush1.bf16.msra.mxu1 %v733_v36  ;;  %v355_v36 = vld [vmem:[%s3329_s1 + $0x790] sm:$0xff] }
  0xde   :  { %1265 = vmatpush1.bf16.msra.mxu0 %v861_v37  ;;  %1054 = vmatprep.subr.bf16.mxu1 %v736_v38  ;;  %v609_v37 = vld [vmem:[%s3329_s1 + $0xf80] sm:$0xff]  ;;  %v874_v38 = vpack.c.bf16 %v612_v31, %v610_v30  ;;  %v745_v44 = vpack.c.bf16 %v355_v36, %v353_v35  ;;  %v111_v31 = vpack.c.bf16 %v79_v29, %v63_v28 }
  0xdf   :  { %1266 = vmatprep.subr.bf16.mxu0 %v864_v42  ;;  %v614_v42 = vld [vmem:[%s3329_s1 + $0xfa8] sm:$0xff]  ;;  %v873_v45 = vpack.c.bf16 %v611_v39, %v609_v37 }
  0xe1   :  { %1055 = vmatpush1.bf16.msra.mxu1 %v735_v48  ;;  %v359_v48 = vld [vmem:[%s3329_s1 + $0x7b0] sm:$0xff] }
  0xe2   :  { %1267 = vmatpush1.bf16.msra.mxu0 %v863_v49  ;;  %1056 = vmatprep.subr.bf16.mxu1 %v738_v50  ;;  %v613_v49 = vld [vmem:[%s3329_s1 + $0xfa0] sm:$0xff]  ;;  %v876_v50 = vpack.c.bf16 %v616_v43, %v614_v42  ;;  %v747_v56 = vpack.c.bf16 %v359_v48, %v357_v47 }
  0xe3   :  { %1268 = vmatprep.subr.bf16.mxu0 %v866_v54  ;;  %v618_v54 = vld [vmem:[%s3329_s1 + $0xfc8] sm:$0xff]  ;;  %v875_v57 = vpack.c.bf16 %v615_v51, %v613_v49 }
  0xe5   :  { %1057 = vmatpush1.bf16.msra.mxu1 %v737_v60  ;;  %v363_v60 = vld [vmem:[%s3329_s1 + $0x7d0] sm:$0xff] }
  0xe6   :  { %1269 = vmatpush1.bf16.msra.mxu0 %v865_v61  ;;  %1058 = vmatprep.subr.bf16.mxu1 %v740_v62  ;;  %v617_v61 = vld [vmem:[%s3329_s1 + $0xfc0] sm:$0xff]  ;;  %v878_v62 = vpack.c.bf16 %v620_v55, %v618_v54  ;;  %v749_v4 = vpack.c.bf16 %v363_v60, %v361_v59 }
  0xe7   :  { %1270 = vmatprep.subr.bf16.mxu0 %v868_v2  ;;  %v622_v2 = vld [vmem:[%s3329_s1 + $0xfe8] sm:$0xff]  ;;  %v877_v5 = vpack.c.bf16 %v619_v63, %v617_v61 }
  0xe9   :  { %1059 = vmatpush1.bf16.msra.mxu1 %v739_v8  ;;  %v367_v8 = vld [vmem:[%s3329_s1 + $0x7f0] sm:$0xff] }
  0xea   :  { %1271 = vmatpush1.bf16.msra.mxu0 %v867_v9  ;;  %1060 = vmatprep.subr.bf16.mxu1 %v742_v10  ;;  %v880_v9 = vpack.c.bf16 %v624_v3, %v622_v2  ;;  %v621_v10 = vld [vmem:[%s3329_s1 + $0xfe0] sm:$0xff]  ;;  %v751_v12 = vpack.c.bf16 %v367_v8, %v365_v7 }
  0xeb   :  { %1272 = vmatprep.subr.bf16.mxu0 %v870_v14  ;;  %v39_v14 = vld [vmem:[%s3330_s0 + $0xb0] sm:$0xff]  ;;  %v879_v16 = vpack.c.bf16 %v623_v11, %v621_v10 }
  0xed   :  { %1061 = vmatpush1.bf16.msra.mxu1 %v741_v20  ;;  %v64_v20 = vld [vmem:[%s3330_s0 + $0x178] sm:$0xff] }
  0xee   :  { %1273 = vmatpush1.bf16.msra.mxu0 %v869_v21  ;;  %1062 = vmatprep.subr.bf16.mxu1 %v744_v22  ;;  %v80_v21 = vld [vmem:[%s3330_s0 + $0x1f8] sm:$0xff]  ;;  %v87_v22 = vpack.c.bf16 %v39_v14, %v23_v13 }
  0xef   :  { %1274 = vmatprep.subr.bf16.mxu0 %v872_v26  ;;  %v112_v25 = vpack.c.bf16 %v80_v21, %v64_v20  ;;  %v55_v26 = vld [vmem:[%s3330_s0 + $0x130] sm:$0xff] }
  0xf0   :  { %v103_v30 = vpack.c.bf16 %v71_v27, %v55_v26 }
  0xf1   :  { %1063 = vmatpush1.bf16.msra.mxu1 %v743_v32 }
  0xf2   :  { %1275 = vmatpush1.bf16.msra.mxu0 %v871_v33  ;;  %1064 = vmatprep.subr.bf16.mxu1 %v746_v34 }
  0xf3   :  { %1276 = vmatprep.subr.bf16.mxu0 %v874_v38 }
  0xf5   :  { %1065 = vmatpush1.bf16.msra.mxu1 %v745_v44 }
  0xf6   :  { %1277 = vmatpush1.bf16.msra.mxu0 %v873_v45  ;;  %1066 = vmatprep.subr.bf16.mxu1 %v748_v46 }
  0xf7   :  { %1278 = vmatprep.subr.bf16.mxu0 %v876_v50 }
  0xf9   :  { %1067 = vmatpush1.bf16.msra.mxu1 %v747_v56 }
  0xfa   :  { %1279 = vmatpush1.bf16.msra.mxu0 %v875_v57  ;;  %1068 = vmatprep.subr.bf16.mxu1 %v750_v58 }
  0xfb   :  { %1280 = vmatprep.subr.bf16.mxu0 %v878_v62 }
  0xfd   :  { %1069 = vmatpush1.bf16.msra.mxu1 %v749_v4 }
  0xfe   :  { %1281 = vmatpush1.bf16.msra.mxu0 %v877_v5  ;;  %1070 = vmatprep.subr.bf16.mxu1 %v752_v6 }
  0xff   :  { %1282 = vmatprep.subr.bf16.mxu0 %v880_v9 }
 0x101   :  { %1071 = vmatpush1.bf16.msra.mxu1 %v751_v12 }
 0x102   :  { %1283 = vmatpush1.bf16.msra.mxu0 %v879_v16 }
 0x104   :  { %1073 = vmatmul.mubr.bf16.vlgmr.msra.gmra.mrb[0].mxu1 %v87_v22 }
 0x105   :  { %1285 = vmatmul.mubr.bf16.vlgmr.msra.gmra.mrb[0].mxu0 %v95_v23  ;;  %1082 = vmatprep.mubr.bf16.mxu1 %v104_v24 }
 0x106   :  { %1294 = vmatprep.mubr.bf16.mxu0 %v112_v25 }
 0x10c   :  { %1083 = vmatmul.mubr.bf16.gmra.mrb[4].mxu1 %v103_v30 }
 0x10d   :  { %1295 = vmatmul.mubr.bf16.gmra.mrb[4].mxu0 %v111_v31 }
 0x1d7   :  { %v1074_v32 = vpop.f32.mrb[0].mxu1 }
 0x1d8   :  { %v1286_v33 = vpop.f32.mrb[0].mxu0  ;;  %v1076_v34 = vpop.f32.mrb[1].mxu1 }
 0x1d9   :  { %v1461_v35 = vadd.f32 %v1286_v33, %v1074_v32  ;;  %v1288_v36 = vpop.f32.mrb[1].mxu0  ;;  %v1078_v37 = vpop.f32.mrb[2].mxu1 }
 0x1da   :  { %v1462_v38 = vadd.f32 %v1288_v36, %v1076_v34  ;;  %v1290_v39 = vpop.f32.mrb[2].mxu0  ;;  %v1080_v40 = vpop.f32.mrb[3].mxu1 }
 0x1db   :  { %v1463_v41 = vadd.f32 %v1290_v39, %v1078_v37  ;;  %v1292_v42 = vpop.f32.mrb[3].mxu0 }
 0x1dc   :  { %v1464_v43 = vadd.f32 %v1292_v42, %v1080_v40 }
 0x1dd   :  { %v1305_v44 = vadd.f32 %v1463_v41, %v1461_v35 }
 0x1de   :  { %v1314_v45 = vadd.f32 %v1464_v43, %v1462_v38 }
 0x1df   :  { %v1084_v46 = vpop.f32.mrb[4].mxu1 }
 0x1e0   :  { %v1296_v47 = vpop.f32.mrb[4].mxu0  ;;  %v1086_v48 = vpop.f32.mrb[5].mxu1 }
 0x1e1   :  { %v1465_v49 = vadd.f32 %v1296_v47, %v1084_v46  ;;  %v1298_v50 = vpop.f32.mrb[5].mxu0  ;;  %v1088_v51 = vpop.f32.mrb[6].mxu1 }
 0x1e2   :  { %v1466_v52 = vadd.f32 %v1298_v50, %v1086_v48  ;;  %v1300_v53 = vpop.f32.mrb[6].mxu0  ;;  %v1090_v54 = vpop.f32.mrb[7].mxu1  ;;  %v1522_v50 = vmov 1966171168  }
 0x1e3   :  { %v1306_v55 = vadd.f32 %v1465_v49, %v1305_v44  ;;  %v1467_v56 = vadd.f32 %v1300_v53, %v1088_v51  ;;  %v1302_v57 = vpop.f32.mrb[7].mxu0  ;;  %v1371_v51 = vunpack.c.l.s4 %v1522_v50 }
 0x1e4   :  { %v1315_v58 = vadd.f32 %v1466_v52, %v1314_v45  ;;  %v1468_v59 = vadd.f32 %v1302_v57, %v1090_v54 }
 0x1e5   :  { %v1307_v60 = vadd.f32 %v1467_v56, %v1306_v55  ;;  %v1372_v53 = vunpack.c.0.s8 %v1371_v51 }
 0x1e6   :  { %v1316_v61 = vadd.f32 %v1468_v59, %v1315_v58 }
 0x1e7   :  { %v1308_v62 = vrot.slane %v1307_v60, 4 }
 0x1e8   :  { %v1317_v63 = vrot.slane %v1316_v61, 4 }
 0x1e9   :  { %v1309_v0 = vadd.f32 %v1308_v62, %v1307_v60  ;;  %v1362_v60 = vld [vmem:[%s3331_s2] sm:$0x3] }
 0x1ea   :  { %v1318_v1 = vadd.f32 %v1317_v63, %v1316_v61 }
 0x1eb   :  { %v1310_v2 = vrot.slane %v1309_v0, 2 }
 0x1ec   :  { %v1319_v3 = vrot.slane %v1318_v1, 2 }
 0x1ed   :  { %v1311_v4 = vadd.f32 %v1310_v2, %v1309_v0  ;;  %v1405_v0 = vld [vmem:[%s3332_s3] sm:$0x3] }
 0x1ee   :  { %v1320_v5 = vadd.f32 %v1319_v3, %v1318_v1 }
 0x1ef   :  { %v1312_v6 = vrot.slane %v1311_v4, 1 }
 0x1f0   :  { %v1321_v7 = vrot.slane %v1320_v5, 1 }
 0x1f1   :  { %v1313_v8 = vadd.f32 %v1312_v6, %v1311_v4 }
 0x1f2   :  { %v1322_v9 = vadd.f32 %v1321_v7, %v1320_v5 }
 0x1f3   :  { %v1324_v10 = vmul.f32 0.03125, %v1313_v8 }
 0x1f4   :  { %v1325_v11 = vmul.f32 0.03125, %v1322_v9 }
 0x1f5   :  { %v1326_v12 = vsub.f32 %v1461_v35, %v1324_v10  ;;  %v3276_v13 = vsub.f32 %v1463_v41, %v1324_v10  ;;  %v3278_v14 = vsub.f32 %v1465_v49, %v1324_v10  ;;  %v3280_v15 = vsub.f32 %v1467_v56, %v1324_v10 }
 0x1f6   :  { %v1327_v16 = vsub.f32 %v1462_v38, %v1325_v11  ;;  %v1329_v17 = vsub.f32 %v1464_v43, %v1325_v11  ;;  %v1331_v18 = vsub.f32 %v1466_v52, %v1325_v11  ;;  %v1333_v19 = vsub.f32 %v1468_v59, %v1325_v11 }
 0x1f7   :  { %v1334_v20 = vmul.f32 %v1326_v12, %v1326_v12  ;;  %v1336_v21 = vmul.f32 %v3276_v13, %v3276_v13  ;;  %v1338_v24 = vmul.f32 %v3278_v14, %v3278_v14  ;;  %v1340_v28 = vmul.f32 %v3280_v15, %v3280_v15 }
 0x1f8   :  { %v1335_v22 = vmul.f32 %v1327_v16, %v1327_v16  ;;  %v1337_v23 = vmul.f32 %v1329_v17, %v1329_v17  ;;  %v1339_v26 = vmul.f32 %v1331_v18, %v1331_v18  ;;  %v1341_v30 = vmul.f32 %v1333_v19, %v1333_v19 }
 0x1f9   :  { %v1342_v25 = vadd.f32 %v1336_v21, %v1334_v20  ;;  %v1373_v52 = vlaneseq }
 0x1fa   :  { %v1351_v27 = vadd.f32 %v1337_v23, %v1335_v22 }
 0x1fb   :  { %v1343_v29 = vadd.f32 %v1342_v25, %v1338_v24  ;;  %v1374_v54 = vshrl.u32 %v1373_v52, 7 }
 0x1fc   :  { %v1352_v31 = vadd.f32 %v1351_v27, %v1339_v26 }
 0x1fd   :  { %v1344_v32 = vadd.f32 %v1343_v29, %v1340_v28  ;;  %v1375_v56 = vsub.s32 %v1372_v53, %v1374_v54  ;;  %v1389_v62 = vsub.s32 0, %v1374_v54  ;;  %v1393_v63 = vsub.s32 1, %v1374_v54 }
 0x1fe   :  { %v1353_v33 = vadd.f32 %v1352_v31, %v1341_v30 }
 0x1ff   :  { %v1345_v34 = vrot.slane %v1344_v32, 4  ;;  %v1410_v4 = vrot.slane %v1405_v0, %v1389_v62  ;;  %v1414_v5 = vrot.slane %v1405_v0, %v1393_v63 }
 0x200   :  { %v1354_v35 = vrot.slane %v1353_v33, 4 }
 0x201   :  { %v1346_v36 = vadd.f32 %v1345_v34, %v1344_v32 }
 0x202   :  { %v1355_v37 = vadd.f32 %v1354_v35, %v1353_v33 }
 0x203   :  { %v1347_v38 = vrot.slane %v1346_v36, 2 }
 0x204   :  { %v1356_v39 = vrot.slane %v1355_v37, 2 }
 0x205   :  { %v1348_v40 = vadd.f32 %v1347_v38, %v1346_v36 }
 0x206   :  { %v1357_v41 = vadd.f32 %v1356_v39, %v1355_v37 }
 0x207   :  { %v1349_v42 = vrot.slane %v1348_v40, 1 }
 0x208   :  { %v1358_v43 = vrot.slane %v1357_v41, 1 }
 0x209   :  { %v1350_v44 = vadd.f32 %v1349_v42, %v1348_v40 }
 0x20a   :  { %v1359_v45 = vadd.f32 %v1358_v43, %v1357_v41 }
 0x20b   :  { %v1360_v46 = vmul.f32 0.03125, %v1350_v44 }
 0x20c   :  { %v1361_v47 = vmul.f32 0.03125, %v1359_v45 }
 0x20d   :  { %v1363_v48 = vadd.f32 1e-05, %v1360_v46 }
 0x20e   :  { %v1364_v49 = vadd.f32 1e-05, %v1361_v47 }
 0x20f   :  { %1518 = vrsqrt.f32 %v1363_v48 }
 0x210   :  { %1520 = vrsqrt.f32 %v1364_v49 }
 0x219   :  { %v1519_v55 = vpop.eup %1518 }
 0x21a   :  { %v1521_v57 = vpop.eup %1520 }
 0x21b   :  { %v1369_v58 = vcombine.low %v1519_v55, %v1521_v57 }
 0x21d   :  { %v1376_v59 = vrot.slane %v1369_v58, %v1375_v56 }
 0x21f   :  { %v1383_v61 = vrot.slane %v1376_v59, %v1375_v56 }
 0x221   :  { %v1385_v1 = vmul.f32 %v1383_v61, %v1362_v60 }
 0x223   :  { %v1390_v2 = vrot.slane %v1385_v1, %v1389_v62  ;;  %v1394_v3 = vrot.slane %v1385_v1, %v1393_v63 }
 0x225   :  { %v1397_v6 = vmul.f32 %v1390_v2, %v1326_v12  ;;  %v1398_v7 = vmul.f32 %v1394_v3, %v1327_v16  ;;  %v1399_v8 = vmul.f32 %v1390_v2, %v3276_v13  ;;  %v1400_v9 = vmul.f32 %v1394_v3, %v1329_v17 }
 0x226   :  { %v1401_v10 = vmul.f32 %v1390_v2, %v3278_v14  ;;  %v1402_v11 = vmul.f32 %v1394_v3, %v1331_v18  ;;  %v1403_v20 = vmul.f32 %v1390_v2, %v3280_v15  ;;  %v1404_v21 = vmul.f32 %v1394_v3, %v1333_v19 }
 0x227   :  { %v1417_v22 = vadd.f32 %v1410_v4, %v1397_v6  ;;  %v1418_v23 = vadd.f32 %v1414_v5, %v1398_v7  ;;  %v1419_v24 = vadd.f32 %v1410_v4, %v1399_v8  ;;  %v1420_v25 = vadd.f32 %v1414_v5, %v1400_v9 }
 0x228   :  { %v1421_v26 = vadd.f32 %v1410_v4, %v1401_v10  ;;  %v1422_v27 = vadd.f32 %v1414_v5, %v1402_v11  ;;  %v1423_v28 = vadd.f32 %v1410_v4, %v1403_v20  ;;  %v1424_v29 = vadd.f32 %v1414_v5, %v1404_v21 }
 0x229   :  { %vm1425_vm0 = vcmp.gt.f32.partialorder %v1417_v22, 0.0  ;;  %vm1426_vm1 = vcmp.gt.f32.partialorder %v1418_v23, 0.0  ;;  %vm1427_vm2 = vcmp.gt.f32.partialorder %v1419_v24, 0.0  ;;  %vm1428_vm3 = vcmp.gt.f32.partialorder %v1420_v25, 0.0 }
 0x22a   :  { %vm1429_vm4 = vcmp.gt.f32.partialorder %v1421_v26, 0.0  ;;  %vm1430_vm5 = vcmp.gt.f32.partialorder %v1422_v27, 0.0  ;;  %vm1431_vm6 = vcmp.gt.f32.partialorder %v1423_v28, 0.0  ;;  %vm1432_vm7 = vcmp.gt.f32.partialorder %v1424_v29, 0.0 }
 0x22b   :  { %v1433_v12 = vmul.f32 0.2, %v1417_v22  ;;  %v1434_v13 = vmul.f32 0.2, %v1418_v23  ;;  %v1435_v14 = vmul.f32 0.2, %v1419_v24 }
 0x22c   :  { %v1436_v15 = vmul.f32 0.2, %v1420_v25  ;;  %v1437_v16 = vmul.f32 0.2, %v1421_v26  ;;  %v1438_v17 = vmul.f32 0.2, %v1422_v27 }
 0x22d   :  { %v1439_v18 = vmul.f32 0.2, %v1423_v28  ;;  %v1440_v19 = vmul.f32 0.2, %v1424_v29  ;;  %v1441_v30 = vsel %vm1425_vm0, %v1417_v22, %v1433_v12  ;;  %v1442_v31 = vsel %vm1426_vm1, %v1418_v23, %v1434_v13 }
 0x22e   :  { %v1443_v32 = vsel %vm1427_vm2, %v1419_v24, %v1435_v14  ;;  %v1444_v33 = vsel %vm1428_vm3, %v1420_v25, %v1436_v15  ;;  %v1445_v34 = vsel %vm1429_vm4, %v1421_v26, %v1437_v16  ;;  %v1446_v35 = vsel %vm1430_vm5, %v1422_v27, %v1438_v17  ;;  %1449 = vst [vmem:[%s3333_s4] sm:$0xff] %v1441_v30 }
 0x22f   :  { %1450 = vst [vmem:[%s3333_s4 + $0x8] sm:$0xff] %v1442_v31  ;;  %v1447_v36 = vsel %vm1431_vm6, %v1423_v28, %v1439_v18  ;;  %v1448_v37 = vsel %vm1432_vm7, %v1424_v29, %v1440_v19  ;;  %1451 = vst [vmem:[%s3333_s4 + $0x10] sm:$0xff] %v1443_v32 }
 0x230   :  { %1452 = vst [vmem:[%s3333_s4 + $0x18] sm:$0xff] %v1444_v33  ;;  %1453 = vst [vmem:[%s3333_s4 + $0x20] sm:$0xff] %v1445_v34 }
 0x231   :  { %1454 = vst [vmem:[%s3333_s4 + $0x28] sm:$0xff] %v1446_v35  ;;  %1455 = vst [vmem:[%s3333_s4 + $0x30] sm:$0xff] %v1447_v36 }
 0x232   :  { %1456 = vst [vmem:[%s3333_s4 + $0x38] sm:$0xff] %v1448_v37 }

</bundles_post_ra>
